<compile_context>
chip_gen: v5e
topology: v5e:2x2
jax: 0.10.0
libtpu: 0.0.40
codegen_flags: <defaults>
</compile_context>

<pallas_src>
import numpy as np
import jax
import jax.numpy as jnp
from jax import lax
from jax.experimental import pallas as pl
from jax.experimental.pallas import tpu as pltpu

HIDDEN = 128
NUM_LAYERS = 2
MAX_LENGTH = 10   # GRU batch dim (matches self.state shape (num_layers, 10, H))
VOCAB = 2
SEQ_LEN = 8


# ----------------------------- fused Pallas kernel --------------------------

def _fused_kernel(x_ref, h0_ref,
                  wih0_ref, whh0_ref, bgi0_ref, bhhn0_ref,
                  wih1_ref, whh1_ref, bgi1_ref, bhhn1_ref,
                  wlin_ref, blin_ref,
                  out_ref, hT_ref,
                  gi_scr, y0_scr, last_scr):
    """Fused 2-layer GRU + linear head.

    x_ref    : (T*B, I=2)   flattened seq-major inputs
    h0_ref   : (L, B, H)    initial hidden states
    wih*_ref : (I_l, 3H)    input weights (transposed)
    whh*_ref : (H, 3H)      recurrent weights (transposed)
    bgi*_ref : (1, 3H)      b_ih with b_hh[r,z] folded in
    bhhn*_ref: (1, H)       b_hh for the n gate (needed inside r * (gh_n + b))
    wlin_ref : (H, VOCAB)   head weight (transposed), blin_ref: (1, VOCAB)
    out_ref  : (T, VOCAB)   head output for batch row B-1 at every timestep
    hT_ref   : (L, B, H)    new hidden states
    Gate order along 3H is (r, z, n), matching PyTorch.
    """
    TB = x_ref.shape[0]
    B = h0_ref.shape[1]
    H = h0_ref.shape[2]
    T = TB // B

    # ---------- layer 0: hoisted input projection (K=2 -> VPU FMAs) ----------
    xf = x_ref[...]                                    # (T*B, 2)
    w0 = wih0_ref[...]                                 # (2, 3H)
    gi_scr[...] = (xf[:, 0:1] * w0[0:1, :]
                   + xf[:, 1:2] * w0[1:2, :]) + bgi0_ref[...]

    # ---------- layer 0 recurrence (statically unrolled) ----------
    whh0 = whh0_ref[...]                               # (H, 3H), loaded once
    bhhn0 = jnp.broadcast_to(bhhn0_ref[...], (B, H))   # broadcast hoisted
    h = h0_ref[0]                                      # (B, H)
    for t in range(T):
        gi_t = gi_scr[pl.ds(t * B, B), :]              # (B, 3H)
        gh = jnp.dot(h, whh0, preferred_element_type=jnp.float32)
        rz = jax.nn.sigmoid(gi_t[:, :2 * H] + gh[:, :2 * H])   # one EUP pass
        r = rz[:, :H]
        z = rz[:, H:]
        n = jnp.tanh(gi_t[:, 2 * H:] + r * (gh[:, 2 * H:] + bhhn0))
        h = (1.0 - z) * n + z * h
        y0_scr[pl.ds(t * B, B), :] = h
    hT_ref[0] = h

    # ---------- layer 1: hoisted input projection (single MXU matmul) --------
    gi_scr[...] = jnp.dot(y0_scr[...], wih1_ref[...],
                          preferred_element_type=jnp.float32) + bgi1_ref[...]

    # ---------- layer 1 recurrence (statically unrolled) ----------
    whh1 = whh1_ref[...]
    bhhn1 = jnp.broadcast_to(bhhn1_ref[...], (B, H))
    h = h0_ref[1]
    for t in range(T):
        gi_t = gi_scr[pl.ds(t * B, B), :]
        gh = jnp.dot(h, whh1, preferred_element_type=jnp.float32)
        rz = jax.nn.sigmoid(gi_t[:, :2 * H] + gh[:, :2 * H])
        r = rz[:, :H]
        z = rz[:, H:]
        n = jnp.tanh(gi_t[:, 2 * H:] + r * (gh[:, 2 * H:] + bhhn1))
        h = (1.0 - z) * n + z * h
        # torch: x[:, -1, :] -> keep only batch row B-1 of each timestep
        last_scr[pl.ds(t, 1), :] = h[B - 1:B, :]
    hT_ref[1] = h

    # ---------- linear head (epilogue, single masked store of (T, 2)) --------
    out_ref[...] = jnp.dot(last_scr[...], wlin_ref[...],
                           preferred_element_type=jnp.float32) + blin_ref[...]


_VMEM = pl.BlockSpec(memory_space=pltpu.MemorySpace.VMEM)


def fused_forward(x, state, gru_params, lin_w_t, lin_b):
    """x: (T, B, I) seq-major; state: (L, B, H). Returns (out (T, VOCAB), new_state)."""
    T, B, I = x.shape
    H = HIDDEN
    xf = x.reshape(T * B, I)

    args = [xf, state]
    for l in range(NUM_LAYERS):
        p = gru_params[l]
        b_ih = p['b_ih']                                   # (1, 3H)
        b_hh = p['b_hh']                                   # (1, 3H)
        # fold b_ih (all gates) + b_hh (r,z gates) into the hoisted projection
        bgi = b_ih.at[:, :2 * H].add(b_hh[:, :2 * H])
        bhh_n = b_hh[:, 2 * H:]                            # (1, H)
        args += [p['w_ih_t'], p['w_hh_t'], bgi, bhh_n]
    args += [lin_w_t, lin_b]

    out, hT = pl.pallas_call(
        _fused_kernel,
        out_shape=(jax.ShapeDtypeStruct((T, VOCAB), jnp.float32),
                   jax.ShapeDtypeStruct((NUM_LAYERS, B, H), jnp.float32)),
        in_specs=[_VMEM] * len(args),
        out_specs=(_VMEM, _VMEM),
        scratch_shapes=[
            pltpu.VMEM((T * B, 3 * H), jnp.float32),   # hoisted gate projections
            pltpu.VMEM((T * B, H), jnp.float32),       # layer-0 outputs
            pltpu.VMEM((T, H), jnp.float32),           # batch row B-1 per step
        ],
    )(*args)
    return out, hT


# ------------------------------ params / model -------------------------------

def init_params(key):
    ks = jax.random.split(key, 11)
    H = HIDDEN
    bound = 1.0 / np.sqrt(H)
    in_sizes = [VOCAB, HIDDEN]
    gru = []
    i = 0
    for l in range(NUM_LAYERS):
        I = in_sizes[l]
        w_ih = jax.random.uniform(ks[i], (3 * H, I), jnp.float32, -bound, bound); i += 1
        w_hh = jax.random.uniform(ks[i], (3 * H, H), jnp.float32, -bound, bound); i += 1
        b_ih = jax.random.uniform(ks[i], (3 * H,), jnp.float32, -bound, bound); i += 1
        b_hh = jax.random.uniform(ks[i], (3 * H,), jnp.float32, -bound, bound); i += 1
        gru.append(dict(w_ih_t=w_ih.T, w_hh_t=w_hh.T,
                        b_ih=b_ih[None, :], b_hh=b_hh[None, :]))
    w_lin = jax.random.uniform(ks[i], (VOCAB, HIDDEN), jnp.float32, -bound, bound); i += 1
    b_lin = jax.random.uniform(ks[i], (VOCAB,), jnp.float32, -bound, bound); i += 1
    state = jax.random.normal(ks[i], (NUM_LAYERS, MAX_LENGTH, HIDDEN), jnp.float32)
    return dict(gru=gru, lin_w_t=w_lin.T, lin_b=b_lin[None, :], state=state)


@jax.jit
def model_forward(params, inputs):
    return fused_forward(inputs, params['state'], params['gru'],
                         params['lin_w_t'], params['lin_b'])


# ------------------------- pure-JAX reference --------------------------------

def _gru_layer_ref(x, h0, w_ih_t, w_hh_t, b_ih, b_hh):
    H = h0.shape[1]

    def step(h, x_t):
        gi = x_t @ w_ih_t + b_ih
        gh = h @ w_hh_t + b_hh
        r = jax.nn.sigmoid(gi[:, :H] + gh[:, :H])
        z = jax.nn.sigmoid(gi[:, H:2 * H] + gh[:, H:2 * H])
        n = jnp.tanh(gi[:, 2 * H:] + r * gh[:, 2 * H:])
        h_new = (1.0 - z) * n + z * h
        return h_new, h_new

    hT, ys = lax.scan(step, h0, x)
    return ys, hT


def model_ref(params, inputs):
    x = inputs
    hTs = []
    for l in range(NUM_LAYERS):
        p = params['gru'][l]
        x, hT = _gru_layer_ref(x, params['state'][l], p['w_ih_t'], p['w_hh_t'],
                               p['b_ih'], p['b_hh'])
        hTs.append(hT)
    last = x[:, -1, :]
    return last @ params['lin_w_t'] + params['lin_b'], jnp.stack(hTs)


# ------------------------------ main -----------------------------------------

if __name__ == "__main__":
    key = jax.random.PRNGKey(0)
    k_params, k_in = jax.random.split(key)
    params = init_params(k_params)
    inputs = jax.random.normal(k_in, (SEQ_LEN, MAX_LENGTH, VOCAB), jnp.float32)

    out, new_state = model_forward(params, inputs)
    out = jax.block_until_ready(out)
    new_state = jax.block_until_ready(new_state)

    ref_out, ref_state = model_ref(params, inputs)
    np.testing.assert_allclose(np.asarray(out), np.asarray(ref_out),
                               rtol=1e-5, atol=2e-5)
    np.testing.assert_allclose(np.asarray(new_state), np.asarray(ref_state),
                               rtol=1e-5, atol=2e-5)
    assert out.shape == (SEQ_LEN, VOCAB)
    assert new_state.shape == (NUM_LAYERS, MAX_LENGTH, HIDDEN)
    print("KERNEL_OK")
</pallas_src>

<mosaic_0001>
module attributes {stable_mosaic.version = 11 : i64} {
  func.func @_fused_kernel(%arg0: memref<80x2xf32, #tpu.memory_space<vmem>>, %arg1: memref<2x10x128xf32, #tpu.memory_space<vmem>>, %arg2: memref<2x384xf32, #tpu.memory_space<vmem>>, %arg3: memref<128x384xf32, #tpu.memory_space<vmem>>, %arg4: memref<1x384xf32, #tpu.memory_space<vmem>>, %arg5: memref<1x128xf32, #tpu.memory_space<vmem>>, %arg6: memref<128x384xf32, #tpu.memory_space<vmem>>, %arg7: memref<128x384xf32, #tpu.memory_space<vmem>>, %arg8: memref<1x384xf32, #tpu.memory_space<vmem>>, %arg9: memref<1x128xf32, #tpu.memory_space<vmem>>, %arg10: memref<128x2xf32, #tpu.memory_space<vmem>>, %arg11: memref<1x2xf32, #tpu.memory_space<vmem>>, %arg12: memref<8x2xf32, #tpu.memory_space<vmem>>, %arg13: memref<2x10x128xf32, #tpu.memory_space<vmem>>, %arg14: memref<80x384xf32, #tpu.memory_space<vmem>>, %arg15: memref<80x128xf32, #tpu.memory_space<vmem>>, %arg16: memref<8x128xf32, #tpu.memory_space<vmem>>) attributes {dimension_semantics = [], scalar_prefetch = 0 : i64, scratch_operands = 3 : i64, tpu.core_type = #tpu.core_type<tc>} {
    %c0 = arith.constant 0 : index
    %c0_0 = arith.constant 0 : index
    %0 = vector.load %arg0[%c0, %c0_0] : memref<80x2xf32, #tpu.memory_space<vmem>>, vector<80x2xf32>
    %c0_1 = arith.constant 0 : index
    %c0_2 = arith.constant 0 : index
    %1 = vector.load %arg2[%c0_1, %c0_2] : memref<2x384xf32, #tpu.memory_space<vmem>>, vector<2x384xf32>
    %2 = vector.extract_strided_slice %0 {offsets = [0, 0], sizes = [80, 1], strides = [1, 1]} : vector<80x2xf32> to vector<80x1xf32>
    %3 = vector.extract_strided_slice %1 {offsets = [0, 0], sizes = [1, 384], strides = [1, 1]} : vector<2x384xf32> to vector<1x384xf32>
    %4 = vector.broadcast %2 : vector<80x1xf32> to vector<80x384xf32>
    %5 = vector.broadcast %3 : vector<1x384xf32> to vector<80x384xf32>
    %6 = arith.mulf %4, %5 : vector<80x384xf32>
    %7 = vector.extract_strided_slice %0 {offsets = [0, 1], sizes = [80, 1], strides = [1, 1]} : vector<80x2xf32> to vector<80x1xf32>
    %8 = vector.extract_strided_slice %1 {offsets = [1, 0], sizes = [1, 384], strides = [1, 1]} : vector<2x384xf32> to vector<1x384xf32>
    %9 = vector.broadcast %7 : vector<80x1xf32> to vector<80x384xf32>
    %10 = vector.broadcast %8 : vector<1x384xf32> to vector<80x384xf32>
    %11 = arith.mulf %9, %10 : vector<80x384xf32>
    %12 = arith.addf %6, %11 : vector<80x384xf32>
    %c0_3 = arith.constant 0 : index
    %c0_4 = arith.constant 0 : index
    %13 = vector.load %arg4[%c0_3, %c0_4] : memref<1x384xf32, #tpu.memory_space<vmem>>, vector<1x384xf32>
    %14 = vector.broadcast %13 : vector<1x384xf32> to vector<80x384xf32>
    %15 = arith.addf %12, %14 : vector<80x384xf32>
    %c0_5 = arith.constant 0 : index
    %c0_6 = arith.constant 0 : index
    %16 = vector.load %arg14[%c0_5, %c0_6] : memref<80x384xf32, #tpu.memory_space<vmem>>, vector<80x384xf32>
    tpu.vector_store %arg14[%c0_5, %c0_6], %15 {strides = array<i32>} : memref<80x384xf32, #tpu.memory_space<vmem>>, vector<80x384xf32>,
    %c0_7 = arith.constant 0 : index
    %c0_8 = arith.constant 0 : index
    %17 = vector.load %arg3[%c0_7, %c0_8] : memref<128x384xf32, #tpu.memory_space<vmem>>, vector<128x384xf32>
    %c0_9 = arith.constant 0 : index
    %c0_10 = arith.constant 0 : index
    %18 = vector.load %arg5[%c0_9, %c0_10] : memref<1x128xf32, #tpu.memory_space<vmem>>, vector<1x128xf32>
    %19 = vector.shape_cast %18 : vector<1x128xf32> to vector<1x128xf32>
    %20 = vector.broadcast %19 : vector<1x128xf32> to vector<10x128xf32>
    %c0_11 = arith.constant 0 : index
    %c0_12 = arith.constant 0 : index
    %c0_13 = arith.constant 0 : index
    %21 = vector.load %arg1[%c0_11, %c0_12, %c0_13] : memref<2x10x128xf32, #tpu.memory_space<vmem>>, vector<1x10x128xf32>
    %22 = vector.shape_cast %21 : vector<1x10x128xf32> to vector<10x128xf32>
    %c0_14 = arith.constant 0 : index
    %c0_15 = arith.constant 0 : index
    %23 = vector.load %arg14[%c0_14, %c0_15] : memref<80x384xf32, #tpu.memory_space<vmem>>, vector<10x384xf32>
    %cst = arith.constant dense<0.000000e+00> : vector<10x384xf32>
    %24 = tpu.matmul %22, %17, %cst {dimension_numbers = #tpu.dot_dimension_numbers<[1], [0], [0], [1], [0, 0, 1, 1], [], []>} : vector<10x128xf32>, vector<128x384xf32>, vector<10x384xf32> -> vector<10x384xf32>
    %25 = vector.extract_strided_slice %23 {offsets = [0, 0], sizes = [10, 256], strides = [1, 1]} : vector<10x384xf32> to vector<10x256xf32>
    %26 = vector.extract_strided_slice %24 {offsets = [0, 0], sizes = [10, 256], strides = [1, 1]} : vector<10x384xf32> to vector<10x256xf32>
    %27 = arith.addf %25, %26 : vector<10x256xf32>
    %28 = arith.negf %27 : vector<10x256xf32>
    %29 = math.exp %28 : vector<10x256xf32>
    %cst_16 = arith.constant 1.000000e+00 : f32
    %30 = vector.broadcast %cst_16 : f32 to vector<10x256xf32>
    %31 = arith.addf %30, %29 : vector<10x256xf32>
    %32 = arith.divf %30, %31 : vector<10x256xf32>
    %33 = vector.extract_strided_slice %32 {offsets = [0, 0], sizes = [10, 128], strides = [1, 1]} : vector<10x256xf32> to vector<10x128xf32>
    %34 = vector.extract_strided_slice %32 {offsets = [0, 128], sizes = [10, 128], strides = [1, 1]} : vector<10x256xf32> to vector<10x128xf32>
    %35 = vector.extract_strided_slice %23 {offsets = [0, 256], sizes = [10, 128], strides = [1, 1]} : vector<10x384xf32> to vector<10x128xf32>
    %36 = vector.extract_strided_slice %24 {offsets = [0, 256], sizes = [10, 128], strides = [1, 1]} : vector<10x384xf32> to vector<10x128xf32>
    %37 = arith.addf %36, %20 : vector<10x128xf32>
    %38 = arith.mulf %33, %37 : vector<10x128xf32>
    %39 = arith.addf %35, %38 : vector<10x128xf32>
    %40 = math.tanh %39 : vector<10x128xf32>
    %cst_17 = arith.constant 1.000000e+00 : f32
    %41 = vector.broadcast %cst_17 : f32 to vector<10x128xf32>
    %42 = arith.subf %41, %34 : vector<10x128xf32>
    %43 = arith.mulf %42, %40 : vector<10x128xf32>
    %44 = arith.mulf %34, %22 : vector<10x128xf32>
    %45 = arith.addf %43, %44 : vector<10x128xf32>
    %c0_18 = arith.constant 0 : index
    %c0_19 = arith.constant 0 : index
    %46 = vector.load %arg15[%c0_18, %c0_19] : memref<80x128xf32, #tpu.memory_space<vmem>>, vector<10x128xf32>
    tpu.vector_store %arg15[%c0_18, %c0_19], %45 {strides = array<i32>} : memref<80x128xf32, #tpu.memory_space<vmem>>, vector<10x128xf32>,
    %c10 = arith.constant 10 : index
    %c0_20 = arith.constant 0 : index
    %47 = vector.load %arg14[%c10, %c0_20] : memref<80x384xf32, #tpu.memory_space<vmem>>, vector<10x384xf32>
    %cst_21 = arith.constant dense<0.000000e+00> : vector<10x384xf32>
    %48 = tpu.matmul %45, %17, %cst_21 {dimension_numbers = #tpu.dot_dimension_numbers<[1], [0], [0], [1], [0, 0, 1, 1], [], []>} : vector<10x128xf32>, vector<128x384xf32>, vector<10x384xf32> -> vector<10x384xf32>
    %49 = vector.extract_strided_slice %47 {offsets = [0, 0], sizes = [10, 256], strides = [1, 1]} : vector<10x384xf32> to vector<10x256xf32>
    %50 = vector.extract_strided_slice %48 {offsets = [0, 0], sizes = [10, 256], strides = [1, 1]} : vector<10x384xf32> to vector<10x256xf32>
    %51 = arith.addf %49, %50 : vector<10x256xf32>
    %52 = arith.negf %51 : vector<10x256xf32>
    %53 = math.exp %52 : vector<10x256xf32>
    %cst_22 = arith.constant 1.000000e+00 : f32
    %54 = vector.broadcast %cst_22 : f32 to vector<10x256xf32>
    %55 = arith.addf %54, %53 : vector<10x256xf32>
    %56 = arith.divf %54, %55 : vector<10x256xf32>
    %57 = vector.extract_strided_slice %56 {offsets = [0, 0], sizes = [10, 128], strides = [1, 1]} : vector<10x256xf32> to vector<10x128xf32>
    %58 = vector.extract_strided_slice %56 {offsets = [0, 128], sizes = [10, 128], strides = [1, 1]} : vector<10x256xf32> to vector<10x128xf32>
    %59 = vector.extract_strided_slice %47 {offsets = [0, 256], sizes = [10, 128], strides = [1, 1]} : vector<10x384xf32> to vector<10x128xf32>
    %60 = vector.extract_strided_slice %48 {offsets = [0, 256], sizes = [10, 128], strides = [1, 1]} : vector<10x384xf32> to vector<10x128xf32>
    %61 = arith.addf %60, %20 : vector<10x128xf32>
    %62 = arith.mulf %57, %61 : vector<10x128xf32>
    %63 = arith.addf %59, %62 : vector<10x128xf32>
    %64 = math.tanh %63 : vector<10x128xf32>
    %cst_23 = arith.constant 1.000000e+00 : f32
    %65 = vector.broadcast %cst_23 : f32 to vector<10x128xf32>
    %66 = arith.subf %65, %58 : vector<10x128xf32>
    %67 = arith.mulf %66, %64 : vector<10x128xf32>
    %68 = arith.mulf %58, %45 : vector<10x128xf32>
    %69 = arith.addf %67, %68 : vector<10x128xf32>
    %c10_24 = arith.constant 10 : index
    %c0_25 = arith.constant 0 : index
    %70 = vector.load %arg15[%c10_24, %c0_25] : memref<80x128xf32, #tpu.memory_space<vmem>>, vector<10x128xf32>
    tpu.vector_store %arg15[%c10_24, %c0_25], %69 {strides = array<i32>} : memref<80x128xf32, #tpu.memory_space<vmem>>, vector<10x128xf32>,
    %c20 = arith.constant 20 : index
    %c0_26 = arith.constant 0 : index
    %71 = vector.load %arg14[%c20, %c0_26] : memref<80x384xf32, #tpu.memory_space<vmem>>, vector<10x384xf32>
    %cst_27 = arith.constant dense<0.000000e+00> : vector<10x384xf32>
    %72 = tpu.matmul %69, %17, %cst_27 {dimension_numbers = #tpu.dot_dimension_numbers<[1], [0], [0], [1], [0, 0, 1, 1], [], []>} : vector<10x128xf32>, vector<128x384xf32>, vector<10x384xf32> -> vector<10x384xf32>
    %73 = vector.extract_strided_slice %71 {offsets = [0, 0], sizes = [10, 256], strides = [1, 1]} : vector<10x384xf32> to vector<10x256xf32>
    %74 = vector.extract_strided_slice %72 {offsets = [0, 0], sizes = [10, 256], strides = [1, 1]} : vector<10x384xf32> to vector<10x256xf32>
    %75 = arith.addf %73, %74 : vector<10x256xf32>
    %76 = arith.negf %75 : vector<10x256xf32>
    %77 = math.exp %76 : vector<10x256xf32>
    %cst_28 = arith.constant 1.000000e+00 : f32
    %78 = vector.broadcast %cst_28 : f32 to vector<10x256xf32>
    %79 = arith.addf %78, %77 : vector<10x256xf32>
    %80 = arith.divf %78, %79 : vector<10x256xf32>
    %81 = vector.extract_strided_slice %80 {offsets = [0, 0], sizes = [10, 128], strides = [1, 1]} : vector<10x256xf32> to vector<10x128xf32>
    %82 = vector.extract_strided_slice %80 {offsets = [0, 128], sizes = [10, 128], strides = [1, 1]} : vector<10x256xf32> to vector<10x128xf32>
    %83 = vector.extract_strided_slice %71 {offsets = [0, 256], sizes = [10, 128], strides = [1, 1]} : vector<10x384xf32> to vector<10x128xf32>
    %84 = vector.extract_strided_slice %72 {offsets = [0, 256], sizes = [10, 128], strides = [1, 1]} : vector<10x384xf32> to vector<10x128xf32>
    %85 = arith.addf %84, %20 : vector<10x128xf32>
    %86 = arith.mulf %81, %85 : vector<10x128xf32>
    %87 = arith.addf %83, %86 : vector<10x128xf32>
    %88 = math.tanh %87 : vector<10x128xf32>
    %cst_29 = arith.constant 1.000000e+00 : f32
    %89 = vector.broadcast %cst_29 : f32 to vector<10x128xf32>
    %90 = arith.subf %89, %82 : vector<10x128xf32>
    %91 = arith.mulf %90, %88 : vector<10x128xf32>
    %92 = arith.mulf %82, %69 : vector<10x128xf32>
    %93 = arith.addf %91, %92 : vector<10x128xf32>
    %c20_30 = arith.constant 20 : index
    %c0_31 = arith.constant 0 : index
    %94 = vector.load %arg15[%c20_30, %c0_31] : memref<80x128xf32, #tpu.memory_space<vmem>>, vector<10x128xf32>
    tpu.vector_store %arg15[%c20_30, %c0_31], %93 {strides = array<i32>} : memref<80x128xf32, #tpu.memory_space<vmem>>, vector<10x128xf32>,
    %c30 = arith.constant 30 : index
    %c0_32 = arith.constant 0 : index
    %95 = vector.load %arg14[%c30, %c0_32] : memref<80x384xf32, #tpu.memory_space<vmem>>, vector<10x384xf32>
    %cst_33 = arith.constant dense<0.000000e+00> : vector<10x384xf32>
    %96 = tpu.matmul %93, %17, %cst_33 {dimension_numbers = #tpu.dot_dimension_numbers<[1], [0], [0], [1], [0, 0, 1, 1], [], []>} : vector<10x128xf32>, vector<128x384xf32>, vector<10x384xf32> -> vector<10x384xf32>
    %97 = vector.extract_strided_slice %95 {offsets = [0, 0], sizes = [10, 256], strides = [1, 1]} : vector<10x384xf32> to vector<10x256xf32>
    %98 = vector.extract_strided_slice %96 {offsets = [0, 0], sizes = [10, 256], strides = [1, 1]} : vector<10x384xf32> to vector<10x256xf32>
    %99 = arith.addf %97, %98 : vector<10x256xf32>
    %100 = arith.negf %99 : vector<10x256xf32>
    %101 = math.exp %100 : vector<10x256xf32>
    %cst_34 = arith.constant 1.000000e+00 : f32
    %102 = vector.broadcast %cst_34 : f32 to vector<10x256xf32>
    %103 = arith.addf %102, %101 : vector<10x256xf32>
    %104 = arith.divf %102, %103 : vector<10x256xf32>
    %105 = vector.extract_strided_slice %104 {offsets = [0, 0], sizes = [10, 128], strides = [1, 1]} : vector<10x256xf32> to vector<10x128xf32>
    %106 = vector.extract_strided_slice %104 {offsets = [0, 128], sizes = [10, 128], strides = [1, 1]} : vector<10x256xf32> to vector<10x128xf32>
    %107 = vector.extract_strided_slice %95 {offsets = [0, 256], sizes = [10, 128], strides = [1, 1]} : vector<10x384xf32> to vector<10x128xf32>
    %108 = vector.extract_strided_slice %96 {offsets = [0, 256], sizes = [10, 128], strides = [1, 1]} : vector<10x384xf32> to vector<10x128xf32>
    %109 = arith.addf %108, %20 : vector<10x128xf32>
    %110 = arith.mulf %105, %109 : vector<10x128xf32>
    %111 = arith.addf %107, %110 : vector<10x128xf32>
    %112 = math.tanh %111 : vector<10x128xf32>
    %cst_35 = arith.constant 1.000000e+00 : f32
    %113 = vector.broadcast %cst_35 : f32 to vector<10x128xf32>
    %114 = arith.subf %113, %106 : vector<10x128xf32>
    %115 = arith.mulf %114, %112 : vector<10x128xf32>
    %116 = arith.mulf %106, %93 : vector<10x128xf32>
    %117 = arith.addf %115, %116 : vector<10x128xf32>
    %c30_36 = arith.constant 30 : index
    %c0_37 = arith.constant 0 : index
    %118 = vector.load %arg15[%c30_36, %c0_37] : memref<80x128xf32, #tpu.memory_space<vmem>>, vector<10x128xf32>
    tpu.vector_store %arg15[%c30_36, %c0_37], %117 {strides = array<i32>} : memref<80x128xf32, #tpu.memory_space<vmem>>, vector<10x128xf32>,
    %c40 = arith.constant 40 : index
    %c0_38 = arith.constant 0 : index
    %119 = vector.load %arg14[%c40, %c0_38] : memref<80x384xf32, #tpu.memory_space<vmem>>, vector<10x384xf32>
    %cst_39 = arith.constant dense<0.000000e+00> : vector<10x384xf32>
    %120 = tpu.matmul %117, %17, %cst_39 {dimension_numbers = #tpu.dot_dimension_numbers<[1], [0], [0], [1], [0, 0, 1, 1], [], []>} : vector<10x128xf32>, vector<128x384xf32>, vector<10x384xf32> -> vector<10x384xf32>
    %121 = vector.extract_strided_slice %119 {offsets = [0, 0], sizes = [10, 256], strides = [1, 1]} : vector<10x384xf32> to vector<10x256xf32>
    %122 = vector.extract_strided_slice %120 {offsets = [0, 0], sizes = [10, 256], strides = [1, 1]} : vector<10x384xf32> to vector<10x256xf32>
    %123 = arith.addf %121, %122 : vector<10x256xf32>
    %124 = arith.negf %123 : vector<10x256xf32>
    %125 = math.exp %124 : vector<10x256xf32>
    %cst_40 = arith.constant 1.000000e+00 : f32
    %126 = vector.broadcast %cst_40 : f32 to vector<10x256xf32>
    %127 = arith.addf %126, %125 : vector<10x256xf32>
    %128 = arith.divf %126, %127 : vector<10x256xf32>
    %129 = vector.extract_strided_slice %128 {offsets = [0, 0], sizes = [10, 128], strides = [1, 1]} : vector<10x256xf32> to vector<10x128xf32>
    %130 = vector.extract_strided_slice %128 {offsets = [0, 128], sizes = [10, 128], strides = [1, 1]} : vector<10x256xf32> to vector<10x128xf32>
    %131 = vector.extract_strided_slice %119 {offsets = [0, 256], sizes = [10, 128], strides = [1, 1]} : vector<10x384xf32> to vector<10x128xf32>
    %132 = vector.extract_strided_slice %120 {offsets = [0, 256], sizes = [10, 128], strides = [1, 1]} : vector<10x384xf32> to vector<10x128xf32>
    %133 = arith.addf %132, %20 : vector<10x128xf32>
    %134 = arith.mulf %129, %133 : vector<10x128xf32>
    %135 = arith.addf %131, %134 : vector<10x128xf32>
    %136 = math.tanh %135 : vector<10x128xf32>
    %cst_41 = arith.constant 1.000000e+00 : f32
    %137 = vector.broadcast %cst_41 : f32 to vector<10x128xf32>
    %138 = arith.subf %137, %130 : vector<10x128xf32>
    %139 = arith.mulf %138, %136 : vector<10x128xf32>
    %140 = arith.mulf %130, %117 : vector<10x128xf32>
    %141 = arith.addf %139, %140 : vector<10x128xf32>
    %c40_42 = arith.constant 40 : index
    %c0_43 = arith.constant 0 : index
    %142 = vector.load %arg15[%c40_42, %c0_43] : memref<80x128xf32, #tpu.memory_space<vmem>>, vector<10x128xf32>
    tpu.vector_store %arg15[%c40_42, %c0_43], %141 {strides = array<i32>} : memref<80x128xf32, #tpu.memory_space<vmem>>, vector<10x128xf32>,
    %c50 = arith.constant 50 : index
    %c0_44 = arith.constant 0 : index
    %143 = vector.load %arg14[%c50, %c0_44] : memref<80x384xf32, #tpu.memory_space<vmem>>, vector<10x384xf32>
    %cst_45 = arith.constant dense<0.000000e+00> : vector<10x384xf32>
    %144 = tpu.matmul %141, %17, %cst_45 {dimension_numbers = #tpu.dot_dimension_numbers<[1], [0], [0], [1], [0, 0, 1, 1], [], []>} : vector<10x128xf32>, vector<128x384xf32>, vector<10x384xf32> -> vector<10x384xf32>
    %145 = vector.extract_strided_slice %143 {offsets = [0, 0], sizes = [10, 256], strides = [1, 1]} : vector<10x384xf32> to vector<10x256xf32>
    %146 = vector.extract_strided_slice %144 {offsets = [0, 0], sizes = [10, 256], strides = [1, 1]} : vector<10x384xf32> to vector<10x256xf32>
    %147 = arith.addf %145, %146 : vector<10x256xf32>
    %148 = arith.negf %147 : vector<10x256xf32>
    %149 = math.exp %148 : vector<10x256xf32>
    %cst_46 = arith.constant 1.000000e+00 : f32
    %150 = vector.broadcast %cst_46 : f32 to vector<10x256xf32>
    %151 = arith.addf %150, %149 : vector<10x256xf32>
    %152 = arith.divf %150, %151 : vector<10x256xf32>
    %153 = vector.extract_strided_slice %152 {offsets = [0, 0], sizes = [10, 128], strides = [1, 1]} : vector<10x256xf32> to vector<10x128xf32>
    %154 = vector.extract_strided_slice %152 {offsets = [0, 128], sizes = [10, 128], strides = [1, 1]} : vector<10x256xf32> to vector<10x128xf32>
    %155 = vector.extract_strided_slice %143 {offsets = [0, 256], sizes = [10, 128], strides = [1, 1]} : vector<10x384xf32> to vector<10x128xf32>
    %156 = vector.extract_strided_slice %144 {offsets = [0, 256], sizes = [10, 128], strides = [1, 1]} : vector<10x384xf32> to vector<10x128xf32>
    %157 = arith.addf %156, %20 : vector<10x128xf32>
    %158 = arith.mulf %153, %157 : vector<10x128xf32>
    %159 = arith.addf %155, %158 : vector<10x128xf32>
    %160 = math.tanh %159 : vector<10x128xf32>
    %cst_47 = arith.constant 1.000000e+00 : f32
    %161 = vector.broadcast %cst_47 : f32 to vector<10x128xf32>
    %162 = arith.subf %161, %154 : vector<10x128xf32>
    %163 = arith.mulf %162, %160 : vector<10x128xf32>
    %164 = arith.mulf %154, %141 : vector<10x128xf32>
    %165 = arith.addf %163, %164 : vector<10x128xf32>
    %c50_48 = arith.constant 50 : index
    %c0_49 = arith.constant 0 : index
    %166 = vector.load %arg15[%c50_48, %c0_49] : memref<80x128xf32, #tpu.memory_space<vmem>>, vector<10x128xf32>
    tpu.vector_store %arg15[%c50_48, %c0_49], %165 {strides = array<i32>} : memref<80x128xf32, #tpu.memory_space<vmem>>, vector<10x128xf32>,
    %c60 = arith.constant 60 : index
    %c0_50 = arith.constant 0 : index
    %167 = vector.load %arg14[%c60, %c0_50] : memref<80x384xf32, #tpu.memory_space<vmem>>, vector<10x384xf32>
    %cst_51 = arith.constant dense<0.000000e+00> : vector<10x384xf32>
    %168 = tpu.matmul %165, %17, %cst_51 {dimension_numbers = #tpu.dot_dimension_numbers<[1], [0], [0], [1], [0, 0, 1, 1], [], []>} : vector<10x128xf32>, vector<128x384xf32>, vector<10x384xf32> -> vector<10x384xf32>
    %169 = vector.extract_strided_slice %167 {offsets = [0, 0], sizes = [10, 256], strides = [1, 1]} : vector<10x384xf32> to vector<10x256xf32>
    %170 = vector.extract_strided_slice %168 {offsets = [0, 0], sizes = [10, 256], strides = [1, 1]} : vector<10x384xf32> to vector<10x256xf32>
    %171 = arith.addf %169, %170 : vector<10x256xf32>
    %172 = arith.negf %171 : vector<10x256xf32>
    %173 = math.exp %172 : vector<10x256xf32>
    %cst_52 = arith.constant 1.000000e+00 : f32
    %174 = vector.broadcast %cst_52 : f32 to vector<10x256xf32>
    %175 = arith.addf %174, %173 : vector<10x256xf32>
    %176 = arith.divf %174, %175 : vector<10x256xf32>
    %177 = vector.extract_strided_slice %176 {offsets = [0, 0], sizes = [10, 128], strides = [1, 1]} : vector<10x256xf32> to vector<10x128xf32>
    %178 = vector.extract_strided_slice %176 {offsets = [0, 128], sizes = [10, 128], strides = [1, 1]} : vector<10x256xf32> to vector<10x128xf32>
    %179 = vector.extract_strided_slice %167 {offsets = [0, 256], sizes = [10, 128], strides = [1, 1]} : vector<10x384xf32> to vector<10x128xf32>
    %180 = vector.extract_strided_slice %168 {offsets = [0, 256], sizes = [10, 128], strides = [1, 1]} : vector<10x384xf32> to vector<10x128xf32>
    %181 = arith.addf %180, %20 : vector<10x128xf32>
    %182 = arith.mulf %177, %181 : vector<10x128xf32>
    %183 = arith.addf %179, %182 : vector<10x128xf32>
    %184 = math.tanh %183 : vector<10x128xf32>
    %cst_53 = arith.constant 1.000000e+00 : f32
    %185 = vector.broadcast %cst_53 : f32 to vector<10x128xf32>
    %186 = arith.subf %185, %178 : vector<10x128xf32>
    %187 = arith.mulf %186, %184 : vector<10x128xf32>
    %188 = arith.mulf %178, %165 : vector<10x128xf32>
    %189 = arith.addf %187, %188 : vector<10x128xf32>
    %c60_54 = arith.constant 60 : index
    %c0_55 = arith.constant 0 : index
    %190 = vector.load %arg15[%c60_54, %c0_55] : memref<80x128xf32, #tpu.memory_space<vmem>>, vector<10x128xf32>
    tpu.vector_store %arg15[%c60_54, %c0_55], %189 {strides = array<i32>} : memref<80x128xf32, #tpu.memory_space<vmem>>, vector<10x128xf32>,
    %c70 = arith.constant 70 : index
    %c0_56 = arith.constant 0 : index
    %191 = vector.load %arg14[%c70, %c0_56] : memref<80x384xf32, #tpu.memory_space<vmem>>, vector<10x384xf32>
    %cst_57 = arith.constant dense<0.000000e+00> : vector<10x384xf32>
    %192 = tpu.matmul %189, %17, %cst_57 {dimension_numbers = #tpu.dot_dimension_numbers<[1], [0], [0], [1], [0, 0, 1, 1], [], []>} : vector<10x128xf32>, vector<128x384xf32>, vector<10x384xf32> -> vector<10x384xf32>
    %193 = vector.extract_strided_slice %191 {offsets = [0, 0], sizes = [10, 256], strides = [1, 1]} : vector<10x384xf32> to vector<10x256xf32>
    %194 = vector.extract_strided_slice %192 {offsets = [0, 0], sizes = [10, 256], strides = [1, 1]} : vector<10x384xf32> to vector<10x256xf32>
    %195 = arith.addf %193, %194 : vector<10x256xf32>
    %196 = arith.negf %195 : vector<10x256xf32>
    %197 = math.exp %196 : vector<10x256xf32>
    %cst_58 = arith.constant 1.000000e+00 : f32
    %198 = vector.broadcast %cst_58 : f32 to vector<10x256xf32>
    %199 = arith.addf %198, %197 : vector<10x256xf32>
    %200 = arith.divf %198, %199 : vector<10x256xf32>
    %201 = vector.extract_strided_slice %200 {offsets = [0, 0], sizes = [10, 128], strides = [1, 1]} : vector<10x256xf32> to vector<10x128xf32>
    %202 = vector.extract_strided_slice %200 {offsets = [0, 128], sizes = [10, 128], strides = [1, 1]} : vector<10x256xf32> to vector<10x128xf32>
    %203 = vector.extract_strided_slice %191 {offsets = [0, 256], sizes = [10, 128], strides = [1, 1]} : vector<10x384xf32> to vector<10x128xf32>
    %204 = vector.extract_strided_slice %192 {offsets = [0, 256], sizes = [10, 128], strides = [1, 1]} : vector<10x384xf32> to vector<10x128xf32>
    %205 = arith.addf %204, %20 : vector<10x128xf32>
    %206 = arith.mulf %201, %205 : vector<10x128xf32>
    %207 = arith.addf %203, %206 : vector<10x128xf32>
    %208 = math.tanh %207 : vector<10x128xf32>
    %cst_59 = arith.constant 1.000000e+00 : f32
    %209 = vector.broadcast %cst_59 : f32 to vector<10x128xf32>
    %210 = arith.subf %209, %202 : vector<10x128xf32>
    %211 = arith.mulf %210, %208 : vector<10x128xf32>
    %212 = arith.mulf %202, %189 : vector<10x128xf32>
    %213 = arith.addf %211, %212 : vector<10x128xf32>
    %c70_60 = arith.constant 70 : index
    %c0_61 = arith.constant 0 : index
    %214 = vector.load %arg15[%c70_60, %c0_61] : memref<80x128xf32, #tpu.memory_space<vmem>>, vector<10x128xf32>
    tpu.vector_store %arg15[%c70_60, %c0_61], %213 {strides = array<i32>} : memref<80x128xf32, #tpu.memory_space<vmem>>, vector<10x128xf32>,
    %c0_62 = arith.constant 0 : index
    %c0_63 = arith.constant 0 : index
    %c0_64 = arith.constant 0 : index
    %215 = vector.load %arg13[%c0_62, %c0_63, %c0_64] : memref<2x10x128xf32, #tpu.memory_space<vmem>>, vector<1x10x128xf32>
    %216 = vector.shape_cast %215 : vector<1x10x128xf32> to vector<10x128xf32>
    %217 = vector.shape_cast %213 : vector<10x128xf32> to vector<1x10x128xf32>
    tpu.vector_store %arg13[%c0_62, %c0_63, %c0_64], %217 {strides = array<i32>} : memref<2x10x128xf32, #tpu.memory_space<vmem>>, vector<1x10x128xf32>,
    %c0_65 = arith.constant 0 : index
    %c0_66 = arith.constant 0 : index
    %218 = vector.load %arg15[%c0_65, %c0_66] : memref<80x128xf32, #tpu.memory_space<vmem>>, vector<80x128xf32>
    %c0_67 = arith.constant 0 : index
    %c0_68 = arith.constant 0 : index
    %219 = vector.load %arg6[%c0_67, %c0_68] : memref<128x384xf32, #tpu.memory_space<vmem>>, vector<128x384xf32>
    %cst_69 = arith.constant dense<0.000000e+00> : vector<80x384xf32>
    %220 = tpu.matmul %218, %219, %cst_69 {dimension_numbers = #tpu.dot_dimension_numbers<[1], [0], [0], [1], [0, 0, 1, 1], [], []>} : vector<80x128xf32>, vector<128x384xf32>, vector<80x384xf32> -> vector<80x384xf32>
    %c0_70 = arith.constant 0 : index
    %c0_71 = arith.constant 0 : index
    %221 = vector.load %arg8[%c0_70, %c0_71] : memref<1x384xf32, #tpu.memory_space<vmem>>, vector<1x384xf32>
    %222 = vector.broadcast %221 : vector<1x384xf32> to vector<80x384xf32>
    %223 = arith.addf %220, %222 : vector<80x384xf32>
    %c0_72 = arith.constant 0 : index
    %c0_73 = arith.constant 0 : index
    %224 = vector.load %arg14[%c0_72, %c0_73] : memref<80x384xf32, #tpu.memory_space<vmem>>, vector<80x384xf32>
    tpu.vector_store %arg14[%c0_72, %c0_73], %223 {strides = array<i32>} : memref<80x384xf32, #tpu.memory_space<vmem>>, vector<80x384xf32>,
    %c0_74 = arith.constant 0 : index
    %c0_75 = arith.constant 0 : index
    %225 = vector.load %arg7[%c0_74, %c0_75] : memref<128x384xf32, #tpu.memory_space<vmem>>, vector<128x384xf32>
    %c0_76 = arith.constant 0 : index
    %c0_77 = arith.constant 0 : index
    %226 = vector.load %arg9[%c0_76, %c0_77] : memref<1x128xf32, #tpu.memory_space<vmem>>, vector<1x128xf32>
    %227 = vector.shape_cast %226 : vector<1x128xf32> to vector<1x128xf32>
    %228 = vector.broadcast %227 : vector<1x128xf32> to vector<10x128xf32>
    %c1 = arith.constant 1 : index
    %c0_78 = arith.constant 0 : index
    %c0_79 = arith.constant 0 : index
    %229 = vector.load %arg1[%c1, %c0_78, %c0_79] : memref<2x10x128xf32, #tpu.memory_space<vmem>>, vector<1x10x128xf32>
    %230 = vector.shape_cast %229 : vector<1x10x128xf32> to vector<10x128xf32>
    %c0_80 = arith.constant 0 : index
    %c0_81 = arith.constant 0 : index
    %231 = vector.load %arg14[%c0_80, %c0_81] : memref<80x384xf32, #tpu.memory_space<vmem>>, vector<10x384xf32>
    %cst_82 = arith.constant dense<0.000000e+00> : vector<10x384xf32>
    %232 = tpu.matmul %230, %225, %cst_82 {dimension_numbers = #tpu.dot_dimension_numbers<[1], [0], [0], [1], [0, 0, 1, 1], [], []>} : vector<10x128xf32>, vector<128x384xf32>, vector<10x384xf32> -> vector<10x384xf32>
    %233 = vector.extract_strided_slice %231 {offsets = [0, 0], sizes = [10, 256], strides = [1, 1]} : vector<10x384xf32> to vector<10x256xf32>
    %234 = vector.extract_strided_slice %232 {offsets = [0, 0], sizes = [10, 256], strides = [1, 1]} : vector<10x384xf32> to vector<10x256xf32>
    %235 = arith.addf %233, %234 : vector<10x256xf32>
    %236 = arith.negf %235 : vector<10x256xf32>
    %237 = math.exp %236 : vector<10x256xf32>
    %cst_83 = arith.constant 1.000000e+00 : f32
    %238 = vector.broadcast %cst_83 : f32 to vector<10x256xf32>
    %239 = arith.addf %238, %237 : vector<10x256xf32>
    %240 = arith.divf %238, %239 : vector<10x256xf32>
    %241 = vector.extract_strided_slice %240 {offsets = [0, 0], sizes = [10, 128], strides = [1, 1]} : vector<10x256xf32> to vector<10x128xf32>
    %242 = vector.extract_strided_slice %240 {offsets = [0, 128], sizes = [10, 128], strides = [1, 1]} : vector<10x256xf32> to vector<10x128xf32>
    %243 = vector.extract_strided_slice %231 {offsets = [0, 256], sizes = [10, 128], strides = [1, 1]} : vector<10x384xf32> to vector<10x128xf32>
    %244 = vector.extract_strided_slice %232 {offsets = [0, 256], sizes = [10, 128], strides = [1, 1]} : vector<10x384xf32> to vector<10x128xf32>
    %245 = arith.addf %244, %228 : vector<10x128xf32>
    %246 = arith.mulf %241, %245 : vector<10x128xf32>
    %247 = arith.addf %243, %246 : vector<10x128xf32>
    %248 = math.tanh %247 : vector<10x128xf32>
    %cst_84 = arith.constant 1.000000e+00 : f32
    %249 = vector.broadcast %cst_84 : f32 to vector<10x128xf32>
    %250 = arith.subf %249, %242 : vector<10x128xf32>
    %251 = arith.mulf %250, %248 : vector<10x128xf32>
    %252 = arith.mulf %242, %230 : vector<10x128xf32>
    %253 = arith.addf %251, %252 : vector<10x128xf32>
    %254 = vector.extract_strided_slice %253 {offsets = [9, 0], sizes = [1, 128], strides = [1, 1]} : vector<10x128xf32> to vector<1x128xf32>
    %c0_85 = arith.constant 0 : index
    %c0_86 = arith.constant 0 : index
    %255 = vector.load %arg16[%c0_85, %c0_86] : memref<8x128xf32, #tpu.memory_space<vmem>>, vector<1x128xf32>
    tpu.vector_store %arg16[%c0_85, %c0_86], %254 {strides = array<i32>} : memref<8x128xf32, #tpu.memory_space<vmem>>, vector<1x128xf32>,
    %c10_87 = arith.constant 10 : index
    %c0_88 = arith.constant 0 : index
    %256 = vector.load %arg14[%c10_87, %c0_88] : memref<80x384xf32, #tpu.memory_space<vmem>>, vector<10x384xf32>
    %cst_89 = arith.constant dense<0.000000e+00> : vector<10x384xf32>
    %257 = tpu.matmul %253, %225, %cst_89 {dimension_numbers = #tpu.dot_dimension_numbers<[1], [0], [0], [1], [0, 0, 1, 1], [], []>} : vector<10x128xf32>, vector<128x384xf32>, vector<10x384xf32> -> vector<10x384xf32>
    %258 = vector.extract_strided_slice %256 {offsets = [0, 0], sizes = [10, 256], strides = [1, 1]} : vector<10x384xf32> to vector<10x256xf32>
    %259 = vector.extract_strided_slice %257 {offsets = [0, 0], sizes = [10, 256], strides = [1, 1]} : vector<10x384xf32> to vector<10x256xf32>
    %260 = arith.addf %258, %259 : vector<10x256xf32>
    %261 = arith.negf %260 : vector<10x256xf32>
    %262 = math.exp %261 : vector<10x256xf32>
    %cst_90 = arith.constant 1.000000e+00 : f32
    %263 = vector.broadcast %cst_90 : f32 to vector<10x256xf32>
    %264 = arith.addf %263, %262 : vector<10x256xf32>
    %265 = arith.divf %263, %264 : vector<10x256xf32>
    %266 = vector.extract_strided_slice %265 {offsets = [0, 0], sizes = [10, 128], strides = [1, 1]} : vector<10x256xf32> to vector<10x128xf32>
    %267 = vector.extract_strided_slice %265 {offsets = [0, 128], sizes = [10, 128], strides = [1, 1]} : vector<10x256xf32> to vector<10x128xf32>
    %268 = vector.extract_strided_slice %256 {offsets = [0, 256], sizes = [10, 128], strides = [1, 1]} : vector<10x384xf32> to vector<10x128xf32>
    %269 = vector.extract_strided_slice %257 {offsets = [0, 256], sizes = [10, 128], strides = [1, 1]} : vector<10x384xf32> to vector<10x128xf32>
    %270 = arith.addf %269, %228 : vector<10x128xf32>
    %271 = arith.mulf %266, %270 : vector<10x128xf32>
    %272 = arith.addf %268, %271 : vector<10x128xf32>
    %273 = math.tanh %272 : vector<10x128xf32>
    %cst_91 = arith.constant 1.000000e+00 : f32
    %274 = vector.broadcast %cst_91 : f32 to vector<10x128xf32>
    %275 = arith.subf %274, %267 : vector<10x128xf32>
    %276 = arith.mulf %275, %273 : vector<10x128xf32>
    %277 = arith.mulf %267, %253 : vector<10x128xf32>
    %278 = arith.addf %276, %277 : vector<10x128xf32>
    %279 = vector.extract_strided_slice %278 {offsets = [9, 0], sizes = [1, 128], strides = [1, 1]} : vector<10x128xf32> to vector<1x128xf32>
    %c1_92 = arith.constant 1 : index
    %c0_93 = arith.constant 0 : index
    %280 = vector.load %arg16[%c1_92, %c0_93] : memref<8x128xf32, #tpu.memory_space<vmem>>, vector<1x128xf32>
    tpu.vector_store %arg16[%c1_92, %c0_93], %279 {strides = array<i32>} : memref<8x128xf32, #tpu.memory_space<vmem>>, vector<1x128xf32>,
    %c20_94 = arith.constant 20 : index
    %c0_95 = arith.constant 0 : index
    %281 = vector.load %arg14[%c20_94, %c0_95] : memref<80x384xf32, #tpu.memory_space<vmem>>, vector<10x384xf32>
    %cst_96 = arith.constant dense<0.000000e+00> : vector<10x384xf32>
    %282 = tpu.matmul %278, %225, %cst_96 {dimension_numbers = #tpu.dot_dimension_numbers<[1], [0], [0], [1], [0, 0, 1, 1], [], []>} : vector<10x128xf32>, vector<128x384xf32>, vector<10x384xf32> -> vector<10x384xf32>
    %283 = vector.extract_strided_slice %281 {offsets = [0, 0], sizes = [10, 256], strides = [1, 1]} : vector<10x384xf32> to vector<10x256xf32>
    %284 = vector.extract_strided_slice %282 {offsets = [0, 0], sizes = [10, 256], strides = [1, 1]} : vector<10x384xf32> to vector<10x256xf32>
    %285 = arith.addf %283, %284 : vector<10x256xf32>
    %286 = arith.negf %285 : vector<10x256xf32>
    %287 = math.exp %286 : vector<10x256xf32>
    %cst_97 = arith.constant 1.000000e+00 : f32
    %288 = vector.broadcast %cst_97 : f32 to vector<10x256xf32>
    %289 = arith.addf %288, %287 : vector<10x256xf32>
    %290 = arith.divf %288, %289 : vector<10x256xf32>
    %291 = vector.extract_strided_slice %290 {offsets = [0, 0], sizes = [10, 128], strides = [1, 1]} : vector<10x256xf32> to vector<10x128xf32>
    %292 = vector.extract_strided_slice %290 {offsets = [0, 128], sizes = [10, 128], strides = [1, 1]} : vector<10x256xf32> to vector<10x128xf32>
    %293 = vector.extract_strided_slice %281 {offsets = [0, 256], sizes = [10, 128], strides = [1, 1]} : vector<10x384xf32> to vector<10x128xf32>
    %294 = vector.extract_strided_slice %282 {offsets = [0, 256], sizes = [10, 128], strides = [1, 1]} : vector<10x384xf32> to vector<10x128xf32>
    %295 = arith.addf %294, %228 : vector<10x128xf32>
    %296 = arith.mulf %291, %295 : vector<10x128xf32>
    %297 = arith.addf %293, %296 : vector<10x128xf32>
    %298 = math.tanh %297 : vector<10x128xf32>
    %cst_98 = arith.constant 1.000000e+00 : f32
    %299 = vector.broadcast %cst_98 : f32 to vector<10x128xf32>
    %300 = arith.subf %299, %292 : vector<10x128xf32>
    %301 = arith.mulf %300, %298 : vector<10x128xf32>
    %302 = arith.mulf %292, %278 : vector<10x128xf32>
    %303 = arith.addf %301, %302 : vector<10x128xf32>
    %304 = vector.extract_strided_slice %303 {offsets = [9, 0], sizes = [1, 128], strides = [1, 1]} : vector<10x128xf32> to vector<1x128xf32>
    %c2 = arith.constant 2 : index
    %c0_99 = arith.constant 0 : index
    %305 = vector.load %arg16[%c2, %c0_99] : memref<8x128xf32, #tpu.memory_space<vmem>>, vector<1x128xf32>
    tpu.vector_store %arg16[%c2, %c0_99], %304 {strides = array<i32>} : memref<8x128xf32, #tpu.memory_space<vmem>>, vector<1x128xf32>,
    %c30_100 = arith.constant 30 : index
    %c0_101 = arith.constant 0 : index
    %306 = vector.load %arg14[%c30_100, %c0_101] : memref<80x384xf32, #tpu.memory_space<vmem>>, vector<10x384xf32>
    %cst_102 = arith.constant dense<0.000000e+00> : vector<10x384xf32>
    %307 = tpu.matmul %303, %225, %cst_102 {dimension_numbers = #tpu.dot_dimension_numbers<[1], [0], [0], [1], [0, 0, 1, 1], [], []>} : vector<10x128xf32>, vector<128x384xf32>, vector<10x384xf32> -> vector<10x384xf32>
    %308 = vector.extract_strided_slice %306 {offsets = [0, 0], sizes = [10, 256], strides = [1, 1]} : vector<10x384xf32> to vector<10x256xf32>
    %309 = vector.extract_strided_slice %307 {offsets = [0, 0], sizes = [10, 256], strides = [1, 1]} : vector<10x384xf32> to vector<10x256xf32>
    %310 = arith.addf %308, %309 : vector<10x256xf32>
    %311 = arith.negf %310 : vector<10x256xf32>
    %312 = math.exp %311 : vector<10x256xf32>
    %cst_103 = arith.constant 1.000000e+00 : f32
    %313 = vector.broadcast %cst_103 : f32 to vector<10x256xf32>
    %314 = arith.addf %313, %312 : vector<10x256xf32>
    %315 = arith.divf %313, %314 : vector<10x256xf32>
    %316 = vector.extract_strided_slice %315 {offsets = [0, 0], sizes = [10, 128], strides = [1, 1]} : vector<10x256xf32> to vector<10x128xf32>
    %317 = vector.extract_strided_slice %315 {offsets = [0, 128], sizes = [10, 128], strides = [1, 1]} : vector<10x256xf32> to vector<10x128xf32>
    %318 = vector.extract_strided_slice %306 {offsets = [0, 256], sizes = [10, 128], strides = [1, 1]} : vector<10x384xf32> to vector<10x128xf32>
    %319 = vector.extract_strided_slice %307 {offsets = [0, 256], sizes = [10, 128], strides = [1, 1]} : vector<10x384xf32> to vector<10x128xf32>
    %320 = arith.addf %319, %228 : vector<10x128xf32>
    %321 = arith.mulf %316, %320 : vector<10x128xf32>
    %322 = arith.addf %318, %321 : vector<10x128xf32>
    %323 = math.tanh %322 : vector<10x128xf32>
    %cst_104 = arith.constant 1.000000e+00 : f32
    %324 = vector.broadcast %cst_104 : f32 to vector<10x128xf32>
    %325 = arith.subf %324, %317 : vector<10x128xf32>
    %326 = arith.mulf %325, %323 : vector<10x128xf32>
    %327 = arith.mulf %317, %303 : vector<10x128xf32>
    %328 = arith.addf %326, %327 : vector<10x128xf32>
    %329 = vector.extract_strided_slice %328 {offsets = [9, 0], sizes = [1, 128], strides = [1, 1]} : vector<10x128xf32> to vector<1x128xf32>
    %c3 = arith.constant 3 : index
    %c0_105 = arith.constant 0 : index
    %330 = vector.load %arg16[%c3, %c0_105] : memref<8x128xf32, #tpu.memory_space<vmem>>, vector<1x128xf32>
    tpu.vector_store %arg16[%c3, %c0_105], %329 {strides = array<i32>} : memref<8x128xf32, #tpu.memory_space<vmem>>, vector<1x128xf32>,
    %c40_106 = arith.constant 40 : index
    %c0_107 = arith.constant 0 : index
    %331 = vector.load %arg14[%c40_106, %c0_107] : memref<80x384xf32, #tpu.memory_space<vmem>>, vector<10x384xf32>
    %cst_108 = arith.constant dense<0.000000e+00> : vector<10x384xf32>
    %332 = tpu.matmul %328, %225, %cst_108 {dimension_numbers = #tpu.dot_dimension_numbers<[1], [0], [0], [1], [0, 0, 1, 1], [], []>} : vector<10x128xf32>, vector<128x384xf32>, vector<10x384xf32> -> vector<10x384xf32>
    %333 = vector.extract_strided_slice %331 {offsets = [0, 0], sizes = [10, 256], strides = [1, 1]} : vector<10x384xf32> to vector<10x256xf32>
    %334 = vector.extract_strided_slice %332 {offsets = [0, 0], sizes = [10, 256], strides = [1, 1]} : vector<10x384xf32> to vector<10x256xf32>
    %335 = arith.addf %333, %334 : vector<10x256xf32>
    %336 = arith.negf %335 : vector<10x256xf32>
    %337 = math.exp %336 : vector<10x256xf32>
    %cst_109 = arith.constant 1.000000e+00 : f32
    %338 = vector.broadcast %cst_109 : f32 to vector<10x256xf32>
    %339 = arith.addf %338, %337 : vector<10x256xf32>
    %340 = arith.divf %338, %339 : vector<10x256xf32>
    %341 = vector.extract_strided_slice %340 {offsets = [0, 0], sizes = [10, 128], strides = [1, 1]} : vector<10x256xf32> to vector<10x128xf32>
    %342 = vector.extract_strided_slice %340 {offsets = [0, 128], sizes = [10, 128], strides = [1, 1]} : vector<10x256xf32> to vector<10x128xf32>
    %343 = vector.extract_strided_slice %331 {offsets = [0, 256], sizes = [10, 128], strides = [1, 1]} : vector<10x384xf32> to vector<10x128xf32>
    %344 = vector.extract_strided_slice %332 {offsets = [0, 256], sizes = [10, 128], strides = [1, 1]} : vector<10x384xf32> to vector<10x128xf32>
    %345 = arith.addf %344, %228 : vector<10x128xf32>
    %346 = arith.mulf %341, %345 : vector<10x128xf32>
    %347 = arith.addf %343, %346 : vector<10x128xf32>
    %348 = math.tanh %347 : vector<10x128xf32>
    %cst_110 = arith.constant 1.000000e+00 : f32
    %349 = vector.broadcast %cst_110 : f32 to vector<10x128xf32>
    %350 = arith.subf %349, %342 : vector<10x128xf32>
    %351 = arith.mulf %350, %348 : vector<10x128xf32>
    %352 = arith.mulf %342, %328 : vector<10x128xf32>
    %353 = arith.addf %351, %352 : vector<10x128xf32>
    %354 = vector.extract_strided_slice %353 {offsets = [9, 0], sizes = [1, 128], strides = [1, 1]} : vector<10x128xf32> to vector<1x128xf32>
    %c4 = arith.constant 4 : index
    %c0_111 = arith.constant 0 : index
    %355 = vector.load %arg16[%c4, %c0_111] : memref<8x128xf32, #tpu.memory_space<vmem>>, vector<1x128xf32>
    tpu.vector_store %arg16[%c4, %c0_111], %354 {strides = array<i32>} : memref<8x128xf32, #tpu.memory_space<vmem>>, vector<1x128xf32>,
    %c50_112 = arith.constant 50 : index
    %c0_113 = arith.constant 0 : index
    %356 = vector.load %arg14[%c50_112, %c0_113] : memref<80x384xf32, #tpu.memory_space<vmem>>, vector<10x384xf32>
    %cst_114 = arith.constant dense<0.000000e+00> : vector<10x384xf32>
    %357 = tpu.matmul %353, %225, %cst_114 {dimension_numbers = #tpu.dot_dimension_numbers<[1], [0], [0], [1], [0, 0, 1, 1], [], []>} : vector<10x128xf32>, vector<128x384xf32>, vector<10x384xf32> -> vector<10x384xf32>
    %358 = vector.extract_strided_slice %356 {offsets = [0, 0], sizes = [10, 256], strides = [1, 1]} : vector<10x384xf32> to vector<10x256xf32>
    %359 = vector.extract_strided_slice %357 {offsets = [0, 0], sizes = [10, 256], strides = [1, 1]} : vector<10x384xf32> to vector<10x256xf32>
    %360 = arith.addf %358, %359 : vector<10x256xf32>
    %361 = arith.negf %360 : vector<10x256xf32>
    %362 = math.exp %361 : vector<10x256xf32>
    %cst_115 = arith.constant 1.000000e+00 : f32
    %363 = vector.broadcast %cst_115 : f32 to vector<10x256xf32>
    %364 = arith.addf %363, %362 : vector<10x256xf32>
    %365 = arith.divf %363, %364 : vector<10x256xf32>
    %366 = vector.extract_strided_slice %365 {offsets = [0, 0], sizes = [10, 128], strides = [1, 1]} : vector<10x256xf32> to vector<10x128xf32>
    %367 = vector.extract_strided_slice %365 {offsets = [0, 128], sizes = [10, 128], strides = [1, 1]} : vector<10x256xf32> to vector<10x128xf32>
    %368 = vector.extract_strided_slice %356 {offsets = [0, 256], sizes = [10, 128], strides = [1, 1]} : vector<10x384xf32> to vector<10x128xf32>
    %369 = vector.extract_strided_slice %357 {offsets = [0, 256], sizes = [10, 128], strides = [1, 1]} : vector<10x384xf32> to vector<10x128xf32>
    %370 = arith.addf %369, %228 : vector<10x128xf32>
    %371 = arith.mulf %366, %370 : vector<10x128xf32>
    %372 = arith.addf %368, %371 : vector<10x128xf32>
    %373 = math.tanh %372 : vector<10x128xf32>
    %cst_116 = arith.constant 1.000000e+00 : f32
    %374 = vector.broadcast %cst_116 : f32 to vector<10x128xf32>
    %375 = arith.subf %374, %367 : vector<10x128xf32>
    %376 = arith.mulf %375, %373 : vector<10x128xf32>
    %377 = arith.mulf %367, %353 : vector<10x128xf32>
    %378 = arith.addf %376, %377 : vector<10x128xf32>
    %379 = vector.extract_strided_slice %378 {offsets = [9, 0], sizes = [1, 128], strides = [1, 1]} : vector<10x128xf32> to vector<1x128xf32>
    %c5 = arith.constant 5 : index
    %c0_117 = arith.constant 0 : index
    %380 = vector.load %arg16[%c5, %c0_117] : memref<8x128xf32, #tpu.memory_space<vmem>>, vector<1x128xf32>
    tpu.vector_store %arg16[%c5, %c0_117], %379 {strides = array<i32>} : memref<8x128xf32, #tpu.memory_space<vmem>>, vector<1x128xf32>,
    %c60_118 = arith.constant 60 : index
    %c0_119 = arith.constant 0 : index
    %381 = vector.load %arg14[%c60_118, %c0_119] : memref<80x384xf32, #tpu.memory_space<vmem>>, vector<10x384xf32>
    %cst_120 = arith.constant dense<0.000000e+00> : vector<10x384xf32>
    %382 = tpu.matmul %378, %225, %cst_120 {dimension_numbers = #tpu.dot_dimension_numbers<[1], [0], [0], [1], [0, 0, 1, 1], [], []>} : vector<10x128xf32>, vector<128x384xf32>, vector<10x384xf32> -> vector<10x384xf32>
    %383 = vector.extract_strided_slice %381 {offsets = [0, 0], sizes = [10, 256], strides = [1, 1]} : vector<10x384xf32> to vector<10x256xf32>
    %384 = vector.extract_strided_slice %382 {offsets = [0, 0], sizes = [10, 256], strides = [1, 1]} : vector<10x384xf32> to vector<10x256xf32>
    %385 = arith.addf %383, %384 : vector<10x256xf32>
    %386 = arith.negf %385 : vector<10x256xf32>
    %387 = math.exp %386 : vector<10x256xf32>
    %cst_121 = arith.constant 1.000000e+00 : f32
    %388 = vector.broadcast %cst_121 : f32 to vector<10x256xf32>
    %389 = arith.addf %388, %387 : vector<10x256xf32>
    %390 = arith.divf %388, %389 : vector<10x256xf32>
    %391 = vector.extract_strided_slice %390 {offsets = [0, 0], sizes = [10, 128], strides = [1, 1]} : vector<10x256xf32> to vector<10x128xf32>
    %392 = vector.extract_strided_slice %390 {offsets = [0, 128], sizes = [10, 128], strides = [1, 1]} : vector<10x256xf32> to vector<10x128xf32>
    %393 = vector.extract_strided_slice %381 {offsets = [0, 256], sizes = [10, 128], strides = [1, 1]} : vector<10x384xf32> to vector<10x128xf32>
    %394 = vector.extract_strided_slice %382 {offsets = [0, 256], sizes = [10, 128], strides = [1, 1]} : vector<10x384xf32> to vector<10x128xf32>
    %395 = arith.addf %394, %228 : vector<10x128xf32>
    %396 = arith.mulf %391, %395 : vector<10x128xf32>
    %397 = arith.addf %393, %396 : vector<10x128xf32>
    %398 = math.tanh %397 : vector<10x128xf32>
    %cst_122 = arith.constant 1.000000e+00 : f32
    %399 = vector.broadcast %cst_122 : f32 to vector<10x128xf32>
    %400 = arith.subf %399, %392 : vector<10x128xf32>
    %401 = arith.mulf %400, %398 : vector<10x128xf32>
    %402 = arith.mulf %392, %378 : vector<10x128xf32>
    %403 = arith.addf %401, %402 : vector<10x128xf32>
    %404 = vector.extract_strided_slice %403 {offsets = [9, 0], sizes = [1, 128], strides = [1, 1]} : vector<10x128xf32> to vector<1x128xf32>
    %c6 = arith.constant 6 : index
    %c0_123 = arith.constant 0 : index
    %405 = vector.load %arg16[%c6, %c0_123] : memref<8x128xf32, #tpu.memory_space<vmem>>, vector<1x128xf32>
    tpu.vector_store %arg16[%c6, %c0_123], %404 {strides = array<i32>} : memref<8x128xf32, #tpu.memory_space<vmem>>, vector<1x128xf32>,
    %c70_124 = arith.constant 70 : index
    %c0_125 = arith.constant 0 : index
    %406 = vector.load %arg14[%c70_124, %c0_125] : memref<80x384xf32, #tpu.memory_space<vmem>>, vector<10x384xf32>
    %cst_126 = arith.constant dense<0.000000e+00> : vector<10x384xf32>
    %407 = tpu.matmul %403, %225, %cst_126 {dimension_numbers = #tpu.dot_dimension_numbers<[1], [0], [0], [1], [0, 0, 1, 1], [], []>} : vector<10x128xf32>, vector<128x384xf32>, vector<10x384xf32> -> vector<10x384xf32>
    %408 = vector.extract_strided_slice %406 {offsets = [0, 0], sizes = [10, 256], strides = [1, 1]} : vector<10x384xf32> to vector<10x256xf32>
    %409 = vector.extract_strided_slice %407 {offsets = [0, 0], sizes = [10, 256], strides = [1, 1]} : vector<10x384xf32> to vector<10x256xf32>
    %410 = arith.addf %408, %409 : vector<10x256xf32>
    %411 = arith.negf %410 : vector<10x256xf32>
    %412 = math.exp %411 : vector<10x256xf32>
    %cst_127 = arith.constant 1.000000e+00 : f32
    %413 = vector.broadcast %cst_127 : f32 to vector<10x256xf32>
    %414 = arith.addf %413, %412 : vector<10x256xf32>
    %415 = arith.divf %413, %414 : vector<10x256xf32>
    %416 = vector.extract_strided_slice %415 {offsets = [0, 0], sizes = [10, 128], strides = [1, 1]} : vector<10x256xf32> to vector<10x128xf32>
    %417 = vector.extract_strided_slice %415 {offsets = [0, 128], sizes = [10, 128], strides = [1, 1]} : vector<10x256xf32> to vector<10x128xf32>
    %418 = vector.extract_strided_slice %406 {offsets = [0, 256], sizes = [10, 128], strides = [1, 1]} : vector<10x384xf32> to vector<10x128xf32>
    %419 = vector.extract_strided_slice %407 {offsets = [0, 256], sizes = [10, 128], strides = [1, 1]} : vector<10x384xf32> to vector<10x128xf32>
    %420 = arith.addf %419, %228 : vector<10x128xf32>
    %421 = arith.mulf %416, %420 : vector<10x128xf32>
    %422 = arith.addf %418, %421 : vector<10x128xf32>
    %423 = math.tanh %422 : vector<10x128xf32>
    %cst_128 = arith.constant 1.000000e+00 : f32
    %424 = vector.broadcast %cst_128 : f32 to vector<10x128xf32>
    %425 = arith.subf %424, %417 : vector<10x128xf32>
    %426 = arith.mulf %425, %423 : vector<10x128xf32>
    %427 = arith.mulf %417, %403 : vector<10x128xf32>
    %428 = arith.addf %426, %427 : vector<10x128xf32>
    %429 = vector.extract_strided_slice %428 {offsets = [9, 0], sizes = [1, 128], strides = [1, 1]} : vector<10x128xf32> to vector<1x128xf32>
    %c7 = arith.constant 7 : index
    %c0_129 = arith.constant 0 : index
    %430 = vector.load %arg16[%c7, %c0_129] : memref<8x128xf32, #tpu.memory_space<vmem>>, vector<1x128xf32>
    tpu.vector_store %arg16[%c7, %c0_129], %429 {strides = array<i32>} : memref<8x128xf32, #tpu.memory_space<vmem>>, vector<1x128xf32>,
    %c1_130 = arith.constant 1 : index
    %c0_131 = arith.constant 0 : index
    %c0_132 = arith.constant 0 : index
    %431 = vector.load %arg13[%c1_130, %c0_131, %c0_132] : memref<2x10x128xf32, #tpu.memory_space<vmem>>, vector<1x10x128xf32>
    %432 = vector.shape_cast %431 : vector<1x10x128xf32> to vector<10x128xf32>
    %433 = vector.shape_cast %428 : vector<10x128xf32> to vector<1x10x128xf32>
    tpu.vector_store %arg13[%c1_130, %c0_131, %c0_132], %433 {strides = array<i32>} : memref<2x10x128xf32, #tpu.memory_space<vmem>>, vector<1x10x128xf32>,
    %c0_133 = arith.constant 0 : index
    %c0_134 = arith.constant 0 : index
    %434 = vector.load %arg16[%c0_133, %c0_134] : memref<8x128xf32, #tpu.memory_space<vmem>>, vector<8x128xf32>
    %c0_135 = arith.constant 0 : index
    %c0_136 = arith.constant 0 : index
    %435 = vector.load %arg10[%c0_135, %c0_136] : memref<128x2xf32, #tpu.memory_space<vmem>>, vector<128x2xf32>
    %cst_137 = arith.constant dense<0.000000e+00> : vector<8x2xf32>
    %436 = tpu.matmul %434, %435, %cst_137 {dimension_numbers = #tpu.dot_dimension_numbers<[1], [0], [0], [1], [0, 0, 1, 1], [], []>} : vector<8x128xf32>, vector<128x2xf32>, vector<8x2xf32> -> vector<8x2xf32>
    %c0_138 = arith.constant 0 : index
    %c0_139 = arith.constant 0 : index
    %437 = vector.load %arg11[%c0_138, %c0_139] : memref<1x2xf32, #tpu.memory_space<vmem>>, vector<1x2xf32>
    %438 = vector.broadcast %437 : vector<1x2xf32> to vector<8x2xf32>
    %439 = arith.addf %436, %438 : vector<8x2xf32>
    %c0_140 = arith.constant 0 : index
    %c0_141 = arith.constant 0 : index
    %440 = vector.load %arg12[%c0_140, %c0_141] : memref<8x2xf32, #tpu.memory_space<vmem>>, vector<8x2xf32>
    tpu.vector_store %arg12[%c0_140, %c0_141], %439 {strides = array<i32>} : memref<8x2xf32, #tpu.memory_space<vmem>>, vector<8x2xf32>,
    return
  }
}

</mosaic_0001>

<bundles_post_ra>
// kernel: model_forward.1
= control target key start
LH: loop header
LB: loop body
LE: loop exit
PB: predicated region body
PF: predicated region fallthrough
CT: control target
= control target key end

     0   :  { %19 = vsyncpa [#allocation6], 0  ;;  %s6945_s0 = inlined_call_operand.vmem [shape: f32[80,2], index: 0, kind: input, shape index: {}]   ;;  %s6946_s1 = inlined_call_operand.vmem [shape: f32[2,10,128], index: 1, kind: input, shape index: {}]   ;;  %s6947_s2 = inlined_call_operand.vmem [shape: f32[2,384], index: 2, kind: input, shape index: {}]   ;;  %s6948_s3 = inlined_call_operand.hbm [shape: f32[128,384], index: 3, kind: input, shape index: {}]   ;;  %s6949_s4 = inlined_call_operand.vmem [shape: f32[1,384], index: 4, kind: input, shape index: {}]   ;;  %s6950_s5 = inlined_call_operand.vmem [shape: f32[1,128], index: 5, kind: input, shape index: {}]   ;;  %s6951_s6 = inlined_call_operand.hbm [shape: f32[128,384], index: 6, kind: input, shape index: {}]   ;;  %s6952_s7 = inlined_call_operand.hbm [shape: f32[128,384], index: 7, kind: input, shape index: {}]   ;;  %s6953_s8 = inlined_call_operand.vmem [shape: f32[1,384], index: 8, kind: input, shape index: {}]   ;;  %s6954_s9 = inlined_call_operand.vmem [shape: f32[1,128], index: 9, kind: input, shape index: {}]   ;;  %s6955_s10 = inlined_call_operand.vmem [shape: f32[128,2], index: 10, kind: input, shape index: {}]   ;;  %s6956_s11 = inlined_call_operand.vmem [shape: f32[1,2], index: 11, kind: input, shape index: {}]   ;;  %s6957_s12 = inlined_call_operand.vmem [shape: f32[8,2], index: 12, kind: output, shape index: {0}]   ;;  %s6958_s13 = inlined_call_operand.vmem [shape: f32[2,10,128], index: 13, kind: output, shape index: {1}]  }
   0x1   :  { %20 = vsyncpa [#allocation8], 0  ;;  %s48_s27 = sshll.u32 %s6951_s6, 4  ;;  %s4597_s28 = smov [#allocation7]   ;;  %s49_s27 = int_to_ptr.hbm [resolvable:$true] %s48_s27 }
   0x2   :  { %s50_s29 = sshll.u32 %s4597_s28, 4  ;;  %s31_s15 = sshll.u32 %s6948_s3, 4  ;;  %s51_s29 = int_to_ptr.vmem [resolvable:$true] %s50_s29  ;;  %s32_s15 = int_to_ptr.hbm [resolvable:$true] %s31_s15 }
   0x3   :  { %s4598_s16 = smov 384   ;;  %s4599_s17 = smov 24  }
   0x4   :  { %56 = dma.hbm_to_vmem [thread:$0]  %s49_s27, 6144, %s51_s29, [#allocation8], %s4598_s16, %s4598_s16, %s4599_s17  }
   0x5   :  { %s4600_s18 = smov [#allocation5]   ;;  %s61_s22 = sshll.u32 %s6952_s7, 4  ;;  %s62_s22 = int_to_ptr.hbm [resolvable:$true] %s61_s22 }
   0x6   :  { %s33_s19 = sshll.u32 %s4600_s18, 4  ;;  %s4601_s6 = smov [#allocation9]   ;;  %s34_s19 = int_to_ptr.vmem [resolvable:$true] %s33_s19 }
   0x7   :  { %39 = dma.hbm_to_vmem [thread:$0]  %s32_s15, 6144, %s34_s19, [#allocation6], %s4598_s16, %s4598_s16, %s4599_s17  }
   0x8   :  { %s63_s23 = sshll.u32 %s4601_s6, 4  ;;  %s64_s23 = int_to_ptr.vmem [resolvable:$true] %s63_s23 }
   0x9   :  { %69 = dma.hbm_to_vmem [thread:$0]  %s62_s22, 6144, %s64_s23, [#allocation8], %s4598_s16, %s4598_s16, %s4599_s17  }
   0xa   :  { %4593 = dma.done.wait [#allocation6], 6144  }
   0xb   :  { %4594 = vsyncadd [#allocation6], 4294961152 }
   0xc   :  { %4595 = dma.done.wait [#allocation8], 12288  }
   0xd   :  { %4596 = vsyncadd [#allocation8], 4294955008  ;;  %v6959_v0 = vmov 0   ;;  %v4686_v1 = vld [vmem:[#allocation5 + $0x168] sm:$0xff]  ;;  %v4688_v2 = vld [vmem:[#allocation5 + $0x170] sm:$0xff]  ;;  %v6961_v24 = vmov 1  }
   0xe   :  { %4016 = vset.pattern.permute.xlu0 %v6959_v0  ;;  %4018 = vset.pattern.permute.xlu1 %v6959_v0  ;;  %v4690_v3 = vld [vmem:[#allocation5 + $0x150] sm:$0xff]  ;;  %v4694_v4 = vld [vmem:[#allocation5 + $0x158] sm:$0xff]  ;;  %v4698_v6 = vld [vmem:[#allocation5 + $0x140] sm:$0xff] }
   0xf   :  { %4020 = vset.pattern.permute.xlu2 %v6959_v0  ;;  %428 = vmatpush.msra.mxu0 %v4686_v1  ;;  %v4696_v5 = vld [vmem:[#allocation5 + $0x138] sm:$0xff]  ;;  %v4703_v7 = vld [vmem:[#allocation5 + $0x120] sm:$0xff]  ;;  %v4705_v8 = vld [vmem:[#allocation5 + $0x128] sm:$0xff] }
  0x10   :  { %451 = vmatpush.msra.mxu1 %v4688_v2  ;;  %601 = vmatpush.msra.mxu3 %v4686_v1  ;;  %v90_v9 = vld [vmem:[%s6945_s0] sm:$0xff]  ;;  %v4713_v10 = vld [vmem:[#allocation5 + $0x108] sm:$0xff]  ;;  %v4715_v11 = vld [vmem:[#allocation5 + $0x110] sm:$0xff] }
  0x11   :  { %429 = vmatpush.msra.mxu0 %v4690_v3  ;;  %103 = vperm.xlu0 %4016, %v90_v9   ;;  %v91_v12 = vld [vmem:[%s6945_s0 + $0x8] sm:$0xff]  ;;  %v4723_v13 = vld [vmem:[#allocation5 + $0xf0] sm:$0xff]  ;;  %v4725_v14 = vld [vmem:[#allocation5 + $0xf8] sm:$0xff] }
  0x12   :  { %452 = vmatpush.msra.mxu1 %v4694_v4  ;;  %602 = vmatpush.msra.mxu3 %v4690_v3  ;;  %v4727_v15 = vld [vmem:[#allocation5 + $0x178] sm:$0xff]  ;;  %v4732_v16 = vld [vmem:[#allocation5 + $0x160] sm:$0xff]  ;;  %v4742_v19 = vld [vmem:[#allocation5 + $0x148] sm:$0xff] }
  0x13   :  { %430 = vmatpush.msra.mxu0 %v4696_v5  ;;  %108 = vperm.xlu1 %4018, %v91_v12   ;;  %v4734_v17 = vld [vmem:[#allocation5 + $0xd8] sm:$0xff]  ;;  %v4736_v18 = vld [vmem:[#allocation5 + $0xe0] sm:$0xff]  ;;  %v4746_v21 = vld [vmem:[#allocation5 + $0xc8] sm:$0xff] }
  0x14   :  { %453 = vmatpush.msra.mxu1 %v4698_v6  ;;  %603 = vmatpush.msra.mxu3 %v4696_v5  ;;  %v4744_v20 = vld [vmem:[#allocation5 + $0xc0] sm:$0xff]  ;;  %v4752_v22 = vld [vmem:[#allocation5 + $0xa8] sm:$0xff]  ;;  %v4754_v23 = vld [vmem:[#allocation5 + $0xb0] sm:$0xff] }
  0x15   :  { %431 = vmatpush.msra.mxu0 %v4703_v7  ;;  %474 = vmatpush.msra.mxu2 %v4727_v15  ;;  %v4760_v25 = vld [vmem:[#allocation5 + $0x130] sm:$0xff]  ;;  %v4764_v27 = vld [vmem:[#allocation5 + $0x98] sm:$0xff]  ;;  %v4773_v30 = vld [vmem:[#allocation5 + $0x80] sm:$0xff] }
  0x16   :  { %454 = vmatpush.msra.mxu1 %v4705_v8  ;;  %604 = vmatpush.msra.mxu3 %v4703_v7  ;;  %v4762_v26 = vld [vmem:[#allocation5 + $0x90] sm:$0xff]  ;;  %v4769_v28 = vld [vmem:[#allocation5 + $0x118] sm:$0xff]  ;;  %v4778_v31 = vld [vmem:[#allocation5 + $0x100] sm:$0xff] }
  0x17   :  { %432 = vmatpush.msra.mxu0 %v4713_v10  ;;  %475 = vmatpush.msra.mxu2 %v4732_v16  ;;  %v4771_v29 = vld [vmem:[#allocation5 + $0x78] sm:$0xff]  ;;  %v4780_v32 = vld [vmem:[#allocation5 + $0x60] sm:$0xff]  ;;  %v4782_v33 = vld [vmem:[#allocation5 + $0x68] sm:$0xff] }
  0x18   :  { %455 = vmatpush.msra.mxu1 %v4715_v11  ;;  %605 = vmatpush.msra.mxu3 %v4713_v10  ;;  %7068 = vst [vmem:[#allocation12_spill] sm:$0xff] %v4780_v32  ;;  %v4788_v34 = vld [vmem:[#allocation5 + $0xe8] sm:$0xff]  ;;  %v4792_v36 = vld [vmem:[#allocation5 + $0x50] sm:$0xff]  ;;  %v4802_v39 = vld [vmem:[#allocation5 + $0x38] sm:$0xff] }
  0x19   :  { %433 = vmatpush.msra.mxu0 %v4723_v13  ;;  %4017 = vset.pattern.permute.xlu0 %v6961_v24  ;;  %7069 = vst [vmem:[#allocation13_spill] sm:$0xff] %v4782_v33  ;;  %v4790_v35 = vld [vmem:[#allocation5 + $0x48] sm:$0xff]  ;;  %v4798_v37 = vld [vmem:[#allocation5 + $0xd0] sm:$0xff]  ;;  %v4808_v40 = vld [vmem:[#allocation5 + $0xb8] sm:$0xff] }
  0x1a   :  { %456 = vmatpush.msra.mxu1 %v4725_v14  ;;  %606 = vmatpush.msra.mxu3 %v4723_v13  ;;  %7070 = vst [vmem:[#allocation14_spill] sm:$0xff] %v4790_v35  ;;  %v4800_v38 = vld [vmem:[#allocation5 + $0x30] sm:$0xff]  ;;  %v4810_v41 = vld [vmem:[#allocation5 + $0x18] sm:$0xff]  ;;  %v4812_v42 = vld [vmem:[#allocation5 + $0x20] sm:$0xff] }
  0x1b   :  { %434 = vmatpush.msra.mxu0 %v4734_v17  ;;  %476 = vmatpush.msra.mxu2 %v4742_v19  ;;  %7071 = vst [vmem:[#allocation15_spill] sm:$0xff] %v4792_v36  ;;  %v4818_v43 = vld [vmem:[#allocation5 + $0xa0] sm:$0xff]  ;;  %v4822_v45 = vld [vmem:[#allocation5 + $0x8] sm:$0xff]  ;;  %v4831_v46 = vld [vmem:[%s6946_s1] sm:$0xff] }
  0x1c   :  { %457 = vmatpush.msra.mxu1 %v4736_v18  ;;  %192 = vperm.xlu0 %4017, %v90_v9   ;;  %7072 = vst [vmem:[#allocation16_spill] sm:$0xff] %v4800_v38  ;;  %v4820_v44 = vld [vmem:[#allocation5] sm:$0xff]  ;;  %v4834_v47 = vld [vmem:[#allocation5 + $0x88] sm:$0xff]  ;;  %v4841_v48 = vld [vmem:[#allocation5 + $0x70] sm:$0xff] }
  0x1d   :  { %435 = vmatpush.msra.mxu0 %v4744_v20  ;;  %4019 = vset.pattern.permute.xlu1 %v6961_v24  ;;  %7073 = vst [vmem:[#allocation17_spill] sm:$0xff] %v4802_v39  ;;  %v4845_v49 = vld [vmem:[#allocation5 + $0x58] sm:$0xff]  ;;  %v4851_v50 = vld [vmem:[#allocation5 + $0x40] sm:$0xff]  ;;  %v4862_v52 = vld [vmem:[#allocation5 + $0x28] sm:$0xff] }
  0x1e   :  { %458 = vmatpush.msra.mxu1 %v4746_v21  ;;  %196 = vperm.xlu1 %4019, %v91_v12   ;;  %7074 = vst [vmem:[#allocation18_spill] sm:$0xff] %v4810_v41  ;;  %v4858_v51 = vld [vmem:[%s6946_s1 + $0x8] sm:$0x3]  ;;  %v4870_v53 = vld [vmem:[#allocation5 + $0x10] sm:$0xff]  ;;  %v100_v54 = vld [vmem:[%s6947_s2] sm:$0x3f] }
  0x1f   :  { %436 = vmatpush.msra.mxu0 %v4752_v22  ;;  %477 = vmatpush.msra.mxu2 %v4760_v25  ;;  %7075 = vst [vmem:[#allocation19_spill] sm:$0xff] %v4812_v42  ;;  %v152_v56 = vperm.slane %v100_v54, 0  ;;  %v153_v57 = vperm.slane %v100_v54, 2  ;;  %v154_v58 = vperm.slane %v100_v54, 4  ;;  %v231_v59 = vperm.slane %v100_v54, 1 }
  0x20   :  { %459 = vmatpush.msra.mxu1 %v4754_v23  ;;  %607 = vmatpush.msra.mxu3 %v4734_v17  ;;  %7076 = vst [vmem:[#allocation20_spill] sm:$0xff] %v4820_v44  ;;  %v232_v60 = vperm.slane %v100_v54, 3  ;;  %v233_v61 = vperm.slane %v100_v54, 5 }
  0x21   :  { %437 = vmatpush.msra.mxu0 %v4762_v26  ;;  %478 = vmatpush.msra.mxu2 %v4769_v28  ;;  %7077 = vst [vmem:[#allocation21_spill] sm:$0xff] %v4822_v45  ;;  %v4987_v62 = vperm.slane %v152_v56, 0  ;;  %v4989_v63 = vperm.slane %v153_v57, 0  ;;  %v4991_v9 = vperm.slane %v154_v58, 0  ;;  %v4993_v12 = vperm.slane %v231_v59, 1 }
  0x22   :  { %460 = vmatpush.msra.mxu1 %v4764_v27  ;;  %608 = vmatpush.msra.mxu3 %v4744_v20  ;;  %7078 = vst [vmem:[#allocation22_spill] sm:$0xff] %v4845_v49  ;;  %v4997_v24 = vperm.slane %v233_v61, 1 }
  0x23   :  { %438 = vmatpush.msra.mxu0 %v4771_v29  ;;  %479 = vmatpush.msra.mxu2 %v4778_v31  ;;  %7079 = vst [vmem:[#allocation23_spill] sm:$0xff] %v4851_v50 }
  0x24   :  { %461 = vmatpush.msra.mxu1 %v4773_v30  ;;  %609 = vmatpush.msra.mxu3 %v4752_v22  ;;  %7080 = vst [vmem:[#allocation24_spill] sm:$0xff] %v4862_v52 }
  0x25   :  { %439 = vmatpush.msra.mxu0 %v4780_v32  ;;  %480 = vmatpush.msra.mxu2 %v4788_v34  ;;  %7081 = vst [vmem:[#allocation25_spill] sm:$0xff] %v4870_v53 }
  0x26   :  { %462 = vmatpush.msra.mxu1 %v4782_v33  ;;  %610 = vmatpush.msra.mxu3 %v4762_v26  ;;  %7082 = vst [vmem:[#allocation26_spill] sm:$0xff] %v4987_v62 }
  0x27   :  { %440 = vmatpush.msra.mxu0 %v4790_v35  ;;  %481 = vmatpush.msra.mxu2 %v4798_v37  ;;  %7083 = vst [vmem:[#allocation27_spill] sm:$0xff] %v4989_v63 }
  0x28   :  { %463 = vmatpush.msra.mxu1 %v4792_v36  ;;  %611 = vmatpush.msra.mxu3 %v4771_v29  ;;  %7084 = vst [vmem:[#allocation28_spill] sm:$0xff] %v4991_v9 }
  0x29   :  { %441 = vmatpush.msra.mxu0 %v4800_v38  ;;  %482 = vmatpush.msra.mxu2 %v4808_v40  ;;  %7085 = vst [vmem:[#allocation29_spill] sm:$0xff] %v4993_v12 }
  0x2a   :  { %464 = vmatpush.msra.mxu1 %v4802_v39  ;;  %612 = vmatpush.msra.mxu3 %v4780_v32  ;;  %7087 = vst [vmem:[#allocation31_spill] sm:$0xff] %v4997_v24 }
  0x2b   :  { %442 = vmatpush.msra.mxu0 %v4810_v41  ;;  %483 = vmatpush.msra.mxu2 %v4818_v43 }
  0x2c   :  { %465 = vmatpush.msra.mxu1 %v4812_v42  ;;  %613 = vmatpush.msra.mxu3 %v4790_v35 }
  0x2d   :  { %443 = vmatpush.msra.mxu0 %v4820_v44  ;;  %484 = vmatpush.msra.mxu2 %v4834_v47 }
  0x2e   :  { %466 = vmatpush.msra.mxu1 %v4822_v45  ;;  %444 = vmatmul.f32.vlgmr.msra.gmra.mxu0 %v4831_v46 }
  0x2f   :  { %467 = vmatmul.f32.vlgmr.msra.gmra.mxu1 %v4831_v46  ;;  %624 = vmatpush.msrb.mxu0 %v4688_v2 }
  0x30   :  { %647 = vmatpush.msrb.mxu1 %v4727_v15  ;;  %485 = vmatpush.msra.mxu2 %v4841_v48 }
  0x31   :  { %625 = vmatpush.msrb.mxu0 %v4694_v4  ;;  %614 = vmatpush.msra.mxu3 %v4800_v38 }
  0x32   :  { %648 = vmatpush.msrb.mxu1 %v4732_v16  ;;  %486 = vmatpush.msra.mxu2 %v4845_v49 }
  0x33   :  { %626 = vmatpush.msrb.mxu0 %v4698_v6  ;;  %615 = vmatpush.msra.mxu3 %v4810_v41 }
  0x34   :  { %649 = vmatpush.msrb.mxu1 %v4742_v19  ;;  %487 = vmatpush.msra.mxu2 %v4851_v50 }
  0x35   :  { %627 = vmatpush.msrb.mxu0 %v4705_v8  ;;  %616 = vmatpush.msra.mxu3 %v4820_v44 }
  0x36   :  { %447 = vmatmul.f32.gmra.mxu0 %v4858_v51  ;;  %488 = vmatpush.msra.mxu2 %v4862_v52 }
  0x37   :  { %470 = vmatmul.f32.gmra.mxu1 %v4858_v51  ;;  %628 = vmatpush.msrb.mxu0 %v4715_v11 }
  0x38   :  { %650 = vmatpush.msrb.mxu1 %v4760_v25  ;;  %489 = vmatpush.msra.mxu2 %v4870_v53 }
  0x39   :  { %490 = vmatmul.f32.vlgmr.msra.gmra.mxu2 %v4831_v46  ;;  %629 = vmatpush.msrb.mxu0 %v4725_v14 }
  0x3a   :  { %651 = vmatpush.msrb.mxu1 %v4769_v28  ;;  %4022 = vset.pattern.permute.xlu1 %v6959_v0 }
  0x3b   :  { %630 = vmatpush.msrb.mxu0 %v4736_v18  ;;  %811 = vmatpush.msrb.mxu2 %v4686_v1 }
  0x3c   :  { %652 = vmatpush.msrb.mxu1 %v4778_v31  ;;  %834 = vmatpush.msrb.mxu3 %v4688_v2 }
  0x3d   :  { %631 = vmatpush.msrb.mxu0 %v4746_v21  ;;  %812 = vmatpush.msrb.mxu2 %v4690_v3 }
  0x3e   :  { %653 = vmatpush.msrb.mxu1 %v4788_v34  ;;  %835 = vmatpush.msrb.mxu3 %v4694_v4 }
  0x3f   :  { %632 = vmatpush.msrb.mxu0 %v4754_v23  ;;  %813 = vmatpush.msrb.mxu2 %v4696_v5 }
  0x40   :  { %654 = vmatpush.msrb.mxu1 %v4798_v37  ;;  %836 = vmatpush.msrb.mxu3 %v4698_v6 }
  0x41   :  { %493 = vmatmul.f32.gmra.mxu2 %v4858_v51  ;;  %633 = vmatpush.msrb.mxu0 %v4764_v27 }
  0x42   :  { %655 = vmatpush.msrb.mxu1 %v4808_v40  ;;  %814 = vmatpush.msrb.mxu2 %v4703_v7 }
  0x43   :  { %634 = vmatpush.msrb.mxu0 %v4773_v30  ;;  %837 = vmatpush.msrb.mxu3 %v4705_v8 }
  0x44   :  { %656 = vmatpush.msrb.mxu1 %v4818_v43  ;;  %815 = vmatpush.msrb.mxu2 %v4713_v10 }
  0x45   :  { %635 = vmatpush.msrb.mxu0 %v4782_v33  ;;  %838 = vmatpush.msrb.mxu3 %v4715_v11 }
  0x46   :  { %657 = vmatpush.msrb.mxu1 %v4834_v47  ;;  %816 = vmatpush.msrb.mxu2 %v4723_v13 }
  0x47   :  { %636 = vmatpush.msrb.mxu0 %v4792_v36  ;;  %839 = vmatpush.msrb.mxu3 %v4725_v14 }
  0x48   :  { %658 = vmatpush.msrb.mxu1 %v4841_v48  ;;  %817 = vmatpush.msrb.mxu2 %v4734_v17 }
  0x49   :  { %637 = vmatpush.msrb.mxu0 %v4802_v39  ;;  %840 = vmatpush.msrb.mxu3 %v4736_v18 }
  0x4a   :  { %659 = vmatpush.msrb.mxu1 %v4845_v49  ;;  %818 = vmatpush.msrb.mxu2 %v4744_v20 }
  0x4b   :  { %638 = vmatpush.msrb.mxu0 %v4812_v42  ;;  %841 = vmatpush.msrb.mxu3 %v4746_v21 }
  0x4c   :  { %660 = vmatpush.msrb.mxu1 %v4851_v50  ;;  %819 = vmatpush.msrb.mxu2 %v4752_v22 }
  0x4d   :  { %639 = vmatpush.msrb.mxu0 %v4822_v45  ;;  %842 = vmatpush.msrb.mxu3 %v4754_v23 }
  0x4e   :  { %661 = vmatpush.msrb.mxu1 %v4862_v52  ;;  %820 = vmatpush.msrb.mxu2 %v4762_v26 }
  0x4f   :  { %857 = vmatpush.msra.mxu0 %v4727_v15  ;;  %843 = vmatpush.msrb.mxu3 %v4764_v27 }
  0x50   :  { %662 = vmatpush.msrb.mxu1 %v4870_v53  ;;  %821 = vmatpush.msrb.mxu2 %v4771_v29 }
  0x51   :  { %858 = vmatpush.msra.mxu0 %v4732_v16  ;;  %844 = vmatpush.msrb.mxu3 %v4773_v30 }
  0x52   :  { %1018 = vmatpush.msra.mxu1 %v4686_v1  ;;  %822 = vmatpush.msrb.mxu2 %v4780_v32 }
  0x53   :  { %859 = vmatpush.msra.mxu0 %v4742_v19  ;;  %845 = vmatpush.msrb.mxu3 %v4782_v33 }
  0x54   :  { %1019 = vmatpush.msra.mxu1 %v4690_v3  ;;  %823 = vmatpush.msrb.mxu2 %v4790_v35 }
  0x55   :  { %860 = vmatpush.msra.mxu0 %v4760_v25  ;;  %846 = vmatpush.msrb.mxu3 %v4792_v36 }
  0x56   :  { %1020 = vmatpush.msra.mxu1 %v4696_v5  ;;  %824 = vmatpush.msrb.mxu2 %v4800_v38 }
  0x57   :  { %861 = vmatpush.msra.mxu0 %v4769_v28  ;;  %847 = vmatpush.msrb.mxu3 %v4802_v39 }
  0x58   :  { %1021 = vmatpush.msra.mxu1 %v4703_v7  ;;  %825 = vmatpush.msrb.mxu2 %v4810_v41 }
  0x59   :  { %862 = vmatpush.msra.mxu0 %v4778_v31  ;;  %848 = vmatpush.msrb.mxu3 %v4812_v42 }
  0x5a   :  { %1022 = vmatpush.msra.mxu1 %v4713_v10  ;;  %826 = vmatpush.msrb.mxu2 %v4820_v44 }
  0x5b   :  { %863 = vmatpush.msra.mxu0 %v4788_v34  ;;  %849 = vmatpush.msrb.mxu3 %v4822_v45 }
  0x5c   :  { %1023 = vmatpush.msra.mxu1 %v4723_v13  ;;  %1041 = vmatpush.msra.mxu2 %v4688_v2 }
  0x5d   :  { %864 = vmatpush.msra.mxu0 %v4798_v37  ;;  %4023 = vset.pattern.permute.xlu0 %v6959_v0  ;;  %v4995_v0 = vperm.slane %v232_v60, 1 }
  0x5e   :  { %1024 = vmatpush.msra.mxu1 %v4734_v17  ;;  %1042 = vmatpush.msra.mxu2 %v4694_v4 }
  0x5f   :  { %865 = vmatpush.msra.mxu0 %v4808_v40  ;;  %7086 = vst [vmem:[#allocation30_spill] sm:$0xff] %v4995_v0 }
  0x60   :  { %1025 = vmatpush.msra.mxu1 %v4744_v20  ;;  %1043 = vmatpush.msra.mxu2 %v4698_v6 }
  0x61   :  { %866 = vmatpush.msra.mxu0 %v4818_v43 }
  0x62   :  { %1026 = vmatpush.msra.mxu1 %v4752_v22  ;;  %1044 = vmatpush.msra.mxu2 %v4705_v8 }
  0x63   :  { %867 = vmatpush.msra.mxu0 %v4834_v47 }
  0x64   :  { %1027 = vmatpush.msra.mxu1 %v4762_v26  ;;  %1045 = vmatpush.msra.mxu2 %v4715_v11 }
  0x65   :  { %868 = vmatpush.msra.mxu0 %v4841_v48 }
  0x66   :  { %1028 = vmatpush.msra.mxu1 %v4771_v29  ;;  %1046 = vmatpush.msra.mxu2 %v4725_v14 }
  0x67   :  { %869 = vmatpush.msra.mxu0 %v4845_v49 }
  0x68   :  { %1029 = vmatpush.msra.mxu1 %v4780_v32  ;;  %1047 = vmatpush.msra.mxu2 %v4736_v18 }
  0x69   :  { %870 = vmatpush.msra.mxu0 %v4851_v50 }
  0x6a   :  { %1030 = vmatpush.msra.mxu1 %v4790_v35  ;;  %1048 = vmatpush.msra.mxu2 %v4746_v21 }
  0x6b   :  { %871 = vmatpush.msra.mxu0 %v4862_v52 }
  0x6c   :  { %1031 = vmatpush.msra.mxu1 %v4800_v38  ;;  %1049 = vmatpush.msra.mxu2 %v4754_v23 }
  0x6d   :  { %872 = vmatpush.msra.mxu0 %v4870_v53 }
  0x6e   :  { %1032 = vmatpush.msra.mxu1 %v4810_v41  ;;  %1050 = vmatpush.msra.mxu2 %v4764_v27 }
  0x70   :  { %1033 = vmatpush.msra.mxu1 %v4820_v44  ;;  %1051 = vmatpush.msra.mxu2 %v4773_v30 }
  0x72   :  { %1052 = vmatpush.msra.mxu2 %v4782_v33 }
  0x74   :  { %1053 = vmatpush.msra.mxu2 %v4792_v36 }
  0x76   :  { %1054 = vmatpush.msra.mxu2 %v4802_v39 }
  0x78   :  { %1055 = vmatpush.msra.mxu2 %v4812_v42 }
  0x7a   :  { %1056 = vmatpush.msra.mxu2 %v4822_v45  ;;  %v300_v45 = vld [vmem:[%s6949_s4] sm:$0x7] }
  0x7b   :  { %v5005_v42 = vperm.slane %v300_v45, 0  ;;  %v5008_v59 = vperm.slane %v300_v45, 1  ;;  %v5010_v60 = vperm.slane %v300_v45, 2 }
  0x7d   :  { %7088 = vst [vmem:[#allocation32_spill] sm:$0xff] %v5005_v42 }
  0x7e   :  { %7089 = vst [vmem:[#allocation33_spill] sm:$0xff] %v5008_v59 }
  0x7f   :  { %7090 = vst [vmem:[#allocation34_spill] sm:$0xff] %v5010_v60 }
  0x83   :  { %v104_v53 = vpop.permute.xlu0 %103 }
  0x84   :  { %v161_v45 = vmul.f32 %v4987_v62, %v104_v53  ;;  %v162_v33 = vmul.f32 %v4989_v63, %v104_v53 }
  0x85   :  { %v109_v55 = vpop.permute.xlu1 %108 }
  0x86   :  { %v164_v44 = vmul.f32 %v4987_v62, %v109_v55  ;;  %v165_v54 = vmul.f32 %v4989_v63, %v109_v55  ;;  %v166_v56 = vmul.f32 %v4991_v9, %v109_v55 }
  0x8e   :  { %v193_v50 = vpop.permute.xlu0 %192 }
  0x90   :  { %v197_v57 = vpop.permute.xlu1 %196 }
  0x91   :  { %v243_v58 = vmul.f32 %v4993_v12, %v197_v57  ;;  %v244_v61 = vmul.f32 %v4995_v0, %v197_v57  ;;  %v245_v41 = vmul.f32 %v4997_v24, %v197_v57  ;;  %v240_v57 = vmul.f32 %v4993_v12, %v193_v50 }
  0x93   :  { %v273_v39 = vadd.f32 %v243_v58, %v164_v44  ;;  %v274_v38 = vadd.f32 %v244_v61, %v165_v54  ;;  %v275_v52 = vadd.f32 %v245_v41, %v166_v56  ;;  %v241_v44 = vmul.f32 %v4995_v0, %v193_v50 }
  0x94   :  { %v270_v54 = vadd.f32 %v240_v57, %v161_v45 }
  0x95   :  { %v311_v36 = vadd.f32 %v5005_v42, %v273_v39  ;;  %v312_v55 = vadd.f32 %v5008_v59, %v274_v38  ;;  %v313_v35 = vadd.f32 %v5010_v60, %v275_v52  ;;  %v271_v41 = vadd.f32 %v241_v44, %v162_v33 }
  0x96   :  { %v308_v39 = vadd.f32 %v5005_v42, %v270_v54 }
  0x97   :  { %341 = vst [vmem:[#allocation2 + $0x18] sm:$0xff] %v311_v36  ;;  %v309_v38 = vadd.f32 %v5008_v59, %v271_v41 }
  0x98   :  { %342 = vst [vmem:[#allocation2 + $0x50] sm:$0xff] %v312_v55 }
  0x99   :  { %343 = vst [vmem:[#allocation2 + $0x68] sm:$0xff] %v313_v35 }
  0x9e   :  { %v425_v55 = vld [vmem:[#allocation2 + $0x18] sm:$0x3] }
  0x9f   :  { %v426_v62 = vld [vmem:[#allocation2 + $0x50] sm:$0x3] }
  0xab   :  { %v445_v56 = vpop.f32.mrf.mxu0 }
  0xac   :  { %v468_v52 = vpop.f32.mrf.mxu1  ;;  %v497_v36 = vadd.f32 %v445_v56, %v308_v39 }
  0xad   :  { %v498_v58 = vadd.f32 %v468_v52, %v309_v38 }
  0xae   :  { %v3925_v35 = vmul.f32 -1.442695, %v497_v36 }
  0xaf   :  { %v3926_v61 = vmul.f32 -1.442695, %v498_v58 }
  0xb0   :  { %4035 = vpow2.f32 %v3925_v35 }
  0xb1   :  { %4037 = vpow2.f32 %v3926_v61 }
  0xb3   :  { %v448_v63 = vpop.f32.mrf.mxu0 }
  0xb4   :  { %v471_v12 = vpop.f32.mrf.mxu1  ;;  %v499_v32 = vadd.f32 %v448_v63, %v425_v55  ;;  %v5040_v55 = vld [vmem:[%s6950_s5] ss:$0 sm:$0xff] }
  0xb5   :  { %v500_v0 = vadd.f32 %v471_v12, %v426_v62  ;;  %v242_v12 = vmul.f32 %v4997_v24, %v193_v50  ;;  %v92_v50 = vld [vmem:[%s6945_s0 + $0x10] sm:$0xff] }
  0xb6   :  { %v4036_v45 = vpop.eup %4035  ;;  %v3927_v33 = vmul.f32 -1.442695, %v499_v32  ;;  %v163_v32 = vmul.f32 %v4991_v9, %v104_v53  ;;  %v5045_v53 = vld [vmem:[%s6945_s0 + $0x18] sm:$0xff]  ;;  %113 = vperm.xlu2 %4020, %v92_v50  }
  0xb7   :  { %v4038_v57 = vpop.eup %4037  ;;  %v513_v44 = vadd.f32 1.0, %v4036_v45  ;;  %v3928_v54 = vmul.f32 -1.442695, %v500_v0  ;;  %118 = vperm.xlu1 %4022, %v5045_v53  }
  0xb8   :  { %v5023_v41 = vadd.f32 1.0, %v4038_v57  ;;  %4039 = vpow2.f32 %v3927_v33  ;;  %v272_v33 = vadd.f32 %v242_v12, %v163_v32 }
  0xb9   :  { %4041 = vrcp.f32 %v513_v44  ;;  %v528_v45 = vand.u32 2147483648, %v513_v44  ;;  %vm522_vm1 = vweird.f32 %v513_v44 }
  0xba   :  { %4043 = vrcp.f32 %v5023_v41  ;;  %v310_v24 = vadd.f32 %v5010_v60, %v272_v33  ;;  %vm537_vm3 = vweird.f32 %v5023_v41  ;;  %v541_v33 = vand.u32 2147483647, %v5023_v41 }
  0xbb   :  { %4045 = vpow2.f32 %v3928_v54  ;;  %v526_v54 = vand.u32 2147483647, %v513_v44  ;;  %v529_v59 = vor.u32 1.1754944e-38, %v528_v45 }
  0xbc   :  { %v491_v36 = vpop.f32.mrf.mxu2  ;;  %vm542_vm10 = vcmp.eq.f32.partialorder %v541_v33, 8.507059e+37 }
  0xbd   :  { %vm527_vm4 = vcmp.eq.f32.partialorder %v526_v54, 8.507059e+37  ;;  %v7091_v54 = vmov 1  }
  0xbe   :  { %v4040_v39 = vpop.eup %4039  ;;  %4021 = vset.pattern.permute.xlu2 %v7091_v54 }
  0xbf   :  { %v4042_v38 = vpop.eup %4041  ;;  %v5026_v56 = vadd.f32 1.0, %v4040_v39  ;;  %4024 = vset.pattern.permute.xlu1 %v7091_v54  ;;  %200 = vperm.xlu2 %4021, %v92_v50  }
  0xc0   :  { %v5028_v52 = vpop.eup %4043  ;;  %v518_v63 = vmul.f32 %v4042_v38, %v513_v44  ;;  %vm523_vm0 = vweird.f32 %v4042_v38  ;;  %v543_v44 = vand.u32 2147483648, %v5023_v41 }
  0xc1   :  { %v4046_v62 = vpop.eup %4045  ;;  %v533_v0 = vmul.f32 %v5028_v52, %v5023_v41  ;;  %4047 = vrcp.f32 %v5026_v56  ;;  %vm524_vm2 = vmor %vm522_vm1, %vm523_vm0  ;;  %vm538_vm5 = vweird.f32 %v5028_v52  ;;  %v558_v49 = vand.u32 2147483648, %v5026_v56 }
  0xc2   :  { %v5035_v58 = vadd.f32 1.0, %v4046_v62  ;;  %v519_v35 = vsub.f32 1.0, %v518_v63  ;;  %vm5068_vm7 = vmor %vm537_vm3, %vm538_vm5  ;;  %vm552_vm8 = vweird.f32 %v5026_v56  ;;  %vm674_vm0 = vcmask 1041408  }
  0xc3   :  { %v534_v61 = vsub.f32 1.0, %v533_v0  ;;  %v577_v0 = vadd.f32 %v5040_v55, %v491_v36  ;;  %v559_v41 = vor.u32 1.1754944e-38, %v558_v49 }
  0xc4   :  { %4049 = vrcp.f32 %v5035_v58  ;;  %v520_v57 = vmul.f32 %v4042_v38, %v519_v35  ;;  %vm567_vm13 = vweird.f32 %v5035_v58 }
  0xc5   :  { %v535_v39 = vmul.f32 %v5028_v52, %v534_v61 }
  0xc6   :  { %v521_v62 = vadd.f32 %v4042_v38, %v520_v57  ;;  %v494_v57 = vpop.f32.mrf.mxu2 }
  0xc7   :  { %v4048_v63 = vpop.eup %4047  ;;  %v536_v12 = vadd.f32 %v5028_v52, %v535_v39  ;;  %204 = vperm.xlu2 %4021, %v5045_v53  }
  0xc8   :  { %v548_v42 = vmul.f32 %v4048_v63, %v5026_v56  ;;  %v525_v9 = vsel %vm524_vm2, %v4042_v38, %v521_v62  ;;  %vm553_vm6 = vweird.f32 %v4048_v63  ;;  %v556_v38 = vand.u32 2147483647, %v5026_v56 }
  0xc9   :  { %v530_v35 = vsel %vm527_vm4, %v529_v59, %v525_v9  ;;  %v540_v39 = vsel %vm5068_vm7, %v5028_v52, %v536_v12  ;;  %vm554_vm9 = vmor %vm552_vm8, %vm553_vm6  ;;  %v573_v52 = vand.u32 2147483648, %v5035_v58  ;;  %v571_v56 = vand.u32 2147483647, %v5035_v58  ;;  %v427_v12 = vld [vmem:[#allocation2 + $0x68] sm:$0x3] }
  0xca   :  { %v4050_v32 = vpop.eup %4049  ;;  %v549_v61 = vsub.f32 1.0, %v548_v42  ;;  %v579_v45 = vmul.f32 %v577_v0, %v530_v35  ;;  %v578_v0 = vadd.f32 %v5040_v55, %v494_v57  ;;  %v544_v35 = vor.u32 1.1754944e-38, %v543_v44 }
  0xcb   :  { %v563_v36 = vmul.f32 %v4050_v32, %v5035_v58  ;;  %vm557_vm11 = vcmp.eq.f32.partialorder %v556_v38, 8.507059e+37  ;;  %vm568_vm12 = vweird.f32 %v4050_v32  ;;  %vm572_vm15 = vcmp.eq.f32.partialorder %v571_v56, 8.507059e+37 }
  0xcc   :  { %v550_v60 = vmul.f32 %v4048_v63, %v549_v61  ;;  %v581_v59 = vadd.f32 %v579_v45, %v310_v24  ;;  %v545_v50 = vsel %vm542_vm10, %v544_v35, %v540_v39  ;;  %vm569_vm14 = vmor %vm567_vm13, %vm568_vm12  ;;  %v7117_v35 = vld [vmem:[#allocation34_spill] sm:$0xff] }
  0xcd   :  { %v564_v9 = vsub.f32 1.0, %v563_v36  ;;  %v585_v44 = vsub.f32 1.0, %v545_v50  ;;  %v589_v38 = vmul.f32 %v545_v50, %v4831_v46 }
  0xce   :  { %v551_v62 = vadd.f32 %v4048_v63, %v550_v60  ;;  %4051 = vtanh.f32 %v581_v59 }
  0xcf   :  { %v565_v61 = vmul.f32 %v4050_v32, %v564_v9  ;;  %v7094_v9 = vmov 0  }
  0xd0   :  { %v555_v54 = vsel %vm554_vm9, %v4048_v63, %v551_v62  ;;  %v574_v63 = vor.u32 1.1754944e-38, %v573_v52  ;;  %4025 = vset.pattern.permute.xlu2 %v7094_v9  ;;  %v7116_v62 = vld [vmem:[#allocation33_spill] sm:$0xff] }
  0xd1   :  { %v566_v24 = vadd.f32 %v4050_v32, %v565_v61  ;;  %v560_v36 = vsel %vm557_vm11, %v559_v41, %v555_v54 }
  0xd2   :  { %v580_v60 = vmul.f32 %v578_v0, %v560_v36 }
  0xd3   :  { %v570_v49 = vsel %vm569_vm14, %v4050_v32, %v566_v24 }
  0xd4   :  { %v582_v45 = vadd.f32 %v580_v60, %v427_v12  ;;  %v4052_v57 = vpop.eup %4051  ;;  %v575_v54 = vsel %vm572_vm15, %v574_v63, %v570_v49 }
  0xd5   :  { %v587_v33 = vmul.f32 %v4052_v57, %v585_v44  ;;  %v586_v58 = vsub.f32 1.0, %v575_v54  ;;  %v590_v32 = vmul.f32 %v575_v54, %v4858_v51  ;;  %v7115_v51 = vld [vmem:[#allocation32_spill] sm:$0xff] }
  0xd6   :  { %4053 = vtanh.f32 %v582_v45 }
  0xd7   :  { %v5083_v42 = vadd.f32 %v589_v38, %v587_v33 }
  0xd9   :  { %593 = vst [vmem:[#allocation3] sm:$0xff] %v5083_v42  ;;  %617 = vmatmul.f32.vlgmr.msra.gmra.mxu3 %v5083_v42  ;;  %640 = vmatmul.f32.vlgmr.msrb.gmra.mxu0 %v5083_v42 }
  0xda   :  { %663 = vmatmul.f32.vlgmr.msrb.gmra.mxu1 %v5083_v42  ;;  %1064 = vmatpush.msra.mxu3 %v4727_v15  ;;  %v7104_v15 = vld [vmem:[#allocation25_spill] sm:$0xff] }
  0xdb   :  { %1224 = vmatpush.msrb.mxu0 %v4686_v1  ;;  %1247 = vmatpush.msrb.mxu1 %v4688_v2  ;;  %v786_v1 = vrot.slane %v5083_v42, 6 }
  0xdc   :  { %v4054_v53 = vpop.eup %4053  ;;  %1065 = vmatpush.msra.mxu3 %v4732_v16  ;;  %v7105_v16 = vld [vmem:[#allocation18_spill] sm:$0xff] }
  0xdd   :  { %v588_v46 = vmul.f32 %v4054_v53, %v586_v58  ;;  %1225 = vmatpush.msrb.mxu0 %v4690_v3  ;;  %1248 = vmatpush.msrb.mxu1 %v4694_v4  ;;  %v7095_v4 = vld [vmem:[#allocation22_spill] sm:$0xff]  ;;  %v596_v58 = vld [vmem:[#allocation2 + $0x50] sm:$0xfc] }
  0xde   :  { %1066 = vmatpush.msra.mxu3 %v4742_v19  ;;  %v7108_v19 = vld [vmem:[#allocation21_spill] sm:$0xff] }
  0xdf   :  { %v592_v59 = vadd.f32 %v590_v32, %v588_v46  ;;  %1226 = vmatpush.msrb.mxu0 %v4696_v5  ;;  %1249 = vmatpush.msrb.mxu1 %v4698_v6  ;;  %v7096_v5 = vld [vmem:[#allocation12_spill] sm:$0xff]  ;;  %v7097_v6 = vld [vmem:[#allocation13_spill] sm:$0xff] }
  0xe0   :  { %1067 = vmatpush.msra.mxu3 %v4760_v25 }
  0xe1   :  { %594 = vst [vmem:[#allocation3 + $0x48] sm:$0x3] %v592_v59  ;;  %v787_v2 = vrot.slane %v592_v59, 6  ;;  %620 = vmatmul.f32.gmra.mxu3 %v592_v59  ;;  %643 = vmatmul.f32.gmra.mxu0 %v592_v59 }
  0xe2   :  { %666 = vmatmul.f32.gmra.mxu1 %v592_v59  ;;  %1068 = vmatpush.msra.mxu3 %v4769_v28 }
  0xe3   :  { %v5105_v3 = vsel %vm674_vm0, %v786_v1, %v787_v2  ;;  %1227 = vmatpush.msrb.mxu0 %v4703_v7  ;;  %1250 = vmatpush.msrb.mxu1 %v4705_v8  ;;  %v7098_v7 = vld [vmem:[#allocation23_spill] sm:$0xff]  ;;  %v7099_v8 = vld [vmem:[#allocation14_spill] sm:$0xff] }
  0xe4   :  { %1069 = vmatpush.msra.mxu3 %v4778_v31  ;;  %v7113_v31 = vld [vmem:[#allocation30_spill] sm:$0xff] }
  0xe5   :  { %1228 = vmatpush.msrb.mxu0 %v4713_v10  ;;  %1251 = vmatpush.msrb.mxu1 %v4715_v11  ;;  %v7100_v10 = vld [vmem:[#allocation15_spill] sm:$0xff]  ;;  %v7101_v11 = vld [vmem:[#allocation24_spill] sm:$0xff]  ;;  %v595_v2 = vld [vmem:[#allocation2 + $0x18] sm:$0xfc] }
  0xe6   :  { %1070 = vmatpush.msra.mxu3 %v4788_v34 }
  0xe7   :  { %1229 = vmatpush.msrb.mxu0 %v4723_v13  ;;  %1252 = vmatpush.msrb.mxu1 %v4725_v14  ;;  %v7102_v13 = vld [vmem:[#allocation16_spill] sm:$0xff]  ;;  %v7103_v14 = vld [vmem:[#allocation17_spill] sm:$0xff] }
  0xe8   :  { %1071 = vmatpush.msra.mxu3 %v4798_v37  ;;  %v7114_v37 = vld [vmem:[#allocation31_spill] sm:$0xff] }
  0xe9   :  { %1230 = vmatpush.msrb.mxu0 %v4734_v17  ;;  %1253 = vmatpush.msrb.mxu1 %v4736_v18  ;;  %v7106_v17 = vld [vmem:[#allocation19_spill] sm:$0xff]  ;;  %v7107_v18 = vld [vmem:[#allocation20_spill] sm:$0xff] }
  0xea   :  { %1072 = vmatpush.msra.mxu3 %v4808_v40 }
  0xeb   :  { %1231 = vmatpush.msrb.mxu0 %v4744_v20  ;;  %1254 = vmatpush.msrb.mxu1 %v4746_v21  ;;  %v7109_v21 = vld [vmem:[#allocation26_spill] sm:$0xff] }
  0xec   :  { %1073 = vmatpush.msra.mxu3 %v4818_v43 }
  0xed   :  { %1232 = vmatpush.msrb.mxu0 %v4752_v22  ;;  %1255 = vmatpush.msrb.mxu1 %v4754_v23  ;;  %v7110_v23 = vld [vmem:[#allocation27_spill] sm:$0xff] }
  0xee   :  { %1074 = vmatpush.msra.mxu3 %v4834_v47 }
  0xef   :  { %1233 = vmatpush.msrb.mxu0 %v4762_v26  ;;  %1256 = vmatpush.msrb.mxu1 %v4764_v27  ;;  %v7111_v26 = vld [vmem:[#allocation28_spill] sm:$0xff] }
  0xf0   :  { %1075 = vmatpush.msra.mxu3 %v4841_v48 }
  0xf1   :  { %1234 = vmatpush.msrb.mxu0 %v4771_v29  ;;  %1257 = vmatpush.msrb.mxu1 %v4773_v30  ;;  %v7112_v29 = vld [vmem:[#allocation29_spill] sm:$0xff] }
  0xf2   :  { %1076 = vmatpush.msra.mxu3 %v7095_v4 }
  0xf3   :  { %1235 = vmatpush.msrb.mxu0 %v7096_v5  ;;  %1258 = vmatpush.msrb.mxu1 %v7097_v6 }
  0xf4   :  { %1077 = vmatpush.msra.mxu3 %v7098_v7 }
  0xf5   :  { %1236 = vmatpush.msrb.mxu0 %v7099_v8  ;;  %1259 = vmatpush.msrb.mxu1 %v7100_v10 }
  0xf6   :  { %1078 = vmatpush.msra.mxu3 %v7101_v11 }
  0xf7   :  { %1237 = vmatpush.msrb.mxu0 %v7102_v13  ;;  %1260 = vmatpush.msrb.mxu1 %v7103_v14 }
  0xf8   :  { %1079 = vmatpush.msra.mxu3 %v7104_v15 }
  0xf9   :  { %1238 = vmatpush.msrb.mxu0 %v7105_v16  ;;  %1261 = vmatpush.msrb.mxu1 %v7106_v17 }
  0xfb   :  { %1239 = vmatpush.msrb.mxu0 %v7107_v18  ;;  %1262 = vmatpush.msrb.mxu1 %v7108_v19 }
 0x110   :  { %v114_v20 = vpop.permute.xlu2 %113 }
 0x111   :  { %v167_v22 = vmul.f32 %v7109_v21, %v114_v20  ;;  %v168_v25 = vmul.f32 %v7110_v23, %v114_v20  ;;  %v169_v27 = vmul.f32 %v7111_v26, %v114_v20 }
 0x119   :  { %v201_v28 = vpop.permute.xlu2 %200 }
 0x11a   :  { %v246_v30 = vmul.f32 %v7112_v29, %v201_v28  ;;  %v247_v34 = vmul.f32 %v7113_v31, %v201_v28  ;;  %v248_v40 = vmul.f32 %v7114_v37, %v201_v28 }
 0x11c   :  { %v276_v43 = vadd.f32 %v246_v30, %v167_v22  ;;  %v277_v47 = vadd.f32 %v247_v34, %v168_v25  ;;  %v278_v48 = vadd.f32 %v248_v40, %v169_v27 }
 0x11e   :  { %v314_v39 = vadd.f32 %v7115_v51, %v276_v43  ;;  %v315_v0 = vadd.f32 %v7116_v62, %v277_v47  ;;  %v316_v61 = vadd.f32 %v7117_v35, %v278_v48 }
 0x120   :  { %344 = vst [vmem:[#allocation2 + $0x30] sm:$0xff] %v314_v39 }
 0x121   :  { %345 = vst [vmem:[#allocation2 + $0x48] sm:$0xff] %v315_v0  ;;  %v205_v41 = vpop.permute.xlu2 %204 }
 0x122   :  { %346 = vst [vmem:[#allocation2 + $0x80] sm:$0xff] %v316_v61  ;;  %v249_v50 = vmul.f32 %v7112_v29, %v205_v41  ;;  %v250_v36 = vmul.f32 %v7113_v31, %v205_v41  ;;  %v251_v52 = vmul.f32 %v7114_v37, %v205_v41 }
 0x127   :  { %v598_v18 = vld [vmem:[#allocation2 + $0x30] sm:$0xf] }
 0x128   :  { %v599_v8 = vld [vmem:[#allocation2 + $0x48] sm:$0xf]  ;;  %v798_v37 = vld [vmem:[#allocation2 + $0x48] sm:$0xf0] }
 0x129   :  { %v119_v24 = vpop.permute.xlu1 %118 }
 0x12a   :  { %v170_v60 = vmul.f32 %v7109_v21, %v119_v24  ;;  %v171_v56 = vmul.f32 %v7110_v23, %v119_v24  ;;  %v172_v12 = vmul.f32 %v7111_v26, %v119_v24  ;;  %v797_v26 = vld [vmem:[#allocation2 + $0x30] sm:$0xf0] }
 0x12c   :  { %v279_v44 = vadd.f32 %v249_v50, %v170_v60  ;;  %v280_v45 = vadd.f32 %v250_v36, %v171_v56  ;;  %v281_v57 = vadd.f32 %v251_v52, %v172_v12 }
 0x12e   :  { %v317_v49 = vadd.f32 %v7115_v51, %v279_v44  ;;  %v318_v63 = vadd.f32 %v7116_v62, %v280_v45  ;;  %v319_v33 = vadd.f32 %v7117_v35, %v281_v57 }
 0x130   :  { %347 = vst [vmem:[#allocation2 + $0x88] sm:$0xff] %v317_v49 }
 0x131   :  { %348 = vst [vmem:[#allocation2 + $0xe8] sm:$0xff] %v318_v63 }
 0x132   :  { %349 = vst [vmem:[#allocation2 + $0xb8] sm:$0xff] %v319_v33 }
 0x156   :  { %v641_v38 = vpop.f32.mrf.mxu0 }
 0x157   :  { %v676_v54 = vrot.slane %v641_v38, 6  ;;  %v664_v34 = vpop.f32.mrf.mxu1 }
 0x158   :  { %v765_v36 = vadd.f32 %v5040_v55, %v664_v34 }
 0x159   :  { %v686_v53 = vadd.f32 %v676_v54, %v596_v58 }
 0x15a   :  { %v769_v49 = vrot.slane %v765_v36, 6 }
 0x15b   :  { %v3930_v46 = vmul.f32 -1.442695, %v686_v53 }
 0x15c   :  { %v618_v32 = vpop.f32.mrf.mxu3 }
 0x15d   :  { %4055 = vpow2.f32 %v3930_v46  ;;  %v675_v59 = vrot.slane %v618_v32, 6 }
 0x15e   :  { %v644_v4 = vpop.f32.mrf.mxu0 }
 0x15f   :  { %v685_v5 = vadd.f32 %v675_v59, %v595_v2  ;;  %v679_v6 = vrot.slane %v644_v4, 6  ;;  %v667_v12 = vpop.f32.mrf.mxu1  ;;  %v597_v2 = vld [vmem:[#allocation2 + $0x68] sm:$0xfc] }
 0x160   :  { %v766_v33 = vadd.f32 %v5040_v55, %v667_v12 }
 0x161   :  { %v3929_v7 = vmul.f32 -1.442695, %v685_v5  ;;  %v680_v10 = vsel %vm674_vm0, %v676_v54, %v679_v6 }
 0x162   :  { %v688_v11 = vadd.f32 %v680_v10, %v599_v8 }
 0x163   :  { %v4056_v13 = vpop.eup %4055  ;;  %4057 = vpow2.f32 %v3929_v7  ;;  %v770_v7 = vrot.slane %v766_v33, 6  ;;  %v5212_v33 = vld [vmem:[#allocation5 + $0x160] sm:$0xff] }
 0x164   :  { %v5164_v14 = vadd.f32 1.0, %v4056_v13  ;;  %v3932_v15 = vmul.f32 -1.442695, %v688_v11  ;;  %v621_v16 = vpop.f32.mrf.mxu3 }
 0x165   :  { %v677_v17 = vrot.slane %v621_v16, 6 }
 0x166   :  { %4059 = vrcp.f32 %v5164_v14  ;;  %v731_v53 = vand.u32 2147483648, %v5164_v14  ;;  %vm725_vm6 = vweird.f32 %v5164_v14  ;;  %v729_v4 = vand.u32 2147483647, %v5164_v14 }
 0x167   :  { %4061 = vpow2.f32 %v3932_v15  ;;  %v678_v19 = vsel %vm674_vm0, %v675_v59, %v677_v17 }
 0x168   :  { %v687_v20 = vadd.f32 %v678_v19, %v598_v18  ;;  %v732_v11 = vor.u32 1.1754944e-38, %v731_v53  ;;  %vm730_vm9 = vcmp.eq.f32.partialorder %v729_v4, 8.507059e+37  ;;  %v5224_v53 = vld [vmem:[#allocation5 + $0x138] sm:$0xff]  ;;  %v5239_v4 = vld [vmem:[#allocation5 + $0x128] sm:$0xff] }
 0x169   :  { %v4058_v22 = vpop.eup %4057 }
 0x16a   :  { %v701_v25 = vadd.f32 1.0, %v4058_v22  ;;  %v3931_v27 = vmul.f32 -1.442695, %v687_v20 }
 0x16c   :  { %v4060_v28 = vpop.eup %4059  ;;  %4063 = vrcp.f32 %v701_v25  ;;  %v716_v24 = vand.u32 2147483648, %v701_v25  ;;  %v714_v60 = vand.u32 2147483647, %v701_v25  ;;  %vm710_vm2 = vweird.f32 %v701_v25 }
 0x16d   :  { %v4062_v30 = vpop.eup %4061  ;;  %4065 = vpow2.f32 %v3931_v27  ;;  %v721_v43 = vmul.f32 %v4060_v28, %v5164_v14  ;;  %vm726_vm5 = vweird.f32 %v4060_v28  ;;  %v771_v14 = vsel %vm674_vm0, %v769_v49, %v770_v7  ;;  %v5248_v7 = vld [vmem:[#allocation5 + $0x110] sm:$0xff] }
 0x16e   :  { %v5168_v40 = vadd.f32 1.0, %v4062_v30  ;;  %v717_v45 = vor.u32 1.1754944e-38, %v716_v24  ;;  %vm715_vm4 = vcmp.eq.f32.partialorder %v714_v60, 8.507059e+37  ;;  %vm727_vm7 = vmor %vm725_vm6, %vm726_vm5 }
 0x16f   :  { %v722_v0 = vsub.f32 1.0, %v721_v43  ;;  %v600_v43 = vld [vmem:[#allocation2 + $0x80] sm:$0xf] }
 0x170   :  { %4067 = vrcp.f32 %v5168_v40  ;;  %v761_v30 = vand.u32 2147483648, %v5168_v40  ;;  %vm755_vm14 = vweird.f32 %v5168_v40 }
 0x171   :  { %v723_v56 = vmul.f32 %v4060_v28, %v722_v0 }
 0x172   :  { %v4064_v47 = vpop.eup %4063  ;;  %v762_v24 = vor.u32 1.1754944e-38, %v761_v30  ;;  %v5296_v30 = vld [vmem:[#allocation5 + $0x70] sm:$0xff] }
 0x173   :  { %v4066_v48 = vpop.eup %4065  ;;  %v706_v39 = vmul.f32 %v4064_v47, %v701_v25  ;;  %vm711_vm1 = vweird.f32 %v4064_v47  ;;  %v724_v58 = vadd.f32 %v4060_v28, %v723_v56 }
 0x174   :  { %v703_v61 = vadd.f32 1.0, %v4066_v48  ;;  %vm712_vm3 = vmor %vm710_vm2, %vm711_vm1  ;;  %vm805_vm2 = vcmask 1045504  }
 0x175   :  { %v707_v41 = vsub.f32 1.0, %v706_v39  ;;  %v728_v10 = vsel %vm727_vm7, %v4060_v28, %v724_v58  ;;  %v5221_v58 = vld [vmem:[#allocation5 + $0x148] sm:$0xff] }
 0x176   :  { %4069 = vrcp.f32 %v703_v61  ;;  %v5172_v50 = vpop.eup %4067  ;;  %v746_v8 = vand.u32 2147483648, %v703_v61  ;;  %v744_v15 = vand.u32 2147483647, %v703_v61  ;;  %vm740_vm10 = vweird.f32 %v703_v61 }
 0x177   :  { %v708_v52 = vmul.f32 %v4064_v47, %v707_v41  ;;  %v751_v57 = vmul.f32 %v5172_v50, %v5168_v40  ;;  %v733_v18 = vsel %vm730_vm9, %v732_v11, %v728_v10  ;;  %vm756_vm13 = vweird.f32 %v5172_v50  ;;  %v5254_v10 = vld [vmem:[#allocation5 + $0xf0] sm:$0xff]  ;;  %v5257_v11 = vld [vmem:[#allocation5 + $0xf8] sm:$0xff] }
 0x178   :  { %v747_v19 = vor.u32 1.1754944e-38, %v746_v8  ;;  %vm745_vm12 = vcmp.eq.f32.partialorder %v744_v15, 8.507059e+37  ;;  %v780_v27 = vsub.f32 1.0, %v733_v18  ;;  %v791_v39 = vmul.f32 %v786_v1, %v733_v18  ;;  %vm757_vm15 = vmor %vm755_vm14, %vm756_vm13  ;;  %v5251_v8 = vld [vmem:[#allocation5 + $0xe8] sm:$0xff]  ;;  %v5263_v15 = vld [vmem:[#allocation5 + $0xd8] sm:$0xff] }
 0x179   :  { %v709_v44 = vadd.f32 %v4064_v47, %v708_v52  ;;  %v752_v59 = vsub.f32 1.0, %v751_v57  ;;  %v5272_v18 = vld [vmem:[#allocation5 + $0xc0] sm:$0xff] }
 0x17b   :  { %v713_v63 = vsel %vm712_vm3, %v4064_v47, %v709_v44  ;;  %v753_v16 = vmul.f32 %v5172_v50, %v752_v59  ;;  %v759_v47 = vand.u32 2147483647, %v5168_v40  ;;  %v5233_v59 = vld [vmem:[#allocation5 + $0x118] sm:$0xff]  ;;  %vm884_vm3 = vcmask 1043456  }
 0x17c   :  { %v4070_v38 = vpop.eup %4069  ;;  %v718_v54 = vsel %vm715_vm4, %v717_v45, %v713_v63  ;;  %v5209_v63 = vld [vmem:[#allocation5 + $0x170] sm:$0xff] }
 0x17d   :  { %v736_v46 = vmul.f32 %v4070_v38, %v703_v61  ;;  %v774_v32 = vmul.f32 %v769_v49, %v718_v54  ;;  %vm741_vm8 = vweird.f32 %v4070_v38  ;;  %v754_v25 = vadd.f32 %v5172_v50, %v753_v16  ;;  %v5206_v49 = vld [vmem:[#allocation5 + $0x168] sm:$0xff]  ;;  %v5218_v54 = vld [vmem:[#allocation5 + $0x158] sm:$0xff]  ;;  %v5266_v16 = vld [vmem:[#allocation5 + $0xe0] sm:$0xff] }
 0x17e   :  { %vm742_vm11 = vmor %vm740_vm10, %vm741_vm8  ;;  %vm760_vm1 = vcmp.eq.f32.partialorder %v759_v47, 8.507059e+37  ;;  %v5305_v47 = vld [vmem:[#allocation5 + $0x58] sm:$0xff] }
 0x17f   :  { %v737_v5 = vsub.f32 1.0, %v736_v46  ;;  %v776_v6 = vadd.f32 %v774_v32, %v597_v2  ;;  %v758_v61 = vsel %vm757_vm15, %v5172_v50, %v754_v25  ;;  %v5227_v46 = vld [vmem:[#allocation5 + $0x140] sm:$0xff]  ;;  %v5230_v32 = vld [vmem:[#allocation5 + $0x130] sm:$0xff]  ;;  %v5287_v25 = vld [vmem:[#allocation5 + $0x88] sm:$0xff]  ;;  %7119 = vst [vmem:[#allocation12_spill] sm:$0xff] %v5305_v47 }
 0x180   :  { %v763_v36 = vsel %vm760_vm1, %v762_v24, %v758_v61  ;;  %v5236_v2 = vld [vmem:[#allocation5 + $0x120] sm:$0xff]  ;;  %v5317_v61 = vld [vmem:[#allocation5 + $0x48] sm:$0xff]  ;;  %v5320_v24 = vld [vmem:[#allocation5 + $0x50] sm:$0xff] }
 0x181   :  { %v738_v13 = vmul.f32 %v4070_v38, %v737_v5  ;;  %4071 = vtanh.f32 %v776_v6  ;;  %v781_v52 = vsub.f32 1.0, %v763_v36  ;;  %v792_v40 = vmul.f32 %v5105_v3, %v763_v36  ;;  %v5203_v3 = vld [vmem:[#allocation5 + $0x178] sm:$0xff]  ;;  %v5242_v5 = vld [vmem:[#allocation5 + $0x100] sm:$0xff]  ;;  %v5245_v6 = vld [vmem:[#allocation5 + $0x108] sm:$0xff]  ;;  %7123 = vst [vmem:[#allocation15_spill] sm:$0xff] %v5317_v61 }
 0x182   :  { %7124 = vst [vmem:[#allocation24_spill] sm:$0xff] %v5320_v24  ;;  %v5323_v36 = vld [vmem:[#allocation5 + $0x28] sm:$0xff] }
 0x183   :  { %v739_v17 = vadd.f32 %v4070_v38, %v738_v13  ;;  %v5260_v13 = vld [vmem:[#allocation5 + $0xd0] sm:$0xff]  ;;  %7125 = vst [vmem:[#allocation16_spill] sm:$0xff] %v5323_v36 }
 0x185   :  { %v743_v20 = vsel %vm742_vm11, %v4070_v38, %v739_v17  ;;  %v5215_v38 = vld [vmem:[#allocation5 + $0x150] sm:$0xff]  ;;  %v5269_v17 = vld [vmem:[#allocation5 + $0xb8] sm:$0xff] }
 0x186   :  { %v748_v22 = vsel %vm745_vm12, %v747_v19, %v743_v20  ;;  %v5275_v19 = vld [vmem:[#allocation5 + $0xc8] sm:$0xff] }
 0x187   :  { %v4072_v28 = vpop.eup %4071  ;;  %v775_v34 = vmul.f32 %v771_v14, %v748_v22  ;;  %v5278_v14 = vld [vmem:[#allocation5 + $0xa0] sm:$0xff]  ;;  %v5281_v20 = vld [vmem:[#allocation5 + $0xa8] sm:$0xff]  ;;  %v5284_v22 = vld [vmem:[#allocation5 + $0xb0] sm:$0xff] }
 0x188   :  { %v782_v48 = vmul.f32 %v4072_v28, %v780_v27  ;;  %v5290_v27 = vld [vmem:[#allocation5 + $0x90] sm:$0xff]  ;;  %v5293_v28 = vld [vmem:[#allocation5 + $0x98] sm:$0xff] }
 0x189   :  { %v777_v0 = vadd.f32 %v775_v34, %v600_v43  ;;  %v5299_v34 = vld [vmem:[#allocation5 + $0x78] sm:$0xff]  ;;  %v5302_v43 = vld [vmem:[#allocation5 + $0x80] sm:$0xff] }
 0x18a   :  { %v5191_v41 = vadd.f32 %v791_v39, %v782_v48  ;;  %7118 = vst [vmem:[#allocation22_spill] sm:$0xff] %v5302_v43  ;;  %v5308_v48 = vld [vmem:[#allocation5 + $0x60] sm:$0xff]  ;;  %v5311_v39 = vld [vmem:[#allocation5 + $0x68] sm:$0xff] }
 0x18b   :  { %4073 = vtanh.f32 %v777_v0  ;;  %7120 = vst [vmem:[#allocation13_spill] sm:$0xff] %v5308_v48  ;;  %v5314_v0 = vld [vmem:[#allocation5 + $0x40] sm:$0xff] }
 0x18c   :  { %795 = vst [vmem:[#allocation3 + $0x48] sm:$0xfc] %v5191_v41  ;;  %v806_v42 = vrot.slane %v5191_v41, 2  ;;  %v6996_v50 = vrot.slane %v5191_v41, 6 }
 0x18d   :  { %7121 = vst [vmem:[#allocation23_spill] sm:$0xff] %v5311_v39 }
 0x18e   :  { %7122 = vst [vmem:[#allocation14_spill] sm:$0xff] %v5314_v0 }
 0x191   :  { %v4074_v60 = vpop.eup %4073 }
 0x192   :  { %v783_v56 = vmul.f32 %v4074_v60, %v781_v52  ;;  %v5326_v52 = vld [vmem:[#allocation5 + $0x30] sm:$0xff]  ;;  %v5329_v60 = vld [vmem:[#allocation5 + $0x38] sm:$0xff] }
 0x193   :  { %7126 = vst [vmem:[#allocation17_spill] sm:$0xff] %v5326_v52 }
 0x194   :  { %v794_v12 = vadd.f32 %v792_v40, %v783_v56  ;;  %7127 = vst [vmem:[#allocation25_spill] sm:$0xff] %v5329_v60  ;;  %v5332_v56 = vld [vmem:[#allocation5 + $0x10] sm:$0xff]  ;;  %v5335_v40 = vld [vmem:[#allocation5 + $0x18] sm:$0xff] }
 0x195   :  { %7128 = vst [vmem:[#allocation18_spill] sm:$0xff] %v5332_v56 }
 0x196   :  { %796 = vst [vmem:[#allocation3 + $0x28] sm:$0xf] %v794_v12  ;;  %v807_v1 = vrot.slane %v794_v12, 2  ;;  %v995_v44 = vrot.slane %v794_v12, 6  ;;  %v5338_v12 = vld [vmem:[#allocation5 + $0x20] sm:$0xff] }
 0x197   :  { %7129 = vst [vmem:[#allocation19_spill] sm:$0xff] %v5335_v40 }
 0x198   :  { %v808_v45 = vsel %vm805_vm2, %v806_v42, %v807_v1  ;;  %v5201_v57 = vsel %vm674_vm0, %v6996_v50, %v995_v44  ;;  %7130 = vst [vmem:[#allocation20_spill] sm:$0xff] %v5338_v12  ;;  %v5341_v42 = vld [vmem:[#allocation5] sm:$0xff] }
 0x199   :  { %827 = vmatmul.f32.vlgmr.msrb.gmra.mxu2 %v808_v45  ;;  %850 = vmatmul.f32.vlgmr.msrb.gmra.mxu3 %v808_v45  ;;  %7131 = vst [vmem:[#allocation21_spill] sm:$0xff] %v5341_v42 }
 0x19a   :  { %873 = vmatmul.f32.vlgmr.msra.gmra.mxu0 %v808_v45  ;;  %1270 = vmatpush.msrb.mxu2 %v5203_v3 }
 0x19b   :  { %1397 = vmatpush.msrb.mxu3 %v5206_v49  ;;  %1420 = vmatpush.msra.mxu0 %v5209_v63 }
 0x19c   :  { %1271 = vmatpush.msrb.mxu2 %v5212_v33 }
 0x19d   :  { %1398 = vmatpush.msrb.mxu3 %v5215_v38  ;;  %1421 = vmatpush.msra.mxu0 %v5218_v54 }
 0x19e   :  { %1272 = vmatpush.msrb.mxu2 %v5221_v58 }
 0x19f   :  { %1399 = vmatpush.msrb.mxu3 %v5224_v53  ;;  %1422 = vmatpush.msra.mxu0 %v5227_v46 }
 0x1a0   :  { %1273 = vmatpush.msrb.mxu2 %v5230_v32 }
 0x1a1   :  { %830 = vmatmul.f32.gmra.mxu2 %v807_v1  ;;  %853 = vmatmul.f32.gmra.mxu3 %v807_v1 }
 0x1a2   :  { %876 = vmatmul.f32.gmra.mxu0 %v807_v1  ;;  %1274 = vmatpush.msrb.mxu2 %v5233_v59  ;;  %v5344_v1 = vld [vmem:[#allocation5 + $0x8] sm:$0xff] }
 0x1a3   :  { %1400 = vmatpush.msrb.mxu3 %v5236_v2  ;;  %1423 = vmatpush.msra.mxu0 %v5239_v4  ;;  %7132 = vst [vmem:[#allocation35_spill] sm:$0xff] %v5344_v1 }
 0x1a4   :  { %1275 = vmatpush.msrb.mxu2 %v5242_v5 }
 0x1a5   :  { %1401 = vmatpush.msrb.mxu3 %v5245_v6  ;;  %1424 = vmatpush.msra.mxu0 %v5248_v7 }
 0x1a6   :  { %1276 = vmatpush.msrb.mxu2 %v5251_v8 }
 0x1a7   :  { %1402 = vmatpush.msrb.mxu3 %v5254_v10  ;;  %1425 = vmatpush.msra.mxu0 %v5257_v11 }
 0x1a8   :  { %1277 = vmatpush.msrb.mxu2 %v5260_v13 }
 0x1a9   :  { %1403 = vmatpush.msrb.mxu3 %v5263_v15  ;;  %1426 = vmatpush.msra.mxu0 %v5266_v16 }
 0x1aa   :  { %1278 = vmatpush.msrb.mxu2 %v5269_v17 }
 0x1ab   :  { %1404 = vmatpush.msrb.mxu3 %v5272_v18  ;;  %1427 = vmatpush.msra.mxu0 %v5275_v19 }
 0x1ac   :  { %1279 = vmatpush.msrb.mxu2 %v5278_v14 }
 0x1ad   :  { %1405 = vmatpush.msrb.mxu3 %v5281_v20  ;;  %1428 = vmatpush.msra.mxu0 %v5284_v22 }
 0x1ae   :  { %1280 = vmatpush.msrb.mxu2 %v5287_v25 }
 0x1af   :  { %1406 = vmatpush.msrb.mxu3 %v5290_v27  ;;  %1429 = vmatpush.msra.mxu0 %v5293_v28 }
 0x1b0   :  { %1281 = vmatpush.msrb.mxu2 %v5296_v30 }
 0x1b1   :  { %1407 = vmatpush.msrb.mxu3 %v5299_v34  ;;  %1430 = vmatpush.msra.mxu0 %v5302_v43 }
 0x1b2   :  { %1282 = vmatpush.msrb.mxu2 %v5305_v47 }
 0x1b3   :  { %1408 = vmatpush.msrb.mxu3 %v5308_v48  ;;  %1431 = vmatpush.msra.mxu0 %v5311_v39 }
 0x1b4   :  { %1283 = vmatpush.msrb.mxu2 %v5314_v0 }
 0x1b5   :  { %1409 = vmatpush.msrb.mxu3 %v5317_v61  ;;  %1432 = vmatpush.msra.mxu0 %v5320_v24 }
 0x1b6   :  { %1284 = vmatpush.msrb.mxu2 %v5323_v36 }
 0x1b7   :  { %1410 = vmatpush.msrb.mxu3 %v5326_v52  ;;  %1433 = vmatpush.msra.mxu0 %v5329_v60 }
 0x1b8   :  { %1285 = vmatpush.msrb.mxu2 %v5332_v56  ;;  %v801_v56 = vld [vmem:[#allocation2 + $0xe8] sm:$0x3f] }
 0x1b9   :  { %1411 = vmatpush.msrb.mxu3 %v5335_v40  ;;  %1434 = vmatpush.msra.mxu0 %v5338_v12  ;;  %v800_v40 = vld [vmem:[#allocation2 + $0x88] sm:$0x3f] }
 0x1bb   :  { %1412 = vmatpush.msrb.mxu3 %v5341_v42  ;;  %1435 = vmatpush.msra.mxu0 %v5344_v1 }
 0x21c   :  { %v828_v44 = vpop.f32.mrf.mxu2  ;;  %v851_v45 = vpop.f32.mrf.mxu3 }
 0x21d   :  { %v885_v50 = vrot.slane %v828_v44, 4  ;;  %v886_v35 = vrot.slane %v851_v45, 4 }
 0x21f   :  { %v895_v62 = vadd.f32 %v885_v50, %v797_v26  ;;  %v896_v51 = vadd.f32 %v886_v35, %v798_v37  ;;  %v94_v26 = vld [vmem:[%s6945_s0 + $0x20] sm:$0xff] }
 0x220   :  { %208 = vperm.xlu1 %4024, %v94_v26   ;;  %123 = vperm.xlu0 %4023, %v94_v26  }
 0x221   :  { %v3933_v23 = vmul.f32 -1.442695, %v895_v62  ;;  %v3934_v31 = vmul.f32 -1.442695, %v896_v51  ;;  %v7133_v62 = vmov 1  }
 0x223   :  { %4075 = vpow2.f32 %v3933_v23 }
 0x224   :  { %4077 = vpow2.f32 %v3934_v31  ;;  %v831_v21 = vpop.f32.mrf.mxu2  ;;  %v854_v29 = vpop.f32.mrf.mxu3 }
 0x225   :  { %v887_v12 = vrot.slane %v831_v21, 4  ;;  %v889_v42 = vrot.slane %v854_v29, 4 }
 0x227   :  { %v888_v1 = vsel %vm884_vm3, %v885_v50, %v887_v12  ;;  %v890_v44 = vsel %vm884_vm3, %v886_v35, %v889_v42  ;;  %v874_v50 = vpop.f32.mrf.mxu0 }
 0x228   :  { %v897_v45 = vadd.f32 %v888_v1, %v800_v40  ;;  %v898_v60 = vadd.f32 %v890_v44, %v801_v56  ;;  %4026 = vset.pattern.permute.xlu0 %v7133_v62 }
 0x229   :  { %v4076_v37 = vpop.eup %4075 }
 0x22a   :  { %v4078_v23 = vpop.eup %4077  ;;  %v911_v31 = vadd.f32 1.0, %v4076_v37  ;;  %v3935_v21 = vmul.f32 -1.442695, %v897_v45  ;;  %v3936_v51 = vmul.f32 -1.442695, %v898_v60  ;;  %v975_v37 = vadd.f32 %v5040_v55, %v874_v50  ;;  %v95_v50 = vld [vmem:[%s6945_s0 + $0x28] sm:$0xff] }
 0x22b   :  { %v912_v29 = vadd.f32 1.0, %v4078_v23  ;;  %212 = vperm.xlu1 %4024, %v95_v50   ;;  %128 = vperm.xlu2 %4025, %v95_v50  }
 0x22c   :  { %4079 = vrcp.f32 %v911_v31  ;;  %v926_v45 = vand.u32 2147483648, %v911_v31  ;;  %vm920_vm5 = vweird.f32 %v911_v31  ;;  %v979_v24 = vrot.slane %v975_v37, 4 }
 0x22d   :  { %4081 = vrcp.f32 %v912_v29  ;;  %v941_v61 = vand.u32 2147483648, %v912_v29  ;;  %vm935_vm9 = vweird.f32 %v912_v29  ;;  %v939_v37 = vand.u32 2147483647, %v912_v29 }
 0x22e   :  { %4083 = vpow2.f32 %v3935_v21  ;;  %v924_v21 = vand.u32 2147483647, %v911_v31  ;;  %v927_v36 = vor.u32 1.1754944e-38, %v926_v45  ;;  %v799_v45 = vld [vmem:[#allocation2 + $0x80] sm:$0xf0] }
 0x22f   :  { %4085 = vpow2.f32 %v3936_v51  ;;  %vm940_vm12 = vcmp.eq.f32.partialorder %v939_v37, 8.507059e+37 }
 0x230   :  { %vm925_vm7 = vcmp.eq.f32.partialorder %v924_v21, 8.507059e+37 }
 0x232   :  { %v4080_v35 = vpop.eup %4079 }
 0x233   :  { %v4082_v56 = vpop.eup %4081  ;;  %v916_v40 = vmul.f32 %v4080_v35, %v911_v31  ;;  %vm921_vm4 = vweird.f32 %v4080_v35  ;;  %4027 = vset.pattern.permute.xlu1 %v7094_v9 }
 0x234   :  { %v4084_v12 = vpop.eup %4083  ;;  %v931_v42 = vmul.f32 %v4082_v56, %v912_v29  ;;  %vm922_vm6 = vmor %vm920_vm5, %vm921_vm4  ;;  %vm936_vm8 = vweird.f32 %v4082_v56 }
 0x235   :  { %v4086_v1 = vpop.eup %4085  ;;  %v917_v44 = vsub.f32 1.0, %v916_v40  ;;  %v913_v26 = vadd.f32 1.0, %v4084_v12  ;;  %vm937_vm10 = vmor %vm935_vm9, %vm936_vm8 }
 0x236   :  { %v932_v23 = vsub.f32 1.0, %v931_v42  ;;  %v5354_v60 = vadd.f32 1.0, %v4086_v1  ;;  %v877_v42 = vpop.f32.mrf.mxu0 }
 0x237   :  { %v918_v52 = vmul.f32 %v4080_v35, %v917_v44  ;;  %4087 = vrcp.f32 %v913_v26  ;;  %v956_v0 = vand.u32 2147483648, %v913_v26  ;;  %vm950_vm13 = vweird.f32 %v913_v26 }
 0x238   :  { %v933_v51 = vmul.f32 %v4082_v56, %v932_v23  ;;  %4089 = vrcp.f32 %v5354_v60  ;;  %v971_v37 = vand.u32 2147483648, %v5354_v60  ;;  %vm965_vm4 = vweird.f32 %v5354_v60 }
 0x239   :  { %v919_v62 = vadd.f32 %v4080_v35, %v918_v52 }
 0x23a   :  { %v934_v1 = vadd.f32 %v4082_v56, %v933_v51  ;;  %v942_v51 = vor.u32 1.1754944e-38, %v941_v61 }
 0x23b   :  { %v923_v40 = vsel %vm922_vm6, %v4080_v35, %v919_v62  ;;  %v976_v62 = vadd.f32 %v5040_v55, %v877_v42  ;;  %v957_v55 = vor.u32 1.1754944e-38, %v956_v0  ;;  %v969_v0 = vand.u32 2147483647, %v5354_v60 }
 0x23c   :  { %v928_v12 = vsel %vm925_vm7, %v927_v36, %v923_v40  ;;  %v938_v40 = vsel %vm937_vm10, %v4082_v56, %v934_v1 }
 0x23d   :  { %v4088_v44 = vpop.eup %4087  ;;  %v984_v23 = vmul.f32 %v979_v24, %v928_v12  ;;  %v954_v12 = vand.u32 2147483647, %v913_v26  ;;  %v980_v48 = vrot.slane %v976_v62, 4  ;;  %v943_v43 = vsel %vm940_vm12, %v942_v51, %v938_v40 }
 0x23e   :  { %v4090_v52 = vpop.eup %4089  ;;  %v946_v31 = vmul.f32 %v4088_v44, %v913_v26  ;;  %vm951_vm11 = vweird.f32 %v4088_v44  ;;  %v990_v56 = vsub.f32 1.0, %v943_v43  ;;  %v7134_v62 = vrot.slane %v5191_v41, 6 }
 0x23f   :  { %v961_v35 = vmul.f32 %v4090_v52, %v5354_v60  ;;  %v986_v21 = vadd.f32 %v984_v23, %v799_v45  ;;  %vm952_vm14 = vmor %vm950_vm13, %vm951_vm11  ;;  %vm955_vm15 = vcmp.eq.f32.partialorder %v954_v12, 8.507059e+37  ;;  %v981_v1 = vsel %vm884_vm3, %v979_v24, %v980_v48 }
 0x240   :  { %v947_v36 = vsub.f32 1.0, %v946_v31  ;;  %vm966_vm1 = vweird.f32 %v4090_v52  ;;  %v999_v26 = vmul.f32 %v7134_v62, %v943_v43  ;;  %v972_v24 = vor.u32 1.1754944e-38, %v971_v37  ;;  %v7143_v37 = vld [vmem:[#allocation17_spill] sm:$0xff]  ;;  %v7145_v62 = vld [vmem:[#allocation18_spill] sm:$0xff] }
 0x241   :  { %v962_v39 = vsub.f32 1.0, %v961_v35  ;;  %4091 = vtanh.f32 %v986_v21  ;;  %v802_v35 = vld [vmem:[#allocation2 + $0xb8] sm:$0x3f]  ;;  %vm967_vm5 = vmor %vm965_vm4, %vm966_vm1  ;;  %vm970_vm6 = vcmp.eq.f32.partialorder %v969_v0, 8.507059e+37  ;;  %v7148_v0 = vld [vmem:[#allocation21_spill] sm:$0xff] }
 0x242   :  { %v948_v50 = vmul.f32 %v4088_v44, %v947_v36 }
 0x243   :  { %v963_v47 = vmul.f32 %v4090_v52, %v962_v39 }
 0x244   :  { %v949_v29 = vadd.f32 %v4088_v44, %v948_v50 }
 0x245   :  { %v964_v31 = vadd.f32 %v4090_v52, %v963_v47 }
 0x246   :  { %v953_v42 = vsel %vm952_vm14, %v4088_v44, %v949_v29 }
 0x247   :  { %v4092_v61 = vpop.eup %4091  ;;  %v958_v23 = vsel %vm955_vm15, %v957_v55, %v953_v42  ;;  %v968_v48 = vsel %vm967_vm5, %v4090_v52, %v964_v31  ;;  %v7136_v42 = vld [vmem:[#allocation12_spill] sm:$0xff] }
 0x248   :  { %v985_v45 = vmul.f32 %v981_v1, %v958_v23  ;;  %v992_v39 = vmul.f32 %v4092_v61, %v990_v56  ;;  %v973_v47 = vsel %vm970_vm6, %v972_v24, %v968_v48  ;;  %v7137_v56 = vld [vmem:[#allocation13_spill] sm:$0xff]  ;;  %v7138_v61 = vld [vmem:[#allocation23_spill] sm:$0xff]  ;;  %v7139_v1 = vld [vmem:[#allocation14_spill] sm:$0xff] }
 0x249   :  { %v991_v36 = vsub.f32 1.0, %v973_v47  ;;  %v1000_v43 = vmul.f32 %v5201_v57, %v973_v47  ;;  %v7135_v57 = vld [vmem:[#allocation22_spill] sm:$0xff]  ;;  %v7140_v23 = vld [vmem:[#allocation15_spill] sm:$0xff]  ;;  %v7141_v31 = vld [vmem:[#allocation24_spill] sm:$0xff] }
 0x24a   :  { %v987_v44 = vadd.f32 %v985_v45, %v802_v35  ;;  %v5369_v21 = vadd.f32 %v999_v26, %v992_v39  ;;  %v7142_v45 = vld [vmem:[#allocation16_spill] sm:$0xff]  ;;  %v7144_v39 = vld [vmem:[#allocation25_spill] sm:$0xff]  ;;  %v7146_v26 = vld [vmem:[#allocation19_spill] sm:$0xff] }
 0x24b   :  { %v7147_v35 = vld [vmem:[#allocation20_spill] sm:$0xff]  ;;  %v7150_v47 = vld [vmem:[#allocation29_spill] sm:$0xff] }
 0x24c   :  { %4093 = vtanh.f32 %v987_v44  ;;  %1003 = vst [vmem:[#allocation3 + $0x28] sm:$0xf0] %v5369_v21  ;;  %v1013_v60 = vrot.slane %v5369_v21, 4  ;;  %v7036_v29 = vrot.slane %v5369_v21, 6  ;;  %v7149_v44 = vld [vmem:[#allocation35_spill] sm:$0xff] }
 0x252   :  { %v4094_v40 = vpop.eup %4093 }
 0x253   :  { %v993_v41 = vmul.f32 %v4094_v40, %v991_v36  ;;  %v7151_v40 = vld [vmem:[#allocation26_spill] sm:$0xff] }
 0x255   :  { %v1002_v51 = vadd.f32 %v1000_v43, %v993_v41 }
 0x257   :  { %1004 = vst [vmem:[#allocation3 + $0x38] sm:$0x3f] %v1002_v51  ;;  %v1014_v50 = vrot.slane %v1002_v51, 4  ;;  %v1201_v12 = vrot.slane %v1002_v51, 6 }
 0x259   :  { %v1015_v52 = vsel %vm884_vm3, %v1013_v60, %v1014_v50  ;;  %v5379_v55 = vsel %vm674_vm0, %v7036_v29, %v1201_v12  ;;  %v1005_v60 = vld [vmem:[#allocation2 + $0x88] sm:$0xc0] }
 0x25a   :  { %1034 = vmatmul.f32.vlgmr.msra.gmra.mxu1 %v1015_v52  ;;  %1057 = vmatmul.f32.vlgmr.msra.gmra.mxu2 %v1015_v52 }
 0x25b   :  { %1080 = vmatmul.f32.vlgmr.msra.gmra.mxu3 %v1015_v52  ;;  %1443 = vmatpush.msra.mxu1 %v5203_v3 }
 0x25c   :  { %1605 = vmatpush.msra.mxu2 %v5206_v49  ;;  %1628 = vmatpush.msra.mxu3 %v5209_v63 }
 0x25d   :  { %1444 = vmatpush.msra.mxu1 %v5212_v33 }
 0x25e   :  { %1606 = vmatpush.msra.mxu2 %v5215_v38  ;;  %1629 = vmatpush.msra.mxu3 %v5218_v54 }
 0x25f   :  { %1445 = vmatpush.msra.mxu1 %v5221_v58 }
 0x260   :  { %1607 = vmatpush.msra.mxu2 %v5224_v53  ;;  %1630 = vmatpush.msra.mxu3 %v5227_v46 }
 0x261   :  { %1446 = vmatpush.msra.mxu1 %v5230_v32 }
 0x262   :  { %1037 = vmatmul.f32.gmra.mxu1 %v1014_v50  ;;  %1060 = vmatmul.f32.gmra.mxu2 %v1014_v50 }
 0x263   :  { %1083 = vmatmul.f32.gmra.mxu3 %v1014_v50  ;;  %1447 = vmatpush.msra.mxu1 %v5233_v59 }
 0x264   :  { %1608 = vmatpush.msra.mxu2 %v5236_v2  ;;  %1631 = vmatpush.msra.mxu3 %v5239_v4 }
 0x265   :  { %1448 = vmatpush.msra.mxu1 %v5242_v5 }
 0x266   :  { %1609 = vmatpush.msra.mxu2 %v5245_v6  ;;  %1632 = vmatpush.msra.mxu3 %v5248_v7 }
 0x267   :  { %1449 = vmatpush.msra.mxu1 %v5251_v8 }
 0x268   :  { %1610 = vmatpush.msra.mxu2 %v5254_v10  ;;  %1633 = vmatpush.msra.mxu3 %v5257_v11 }
 0x269   :  { %1450 = vmatpush.msra.mxu1 %v5260_v13 }
 0x26a   :  { %1611 = vmatpush.msra.mxu2 %v5263_v15  ;;  %1634 = vmatpush.msra.mxu3 %v5266_v16 }
 0x26b   :  { %1451 = vmatpush.msra.mxu1 %v5269_v17 }
 0x26c   :  { %1612 = vmatpush.msra.mxu2 %v5272_v18  ;;  %1635 = vmatpush.msra.mxu3 %v5275_v19 }
 0x26d   :  { %1452 = vmatpush.msra.mxu1 %v5278_v14 }
 0x26e   :  { %1613 = vmatpush.msra.mxu2 %v5281_v20  ;;  %1636 = vmatpush.msra.mxu3 %v5284_v22 }
 0x26f   :  { %1453 = vmatpush.msra.mxu1 %v5287_v25 }
 0x270   :  { %1614 = vmatpush.msra.mxu2 %v5290_v27  ;;  %1637 = vmatpush.msra.mxu3 %v5293_v28 }
 0x271   :  { %1454 = vmatpush.msra.mxu1 %v5296_v30 }
 0x272   :  { %1615 = vmatpush.msra.mxu2 %v5299_v34  ;;  %1638 = vmatpush.msra.mxu3 %v7135_v57 }
 0x273   :  { %1455 = vmatpush.msra.mxu1 %v7136_v42 }
 0x274   :  { %1616 = vmatpush.msra.mxu2 %v7137_v56  ;;  %1639 = vmatpush.msra.mxu3 %v7138_v61 }
 0x275   :  { %1456 = vmatpush.msra.mxu1 %v7139_v1  ;;  %v7155_v1 = vld [vmem:[#allocation33_spill] sm:$0xff] }
 0x276   :  { %1617 = vmatpush.msra.mxu2 %v7140_v23  ;;  %1640 = vmatpush.msra.mxu3 %v7141_v31 }
 0x277   :  { %1457 = vmatpush.msra.mxu1 %v7142_v45 }
 0x278   :  { %1618 = vmatpush.msra.mxu2 %v7143_v37  ;;  %1641 = vmatpush.msra.mxu3 %v7144_v39  ;;  %v7154_v39 = vld [vmem:[#allocation32_spill] sm:$0xff] }
 0x279   :  { %1458 = vmatpush.msra.mxu1 %v7145_v62  ;;  %v1006_v37 = vld [vmem:[#allocation2 + $0xe8] sm:$0xc0] }
 0x27a   :  { %1619 = vmatpush.msra.mxu2 %v7146_v26  ;;  %1642 = vmatpush.msra.mxu3 %v7147_v35  ;;  %v7153_v26 = vld [vmem:[#allocation27_spill] sm:$0xff] }
 0x27c   :  { %1620 = vmatpush.msra.mxu2 %v7148_v0  ;;  %1643 = vmatpush.msra.mxu3 %v7149_v44  ;;  %v7152_v44 = vld [vmem:[#allocation30_spill] sm:$0xff] }
 0x292   :  { %v5429_v48 = vpop.permute.xlu0 %123  ;;  %v5431_v24 = vpop.permute.xlu1 %208 }
 0x293   :  { %v252_v36 = vmul.f32 %v7150_v47, %v5431_v24  ;;  %v173_v41 = vmul.f32 %v7151_v40, %v5429_v48  ;;  %v253_v35 = vmul.f32 %v7152_v44, %v5431_v24  ;;  %v174_v62 = vmul.f32 %v7153_v26, %v5429_v48 }
 0x295   :  { %v282_v12 = vadd.f32 %v252_v36, %v173_v41  ;;  %v283_v36 = vadd.f32 %v253_v35, %v174_v62  ;;  %v96_v35 = vld [vmem:[%s6945_s0 + $0x30] sm:$0xff] }
 0x296   :  { %216 = vperm.xlu0 %4026, %v96_v35   ;;  %133 = vperm.xlu2 %4025, %v96_v35  }
 0x297   :  { %v320_v47 = vadd.f32 %v7154_v39, %v282_v12  ;;  %v321_v61 = vadd.f32 %v7155_v1, %v283_v36 }
 0x29e   :  { %4029 = vset.pattern.permute.xlu0 %v7094_v9 }
 0x2d7   :  { %v1035_v43 = vpop.f32.mrf.mxu1 }
 0x2d8   :  { %v1091_v51 = vrot.slane %v1035_v43, 2 }
 0x2da   :  { %v1101_v50 = vadd.f32 %v1091_v51, %v1005_v60 }
 0x2dc   :  { %v3937_v52 = vmul.f32 -1.442695, %v1101_v50 }
 0x2dd   :  { %v1058_v29 = vpop.f32.mrf.mxu2 }
 0x2de   :  { %4095 = vpow2.f32 %v3937_v52  ;;  %v1092_v0 = vrot.slane %v1058_v29, 2 }
 0x2df   :  { %v1038_v45 = vpop.f32.mrf.mxu1 }
 0x2e0   :  { %v1102_v40 = vadd.f32 %v1092_v0, %v1006_v37  ;;  %v1093_v31 = vrot.slane %v1038_v45, 2 }
 0x2e2   :  { %v3938_v43 = vmul.f32 -1.442695, %v1102_v40  ;;  %v1094_v60 = vsel %vm805_vm2, %v1091_v51, %v1093_v31  ;;  %v1081_v31 = vpop.f32.mrf.mxu3 }
 0x2e3   :  { %v1103_v41 = vadd.f32 %v1094_v60, %v320_v47 }
 0x2e4   :  { %v4096_v50 = vpop.eup %4095  ;;  %4097 = vpow2.f32 %v3938_v43  ;;  %v5454_v43 = vld [vmem:[%s6950_s5] ss:$0 sm:$0xff] }
 0x2e5   :  { %v1117_v29 = vadd.f32 1.0, %v4096_v50  ;;  %v3939_v52 = vmul.f32 -1.442695, %v1103_v41  ;;  %v1061_v23 = vpop.f32.mrf.mxu2  ;;  %7156 = vst [vmem:[#allocation22_spill] sm:$0xff] %v5454_v43  ;;  %v1181_v60 = vadd.f32 %v5454_v43, %v1081_v31 }
 0x2e6   :  { %v1095_v44 = vrot.slane %v1061_v23, 2 }
 0x2e7   :  { %4099 = vrcp.f32 %v1117_v29  ;;  %vm1126_vm8 = vweird.f32 %v1117_v29 }
 0x2e8   :  { %4101 = vpow2.f32 %v3939_v52  ;;  %v1096_v12 = vsel %vm805_vm2, %v1092_v0, %v1095_v44 }
 0x2e9   :  { %v1104_v39 = vadd.f32 %v1096_v12, %v321_v61  ;;  %v1132_v61 = vand.u32 2147483648, %v1117_v29 }
 0x2ea   :  { %v4098_v37 = vpop.eup %4097 }
 0x2eb   :  { %v5445_v45 = vadd.f32 1.0, %v4098_v37  ;;  %v3940_v40 = vmul.f32 -1.442695, %v1104_v39  ;;  %v1130_v39 = vand.u32 2147483647, %v1117_v29  ;;  %v1133_v12 = vor.u32 1.1754944e-38, %v1132_v61 }
 0x2ed   :  { %v4100_v62 = vpop.eup %4099  ;;  %4103 = vrcp.f32 %v5445_v45  ;;  %vm1131_vm10 = vcmp.eq.f32.partialorder %v1130_v39, 8.507059e+37  ;;  %v7159_v39 = vld [vmem:[#allocation28_spill] sm:$0xff]  ;;  %v1145_v9 = vand.u32 2147483647, %v5445_v45  ;;  %vm1141_vm12 = vweird.f32 %v5445_v45 }
 0x2ee   :  { %v4102_v23 = vpop.eup %4101  ;;  %v1122_v47 = vmul.f32 %v4100_v62, %v1117_v29  ;;  %4105 = vpow2.f32 %v3940_v40  ;;  %vm1127_vm7 = vweird.f32 %v4100_v62 }
 0x2ef   :  { %v1119_v51 = vadd.f32 1.0, %v4102_v23  ;;  %vm1128_vm9 = vmor %vm1126_vm8, %vm1127_vm7  ;;  %v1185_v23 = vrot.slane %v1181_v60, 2  ;;  %v175_v60 = vmul.f32 %v7159_v39, %v5429_v48  ;;  %vm1146_vm15 = vcmp.eq.f32.partialorder %v1145_v9, 8.507059e+37 }
 0x2f0   :  { %v1123_v0 = vsub.f32 1.0, %v1122_v47  ;;  %v1084_v47 = vpop.f32.mrf.mxu3 }
 0x2f1   :  { %4107 = vrcp.f32 %v1119_v51  ;;  %vm1156_vm1 = vweird.f32 %v1119_v51 }
 0x2f2   :  { %v1124_v44 = vmul.f32 %v4100_v62, %v1123_v0  ;;  %v7157_v0 = vmov 1  }
 0x2f3   :  { %v4104_v36 = vpop.eup %4103  ;;  %4028 = vset.pattern.permute.xlu2 %v7157_v0 }
 0x2f4   :  { %v4106_v41 = vpop.eup %4105  ;;  %v1137_v50 = vmul.f32 %v4104_v36, %v5445_v45  ;;  %v1125_v52 = vadd.f32 %v4100_v62, %v1124_v44  ;;  %v1147_v44 = vand.u32 2147483648, %v5445_v45  ;;  %vm1142_vm11 = vweird.f32 %v4104_v36 }
 0x2f5   :  { %v5458_v37 = vadd.f32 1.0, %v4106_v41  ;;  %v7158_v41 = vld [vmem:[#allocation31_spill] sm:$0xff]  ;;  %vm1143_vm13 = vmor %vm1141_vm12, %vm1142_vm11 }
 0x2f6   :  { %v1138_v40 = vsub.f32 1.0, %v1137_v50  ;;  %v1129_v35 = vsel %vm1128_vm9, %v4100_v62, %v1125_v52  ;;  %v254_v62 = vmul.f32 %v7158_v41, %v5431_v24  ;;  %v1007_v50 = vld [vmem:[#allocation2 + $0xb8] sm:$0xc0]  ;;  %v1182_v52 = vadd.f32 %v5454_v43, %v1084_v47 }
 0x2f7   :  { %v4108_v31 = vpop.eup %4107  ;;  %v1134_v1 = vsel %vm1131_vm10, %v1133_v12, %v1129_v35  ;;  %4109 = vrcp.f32 %v5458_v37  ;;  %v1148_v56 = vor.u32 1.1754944e-38, %v1147_v44  ;;  %vm1171_vm7 = vweird.f32 %v5458_v37 }
 0x2f8   :  { %v1139_v29 = vmul.f32 %v4104_v36, %v1138_v40  ;;  %v1190_v26 = vmul.f32 %v1185_v23, %v1134_v1  ;;  %v1152_v61 = vmul.f32 %v4108_v31, %v1119_v51  ;;  %v1160_v40 = vand.u32 2147483647, %v1119_v51 }
 0x2f9   :  { %v1162_v1 = vand.u32 2147483648, %v1119_v51  ;;  %vm1157_vm14 = vweird.f32 %v4108_v31  ;;  %v284_v48 = vadd.f32 %v254_v62, %v175_v60  ;;  %v1186_v39 = vrot.slane %v1182_v52, 2 }
 0x2fa   :  { %v1192_v12 = vadd.f32 %v1190_v26, %v1007_v50  ;;  %v1153_v35 = vsub.f32 1.0, %v1152_v61  ;;  %v1140_v0 = vadd.f32 %v4104_v36, %v1139_v29  ;;  %vm1158_vm4 = vmor %vm1156_vm1, %vm1157_vm14  ;;  %vm1161_vm5 = vcmp.eq.f32.partialorder %v1160_v40, 8.507059e+37  ;;  %v7160_v50 = vld [vmem:[#allocation34_spill] sm:$0xff] }
 0x2fb   :  { %v1163_v29 = vor.u32 1.1754944e-38, %v1162_v1  ;;  %v322_v44 = vadd.f32 %v7160_v50, %v284_v48  ;;  %v1177_v60 = vand.u32 2147483648, %v5458_v37  ;;  %v7161_v51 = vrot.slane %v5369_v21, 6 }
 0x2fc   :  { %4111 = vtanh.f32 %v1192_v12  ;;  %v1154_v42 = vmul.f32 %v4108_v31, %v1153_v35  ;;  %v1144_v24 = vsel %vm1143_vm13, %v4104_v36, %v1140_v0  ;;  %v1187_v35 = vsel %vm805_vm2, %v1185_v23, %v1186_v39 }
 0x2fd   :  { %v4110_v41 = vpop.eup %4109  ;;  %v1149_v26 = vsel %vm1146_vm15, %v1148_v56, %v1144_v24  ;;  %v1178_v23 = vor.u32 1.1754944e-38, %v1177_v60 }
 0x2fe   :  { %v1167_v47 = vmul.f32 %v4110_v41, %v5458_v37  ;;  %v1155_v43 = vadd.f32 %v4108_v31, %v1154_v42  ;;  %v1196_v36 = vsub.f32 1.0, %v1149_v26  ;;  %vm1172_vm6 = vweird.f32 %v4110_v41 }
 0x2ff   :  { %v1175_v42 = vand.u32 2147483647, %v5458_v37  ;;  %v1205_v9 = vmul.f32 %v7161_v51, %v1149_v26  ;;  %vm1173_vm8 = vmor %vm1171_vm7, %vm1172_vm6 }
 0x300   :  { %v1168_v45 = vsub.f32 1.0, %v1167_v47  ;;  %v1159_v61 = vsel %vm1158_vm4, %v4108_v31, %v1155_v43 }
 0x301   :  { %v1164_v12 = vsel %vm1161_vm5, %v1163_v29, %v1159_v61  ;;  %vm1176_vm9 = vcmp.eq.f32.partialorder %v1175_v42, 8.507059e+37 }
 0x302   :  { %v4112_v0 = vpop.eup %4111  ;;  %v1169_v62 = vmul.f32 %v4110_v41, %v1168_v45  ;;  %v1191_v52 = vmul.f32 %v1187_v35, %v1164_v12 }
 0x303   :  { %v1198_v56 = vmul.f32 %v4112_v0, %v1196_v36 }
 0x304   :  { %v1170_v43 = vadd.f32 %v4110_v41, %v1169_v62  ;;  %v1193_v31 = vadd.f32 %v1191_v52, %v322_v44  ;;  %v213_v44 = vpop.permute.xlu1 %212 }
 0x305   :  { %v1207_v40 = vadd.f32 %v1205_v9, %v1198_v56 }
 0x306   :  { %v1174_v39 = vsel %vm1173_vm8, %v4110_v41, %v1170_v43  ;;  %4113 = vtanh.f32 %v1193_v31 }
 0x307   :  { %1209 = vst [vmem:[#allocation3 + $0x38] sm:$0xc0] %v1207_v40  ;;  %v1179_v1 = vsel %vm1176_vm9, %v1178_v23, %v1174_v39  ;;  %v1219_v21 = vrot.slane %v1207_v40, 6 }
 0x308   :  { %v1197_v24 = vsub.f32 1.0, %v1179_v1  ;;  %v1206_v29 = vmul.f32 %v5379_v55, %v1179_v1 }
 0x30c   :  { %v4114_v48 = vpop.eup %4113 }
 0x30d   :  { %v1199_v47 = vmul.f32 %v4114_v48, %v1197_v24 }
 0x30f   :  { %v5480_v45 = vadd.f32 %v1206_v29, %v1199_v47 }
 0x311   :  { %1210 = vst [vmem:[#allocation3 + $0x8] sm:$0xff] %v5480_v45  ;;  %v5484_v37 = vrot.slane %v5480_v45, 6 }
 0x313   :  { %v5488_v41 = vsel %vm674_vm0, %v1219_v21, %v5484_v37 }
 0x314   :  { %1240 = vmatmul.f32.vlgmr.msrb.gmra.mxu0 %v5488_v41  ;;  %1263 = vmatmul.f32.vlgmr.msrb.gmra.mxu1 %v5488_v41 }
 0x315   :  { %1286 = vmatmul.f32.vlgmr.msrb.gmra.mxu2 %v5488_v41  ;;  %1651 = vmatpush.msrb.mxu0 %v5203_v3  ;;  %v7162_v3 = vld [vmem:[#allocation12_spill] sm:$0xff] }
 0x316   :  { %1811 = vmatpush.msrb.mxu1 %v5206_v49  ;;  %1834 = vmatpush.msrb.mxu2 %v5209_v63  ;;  %v7163_v49 = vld [vmem:[#allocation13_spill] sm:$0xff]  ;;  %v7164_v63 = vld [vmem:[#allocation23_spill] sm:$0xff] }
 0x317   :  { %1652 = vmatpush.msrb.mxu0 %v5212_v33  ;;  %v7165_v33 = vld [vmem:[#allocation14_spill] sm:$0xff] }
 0x318   :  { %1812 = vmatpush.msrb.mxu1 %v5215_v38  ;;  %1835 = vmatpush.msrb.mxu2 %v5218_v54  ;;  %v7166_v38 = vld [vmem:[#allocation15_spill] sm:$0xff]  ;;  %v7167_v54 = vld [vmem:[#allocation24_spill] sm:$0xff] }
 0x319   :  { %1653 = vmatpush.msrb.mxu0 %v5221_v58  ;;  %v7168_v58 = vld [vmem:[#allocation16_spill] sm:$0xff] }
 0x31a   :  { %1813 = vmatpush.msrb.mxu1 %v5224_v53  ;;  %1836 = vmatpush.msrb.mxu2 %v5227_v46  ;;  %v7169_v53 = vld [vmem:[#allocation17_spill] sm:$0xff] }
 0x31b   :  { %1654 = vmatpush.msrb.mxu0 %v5230_v32  ;;  %v7170_v46 = vld [vmem:[#allocation25_spill] sm:$0xff]  ;;  %v7171_v32 = vld [vmem:[#allocation18_spill] sm:$0xff] }
 0x31c   :  { %1243 = vmatmul.f32.gmra.mxu0 %v5484_v37  ;;  %1266 = vmatmul.f32.gmra.mxu1 %v5484_v37 }
 0x31d   :  { %1289 = vmatmul.f32.gmra.mxu2 %v5484_v37  ;;  %1655 = vmatpush.msrb.mxu0 %v5233_v59  ;;  %v7172_v59 = vld [vmem:[#allocation19_spill] sm:$0xff] }
 0x31e   :  { %1814 = vmatpush.msrb.mxu1 %v5236_v2  ;;  %1837 = vmatpush.msrb.mxu2 %v5239_v4  ;;  %v7173_v2 = vld [vmem:[#allocation20_spill] sm:$0xff]  ;;  %v7174_v4 = vld [vmem:[#allocation21_spill] sm:$0xff] }
 0x31f   :  { %1656 = vmatpush.msrb.mxu0 %v5242_v5  ;;  %v7175_v5 = vld [vmem:[#allocation35_spill] sm:$0xff] }
 0x320   :  { %1815 = vmatpush.msrb.mxu1 %v5245_v6  ;;  %1838 = vmatpush.msrb.mxu2 %v5248_v7  ;;  %v129_v6 = vpop.permute.xlu2 %128 }
 0x321   :  { %1657 = vmatpush.msrb.mxu0 %v5251_v8  ;;  %v7176_v8 = vld [vmem:[#allocation26_spill] sm:$0xff] }
 0x322   :  { %1816 = vmatpush.msrb.mxu1 %v5254_v10  ;;  %1839 = vmatpush.msrb.mxu2 %v5257_v11  ;;  %v7177_v11 = vld [vmem:[#allocation27_spill] sm:$0xff]  ;;  %v176_v12 = vmul.f32 %v7176_v8, %v129_v6 }
 0x323   :  { %1658 = vmatpush.msrb.mxu0 %v5260_v13  ;;  %v177_v35 = vmul.f32 %v7177_v11, %v129_v6 }
 0x324   :  { %1817 = vmatpush.msrb.mxu1 %v5263_v15  ;;  %1840 = vmatpush.msrb.mxu2 %v5266_v16  ;;  %v7178_v15 = vld [vmem:[#allocation28_spill] sm:$0xff] }
 0x325   :  { %1659 = vmatpush.msrb.mxu0 %v5269_v17  ;;  %v217_v17 = vpop.permute.xlu0 %216 }
 0x326   :  { %1818 = vmatpush.msrb.mxu1 %v5272_v18  ;;  %1841 = vmatpush.msrb.mxu2 %v5275_v19  ;;  %v7179_v18 = vld [vmem:[#allocation29_spill] sm:$0xff] }
 0x327   :  { %1660 = vmatpush.msrb.mxu0 %v5278_v14  ;;  %v258_v19 = vmul.f32 %v7179_v18, %v217_v17  ;;  %v7180_v14 = vld [vmem:[#allocation30_spill] sm:$0xff]  ;;  %v255_v36 = vmul.f32 %v7179_v18, %v213_v44 }
 0x328   :  { %1819 = vmatpush.msrb.mxu1 %v5281_v20  ;;  %1842 = vmatpush.msrb.mxu2 %v5284_v22  ;;  %v134_v7 = vpop.permute.xlu2 %133  ;;  %v259_v20 = vmul.f32 %v7180_v14, %v217_v17  ;;  %v7181_v22 = vld [vmem:[#allocation31_spill] sm:$0xff]  ;;  %v256_v0 = vmul.f32 %v7180_v14, %v213_v44 }
 0x329   :  { %1661 = vmatpush.msrb.mxu0 %v5287_v25  ;;  %v179_v10 = vmul.f32 %v7176_v8, %v134_v7  ;;  %v180_v13 = vmul.f32 %v7177_v11, %v134_v7  ;;  %v181_v16 = vmul.f32 %v7178_v15, %v134_v7  ;;  %v260_v25 = vmul.f32 %v7181_v22, %v217_v17 }
 0x32a   :  { %1820 = vmatpush.msrb.mxu1 %v5290_v27  ;;  %1843 = vmatpush.msrb.mxu2 %v5293_v28  ;;  %v285_v62 = vadd.f32 %v255_v36, %v176_v12  ;;  %v286_v60 = vadd.f32 %v256_v0, %v177_v35 }
 0x32b   :  { %1662 = vmatpush.msrb.mxu0 %v5296_v30  ;;  %v288_v27 = vadd.f32 %v258_v19, %v179_v10  ;;  %v289_v28 = vadd.f32 %v259_v20, %v180_v13  ;;  %v290_v30 = vadd.f32 %v260_v25, %v181_v16  ;;  %v98_v19 = vld [vmem:[%s6945_s0 + $0x40] sm:$0xff] }
 0x32c   :  { %1821 = vmatpush.msrb.mxu1 %v5299_v34  ;;  %1844 = vmatpush.msrb.mxu2 %v7135_v57  ;;  %v7182_v34 = vld [vmem:[#allocation32_spill] sm:$0xff]  ;;  %v7183_v57 = vld [vmem:[#allocation33_spill] sm:$0xff] }
 0x32d   :  { %1663 = vmatpush.msrb.mxu0 %v7162_v3  ;;  %v326_v55 = vadd.f32 %v7182_v34, %v288_v27  ;;  %v327_v26 = vadd.f32 %v7183_v57, %v289_v28  ;;  %v328_v61 = vadd.f32 %v7160_v50, %v290_v30  ;;  %v323_v52 = vadd.f32 %v7182_v34, %v285_v62 }
 0x32e   :  { %1822 = vmatpush.msrb.mxu1 %v7163_v49  ;;  %1845 = vmatpush.msrb.mxu2 %v7164_v63  ;;  %v324_v42 = vadd.f32 %v7183_v57, %v286_v60 }
 0x32f   :  { %1664 = vmatpush.msrb.mxu0 %v7165_v33  ;;  %356 = vst [vmem:[#allocation2 + $0xc0] sm:$0xff] %v326_v55 }
 0x330   :  { %1823 = vmatpush.msrb.mxu1 %v7166_v38  ;;  %1846 = vmatpush.msrb.mxu2 %v7167_v54  ;;  %357 = vst [vmem:[#allocation2 + $0x10] sm:$0xff] %v327_v26  ;;  %v97_v38 = vld [vmem:[%s6945_s0 + $0x38] sm:$0xff] }
 0x331   :  { %1665 = vmatpush.msrb.mxu0 %v7168_v58  ;;  %358 = vst [vmem:[#allocation2 + $0x38] sm:$0xff] %v328_v61  ;;  %138 = vperm.xlu1 %4027, %v97_v38   ;;  %v7184_v61 = vld [vmem:[#allocation22_spill] sm:$0xff] }
 0x332   :  { %1824 = vmatpush.msrb.mxu1 %v7169_v53  ;;  %1847 = vmatpush.msrb.mxu2 %v7170_v46 }
 0x333   :  { %1666 = vmatpush.msrb.mxu0 %v7171_v32  ;;  %220 = vperm.xlu2 %4028, %v97_v38  }
 0x334   :  { %1825 = vmatpush.msrb.mxu1 %v7172_v59  ;;  %1848 = vmatpush.msrb.mxu2 %v7173_v2 }
 0x336   :  { %1826 = vmatpush.msrb.mxu1 %v7174_v4  ;;  %1849 = vmatpush.msrb.mxu2 %v7175_v5  ;;  %v1214_v23 = vld [vmem:[#allocation2 + $0xc0] sm:$0x3]  ;;  %v178_v4 = vmul.f32 %v7178_v15, %v129_v6  ;;  %v257_v5 = vmul.f32 %v7181_v22, %v213_v44 }
 0x337   :  { %v1215_v1 = vld [vmem:[#allocation2 + $0x10] sm:$0x3] }
 0x338   :  { %v287_v28 = vadd.f32 %v257_v5, %v178_v4 }
 0x339   :  { %143 = vperm.xlu1 %4027, %v98_v19  }
 0x33a   :  { %v325_v62 = vadd.f32 %v7160_v50, %v287_v28 }
 0x33b   :  { %224 = vperm.xlu2 %4028, %v98_v19  }
 0x391   :  { %v1241_v56 = vpop.f32.mrf.mxu0  ;;  %v1264_v51 = vpop.f32.mrf.mxu1 }
 0x392   :  { %v1293_v9 = vadd.f32 %v1241_v56, %v323_v52  ;;  %v1294_v43 = vadd.f32 %v1264_v51, %v324_v42 }
 0x394   :  { %v3941_v31 = vmul.f32 -1.442695, %v1293_v9  ;;  %v3942_v40 = vmul.f32 -1.442695, %v1294_v43 }
 0x396   :  { %4115 = vpow2.f32 %v3941_v31 }
 0x397   :  { %4117 = vpow2.f32 %v3942_v40 }
 0x398   :  { %v1287_v16 = vpop.f32.mrf.mxu2 }
 0x399   :  { %v1244_v39 = vpop.f32.mrf.mxu0  ;;  %v1267_v24 = vpop.f32.mrf.mxu1  ;;  %v1373_v44 = vadd.f32 %v7184_v61, %v1287_v16 }
 0x39a   :  { %v1295_v48 = vadd.f32 %v1244_v39, %v1214_v23  ;;  %v1296_v47 = vadd.f32 %v1267_v24, %v1215_v1 }
 0x39c   :  { %v4116_v29 = vpop.eup %4115  ;;  %v3943_v21 = vmul.f32 -1.442695, %v1295_v48  ;;  %v3944_v63 = vmul.f32 -1.442695, %v1296_v47 }
 0x39d   :  { %v4118_v3 = vpop.eup %4117  ;;  %v1309_v49 = vadd.f32 1.0, %v4116_v29  ;;  %v7187_v29 = vmov 1  }
 0x39e   :  { %v5559_v33 = vadd.f32 1.0, %v4118_v3  ;;  %4119 = vpow2.f32 %v3943_v21  ;;  %4030 = vset.pattern.permute.xlu1 %v7187_v29 }
 0x39f   :  { %4121 = vrcp.f32 %v1309_v49  ;;  %v1324_v17 = vand.u32 2147483648, %v1309_v49  ;;  %v1322_v25 = vand.u32 2147483647, %v1309_v49  ;;  %vm1318_vm11 = vweird.f32 %v1309_v49 }
 0x3a0   :  { %4123 = vrcp.f32 %v5559_v33  ;;  %v1339_v60 = vand.u32 2147483648, %v5559_v33  ;;  %vm1333_vm15 = vweird.f32 %v5559_v33  ;;  %v1337_v56 = vand.u32 2147483647, %v5559_v33  ;;  %v1290_v24 = vpop.f32.mrf.mxu2 }
 0x3a1   :  { %4125 = vpow2.f32 %v3944_v63  ;;  %v1325_v55 = vor.u32 1.1754944e-38, %v1324_v17  ;;  %vm1323_vm13 = vcmp.eq.f32.partialorder %v1322_v25, 8.507059e+37 }
 0x3a2   :  { %v1340_v48 = vor.u32 1.1754944e-38, %v1339_v60  ;;  %vm1338_vm6 = vcmp.eq.f32.partialorder %v1337_v56, 8.507059e+37  ;;  %v4416_v60 = vld [vmem:[#allocation5 + $0x58] sm:$0xff]  ;;  %v4419_v56 = vld [vmem:[#allocation5 + $0x10] sm:$0xff] }
 0x3a4   :  { %v4120_v54 = vpop.eup %4119 }
 0x3a5   :  { %v4122_v58 = vpop.eup %4121  ;;  %v5565_v53 = vadd.f32 1.0, %v4120_v54 }
 0x3a6   :  { %v4124_v46 = vpop.eup %4123  ;;  %v1314_v32 = vmul.f32 %v4122_v58, %v1309_v49  ;;  %vm1319_vm10 = vweird.f32 %v4122_v58 }
 0x3a7   :  { %v4126_v59 = vpop.eup %4125  ;;  %v1329_v2 = vmul.f32 %v4124_v46, %v5559_v33  ;;  %4127 = vrcp.f32 %v5565_v53  ;;  %vm1320_vm12 = vmor %vm1318_vm11, %vm1319_vm10  ;;  %vm1334_vm14 = vweird.f32 %v4124_v46  ;;  %v1354_v9 = vand.u32 2147483648, %v5565_v53 }
 0x3a8   :  { %v1315_v7 = vsub.f32 1.0, %v1314_v32  ;;  %v5571_v10 = vadd.f32 1.0, %v4126_v59  ;;  %vm5585_vm1 = vmor %vm1333_vm15, %vm1334_vm14  ;;  %v1352_v23 = vand.u32 2147483647, %v5565_v53  ;;  %vm1348_vm5 = vweird.f32 %v5565_v53  ;;  %v1216_v59 = vld [vmem:[#allocation2 + $0x38] sm:$0x3] }
 0x3a9   :  { %v1330_v13 = vsub.f32 1.0, %v1329_v2  ;;  %v1355_v3 = vor.u32 1.1754944e-38, %v1354_v9  ;;  %v1374_v33 = vadd.f32 %v7184_v61, %v1290_v24 }
 0x3aa   :  { %v1316_v20 = vmul.f32 %v4122_v58, %v1315_v7  ;;  %4129 = vrcp.f32 %v5571_v10  ;;  %vm1353_vm8 = vcmp.eq.f32.partialorder %v1352_v23, 8.507059e+37  ;;  %vm1363_vm10 = vweird.f32 %v5571_v10 }
 0x3ab   :  { %v1331_v27 = vmul.f32 %v4124_v46, %v1330_v13 }
 0x3ac   :  { %v1317_v6 = vadd.f32 %v4122_v58, %v1316_v20 }
 0x3ad   :  { %v4128_v30 = vpop.eup %4127  ;;  %v1332_v35 = vadd.f32 %v4124_v46, %v1331_v27  ;;  %v4405_v27 = vld [vmem:[#allocation5 + $0x160] sm:$0xff] }
 0x3ae   :  { %v1321_v26 = vsel %vm1320_vm12, %v4122_v58, %v1317_v6  ;;  %v1344_v12 = vmul.f32 %v4128_v30, %v5565_v53  ;;  %vm1349_vm4 = vweird.f32 %v4128_v30  ;;  %v1369_v58 = vand.u32 2147483648, %v5571_v10  ;;  %v4406_v6 = vld [vmem:[#allocation5 + $0x148] sm:$0xff] }
 0x3af   :  { %v1326_v36 = vsel %vm1323_vm13, %v1325_v55, %v1321_v26  ;;  %v1336_v39 = vsel %vm5585_vm1, %v4124_v46, %v1332_v35  ;;  %vm1350_vm7 = vmor %vm1348_vm5, %vm1349_vm4  ;;  %v1367_v53 = vand.u32 2147483647, %v5571_v10  ;;  %v4407_v55 = vld [vmem:[#allocation5 + $0x130] sm:$0xff]  ;;  %v4408_v26 = vld [vmem:[#allocation5 + $0x118] sm:$0xff] }
 0x3b0   :  { %v4130_v0 = vpop.eup %4129  ;;  %v1375_v52 = vmul.f32 %v1373_v44, %v1326_v36  ;;  %v1345_v42 = vsub.f32 1.0, %v1344_v12  ;;  %v1341_v49 = vsel %vm1338_vm6, %v1340_v48, %v1336_v39  ;;  %v1370_v16 = vor.u32 1.1754944e-38, %v1369_v58  ;;  %v4409_v44 = vld [vmem:[#allocation5 + $0x100] sm:$0xff]  ;;  %v4410_v12 = vld [vmem:[#allocation5 + $0xe8] sm:$0xff]  ;;  %v4412_v35 = vld [vmem:[#allocation5 + $0xb8] sm:$0xff] }
 0x3b1   :  { %v1359_v51 = vmul.f32 %v4130_v0, %v5571_v10  ;;  %vm1364_vm9 = vweird.f32 %v4130_v0  ;;  %v1381_v32 = vsub.f32 1.0, %v1341_v49  ;;  %v1385_v13 = vmul.f32 %v1341_v49, %v5488_v41  ;;  %v4404_v10 = vld [vmem:[#allocation5 + $0x178] sm:$0xff]  ;;  %v4413_v36 = vld [vmem:[#allocation5 + $0xa0] sm:$0xff] }
 0x3b2   :  { %v1377_v31 = vadd.f32 %v1375_v52, %v325_v62  ;;  %v1346_v40 = vmul.f32 %v4128_v30, %v1345_v42  ;;  %vm1365_vm11 = vmor %vm1363_vm10, %vm1364_vm9  ;;  %vm1368_vm12 = vcmp.eq.f32.partialorder %v1367_v53, 8.507059e+37  ;;  %v4415_v62 = vld [vmem:[#allocation5 + $0x70] sm:$0xff]  ;;  %v4417_v52 = vld [vmem:[#allocation5 + $0x40] sm:$0xff] }
 0x3b3   :  { %v1360_v1 = vsub.f32 1.0, %v1359_v51  ;;  %v4418_v42 = vld [vmem:[#allocation5 + $0x28] sm:$0xff]  ;;  %v221_v51 = vpop.permute.xlu2 %220 }
 0x3b4   :  { %4131 = vtanh.f32 %v1377_v31  ;;  %v1347_v47 = vadd.f32 %v4128_v30, %v1346_v40  ;;  %v261_v9 = vmul.f32 %v7179_v18, %v221_v51  ;;  %v262_v43 = vmul.f32 %v7180_v14, %v221_v51  ;;  %v139_v40 = vpop.permute.xlu1 %138 }
 0x3b5   :  { %v1361_v21 = vmul.f32 %v4130_v0, %v1360_v1  ;;  %v263_v31 = vmul.f32 %v7181_v22, %v221_v51  ;;  %v182_v23 = vmul.f32 %v7176_v8, %v139_v40  ;;  %v183_v39 = vmul.f32 %v7177_v11, %v139_v40  ;;  %v2061_v51 = vld [vmem:[#allocation7 + $0x168] sm:$0xff] }
 0x3b6   :  { %v1351_v63 = vsel %vm1350_vm7, %v4128_v30, %v1347_v47  ;;  %v184_v1 = vmul.f32 %v7178_v15, %v139_v40  ;;  %v2055_v40 = vld [vmem:[#allocation7 + $0x138] sm:$0xff] }
 0x3b7   :  { %v1362_v38 = vadd.f32 %v4130_v0, %v1361_v21  ;;  %v1356_v54 = vsel %vm1353_vm8, %v1355_v3, %v1351_v63  ;;  %v291_v24 = vadd.f32 %v261_v9, %v182_v23  ;;  %v292_v48 = vadd.f32 %v262_v43, %v183_v39  ;;  %v2058_v9 = vld [vmem:[#allocation7 + $0x150] sm:$0xff] }
 0x3b8   :  { %v1376_v46 = vmul.f32 %v1374_v33, %v1356_v54  ;;  %v293_v47 = vadd.f32 %v263_v31, %v184_v1  ;;  %v2052_v1 = vld [vmem:[#allocation7 + $0x120] sm:$0xff] }
 0x3b9   :  { %v1366_v7 = vsel %vm1365_vm11, %v4130_v0, %v1362_v38  ;;  %v4414_v0 = vld [vmem:[#allocation5 + $0x88] sm:$0xff]  ;;  %v329_v21 = vadd.f32 %v7182_v34, %v291_v24  ;;  %v330_v3 = vadd.f32 %v7183_v57, %v292_v48 }
 0x3ba   :  { %v4132_v2 = vpop.eup %4131  ;;  %v1378_v4 = vadd.f32 %v1376_v46, %v1216_v59  ;;  %v1371_v19 = vsel %vm1368_vm12, %v1370_v16, %v1366_v7  ;;  %v331_v49 = vadd.f32 %v7160_v50, %v293_v47  ;;  %v2049_v47 = vld [vmem:[#allocation7 + $0x108] sm:$0xff] }
 0x3bb   :  { %v1383_v5 = vmul.f32 %v4132_v2, %v1381_v32  ;;  %v1382_v20 = vsub.f32 1.0, %v1371_v19  ;;  %v1386_v28 = vmul.f32 %v1371_v19, %v5484_v37  ;;  %v4411_v37 = vld [vmem:[#allocation5 + $0xd0] sm:$0xff]  ;;  %359 = vst [vmem:[#allocation2 + $0x28] sm:$0xff] %v329_v21  ;;  %v225_v63 = vpop.permute.xlu2 %224 }
 0x3bc   :  { %4133 = vtanh.f32 %v1378_v4  ;;  %360 = vst [vmem:[#allocation2 + $0x90] sm:$0xff] %v330_v3  ;;  %v144_v33 = vpop.permute.xlu1 %143  ;;  %v264_v38 = vmul.f32 %v7179_v18, %v225_v63  ;;  %v265_v54 = vmul.f32 %v7180_v14, %v225_v63  ;;  %v266_v58 = vmul.f32 %v7181_v22, %v225_v63 }
 0x3bd   :  { %v5599_v17 = vadd.f32 %v1385_v13, %v1383_v5  ;;  %361 = vst [vmem:[#allocation2 + $0xa0] sm:$0xff] %v331_v49  ;;  %v185_v46 = vmul.f32 %v7176_v8, %v144_v33  ;;  %v186_v32 = vmul.f32 %v7177_v11, %v144_v33  ;;  %v187_v53 = vmul.f32 %v7178_v15, %v144_v33  ;;  %v2046_v49 = vld [vmem:[#allocation7 + $0xf0] sm:$0xff]  ;;  %v2043_v33 = vld [vmem:[#allocation7 + $0xd8] sm:$0xff] }
 0x3bf   :  { %1389 = vst [vmem:[#allocation3 + $0x18] sm:$0xff] %v5599_v17  ;;  %1413 = vmatmul.f32.vlgmr.msrb.gmra.mxu3 %v5599_v17  ;;  %1436 = vmatmul.f32.vlgmr.msra.gmra.mxu0 %v5599_v17  ;;  %v294_v59 = vadd.f32 %v264_v38, %v185_v46  ;;  %v295_v2 = vadd.f32 %v265_v54, %v186_v32  ;;  %v2040_v46 = vld [vmem:[#allocation7 + $0xc0] sm:$0xff] }
 0x3c0   :  { %1459 = vmatmul.f32.vlgmr.msra.gmra.mxu1 %v5599_v17  ;;  %1857 = vmatpush.msrb.mxu3 %v4404_v10  ;;  %v296_v4 = vadd.f32 %v266_v58, %v187_v53  ;;  %v1392_v10 = vld [vmem:[#allocation2 + $0x10] sm:$0xfc] }
 0x3c1   :  { %v332_v5 = vadd.f32 %v7182_v34, %v294_v59  ;;  %v333_v7 = vadd.f32 %v7183_v57, %v295_v2  ;;  %2072 = vmatpush.msra.mxu0 %v2061_v51 }
 0x3c2   :  { %v4134_v25 = vpop.eup %4133  ;;  %1858 = vmatpush.msrb.mxu3 %v4405_v27  ;;  %v334_v13 = vadd.f32 %v7160_v50, %v296_v4  ;;  %v6060_v50 = vld [vmem:[#allocation9 + $0x40] sm:$0xff] }
 0x3c3   :  { %v1384_v41 = vmul.f32 %v4134_v25, %v1382_v20  ;;  %362 = vst [vmem:[#allocation2 + $0x58] sm:$0xff] %v332_v5  ;;  %2073 = vmatpush.msra.mxu0 %v2058_v9 }
 0x3c4   :  { %1859 = vmatpush.msrb.mxu3 %v4406_v6  ;;  %363 = vst [vmem:[#allocation2 + $0xd0] sm:$0xff] %v333_v7 }
 0x3c5   :  { %v5606_v30 = vadd.f32 %v1386_v28, %v1384_v41  ;;  %364 = vst [vmem:[#allocation2 + $0x98] sm:$0xff] %v334_v13  ;;  %v1391_v28 = vld [vmem:[#allocation2 + $0xc0] sm:$0xfc]  ;;  %2074 = vmatpush.msra.mxu0 %v2055_v40 }
 0x3c6   :  { %1860 = vmatpush.msrb.mxu3 %v4407_v55 }
 0x3c7   :  { %1390 = vst [vmem:[#allocation3 + $0x10] sm:$0x3] %v5606_v30  ;;  %1416 = vmatmul.f32.gmra.mxu3 %v5606_v30  ;;  %1439 = vmatmul.f32.gmra.mxu0 %v5606_v30 }
 0x3c8   :  { %1462 = vmatmul.f32.gmra.mxu1 %v5606_v30  ;;  %1861 = vmatpush.msrb.mxu3 %v4408_v26  ;;  %v1395_v26 = vld [vmem:[#allocation2 + $0x90] sm:$0xf] }
 0x3c9   :  { %2075 = vmatpush.msra.mxu0 %v2052_v1 }
 0x3ca   :  { %1862 = vmatpush.msrb.mxu3 %v4409_v44 }
 0x3cb   :  { %2076 = vmatpush.msra.mxu0 %v2049_v47  ;;  %v2022_v47 = vld [vmem:[#allocation7 + $0x30] sm:$0xff] }
 0x3cc   :  { %1863 = vmatpush.msrb.mxu3 %v4410_v12 }
 0x3cd   :  { %2077 = vmatpush.msra.mxu0 %v2046_v49 }
 0x3ce   :  { %1864 = vmatpush.msrb.mxu3 %v4411_v37 }
 0x3cf   :  { %2078 = vmatpush.msra.mxu0 %v2043_v33  ;;  %v2019_v33 = vld [vmem:[#allocation7 + $0x18] sm:$0xff] }
 0x3d0   :  { %1865 = vmatpush.msrb.mxu3 %v4412_v35 }
 0x3d1   :  { %2079 = vmatpush.msra.mxu0 %v2040_v46 }
 0x3d2   :  { %1866 = vmatpush.msrb.mxu3 %v4413_v36 }
 0x3d4   :  { %1867 = vmatpush.msrb.mxu3 %v4414_v0 }
 0x3d6   :  { %1868 = vmatpush.msrb.mxu3 %v4415_v62 }
 0x3d8   :  { %1869 = vmatpush.msrb.mxu3 %v4416_v60 }
 0x3da   :  { %1870 = vmatpush.msrb.mxu3 %v4417_v52  ;;  %v1394_v52 = vld [vmem:[#allocation2 + $0x28] sm:$0xf] }
 0x3dc   :  { %1871 = vmatpush.msrb.mxu3 %v4418_v42 }
 0x3de   :  { %1872 = vmatpush.msrb.mxu3 %v4419_v56 }
 0x43c   :  { %v1437_v16 = vpop.f32.mrf.mxu0 }
 0x43d   :  { %v1471_v19 = vrot.slane %v1437_v16, 6  ;;  %v1460_v21 = vpop.f32.mrf.mxu1 }
 0x43e   :  { %v1560_v5 = vadd.f32 %v7184_v61, %v1460_v21 }
 0x43f   :  { %v1481_v20 = vadd.f32 %v1471_v19, %v1392_v10 }
 0x441   :  { %v3946_v25 = vmul.f32 -1.442695, %v1481_v20 }
 0x442   :  { %v1414_v27 = vpop.f32.mrf.mxu3 }
 0x443   :  { %4135 = vpow2.f32 %v3946_v25  ;;  %v1470_v41 = vrot.slane %v1414_v27, 6  ;;  %v2037_v27 = vld [vmem:[#allocation7 + $0xa8] sm:$0xff] }
 0x444   :  { %v1440_v6 = vpop.f32.mrf.mxu0  ;;  %2080 = vmatpush.msra.mxu0 %v2037_v27 }
 0x445   :  { %v1480_v55 = vadd.f32 %v1470_v41, %v1391_v28  ;;  %v1474_v44 = vrot.slane %v1440_v6, 6  ;;  %v1564_v28 = vrot.slane %v1560_v5, 6 }
 0x447   :  { %v3945_v12 = vmul.f32 -1.442695, %v1480_v55  ;;  %v1475_v37 = vsel %vm674_vm0, %v1471_v19, %v1474_v44  ;;  %v1463_v19 = vpop.f32.mrf.mxu1 }
 0x448   :  { %v1483_v35 = vadd.f32 %v1475_v37, %v1395_v26  ;;  %v1561_v55 = vadd.f32 %v7184_v61, %v1463_v19 }
 0x449   :  { %v4136_v36 = vpop.eup %4135  ;;  %4137 = vpow2.f32 %v3945_v12 }
 0x44a   :  { %v5631_v0 = vadd.f32 1.0, %v4136_v36  ;;  %v3948_v62 = vmul.f32 -1.442695, %v1483_v35  ;;  %v1417_v60 = vpop.f32.mrf.mxu3  ;;  %v2031_v35 = vld [vmem:[#allocation7 + $0x78] sm:$0xff] }
 0x44b   :  { %v1472_v42 = vrot.slane %v1417_v60, 6 }
 0x44c   :  { %4139 = vrcp.f32 %v5631_v0  ;;  %v1526_v44 = vand.u32 2147483648, %v5631_v0  ;;  %vm1520_vm5 = vweird.f32 %v5631_v0  ;;  %v1524_v61 = vand.u32 2147483647, %v5631_v0 }
 0x44d   :  { %4141 = vpow2.f32 %v3948_v62  ;;  %v1473_v56 = vsel %vm674_vm0, %v1470_v41, %v1472_v42  ;;  %v2034_v41 = vld [vmem:[#allocation7 + $0x90] sm:$0xff]  ;;  %v2028_v42 = vld [vmem:[#allocation7 + $0x60] sm:$0xff] }
 0x44e   :  { %v1482_v43 = vadd.f32 %v1473_v56, %v1394_v52  ;;  %2081 = vmatpush.msra.mxu0 %v2034_v41  ;;  %v1393_v52 = vld [vmem:[#allocation2 + $0x38] sm:$0xfc]  ;;  %vm1525_vm8 = vcmp.eq.f32.partialorder %v1524_v61, 8.507059e+37 }
 0x44f   :  { %v4138_v31 = vpop.eup %4137  ;;  %v5696_v61 = vld [vmem:[#allocation3 + $0x28] sm:$0xff] }
 0x450   :  { %v1496_v23 = vadd.f32 1.0, %v4138_v31  ;;  %v3947_v39 = vmul.f32 -1.442695, %v1482_v43  ;;  %2082 = vmatpush.msra.mxu0 %v2031_v35  ;;  %v1527_v43 = vor.u32 1.1754944e-38, %v1526_v44  ;;  %v1565_v31 = vrot.slane %v1561_v55, 6 }
 0x452   :  { %v5635_v24 = vpop.eup %4139  ;;  %4143 = vrcp.f32 %v1496_v23  ;;  %v1511_v2 = vand.u32 2147483648, %v1496_v23  ;;  %v1509_v13 = vand.u32 2147483647, %v1496_v23  ;;  %vm1505_vm14 = vweird.f32 %v1496_v23  ;;  %2083 = vmatpush.msra.mxu0 %v2028_v42  ;;  %v5699_v42 = vld [vmem:[#allocation3 + $0x38] sm:$0xff] }
 0x453   :  { %v4142_v48 = vpop.eup %4141  ;;  %4145 = vpow2.f32 %v3947_v39  ;;  %v1516_v63 = vmul.f32 %v5635_v24, %v5631_v0  ;;  %vm1521_vm4 = vweird.f32 %v5635_v24 }
 0x454   :  { %v5637_v3 = vadd.f32 1.0, %v4142_v48  ;;  %v1512_v20 = vor.u32 1.1754944e-38, %v1511_v2  ;;  %vm1510_vm1 = vcmp.eq.f32.partialorder %v1509_v13, 8.507059e+37  ;;  %vm5658_vm6 = vmor %vm1520_vm5, %vm1521_vm4  ;;  %v2025_v48 = vld [vmem:[#allocation7 + $0x48] sm:$0xff]  ;;  %v1396_v13 = vld [vmem:[#allocation2 + $0xa0] sm:$0xf] }
 0x455   :  { %v1517_v32 = vsub.f32 1.0, %v1516_v63  ;;  %2084 = vmatpush.msra.mxu0 %v2025_v48 }
 0x456   :  { %4147 = vrcp.f32 %v5637_v3  ;;  %v1556_v2 = vand.u32 2147483648, %v5637_v3 }
 0x457   :  { %v1518_v16 = vmul.f32 %v5635_v24, %v1517_v32  ;;  %2085 = vmatpush.msra.mxu0 %v2022_v47  ;;  %v5719_v47 = vld [vmem:[#allocation9 + $0x138] sm:$0xff] }
 0x458   :  { %v4144_v38 = vpop.eup %4143  ;;  %v1557_v27 = vor.u32 1.1754944e-38, %v1556_v2 }
 0x459   :  { %v4146_v54 = vpop.eup %4145  ;;  %v1501_v58 = vmul.f32 %v4144_v38, %v1496_v23  ;;  %vm1506_vm13 = vweird.f32 %v4144_v38  ;;  %v1519_v37 = vadd.f32 %v5635_v24, %v1518_v16  ;;  %2086 = vmatpush.msra.mxu0 %v2019_v33  ;;  %v5728_v33 = vld [vmem:[#allocation9 + $0x120] sm:$0xff] }
 0x45a   :  { %v5642_v53 = vadd.f32 1.0, %v4146_v54  ;;  %vm1507_vm15 = vmor %vm1505_vm14, %vm1506_vm13  ;;  %v1581_v54 = vrot.slane %v5599_v17, 6  ;;  %vm1550_vm13 = vweird.f32 %v5637_v3 }
 0x45b   :  { %v1502_v59 = vsub.f32 1.0, %v1501_v58  ;;  %v1523_v23 = vsel %vm5658_vm6, %v5635_v24, %v1519_v37  ;;  %v1566_v24 = vsel %vm674_vm0, %v1564_v28, %v1565_v31  ;;  %v5709_v31 = vld [vmem:[#allocation9 + $0x168] sm:$0xff] }
 0x45c   :  { %4149 = vrcp.f32 %v5642_v53  ;;  %v5645_v4 = vpop.eup %4147  ;;  %v1541_v40 = vand.u32 2147483648, %v5642_v53  ;;  %v1539_v0 = vand.u32 2147483647, %v5642_v53  ;;  %vm1535_vm9 = vweird.f32 %v5642_v53 }
 0x45d   :  { %v1503_v7 = vmul.f32 %v4144_v38, %v1502_v59  ;;  %v1546_v25 = vmul.f32 %v5645_v4, %v5637_v3  ;;  %v1528_v49 = vsel %vm1525_vm8, %v1527_v43, %v1523_v23  ;;  %vm1551_vm12 = vweird.f32 %v5645_v4  ;;  %v2016_v59 = vld [vmem:[#allocation7] sm:$0xff] }
 0x45e   :  { %v1542_v63 = vor.u32 1.1754944e-38, %v1541_v40  ;;  %vm1540_vm11 = vcmp.eq.f32.partialorder %v1539_v0, 8.507059e+37  ;;  %v1575_v32 = vsub.f32 1.0, %v1528_v49  ;;  %v1586_v19 = vmul.f32 %v1581_v54, %v1528_v49  ;;  %vm1552_vm14 = vmor %vm1550_vm13, %vm1551_vm12  ;;  %2087 = vmatpush.msra.mxu0 %v2016_v59  ;;  %v5713_v0 = vld [vmem:[#allocation9 + $0x150] sm:$0xff] }
 0x45f   :  { %v1504_v10 = vadd.f32 %v4144_v38, %v1503_v7  ;;  %v1547_v60 = vsub.f32 1.0, %v1546_v25  ;;  %v1554_v7 = vand.u32 2147483647, %v5637_v3  ;;  %v5739_v59 = vld [vmem:[#allocation9 + $0xf0] sm:$0xff] }
 0x461   :  { %v1508_v6 = vsel %vm1507_vm15, %v4144_v38, %v1504_v10  ;;  %v1548_v1 = vmul.f32 %v5645_v4, %v1547_v60  ;;  %vm1555_vm15 = vcmp.eq.f32.partialorder %v1554_v7, 8.507059e+37  ;;  %v5690_v60 = vld [vmem:[#allocation3] sm:$0xff] }
 0x462   :  { %v4150_v26 = vpop.eup %4149  ;;  %v1513_v12 = vsel %vm1510_vm1, %v1512_v20, %v1508_v6 }
 0x463   :  { %v1569_v36 = vmul.f32 %v1564_v28, %v1513_v12  ;;  %v1531_v62 = vmul.f32 %v4150_v26, %v5642_v53  ;;  %vm1536_vm7 = vweird.f32 %v4150_v26  ;;  %v1549_v46 = vadd.f32 %v5645_v4, %v1548_v1 }
 0x464   :  { %vm1537_vm10 = vmor %vm1535_vm9, %vm1536_vm7  ;;  %v1582_v28 = vrot.slane %v5606_v30, 6 }
 0x465   :  { %v1532_v56 = vsub.f32 1.0, %v1531_v62  ;;  %v1571_v9 = vadd.f32 %v1569_v36, %v1393_v52  ;;  %v1553_v20 = vsel %vm1552_vm14, %v5645_v4, %v1549_v46  ;;  %v5693_v52 = vld [vmem:[#allocation3 + $0x48] sm:$0xff] }
 0x466   :  { %v1558_v41 = vsel %vm1555_vm15, %v1557_v27, %v1553_v20  ;;  %v1583_v55 = vsel %vm674_vm0, %v1581_v54, %v1582_v28  ;;  %v5748_v20 = vld [vmem:[#allocation9 + $0xd8] sm:$0xff] }
 0x467   :  { %v1533_v39 = vmul.f32 %v4150_v26, %v1532_v56  ;;  %4151 = vtanh.f32 %v1571_v9  ;;  %v1576_v6 = vsub.f32 1.0, %v1558_v41  ;;  %v1587_v44 = vmul.f32 %v1583_v55, %v1558_v41 }
 0x469   :  { %v1534_v21 = vadd.f32 %v4150_v26, %v1533_v39  ;;  %v1592_v39 = vld [vmem:[#allocation2 + $0x28] sm:$0xf0] }
 0x46b   :  { %v1538_v38 = vsel %vm1537_vm10, %v4150_v26, %v1534_v21 }
 0x46c   :  { %v1543_v58 = vsel %vm1540_vm11, %v1542_v63, %v1538_v38  ;;  %v5724_v63 = vld [vmem:[%s6953_s8] sm:$0x7] }
 0x46d   :  { %v4152_v53 = vpop.eup %4151  ;;  %v1570_v5 = vmul.f32 %v1566_v24, %v1543_v58  ;;  %v5733_v54 = vperm.slane %v5724_v63, 0  ;;  %v5735_v58 = vld [vmem:[#allocation9 + $0x108] sm:$0xff] }
 0x46e   :  { %v1577_v16 = vmul.f32 %v4152_v53, %v1575_v32  ;;  %v1595_v53 = vld [vmem:[#allocation2 + $0x58] sm:$0x3f] }
 0x46f   :  { %v1572_v10 = vadd.f32 %v1570_v5, %v1396_v13  ;;  %v1596_v5 = vld [vmem:[#allocation2 + $0xd0] sm:$0x3f] }
 0x470   :  { %v5677_v25 = vadd.f32 %v1586_v19, %v1577_v16 }
 0x471   :  { %4153 = vtanh.f32 %v1572_v10 }
 0x472   :  { %1590 = vst [vmem:[#allocation3 + $0x10] sm:$0xfc] %v5677_v25  ;;  %v1600_v4 = vrot.slane %v5677_v25, 2  ;;  %v7039_v35 = vrot.slane %v5677_v25, 6 }
 0x477   :  { %v4154_v3 = vpop.eup %4153 }
 0x478   :  { %v1578_v26 = vmul.f32 %v4154_v3, %v1576_v6 }
 0x479   :  { %v5704_v56 = vld [vmem:[#allocation3 + $0x10] sm:$0xff] }
 0x47a   :  { %v1589_v12 = vadd.f32 %v1587_v44, %v1578_v26  ;;  %v5756_v26 = vld [vmem:[#allocation9 + $0xc0] sm:$0xff]  ;;  %v2062_v44 = vld [vmem:[#allocation7 + $0x170] sm:$0xff] }
 0x47b   :  { %2119 = vmatpush.msra.mxu1 %v2062_v44  ;;  %v2044_v44 = vld [vmem:[#allocation7 + $0xe0] sm:$0xff] }
 0x47c   :  { %1591 = vst [vmem:[#allocation3 + $0x30] sm:$0xf] %v1589_v12  ;;  %v1601_v37 = vrot.slane %v1589_v12, 2  ;;  %v1788_v36 = vrot.slane %v1589_v12, 6  ;;  %v2063_v12 = vld [vmem:[#allocation7 + $0x178] sm:$0xff] }
 0x47e   :  { %v1602_v62 = vsel %vm805_vm2, %v1600_v4, %v1601_v37  ;;  %v5688_v30 = vsel %vm674_vm0, %v7039_v35, %v1788_v36  ;;  %v5760_v4 = vld [vmem:[#allocation9 + $0xa8] sm:$0xff]  ;;  %v2060_v36 = vld [vmem:[#allocation7 + $0x160] sm:$0xff] }
 0x47f   :  { %1621 = vmatmul.f32.vlgmr.msra.gmra.mxu2 %v1602_v62  ;;  %1644 = vmatmul.f32.vlgmr.msra.gmra.mxu3 %v1602_v62 }
 0x480   :  { %1667 = vmatmul.f32.vlgmr.msrb.gmra.mxu0 %v1602_v62  ;;  %2304 = vmatpush.msra.mxu3 %v5709_v31  ;;  %v5764_v62 = vld [vmem:[#allocation9 + $0x90] sm:$0xff] }
 0x481   :  { %2476 = vmatpush.msrb.mxu0 %v5709_v31  ;;  %2166 = vmatpush.msra.mxu2 %v2063_v12  ;;  %v2045_v12 = vld [vmem:[#allocation7 + $0xe8] sm:$0xff] }
 0x482   :  { %2305 = vmatpush.msra.mxu3 %v5713_v0 }
 0x483   :  { %2477 = vmatpush.msrb.mxu0 %v5713_v0  ;;  %2167 = vmatpush.msra.mxu2 %v2060_v36 }
 0x484   :  { %2306 = vmatpush.msra.mxu3 %v5719_v47 }
 0x485   :  { %2478 = vmatpush.msrb.mxu0 %v5719_v47 }
 0x486   :  { %2307 = vmatpush.msra.mxu3 %v5728_v33 }
 0x487   :  { %1624 = vmatmul.f32.gmra.mxu2 %v1601_v37  ;;  %1647 = vmatmul.f32.gmra.mxu3 %v1601_v37 }
 0x488   :  { %1670 = vmatmul.f32.gmra.mxu0 %v1601_v37  ;;  %2308 = vmatpush.msra.mxu3 %v5735_v58  ;;  %v2059_v37 = vld [vmem:[#allocation7 + $0x158] sm:$0xff] }
 0x489   :  { %2479 = vmatpush.msrb.mxu0 %v5728_v33  ;;  %2120 = vmatpush.msra.mxu1 %v2059_v37  ;;  %v5802_v37 = vld [vmem:[%s6950_s5] ss:$0 sm:$0xff] }
 0x48a   :  { %2309 = vmatpush.msra.mxu3 %v5739_v59  ;;  %7190 = vst [vmem:[#allocation12_spill] sm:$0xff] %v5802_v37 }
 0x48b   :  { %2480 = vmatpush.msrb.mxu0 %v5735_v58 }
 0x48c   :  { %2310 = vmatpush.msra.mxu3 %v5748_v20 }
 0x48d   :  { %2481 = vmatpush.msrb.mxu0 %v5739_v59 }
 0x48e   :  { %2311 = vmatpush.msra.mxu3 %v5756_v26 }
 0x48f   :  { %2482 = vmatpush.msrb.mxu0 %v5748_v20 }
 0x490   :  { %2088 = vmatmul.f32.vlgmr.msra.gmra.mxu0 %v5690_v60  ;;  %2312 = vmatpush.msra.mxu3 %v5760_v4 }
 0x491   :  { %2483 = vmatpush.msrb.mxu0 %v5756_v26 }
 0x492   :  { %2313 = vmatpush.msra.mxu3 %v5764_v62 }
 0x493   :  { %2484 = vmatpush.msrb.mxu0 %v5760_v4 }
 0x495   :  { %2485 = vmatpush.msrb.mxu0 %v5764_v62 }
 0x498   :  { %2091 = vmatmul.f32.gmra.mxu0 %v5693_v52 }
 0x4a0   :  { %2094 = vmatmul.f32.gmra.mxu0 %v5696_v61 }
 0x4a8   :  { %2097 = vmatmul.f32.gmra.mxu0 %v5699_v42 }
 0x4b0   :  { %2100 = vmatmul.f32.gmra.mxu0 %v5480_v45  ;;  %v1593_v45 = vld [vmem:[#allocation2 + $0x90] sm:$0xf0] }
 0x4b8   :  { %2103 = vmatmul.f32.gmra.mxu0 %v5599_v17 }
 0x4c0   :  { %2106 = vmatmul.f32.gmra.mxu0 %v5704_v56 }
 0x4fd   :  { %v5707_v51 = vpop.f32.mrf.mxu0 }
 0x4fe   :  { %v5806_v36 = vadd.f32 %v5802_v37, %v5707_v51 }
 0x502   :  { %v1622_v9 = vpop.f32.mrf.mxu2  ;;  %v1645_v43 = vpop.f32.mrf.mxu3 }
 0x503   :  { %v1678_v40 = vrot.slane %v1622_v9, 4  ;;  %v1679_v23 = vrot.slane %v1645_v43, 4  ;;  %v2056_v9 = vld [vmem:[#allocation7 + $0x140] sm:$0xff]  ;;  %v2057_v43 = vld [vmem:[#allocation7 + $0x148] sm:$0xff] }
 0x504   :  { %2121 = vmatpush.msra.mxu1 %v2056_v9  ;;  %2168 = vmatpush.msra.mxu2 %v2057_v43 }
 0x505   :  { %v1688_v17 = vadd.f32 %v1678_v40, %v1592_v39  ;;  %v1689_v1 = vadd.f32 %v1679_v23, %v1593_v45  ;;  %v5715_v48 = vpop.f32.mrf.mxu0 }
 0x507   :  { %v3949_v21 = vmul.f32 -1.442695, %v1688_v17  ;;  %v3950_v49 = vmul.f32 -1.442695, %v1689_v1  ;;  %v2053_v17 = vld [vmem:[#allocation7 + $0x128] sm:$0xff]  ;;  %v2054_v1 = vld [vmem:[#allocation7 + $0x130] sm:$0xff] }
 0x508   :  { %2122 = vmatpush.msra.mxu1 %v2053_v17  ;;  %2169 = vmatpush.msra.mxu2 %v2054_v1  ;;  %v2036_v1 = vld [vmem:[#allocation7 + $0xa0] sm:$0xff] }
 0x509   :  { %4155 = vpow2.f32 %v3949_v21  ;;  %v5776_v21 = vld [vmem:[#allocation9 + $0x60] sm:$0xff] }
 0x50a   :  { %4157 = vpow2.f32 %v3950_v49  ;;  %v1625_v24 = vpop.f32.mrf.mxu2  ;;  %v1648_v38 = vpop.f32.mrf.mxu3 }
 0x50b   :  { %v1680_v46 = vrot.slane %v1625_v24, 4  ;;  %v1682_v32 = vrot.slane %v1648_v38, 4  ;;  %v2050_v38 = vld [vmem:[#allocation7 + $0x110] sm:$0xff] }
 0x50c   :  { %2123 = vmatpush.msra.mxu1 %v2050_v38  ;;  %v2041_v38 = vld [vmem:[#allocation7 + $0xc8] sm:$0xff] }
 0x50d   :  { %v1681_v2 = vsel %vm884_vm3, %v1678_v40, %v1680_v46  ;;  %v1683_v7 = vsel %vm884_vm3, %v1679_v23, %v1682_v32  ;;  %v2089_v13 = vpop.f32.mrf.mxu0  ;;  %v5768_v23 = vld [vmem:[#allocation9 + $0x78] sm:$0xff]  ;;  %v5783_v32 = vld [vmem:[#allocation9 + $0x48] sm:$0xff] }
 0x50e   :  { %v1690_v16 = vadd.f32 %v1681_v2, %v1595_v53  ;;  %v1691_v19 = vadd.f32 %v1683_v7, %v1596_v5  ;;  %v5746_v10 = vadd.f32 %v2089_v13, %v5733_v54  ;;  %2314 = vmatpush.msra.mxu3 %v5768_v23  ;;  %2486 = vmatpush.msrb.mxu0 %v5768_v23  ;;  %v2051_v46 = vld [vmem:[#allocation7 + $0x118] sm:$0xff]  ;;  %v2048_v7 = vld [vmem:[#allocation7 + $0x100] sm:$0xff] }
 0x50f   :  { %v4156_v27 = vpop.eup %4155  ;;  %v2047_v5 = vld [vmem:[#allocation7 + $0xf8] sm:$0xff]  ;;  %2170 = vmatpush.msra.mxu2 %v2051_v46  ;;  %v2042_v46 = vld [vmem:[#allocation7 + $0xd0] sm:$0xff] }
 0x510   :  { %v4158_v41 = vpop.eup %4157  ;;  %v5752_v28 = vadd.f32 1.0, %v4156_v27  ;;  %v3951_v6 = vmul.f32 -1.442695, %v1690_v16  ;;  %v3952_v55 = vmul.f32 -1.442695, %v1691_v19  ;;  %2315 = vmatpush.msra.mxu3 %v5776_v21  ;;  %2487 = vmatpush.msrb.mxu0 %v5776_v21  ;;  %v5791_v27 = vld [vmem:[#allocation9 + $0x30] sm:$0xff] }
 0x511   :  { %v5754_v3 = vadd.f32 1.0, %v4158_v41  ;;  %2124 = vmatpush.msra.mxu1 %v2047_v5  ;;  %2171 = vmatpush.msra.mxu2 %v2048_v7  ;;  %v5836_v7 = vadd.f32 %v5802_v37, %v5715_v48  ;;  %v6065_v37 = vld [vmem:[#allocation9 + $0x28] sm:$0xff] }
 0x512   :  { %4159 = vrcp.f32 %v5752_v28  ;;  %v1719_v41 = vand.u32 2147483648, %v5752_v28  ;;  %2316 = vmatpush.msra.mxu3 %v5783_v32  ;;  %2488 = vmatpush.msrb.mxu0 %v5783_v32  ;;  %v1717_v43 = vand.u32 2147483647, %v5752_v28  ;;  %vm1713_vm4 = vweird.f32 %v5752_v28 }
 0x513   :  { %4161 = vrcp.f32 %v5754_v3  ;;  %2125 = vmatpush.msra.mxu1 %v2044_v44  ;;  %2172 = vmatpush.msra.mxu2 %v2045_v12  ;;  %v2039_v44 = vld [vmem:[#allocation7 + $0xb8] sm:$0xff]  ;;  %v1734_v12 = vand.u32 2147483648, %v5754_v3  ;;  %vm1728_vm8 = vweird.f32 %v5754_v3 }
 0x514   :  { %4163 = vpow2.f32 %v3951_v6  ;;  %2317 = vmatpush.msra.mxu3 %v5791_v27  ;;  %2489 = vmatpush.msrb.mxu0 %v5791_v27  ;;  %vm1718_vm6 = vcmp.eq.f32.partialorder %v1717_v43, 8.507059e+37 }
 0x515   :  { %4165 = vpow2.f32 %v3952_v55  ;;  %v2092_v40 = vpop.f32.mrf.mxu0  ;;  %2126 = vmatpush.msra.mxu1 %v2041_v38  ;;  %2173 = vmatpush.msra.mxu2 %v2042_v46  ;;  %v1773_v38 = vrot.slane %v5836_v7, 4  ;;  %v2032_v7 = vld [vmem:[#allocation7 + $0x80] sm:$0xff]  ;;  %v1735_v35 = vor.u32 1.1754944e-38, %v1734_v12 }
 0x516   :  { %v2093_v39 = vadd.f32 %v2092_v40, %v5733_v54  ;;  %v99_v12 = vld [vmem:[%s6945_s0 + $0x48] sm:$0xff] }
 0x517   :  { %2174 = vmatpush.msra.mxu2 %v2039_v44  ;;  %228 = vperm.xlu1 %4030, %v99_v12  }
 0x518   :  { %v5773_v45 = vpop.eup %4159  ;;  %2216 = vst [vmem:[#allocation2 + $0x18] sm:$0xff] %v2093_v39  ;;  %v5811_v39 = vld [vmem:[#allocation9 + $0x18] sm:$0xff]  ;;  %148 = vperm.xlu0 %4029, %v99_v12  }
 0x519   :  { %v5779_v49 = vpop.eup %4161  ;;  %v1709_v24 = vmul.f32 %v5773_v45, %v5752_v28  ;;  %vm1714_vm1 = vweird.f32 %v5773_v45  ;;  %2318 = vmatpush.msra.mxu3 %v5811_v39  ;;  %2490 = vmatpush.msrb.mxu0 %v5811_v39 }
 0x51a   :  { %v4164_v53 = vpop.eup %4163  ;;  %v1724_v2 = vmul.f32 %v5779_v49, %v5754_v3  ;;  %vm5821_vm5 = vmor %vm1713_vm4, %vm1714_vm1  ;;  %vm1729_vm7 = vweird.f32 %v5779_v49  ;;  %2175 = vmatpush.msra.mxu2 %v2036_v1 }
 0x51b   :  { %v4166_v13 = vpop.eup %4165  ;;  %v1710_v16 = vsub.f32 1.0, %v1709_v24  ;;  %v5789_v19 = vadd.f32 1.0, %v4164_v53  ;;  %v1720_v24 = vor.u32 1.1754944e-38, %v1719_v41  ;;  %v5827_v53 = vld [vmem:[#allocation9] sm:$0xff]  ;;  %v1732_v41 = vand.u32 2147483647, %v5754_v3  ;;  %vm5858_vm9 = vmor %vm1728_vm8, %vm1729_vm7 }
 0x51c   :  { %v1725_v6 = vsub.f32 1.0, %v1724_v2  ;;  %v5795_v55 = vadd.f32 1.0, %v4166_v13  ;;  %v7040_v2 = vrot.slane %v5806_v36, 4  ;;  %2319 = vmatpush.msra.mxu3 %v5827_v53  ;;  %2491 = vmatpush.msrb.mxu0 %v5827_v53 }
 0x51d   :  { %v1711_v9 = vmul.f32 %v5773_v45, %v1710_v16  ;;  %4167 = vrcp.f32 %v5789_v19  ;;  %v2095_v40 = vpop.f32.mrf.mxu0  ;;  %vm5870_vm10 = vcmp.eq.f32.partialorder %v1732_v41, 8.507059e+37  ;;  %v2029_v41 = vld [vmem:[#allocation7 + $0x68] sm:$0xff]  ;;  %vm1743_vm12 = vweird.f32 %v5789_v19 }
 0x51e   :  { %v1726_v17 = vmul.f32 %v5779_v49, %v1725_v6  ;;  %4169 = vrcp.f32 %v5795_v55  ;;  %v2096_v28 = vadd.f32 %v2095_v40, %v5733_v54  ;;  %v2038_v6 = vld [vmem:[#allocation7 + $0xb0] sm:$0xff]  ;;  %v1594_v40 = vld [vmem:[#allocation2 + $0xa0] sm:$0xf0]  ;;  %vm1758_vm1 = vweird.f32 %v5795_v55 }
 0x51f   :  { %v1712_v51 = vadd.f32 %v5773_v45, %v1711_v9  ;;  %v5848_v9 = vld [vmem:[#allocation9 + $0x170] sm:$0xff]  ;;  %2127 = vmatpush.msra.mxu1 %v2038_v6 }
 0x520   :  { %v1727_v16 = vadd.f32 %v5779_v49, %v1726_v17  ;;  %2219 = vst [vmem:[#allocation2 + $0x30] sm:$0xff] %v2096_v28  ;;  %2706 = vmatpush.msra.mxu0 %v5848_v9  ;;  %4031 = vset.pattern.permute.xlu0 %v7187_v29 }
 0x521   :  { %v1716_v5 = vsel %vm5821_vm5, %v5773_v45, %v1712_v51  ;;  %v2035_v51 = vld [vmem:[#allocation7 + $0x98] sm:$0xff] }
 0x522   :  { %v1721_v13 = vsel %vm1718_vm6, %v1720_v24, %v1716_v5  ;;  %v5865_v5 = vld [vmem:[#allocation9 + $0x158] sm:$0xff]  ;;  %2128 = vmatpush.msra.mxu1 %v2035_v51  ;;  %v1749_v51 = vand.u32 2147483648, %v5789_v19 }
 0x523   :  { %v5843_v45 = vpop.eup %4167  ;;  %v1777_v48 = vmul.f32 %v7040_v2, %v1721_v13  ;;  %v1731_v13 = vsel %vm5858_vm9, %v5779_v49, %v1727_v16  ;;  %2707 = vmatpush.msra.mxu0 %v5865_v5  ;;  %v5877_v2 = vld [vmem:[#allocation9 + $0x140] sm:$0xff]  ;;  %v1747_v16 = vand.u32 2147483647, %v5789_v19 }
 0x524   :  { %v5850_v43 = vpop.eup %4169  ;;  %v1739_v17 = vmul.f32 %v5843_v45, %v5789_v19  ;;  %2129 = vmatpush.msra.mxu1 %v2032_v7  ;;  %vm1744_vm11 = vweird.f32 %v5843_v45  ;;  %v5893_v7 = vld [vmem:[#allocation9 + $0x128] sm:$0xff]  ;;  %v2023_v19 = vld [vmem:[#allocation7 + $0x38] sm:$0xff] }
 0x525   :  { %v1779_v24 = vadd.f32 %v1777_v48, %v1594_v40  ;;  %v1754_v46 = vmul.f32 %v5850_v43, %v5795_v55  ;;  %v2098_v3 = vpop.f32.mrf.mxu0  ;;  %v2033_v40 = vld [vmem:[#allocation7 + $0x88] sm:$0xff]  ;;  %2708 = vmatpush.msra.mxu0 %v5877_v2  ;;  %vm1745_vm13 = vmor %vm1743_vm12, %vm1744_vm11  ;;  %vm1748_vm14 = vcmp.eq.f32.partialorder %v1747_v16, 8.507059e+37  ;;  %vm1759_vm15 = vweird.f32 %v5850_v43 }
 0x526   :  { %v1740_v44 = vsub.f32 1.0, %v1739_v17  ;;  %v2099_v48 = vadd.f32 %v2098_v3, %v5733_v54  ;;  %2176 = vmatpush.msra.mxu2 %v2033_v40  ;;  %v2030_v17 = vld [vmem:[#allocation7 + $0x70] sm:$0xff]  ;;  %2130 = vmatpush.msra.mxu1 %v2029_v41  ;;  %vm5917_vm4 = vmor %vm1758_vm1, %vm1759_vm15 }
 0x527   :  { %4171 = vtanh.f32 %v1779_v24  ;;  %v1755_v1 = vsub.f32 1.0, %v1754_v46  ;;  %v1736_v24 = vsel %vm5870_vm10, %v1735_v35, %v1731_v13  ;;  %v2026_v3 = vld [vmem:[#allocation7 + $0x50] sm:$0xff]  ;;  %v7197_v13 = vrot.slane %v5806_v36, 4  ;;  %2709 = vmatpush.msra.mxu0 %v5893_v7 }
 0x528   :  { %v1741_v49 = vmul.f32 %v5843_v45, %v1740_v44  ;;  %2222 = vst [vmem:[#allocation2 + $0x88] sm:$0xff] %v2099_v48  ;;  %2177 = vmatpush.msra.mxu2 %v2030_v17  ;;  %v2027_v44 = vld [vmem:[#allocation7 + $0x58] sm:$0xff]  ;;  %v1750_v48 = vor.u32 1.1754944e-38, %v1749_v51  ;;  %2131 = vmatpush.msra.mxu1 %v2026_v3  ;;  %v1783_v35 = vsub.f32 1.0, %v1736_v24  ;;  %v1764_v51 = vand.u32 2147483648, %v5795_v55  ;;  %v5903_v3 = vld [vmem:[#allocation9 + $0x110] sm:$0xff] }
 0x529   :  { %v1756_v28 = vmul.f32 %v5850_v43, %v1755_v1  ;;  %v1774_v6 = vsel %vm884_vm3, %v7197_v13, %v1773_v38  ;;  %v2024_v1 = vld [vmem:[#allocation7 + $0x40] sm:$0xff]  ;;  %2710 = vmatpush.msra.mxu0 %v5903_v3  ;;  %v1762_v13 = vand.u32 2147483647, %v5795_v55 }
 0x52a   :  { %v1742_v46 = vadd.f32 %v5843_v45, %v1741_v49  ;;  %2178 = vmatpush.msra.mxu2 %v2027_v44  ;;  %2132 = vmatpush.msra.mxu1 %v2023_v19  ;;  %v2020_v44 = vld [vmem:[#allocation7 + $0x20] sm:$0xff]  ;;  %v2018_v19 = vld [vmem:[#allocation7 + $0x10] sm:$0xff] }
 0x52b   :  { %v1757_v12 = vadd.f32 %v5850_v43, %v1756_v28  ;;  %v1597_v28 = vld [vmem:[#allocation2 + $0x98] sm:$0x3f]  ;;  %vm1763_vm5 = vcmp.eq.f32.partialorder %v1762_v13, 8.507059e+37  ;;  %v5947_v13 = vld [vmem:[#allocation9 + $0x68] sm:$0xff] }
 0x52c   :  { %v1746_v40 = vsel %vm1745_vm13, %v5843_v45, %v1742_v46  ;;  %2179 = vmatpush.msra.mxu2 %v2024_v1  ;;  %v7198_v45 = vrot.slane %v5677_v25, 6  ;;  %2133 = vmatpush.msra.mxu1 %v2020_v44  ;;  %v5925_v1 = vld [vmem:[#allocation9 + $0xe0] sm:$0xff] }
 0x52d   :  { %v4172_v49 = vpop.eup %4171  ;;  %v1751_v41 = vsel %vm1748_vm14, %v1750_v48, %v1746_v40  ;;  %v2101_v17 = vpop.f32.mrf.mxu0  ;;  %v2021_v48 = vld [vmem:[#allocation7 + $0x28] sm:$0xff]  ;;  %v5911_v40 = vld [vmem:[#allocation9 + $0xf8] sm:$0xff]  ;;  %v1761_v55 = vsel %vm5917_vm4, %v5850_v43, %v1757_v12  ;;  %v5933_v43 = vld [vmem:[#allocation9 + $0xb0] sm:$0xff] }
 0x52e   :  { %v1785_v36 = vmul.f32 %v4172_v49, %v1783_v35  ;;  %v1792_v38 = vmul.f32 %v7198_v45, %v1736_v24  ;;  %v1778_v16 = vmul.f32 %v1774_v6, %v1751_v41  ;;  %v2102_v46 = vadd.f32 %v2101_v17, %v5733_v54  ;;  %2180 = vmatpush.msra.mxu2 %v2021_v48  ;;  %v2017_v6 = vld [vmem:[#allocation7 + $0x8] sm:$0xff]  ;;  %v5944_v44 = vld [vmem:[#allocation9 + $0x80] sm:$0xff] }
 0x52f   :  { %2711 = vmatpush.msra.mxu0 %v5911_v40  ;;  %2134 = vmatpush.msra.mxu1 %v2017_v6  ;;  %v1765_v49 = vor.u32 1.1754944e-38, %v1764_v51  ;;  %v5930_v41 = vld [vmem:[#allocation9 + $0xc8] sm:$0xff]  ;;  %v5937_v51 = vld [vmem:[#allocation9 + $0x98] sm:$0xff] }
 0x530   :  { %v5913_v35 = vadd.f32 %v1792_v38, %v1785_v36  ;;  %2225 = vst [vmem:[#allocation2 + $0x60] sm:$0xff] %v2102_v46  ;;  %v1780_v24 = vadd.f32 %v1778_v16, %v1597_v28  ;;  %2181 = vmatpush.msra.mxu2 %v2018_v19 }
 0x531   :  { %2712 = vmatpush.msra.mxu0 %v5925_v1  ;;  %v1766_v17 = vsel %vm1763_vm5, %v1765_v49, %v1761_v55  ;;  %v5953_v55 = vld [vmem:[#allocation9 + $0x50] sm:$0xff] }
 0x532   :  { %7199 = vst [vmem:[#allocation13_spill] sm:$0xff] %v5913_v35  ;;  %4173 = vtanh.f32 %v1780_v24  ;;  %v1784_v45 = vsub.f32 1.0, %v1766_v17  ;;  %v1793_v46 = vmul.f32 %v5688_v30, %v1766_v17  ;;  %v1806_v25 = vrot.slane %v5913_v35, 4 }
 0x533   :  { %1796 = vst [vmem:[#allocation3 + $0x30] sm:$0xf0] %v5913_v35  ;;  %2713 = vmatpush.msra.mxu0 %v5930_v41  ;;  %v7041_v19 = vrot.slane %v5913_v35, 6  ;;  %v6055_v35 = vld [vmem:[#allocation9 + $0x58] sm:$0xff] }
 0x535   :  { %v2104_v36 = vpop.f32.mrf.mxu0  ;;  %2714 = vmatpush.msra.mxu0 %v5933_v43 }
 0x536   :  { %v2105_v12 = vadd.f32 %v2104_v36, %v5733_v54  ;;  %v5962_v36 = vld [vmem:[#allocation9 + $0x178] sm:$0xff] }
 0x537   :  { %2715 = vmatpush.msra.mxu0 %v5937_v51 }
 0x538   :  { %v4174_v38 = vpop.eup %4173  ;;  %2228 = vst [vmem:[#allocation2 + $0x40] sm:$0xff] %v2105_v12  ;;  %v5966_v12 = vld [vmem:[#allocation9 + $0x38] sm:$0xff] }
 0x539   :  { %v1786_v16 = vmul.f32 %v4174_v38, %v1784_v45  ;;  %2716 = vmatpush.msra.mxu0 %v5944_v44  ;;  %v5969_v45 = vld [vmem:[#allocation9 + $0x160] sm:$0xff] }
 0x53a   :  { %v5940_v29 = vld [vmem:[#allocation3 + $0x30] sm:$0xff]  ;;  %v5974_v38 = vld [vmem:[#allocation9 + $0x20] sm:$0xff] }
 0x53b   :  { %2109 = vmatmul.f32.gmra.mxu0 %v5940_v29  ;;  %v1795_v48 = vadd.f32 %v1793_v46, %v1786_v16  ;;  %v5977_v16 = vld [vmem:[#allocation9 + $0x148] sm:$0xff] }
 0x53c   :  { %2717 = vmatpush.msra.mxu0 %v5947_v13  ;;  %7203 = vst [vmem:[#allocation14_spill] sm:$0xff] %v5977_v16  ;;  %v5982_v46 = vld [vmem:[#allocation9 + $0x8] sm:$0xff] }
 0x53d   :  { %v2107_v28 = vpop.f32.mrf.mxu0  ;;  %1797 = vst [vmem:[#allocation3 + $0x40] sm:$0x3f] %v1795_v48  ;;  %v1807_v24 = vrot.slane %v1795_v48, 4  ;;  %v1994_v6 = vrot.slane %v1795_v48, 6  ;;  %v5989_v48 = vld [vmem:[#allocation9 + $0x130] sm:$0xff] }
 0x53e   :  { %v2108_v30 = vadd.f32 %v2107_v28, %v5733_v54  ;;  %2718 = vmatpush.msra.mxu0 %v5953_v55  ;;  %v5994_v28 = vld [vmem:[#allocation9 + $0x118] sm:$0xff] }
 0x53f   :  { %v1808_v49 = vsel %vm884_vm3, %v1806_v25, %v1807_v24  ;;  %v5959_v17 = vsel %vm674_vm0, %v7041_v19, %v1994_v6  ;;  %v6002_v25 = vld [vmem:[%s6946_s1 + $0x10] sm:$0xff]  ;;  %v6037_v19 = vld [vmem:[#allocation9 + $0xa0] sm:$0xff] }
 0x540   :  { %7202 = vst [vmem:[#allocation23_spill] sm:$0xff] %v5959_v17  ;;  %1827 = vmatmul.f32.vlgmr.msrb.gmra.mxu1 %v1808_v49  ;;  %1850 = vmatmul.f32.vlgmr.msrb.gmra.mxu2 %v1808_v49  ;;  %v6013_v6 = vld [vmem:[#allocation9 + $0xe8] sm:$0xff] }
 0x541   :  { %2231 = vst [vmem:[#allocation2 + $0xc0] sm:$0xff] %v2108_v30  ;;  %1873 = vmatmul.f32.vlgmr.msrb.gmra.mxu3 %v1808_v49  ;;  %2499 = vmatpush.msrb.mxu1 %v5848_v9  ;;  %v6018_v30 = vld [vmem:[#allocation9 + $0xd0] sm:$0xff]  ;;  %v6028_v49 = vld [vmem:[#allocation9 + $0xb8] sm:$0xff]  ;;  %v6042_v17 = vld [vmem:[#allocation9 + $0x88] sm:$0xff] }
 0x542   :  { %2327 = vmatpush.msrb.mxu3 %v5848_v9  ;;  %2522 = vmatpush.msrb.mxu2 %v5962_v36 }
 0x543   :  { %2500 = vmatpush.msrb.mxu1 %v5865_v5  ;;  %2719 = vmatpush.msra.mxu0 %v5966_v12 }
 0x544   :  { %2328 = vmatpush.msrb.mxu3 %v5865_v5  ;;  %2523 = vmatpush.msrb.mxu2 %v5969_v45 }
 0x545   :  { %2501 = vmatpush.msrb.mxu1 %v5877_v2  ;;  %2720 = vmatpush.msra.mxu0 %v5974_v38 }
 0x546   :  { %2329 = vmatpush.msrb.mxu3 %v5877_v2  ;;  %2524 = vmatpush.msrb.mxu2 %v5977_v16 }
 0x547   :  { %2502 = vmatpush.msrb.mxu1 %v5893_v7  ;;  %2721 = vmatpush.msra.mxu0 %v5982_v46 }
 0x548   :  { %2330 = vmatpush.msrb.mxu3 %v5893_v7  ;;  %1830 = vmatmul.f32.gmra.mxu1 %v1807_v24 }
 0x549   :  { %1853 = vmatmul.f32.gmra.mxu2 %v1807_v24  ;;  %1876 = vmatmul.f32.gmra.mxu3 %v1807_v24  ;;  %v6004_v24 = vld [vmem:[#allocation9 + $0x100] sm:$0xff] }
 0x54a   :  { %2331 = vmatpush.msrb.mxu3 %v5903_v3  ;;  %2503 = vmatpush.msrb.mxu1 %v5903_v3 }
 0x54b   :  { %2525 = vmatpush.msrb.mxu2 %v5989_v48 }
 0x54c   :  { %2332 = vmatpush.msrb.mxu3 %v5911_v40  ;;  %2504 = vmatpush.msrb.mxu1 %v5911_v40 }
 0x54d   :  { %2526 = vmatpush.msrb.mxu2 %v5994_v28 }
 0x54e   :  { %2333 = vmatpush.msrb.mxu3 %v5925_v1  ;;  %2505 = vmatpush.msrb.mxu1 %v5925_v1 }
 0x54f   :  { %2527 = vmatpush.msrb.mxu2 %v6004_v24 }
 0x550   :  { %2334 = vmatpush.msrb.mxu3 %v5930_v41  ;;  %2135 = vmatmul.f32.vlgmr.msra.gmra.mxu1 %v5690_v60 }
 0x551   :  { %2182 = vmatmul.f32.vlgmr.msra.gmra.mxu2 %v5690_v60  ;;  %2320 = vmatmul.f32.vlgmr.msra.gmra.mxu3 %v6002_v25  ;;  %v6026_v60 = vld [vmem:[%s6946_s1 + $0x18] sm:$0x3] }
 0x552   :  { %2335 = vmatpush.msrb.mxu3 %v5933_v43  ;;  %2506 = vmatpush.msrb.mxu1 %v5930_v41 }
 0x553   :  { %2528 = vmatpush.msrb.mxu2 %v6013_v6 }
 0x554   :  { %2336 = vmatpush.msrb.mxu3 %v5937_v51  ;;  %2507 = vmatpush.msrb.mxu1 %v5933_v43 }
 0x555   :  { %2529 = vmatpush.msrb.mxu2 %v6018_v30 }
 0x556   :  { %2337 = vmatpush.msrb.mxu3 %v5944_v44  ;;  %2508 = vmatpush.msrb.mxu1 %v5937_v51 }
 0x557   :  { %2530 = vmatpush.msrb.mxu2 %v6028_v49 }
 0x558   :  { %2338 = vmatpush.msrb.mxu3 %v5947_v13  ;;  %2138 = vmatmul.f32.gmra.mxu1 %v5693_v52 }
 0x559   :  { %2185 = vmatmul.f32.gmra.mxu2 %v5693_v52  ;;  %2323 = vmatmul.f32.gmra.mxu3 %v6026_v60  ;;  %v6047_v52 = vld [vmem:[#allocation9 + $0x70] sm:$0xff] }
 0x55a   :  { %2339 = vmatpush.msrb.mxu3 %v5953_v55  ;;  %2509 = vmatpush.msrb.mxu1 %v5944_v44 }
 0x55b   :  { %2531 = vmatpush.msrb.mxu2 %v6037_v19 }
 0x55c   :  { %2340 = vmatpush.msrb.mxu3 %v5966_v12  ;;  %2510 = vmatpush.msrb.mxu1 %v5947_v13 }
 0x55d   :  { %2532 = vmatpush.msrb.mxu2 %v6042_v17 }
 0x55e   :  { %2341 = vmatpush.msrb.mxu3 %v5974_v38  ;;  %2511 = vmatpush.msrb.mxu1 %v5953_v55 }
 0x55f   :  { %2533 = vmatpush.msrb.mxu2 %v6047_v52 }
 0x560   :  { %2342 = vmatpush.msrb.mxu3 %v5982_v46  ;;  %2141 = vmatmul.f32.gmra.mxu1 %v5696_v61 }
 0x561   :  { %2188 = vmatmul.f32.gmra.mxu2 %v5696_v61  ;;  %2343 = vmatmul.f32.vlgmr.msrb.gmra.mxu3 %v6002_v25  ;;  %v6070_v61 = vld [vmem:[#allocation9 + $0x10] sm:$0xff] }
 0x562   :  { %2350 = vmatpush.msra.mxu3 %v5962_v36  ;;  %2534 = vmatpush.msrb.mxu2 %v6055_v35 }
 0x563   :  { %2512 = vmatpush.msrb.mxu1 %v5966_v12 }
 0x564   :  { %2351 = vmatpush.msra.mxu3 %v5969_v45  ;;  %2535 = vmatpush.msrb.mxu2 %v6060_v50 }
 0x565   :  { %2513 = vmatpush.msrb.mxu1 %v5974_v38 }
 0x566   :  { %2352 = vmatpush.msra.mxu3 %v5977_v16  ;;  %2536 = vmatpush.msrb.mxu2 %v6065_v37 }
 0x567   :  { %2514 = vmatpush.msrb.mxu1 %v5982_v46 }
 0x568   :  { %2353 = vmatpush.msra.mxu3 %v5989_v48  ;;  %2144 = vmatmul.f32.gmra.mxu1 %v5699_v42 }
 0x569   :  { %2537 = vmatpush.msrb.mxu2 %v6070_v61  ;;  %2346 = vmatmul.f32.gmra.mxu3 %v6026_v60 }
 0x56a   :  { %2354 = vmatpush.msra.mxu3 %v5994_v28  ;;  %2191 = vmatmul.f32.gmra.mxu2 %v5699_v42  ;;  %v4421_v42 = vld [vmem:[#allocation3 + $0x8] sm:$0xff] }
 0x56b   :  { %2729 = vmatpush.msra.mxu1 %v5962_v36  ;;  %2888 = vmatpush.msra.mxu2 %v5709_v31 }
 0x56c   :  { %2355 = vmatpush.msra.mxu3 %v6004_v24 }
 0x56d   :  { %2730 = vmatpush.msra.mxu1 %v5969_v45  ;;  %2889 = vmatpush.msra.mxu2 %v5713_v0 }
 0x56e   :  { %2356 = vmatpush.msra.mxu3 %v6013_v6 }
 0x56f   :  { %2731 = vmatpush.msra.mxu1 %v5977_v16  ;;  %2890 = vmatpush.msra.mxu2 %v5719_v47  ;;  %v4422_v16 = vld [vmem:[#allocation3 + $0x18] sm:$0xff] }
 0x570   :  { %2357 = vmatpush.msra.mxu3 %v6018_v30  ;;  %2147 = vmatmul.f32.gmra.mxu1 %v4421_v42 }
 0x571   :  { %2732 = vmatpush.msra.mxu1 %v5989_v48  ;;  %2891 = vmatpush.msra.mxu2 %v5728_v33 }
 0x572   :  { %2358 = vmatpush.msra.mxu3 %v6028_v49  ;;  %2194 = vmatmul.f32.gmra.mxu2 %v4421_v42  ;;  %v6179_v42 = vperm.slane %v5724_v63, 2 }
 0x573   :  { %2733 = vmatpush.msra.mxu1 %v5994_v28  ;;  %2892 = vmatpush.msra.mxu2 %v5735_v58 }
 0x574   :  { %2359 = vmatpush.msra.mxu3 %v6037_v19 }
 0x575   :  { %2734 = vmatpush.msra.mxu1 %v6004_v24  ;;  %2893 = vmatpush.msra.mxu2 %v5739_v59 }
 0x576   :  { %2360 = vmatpush.msra.mxu3 %v6042_v17 }
 0x577   :  { %2894 = vmatpush.msra.mxu2 %v5748_v20  ;;  %2735 = vmatpush.msra.mxu1 %v6013_v6 }
 0x578   :  { %2361 = vmatpush.msra.mxu3 %v6047_v52  ;;  %2150 = vmatmul.f32.gmra.mxu1 %v4422_v16 }
 0x579   :  { %2895 = vmatpush.msra.mxu2 %v5756_v26  ;;  %2736 = vmatpush.msra.mxu1 %v6018_v30 }
 0x57a   :  { %2362 = vmatpush.msra.mxu3 %v6055_v35  ;;  %2197 = vmatmul.f32.gmra.mxu2 %v4422_v16 }
 0x57b   :  { %2896 = vmatpush.msra.mxu2 %v5760_v4  ;;  %2737 = vmatpush.msra.mxu1 %v6028_v49 }
 0x57c   :  { %2363 = vmatpush.msra.mxu3 %v6060_v50 }
 0x57d   :  { %2897 = vmatpush.msra.mxu2 %v5764_v62  ;;  %2738 = vmatpush.msra.mxu1 %v6037_v19 }
 0x57e   :  { %2364 = vmatpush.msra.mxu3 %v6065_v37 }
 0x57f   :  { %2898 = vmatpush.msra.mxu2 %v5768_v23  ;;  %2739 = vmatpush.msra.mxu1 %v6042_v17 }
 0x580   :  { %2365 = vmatpush.msra.mxu3 %v6070_v61  ;;  %2153 = vmatmul.f32.gmra.mxu1 %v5704_v56 }
 0x581   :  { %2366 = vmatmul.f32.vlgmr.msra.gmra.mxu3 %v6002_v25  ;;  %2899 = vmatpush.msra.mxu2 %v5776_v21 }
 0x582   :  { %2200 = vmatmul.f32.gmra.mxu2 %v5704_v56  ;;  %2683 = vmatpush.msrb.mxu3 %v5709_v31 }
 0x583   :  { %2740 = vmatpush.msra.mxu1 %v6047_v52  ;;  %2900 = vmatpush.msra.mxu2 %v5783_v32 }
 0x584   :  { %2684 = vmatpush.msrb.mxu3 %v5713_v0 }
 0x585   :  { %2741 = vmatpush.msra.mxu1 %v6055_v35  ;;  %2901 = vmatpush.msra.mxu2 %v5791_v27 }
 0x586   :  { %2685 = vmatpush.msrb.mxu3 %v5719_v47 }
 0x587   :  { %2742 = vmatpush.msra.mxu1 %v6060_v50  ;;  %2902 = vmatpush.msra.mxu2 %v5811_v39 }
 0x588   :  { %2686 = vmatpush.msrb.mxu3 %v5728_v33  ;;  %2156 = vmatmul.f32.gmra.mxu1 %v5940_v29 }
 0x589   :  { %2369 = vmatmul.f32.gmra.mxu3 %v6026_v60  ;;  %2743 = vmatpush.msra.mxu1 %v6065_v37  ;;  %v229_v0 = vpop.permute.xlu1 %228 }
 0x58a   :  { %2203 = vmatmul.f32.gmra.mxu2 %v5940_v29  ;;  %2687 = vmatpush.msrb.mxu3 %v5735_v58  ;;  %v149_v47 = vpop.permute.xlu0 %148  ;;  %v267_v33 = vmul.f32 %v7179_v18, %v229_v0 }
 0x58b   :  { %2903 = vmatpush.msra.mxu2 %v5827_v53  ;;  %2744 = vmatpush.msra.mxu1 %v6070_v61  ;;  %v188_v58 = vmul.f32 %v7176_v8, %v149_v47 }
 0x58c   :  { %2688 = vmatpush.msrb.mxu3 %v5739_v59 }
 0x58e   :  { %2689 = vmatpush.msrb.mxu3 %v5748_v20 }
 0x590   :  { %2690 = vmatpush.msrb.mxu3 %v5756_v26  ;;  %v1798_v26 = vld [vmem:[#allocation2 + $0x58] sm:$0xc0] }
 0x592   :  { %2691 = vmatpush.msrb.mxu3 %v5760_v4 }
 0x594   :  { %2692 = vmatpush.msrb.mxu3 %v5764_v62  ;;  %v297_v62 = vadd.f32 %v267_v33, %v188_v58 }
 0x596   :  { %2693 = vmatpush.msrb.mxu3 %v5768_v23  ;;  %v335_v18 = vadd.f32 %v7182_v34, %v297_v62 }
 0x598   :  { %2694 = vmatpush.msrb.mxu3 %v5776_v21 }
 0x59a   :  { %2695 = vmatpush.msrb.mxu3 %v5783_v32 }
 0x59c   :  { %2696 = vmatpush.msrb.mxu3 %v5791_v27 }
 0x59e   :  { %2697 = vmatpush.msrb.mxu3 %v5811_v39  ;;  %v268_v39 = vmul.f32 %v7180_v14, %v229_v0 }
 0x5a0   :  { %2698 = vmatpush.msrb.mxu3 %v5827_v53  ;;  %v189_v53 = vmul.f32 %v7177_v11, %v149_v47 }
 0x5a2   :  { %2911 = vmatpush.msra.mxu3 %v5848_v9 }
 0x5a4   :  { %2912 = vmatpush.msra.mxu3 %v5865_v5 }
 0x5a6   :  { %2913 = vmatpush.msra.mxu3 %v5877_v2  ;;  %v1799_v2 = vld [vmem:[#allocation2 + $0xd0] sm:$0xc0] }
 0x5a8   :  { %2914 = vmatpush.msra.mxu3 %v5893_v7 }
 0x5aa   :  { %2915 = vmatpush.msra.mxu3 %v5903_v3 }
 0x5ac   :  { %2916 = vmatpush.msra.mxu3 %v5911_v40  ;;  %v298_v40 = vadd.f32 %v268_v39, %v189_v53  ;;  %v7204_v53 = vld [vmem:[#allocation12_spill] sm:$0xff] }
 0x5ae   :  { %2917 = vmatpush.msra.mxu3 %v5925_v1  ;;  %v336_v34 = vadd.f32 %v7183_v57, %v298_v40 }
 0x5b0   :  { %2918 = vmatpush.msra.mxu3 %v5930_v41 }
 0x5b2   :  { %2919 = vmatpush.msra.mxu3 %v5933_v43  ;;  %v6167_v43 = vperm.slane %v5724_v63, 1 }
 0x5b4   :  { %2920 = vmatpush.msra.mxu3 %v5937_v51 }
 0x5b6   :  { %2921 = vmatpush.msra.mxu3 %v5944_v44 }
 0x5b8   :  { %2922 = vmatpush.msra.mxu3 %v5947_v13  ;;  %v2110_v56 = vpop.f32.mrf.mxu0 }
 0x5b9   :  { %v2111_v31 = vadd.f32 %v2110_v56, %v5733_v54 }
 0x5ba   :  { %2923 = vmatpush.msra.mxu3 %v5953_v55 }
 0x5bb   :  { %2234 = vst [vmem:[#allocation2 + $0x28] sm:$0xff] %v2111_v31 }
 0x5bc   :  { %2924 = vmatpush.msra.mxu3 %v5966_v12 }
 0x5bd   :  { %v1828_v59 = vpop.f32.mrf.mxu1 }
 0x5be   :  { %2925 = vmatpush.msra.mxu3 %v5974_v38  ;;  %v1884_v20 = vrot.slane %v1828_v59, 2 }
 0x5c0   :  { %2926 = vmatpush.msra.mxu3 %v5982_v46  ;;  %v1894_v4 = vadd.f32 %v1884_v20, %v1798_v26 }
 0x5c2   :  { %v3953_v23 = vmul.f32 -1.442695, %v1894_v4 }
 0x5c3   :  { %v1851_v21 = vpop.f32.mrf.mxu2 }
 0x5c4   :  { %4175 = vpow2.f32 %v3953_v23  ;;  %v1885_v32 = vrot.slane %v1851_v21, 2  ;;  %v1874_v27 = vpop.f32.mrf.mxu3 }
 0x5c5   :  { %v1831_v8 = vpop.f32.mrf.mxu1 }
 0x5c6   :  { %v1895_v9 = vadd.f32 %v1885_v32, %v1799_v2  ;;  %v1886_v5 = vrot.slane %v1831_v8, 2 }
 0x5c8   :  { %v3954_v7 = vmul.f32 -1.442695, %v1895_v9  ;;  %v1887_v3 = vsel %vm805_vm2, %v1884_v20, %v1886_v5  ;;  %v269_v20 = vmul.f32 %v7181_v22, %v229_v0 }
 0x5c9   :  { %v1896_v1 = vadd.f32 %v1887_v3, %v335_v18  ;;  %v6192_v18 = vadd.f32 %v7204_v53, %v1874_v27 }
 0x5ca   :  { %v4176_v41 = vpop.eup %4175  ;;  %4177 = vpow2.f32 %v3954_v7 }
 0x5cb   :  { %v1910_v51 = vadd.f32 1.0, %v4176_v41  ;;  %v3955_v14 = vmul.f32 -1.442695, %v1896_v1  ;;  %v2301_v41 = vld [vmem:[#allocation2 + $0x18] sm:$0x3] }
 0x5cc   :  { %v1854_v29 = vpop.f32.mrf.mxu2  ;;  %v6169_v11 = vpop.f32.mrf.mxu3 }
 0x5cd   :  { %4179 = vrcp.f32 %v1910_v51  ;;  %v2136_v44 = vpop.f32.mrf.mxu1  ;;  %v1888_v13 = vrot.slane %v1854_v29, 2  ;;  %v1925_v39 = vand.u32 2147483648, %v1910_v51  ;;  %v1923_v0 = vand.u32 2147483647, %v1910_v51 }
 0x5ce   :  { %4181 = vpow2.f32 %v3955_v14  ;;  %v6173_v55 = vadd.f32 %v2136_v44, %v6167_v43  ;;  %vm1919_vm7 = vweird.f32 %v1910_v51 }
 0x5cf   :  { %v1889_v38 = vsel %vm805_vm2, %v1885_v32, %v1888_v13  ;;  %v190_v32 = vmul.f32 %v7178_v15, %v149_v47  ;;  %v1926_v7 = vor.u32 1.1754944e-38, %v1925_v39  ;;  %v1978_v15 = vrot.slane %v6192_v18, 2 }
 0x5d0   :  { %v4178_v12 = vpop.eup %4177  ;;  %v1897_v46 = vadd.f32 %v1889_v38, %v336_v34  ;;  %vm1924_vm9 = vcmp.eq.f32.partialorder %v1923_v0, 8.507059e+37 }
 0x5d1   :  { %v6176_v16 = vadd.f32 1.0, %v4178_v12 }
 0x5d2   :  { %v3956_v33 = vmul.f32 -1.442695, %v1897_v46 }
 0x5d3   :  { %v4180_v56 = vpop.eup %4179  ;;  %4183 = vrcp.f32 %v6176_v16  ;;  %v1940_v3 = vand.u32 2147483648, %v6176_v16  ;;  %vm1934_vm11 = vweird.f32 %v6176_v16 }
 0x5d4   :  { %v4182_v57 = vpop.eup %4181  ;;  %v1915_v31 = vmul.f32 %v4180_v56, %v1910_v51  ;;  %v2183_v58 = vpop.f32.mrf.mxu2  ;;  %4185 = vpow2.f32 %v3956_v33  ;;  %vm1920_vm6 = vweird.f32 %v4180_v56  ;;  %v1975_v33 = vadd.f32 %v7204_v53, %v6169_v11 }
 0x5d5   :  { %v2321_v59 = vpop.f32.mrf.mxu3  ;;  %v6183_v26 = vadd.f32 1.0, %v4182_v57  ;;  %v6186_v4 = vadd.f32 %v2183_v58, %v6179_v42  ;;  %v2139_v62 = vpop.f32.mrf.mxu1  ;;  %vm1921_vm8 = vmor %vm1919_vm7, %vm1920_vm6 }
 0x5d6   :  { %v1916_v23 = vsub.f32 1.0, %v1915_v31  ;;  %v2373_v63 = vadd.f32 %v2321_v59, %v5746_v10  ;;  %v2140_v21 = vadd.f32 %v2139_v62, %v6167_v43  ;;  %v299_v10 = vadd.f32 %v269_v20, %v190_v32  ;;  %v1800_v31 = vld [vmem:[#allocation2 + $0x98] sm:$0xc0] }
 0x5d7   :  { %4187 = vrcp.f32 %v6183_v26  ;;  %v1955_v32 = vand.u32 2147483648, %v6183_v26  ;;  %vm1949_vm15 = vweird.f32 %v6183_v26  ;;  %v1979_v11 = vrot.slane %v1975_v33, 2 }
 0x5d8   :  { %v1917_v22 = vmul.f32 %v4180_v56, %v1916_v23  ;;  %v3959_v2 = vmul.f32 -1.442695, %v2373_v63  ;;  %2217 = vst [vmem:[#allocation2 + $0x50] sm:$0xff] %v2140_v21  ;;  %v1941_v63 = vor.u32 1.1754944e-38, %v1940_v3  ;;  %v1953_v21 = vand.u32 2147483647, %v6183_v26 }
 0x5d9   :  { %v4184_v8 = vpop.eup %4183 }
 0x5da   :  { %v1930_v9 = vmul.f32 %v4184_v8, %v6176_v16  ;;  %v1918_v5 = vadd.f32 %v4180_v56, %v1917_v22  ;;  %4189 = vpow2.f32 %v3959_v2  ;;  %v4186_v47 = vpop.eup %4185  ;;  %vm1935_vm10 = vweird.f32 %v4184_v8 }
 0x5db   :  { %v6198_v44 = vadd.f32 1.0, %v4186_v47  ;;  %vm1936_vm12 = vmor %vm1934_vm11, %vm1935_vm10  ;;  %vm1954_vm4 = vcmp.eq.f32.partialorder %v1953_v21, 8.507059e+37 }
 0x5dc   :  { %v1931_v27 = vsub.f32 1.0, %v1930_v9  ;;  %v1922_v40 = vsel %vm1921_vm8, %v4180_v56, %v1918_v5  ;;  %v2186_v1 = vpop.f32.mrf.mxu2  ;;  %v1938_v56 = vand.u32 2147483647, %v6176_v16 }
 0x5dd   :  { %v2324_v14 = vpop.f32.mrf.mxu3  ;;  %v4188_v29 = vpop.eup %4187  ;;  %v1927_v34 = vsel %vm1924_vm9, %v1926_v7, %v1922_v40  ;;  %v2187_v51 = vadd.f32 %v2186_v1, %v6179_v42  ;;  %4191 = vrcp.f32 %v6198_v44  ;;  %v7205_v7 = vld [vmem:[#allocation34_spill] sm:$0xff]  ;;  %v1970_v33 = vand.u32 2147483648, %v6198_v44 }
 0x5de   :  { %v2375_v13 = vadd.f32 %v2324_v14, %v2301_v41  ;;  %v2142_v12 = vpop.f32.mrf.mxu1  ;;  %v1932_v38 = vmul.f32 %v4184_v8, %v1931_v27  ;;  %v1983_v46 = vmul.f32 %v1978_v15, %v1927_v34  ;;  %v1945_v57 = vmul.f32 %v4188_v29, %v6183_v26 }
 0x5df   :  { %2218 = vst [vmem:[#allocation2 + $0x68] sm:$0xff] %v2187_v51  ;;  %v2143_v16 = vadd.f32 %v2142_v12, %v6167_v43  ;;  %vm1950_vm13 = vweird.f32 %v4188_v29  ;;  %vm1939_vm14 = vcmp.eq.f32.partialorder %v1938_v56, 8.507059e+37  ;;  %v337_v47 = vadd.f32 %v7205_v7, %v299_v10 }
 0x5e0   :  { %v1933_v58 = vadd.f32 %v4184_v8, %v1932_v38  ;;  %v1985_v59 = vadd.f32 %v1983_v46, %v1800_v31  ;;  %v1946_v20 = vsub.f32 1.0, %v1945_v57  ;;  %v3961_v62 = vmul.f32 -1.442695, %v2375_v13  ;;  %v4190_v23 = vpop.eup %4189  ;;  %vm1951_vm1 = vmor %vm1949_vm15, %vm1950_vm13 }
 0x5e1   :  { %2220 = vst [vmem:[#allocation2 + $0x48] sm:$0xff] %v2143_v16  ;;  %v6213_v2 = vadd.f32 1.0, %v4190_v23  ;;  %v1956_v27 = vor.u32 1.1754944e-38, %v1955_v32  ;;  %v1980_v51 = vsel %vm805_vm2, %v1978_v15, %v1979_v11  ;;  %vm1964_vm6 = vweird.f32 %v6198_v44  ;;  %v2302_v32 = vld [vmem:[#allocation2 + $0x50] sm:$0x3] }
 0x5e2   :  { %v1937_v39 = vsel %vm1936_vm12, %v4184_v8, %v1933_v58  ;;  %4193 = vtanh.f32 %v1985_v59  ;;  %v1947_v22 = vmul.f32 %v4188_v29, %v1946_v20  ;;  %v1971_v23 = vor.u32 1.1754944e-38, %v1970_v33 }
 0x5e3   :  { %v1942_v53 = vsel %vm1939_vm14, %v1941_v63, %v1937_v39  ;;  %4195 = vpow2.f32 %v3961_v62  ;;  %v4192_v5 = vpop.eup %4191  ;;  %vm2398_vm10 = vweird.f32 %v6213_v2 }
 0x5e4   :  { %v1948_v0 = vadd.f32 %v4188_v29, %v1947_v22  ;;  %v2189_v9 = vpop.f32.mrf.mxu2  ;;  %v1960_v1 = vmul.f32 %v4192_v5, %v6198_v44  ;;  %v1989_v14 = vsub.f32 1.0, %v1942_v53  ;;  %4197 = vrcp.f32 %v6213_v2 }
 0x5e5   :  { %v2190_v8 = vadd.f32 %v2189_v9, %v6179_v42  ;;  %v2344_v3 = vpop.f32.mrf.mxu3  ;;  %vm1965_vm5 = vweird.f32 %v4192_v5 }
 0x5e6   :  { %v2145_v40 = vpop.f32.mrf.mxu1  ;;  %v1952_v26 = vsel %vm1951_vm1, %v4188_v29, %v1948_v0  ;;  %v2374_v41 = vadd.f32 %v2344_v3, %v6173_v55  ;;  %v1961_v12 = vsub.f32 1.0, %v1960_v1  ;;  %v7206_v29 = vld [vmem:[#allocation13_spill] sm:$0xff]  ;;  %v1968_v55 = vand.u32 2147483647, %v6198_v44  ;;  %vm1966_vm7 = vmor %vm1964_vm6, %vm1965_vm5 }
 0x5e7   :  { %v1957_v34 = vsel %vm1954_vm4, %v1956_v27, %v1952_v26  ;;  %2221 = vst [vmem:[#allocation2 + $0x80] sm:$0xff] %v2190_v8  ;;  %v2146_v10 = vadd.f32 %v2145_v40, %v6167_v43  ;;  %v7207_v56 = vrot.slane %v7206_v29, 6  ;;  %v7208_v40 = vld [vmem:[#allocation23_spill] sm:$0xff] }
 0x5e8   :  { %v4194_v13 = vpop.eup %4193  ;;  %v1984_v38 = vmul.f32 %v1980_v51, %v1957_v34  ;;  %v3960_v46 = vmul.f32 -1.442695, %v2374_v41  ;;  %v1962_v15 = vmul.f32 %v4192_v5, %v1961_v12  ;;  %vm1969_vm8 = vcmp.eq.f32.partialorder %v1968_v55, 8.507059e+37 }
 0x5e9   :  { %v1991_v57 = vmul.f32 %v4194_v13, %v1989_v14  ;;  %v1998_v31 = vmul.f32 %v7207_v56, %v1942_v53  ;;  %2223 = vst [vmem:[#allocation2 + $0xe8] sm:$0xff] %v2146_v10  ;;  %v4196_v18 = vpop.eup %4195 }
 0x5ea   :  { %v1986_v58 = vadd.f32 %v1984_v38, %v337_v47  ;;  %4199 = vpow2.f32 %v3960_v46  ;;  %v1963_v20 = vadd.f32 %v4192_v5, %v1962_v15  ;;  %v6229_v63 = vadd.f32 1.0, %v4196_v18  ;;  %v6232_v22 = vpop.eup %4197 }
 0x5eb   :  { %v2000_v59 = vadd.f32 %v1998_v31, %v1991_v57  ;;  %v2394_v8 = vmul.f32 %v6232_v22, %v6213_v2  ;;  %vm2399_vm9 = vweird.f32 %v6232_v22 }
 0x5ec   :  { %4201 = vtanh.f32 %v1986_v58  ;;  %v1967_v44 = vsel %vm1966_vm7, %v4192_v5, %v1963_v20  ;;  %v2404_v20 = vand.u32 2147483648, %v6213_v2  ;;  %vm2400_vm11 = vmor %vm2398_vm10, %vm2399_vm9  ;;  %vm2428_vm1 = vweird.f32 %v6229_v63 }
 0x5ed   :  { %v2192_v62 = vpop.f32.mrf.mxu2  ;;  %2002 = vst [vmem:[#allocation3 + $0x40] sm:$0xc0] %v2000_v59  ;;  %v2347_v16 = vpop.f32.mrf.mxu3  ;;  %v1972_v0 = vsel %vm1969_vm8, %v1971_v23, %v1967_v44  ;;  %4203 = vrcp.f32 %v6229_v63  ;;  %v2395_v10 = vsub.f32 1.0, %v2394_v8  ;;  %v2402_v23 = vand.u32 2147483647, %v6213_v2 }
 0x5ee   :  { %v2193_v21 = vadd.f32 %v2192_v62, %v6179_v42  ;;  %v2148_v39 = vpop.f32.mrf.mxu1  ;;  %2004 = vst [vmem:[%s6958_s13 - $0x6] sm:$0xc0] %v2000_v59  ;;  %v2376_v11 = vadd.f32 %v2347_v16, %v2302_v32  ;;  %v1990_v47 = vsub.f32 1.0, %v1972_v0  ;;  %v1999_v1 = vmul.f32 %v7208_v40, %v1972_v0 }
 0x5ef   :  { %v2149_v53 = vadd.f32 %v2148_v39, %v6167_v43  ;;  %v2396_v29 = vmul.f32 %v6232_v22, %v2395_v10  ;;  %vm2403_vm12 = vcmp.eq.f32.partialorder %v2402_v23, 8.507059e+37 }
 0x5f0   :  { %2224 = vst [vmem:[#allocation2 + $0xb8] sm:$0xff] %v2193_v21  ;;  %v4200_v9 = vpop.eup %4199  ;;  %v3962_v7 = vmul.f32 -1.442695, %v2376_v11  ;;  %v6272_v21 = vld [vmem:[%s6954_s9] ss:$0 sm:$0xff]  ;;  %v2405_v11 = vor.u32 1.1754944e-38, %v2404_v20 }
 0x5f1   :  { %2226 = vst [vmem:[#allocation2 + $0xa8] sm:$0xff] %v2149_v53  ;;  %v6239_v27 = vadd.f32 1.0, %v4200_v9  ;;  %v2397_v58 = vadd.f32 %v6232_v22, %v2396_v29 }
 0x5f2   :  { %v4202_v3 = vpop.eup %4201  ;;  %4205 = vpow2.f32 %v3962_v7 }
 0x5f3   :  { %v1992_v5 = vmul.f32 %v4202_v3, %v1990_v47  ;;  %4207 = vrcp.f32 %v6239_v27  ;;  %v6247_v12 = vpop.eup %4203  ;;  %v2401_v39 = vsel %vm2400_vm11, %v6232_v22, %v2397_v58  ;;  %vm2413_vm15 = vweird.f32 %v6239_v27  ;;  %v2303_v58 = vld [vmem:[#allocation2 + $0x68] sm:$0x3] }
 0x5f4   :  { %v2014_v41 = vld [vmem:[#allocation3 + $0x40] sm:$0xff]  ;;  %v2424_v31 = vmul.f32 %v6247_v12, %v6229_v63  ;;  %v2406_v0 = vsel %vm2403_vm12, %v2405_v11, %v2401_v39  ;;  %vm2429_vm13 = vweird.f32 %v6247_v12 }
 0x5f5   :  { %v2195_v26 = vpop.f32.mrf.mxu2  ;;  %v2001_v14 = vadd.f32 %v1999_v1, %v1992_v5  ;;  %2112 = vmatmul.f32.gmra.mxu0 %v2014_v41  ;;  %2159 = vmatmul.f32.gmra.mxu1 %v2014_v41  ;;  %vm2430_vm5 = vmor %vm2428_vm1, %vm2429_vm13 }
 0x5f6   :  { %v2196_v34 = vadd.f32 %v2195_v26, %v6179_v42  ;;  %v2151_v51 = vpop.f32.mrf.mxu1  ;;  %2206 = vmatmul.f32.gmra.mxu2 %v2014_v41  ;;  %v2425_v62 = vsub.f32 1.0, %v2424_v31  ;;  %v2419_v26 = vand.u32 2147483648, %v6239_v27  ;;  %v2434_v41 = vand.u32 2147483648, %v6229_v63 }
 0x5f7   :  { %v2152_v13 = vadd.f32 %v2151_v51, %v6167_v43  ;;  %2005 = vst [vmem:[%s6958_s13 + $0x2] sm:$0xff] %v2001_v14  ;;  %v2432_v51 = vand.u32 2147483647, %v6229_v63 }
 0x5f8   :  { %v4206_v38 = vpop.eup %4205  ;;  %2227 = vst [vmem:[#allocation2 + $0x70] sm:$0xff] %v2196_v34  ;;  %v2426_v53 = vmul.f32 %v6247_v12, %v2425_v62  ;;  %v2420_v29 = vor.u32 1.1754944e-38, %v2419_v26  ;;  %v6358_v26 = vld [vmem:[#allocation9 + $0xf0] sm:$0xff] }
 0x5f9   :  { %v6252_v46 = vpop.eup %4207  ;;  %v6254_v57 = vadd.f32 1.0, %v4206_v38  ;;  %2229 = vst [vmem:[#allocation2 + $0x8] sm:$0xff] %v2152_v13  ;;  %vm2433_vm7 = vcmp.eq.f32.partialorder %v2432_v51, 8.507059e+37  ;;  %v6382_v51 = vld [vmem:[#allocation9 + $0xb0] sm:$0xff] }
 0x5fa   :  { %v2409_v56 = vmul.f32 %v6252_v46, %v6239_v27  ;;  %vm2414_vm14 = vweird.f32 %v6252_v46  ;;  %v2427_v1 = vadd.f32 %v6247_v12, %v2426_v53 }
 0x5fb   :  { %4209 = vrcp.f32 %v6254_v57  ;;  %vm2415_vm4 = vmor %vm2413_vm15, %vm2414_vm14  ;;  %vm2443_vm9 = vweird.f32 %v6254_v57 }
 0x5fc   :  { %v2410_v33 = vsub.f32 1.0, %v2409_v56  ;;  %v2431_v38 = vsel %vm2430_vm5, %v6247_v12, %v2427_v1  ;;  %v2435_v56 = vor.u32 1.1754944e-38, %v2434_v41  ;;  %v2447_v12 = vand.u32 2147483647, %v6254_v57  ;;  %v6347_v1 = vld [vmem:[#allocation9 + $0x128] sm:$0xff]  ;;  %v6361_v41 = vld [vmem:[#allocation9 + $0xf8] sm:$0xff] }
 0x5fd   :  { %v2198_v55 = vpop.f32.mrf.mxu2  ;;  %2115 = vmatmul.f32.gmra.mxu0 %v2001_v14  ;;  %2162 = vmatmul.f32.gmra.mxu1 %v2001_v14 }
 0x5fe   :  { %v2199_v18 = vadd.f32 %v2198_v55, %v6179_v42  ;;  %v2154_v15 = vpop.f32.mrf.mxu1  ;;  %2209 = vmatmul.f32.gmra.mxu2 %v2001_v14  ;;  %v2411_v16 = vmul.f32 %v6252_v46, %v2410_v33  ;;  %v2417_v14 = vand.u32 2147483647, %v6239_v27  ;;  %v2436_v33 = vsel %vm2433_vm7, %v2435_v56, %v2431_v38  ;;  %v6403_v38 = vld [vmem:[#allocation9 + $0x68] sm:$0xff]  ;;  %v6424_v56 = vld [vmem:[#allocation9 + $0x20] sm:$0xff] }
 0x5ff   :  { %v2155_v59 = vadd.f32 %v2154_v15, %v6167_v43  ;;  %vm2448_vm11 = vcmp.eq.f32.partialorder %v2447_v12, 8.507059e+37  ;;  %7213 = vst [vmem:[#allocation17_spill] sm:$0xff] %v6403_v38 }
 0x600   :  { %2230 = vst [vmem:[#allocation2 + $0x78] sm:$0xff] %v2199_v18  ;;  %v2412_v22 = vadd.f32 %v6252_v46, %v2411_v16  ;;  %vm2418_vm6 = vcmp.eq.f32.partialorder %v2417_v14, 8.507059e+37  ;;  %v6368_v14 = vld [vmem:[#allocation9 + $0xe0] sm:$0xff] }
 0x601   :  { %2232 = vst [vmem:[#allocation2 + $0x10] sm:$0xff] %v2155_v59  ;;  %v6274_v32 = vpop.eup %4209 }
 0x602   :  { %v2439_v44 = vmul.f32 %v6274_v32, %v6254_v57  ;;  %v2416_v13 = vsel %vm2415_vm4, %v6252_v46, %v2412_v22  ;;  %vm2444_vm8 = vweird.f32 %v6274_v32  ;;  %v2449_v46 = vand.u32 2147483648, %v6254_v57  ;;  %v6333_v22 = vld [vmem:[#allocation9 + $0x140] sm:$0xff]  ;;  %7219 = vst [vmem:[#allocation35_spill] sm:$0xff] %v6424_v56 }
 0x603   :  { %v2421_v63 = vsel %vm2418_vm6, %v2420_v29, %v2416_v13  ;;  %vm2445_vm10 = vmor %vm2443_vm9, %vm2444_vm8  ;;  %v6396_v13 = vld [vmem:[#allocation9 + $0x80] sm:$0xff]  ;;  %v6410_v29 = vld [vmem:[#allocation9 + $0x50] sm:$0xff] }
 0x604   :  { %v2367_v2 = vpop.f32.mrf.mxu3  ;;  %v2440_v47 = vsub.f32 1.0, %v2439_v44  ;;  %v2461_v59 = vsub.f32 1.0, %v2421_v63  ;;  %v2465_v39 = vmul.f32 %v6002_v25, %v2421_v63  ;;  %v2450_v44 = vor.u32 1.1754944e-38, %v2449_v46  ;;  %v6318_v25 = vld [vmem:[#allocation9 + $0x170] sm:$0xff]  ;;  %7211 = vst [vmem:[#allocation24_spill] sm:$0xff] %v6396_v13 }
 0x605   :  { %v2453_v9 = vadd.f32 %v6272_v21, %v2367_v2  ;;  %v2201_v7 = vpop.f32.mrf.mxu2  ;;  %v6315_v2 = vld [vmem:[#allocation9 + $0x168] sm:$0xff]  ;;  %7215 = vst [vmem:[#allocation18_spill] sm:$0xff] %v6410_v29 }
 0x606   :  { %v2202_v8 = vadd.f32 %v2201_v7, %v6179_v42  ;;  %v2157_v3 = vpop.f32.mrf.mxu1  ;;  %v2441_v10 = vmul.f32 %v6274_v32, %v2440_v47  ;;  %v6323_v7 = vld [vmem:[#allocation9 + $0x150] sm:$0xff] }
 0x607   :  { %v2455_v5 = vmul.f32 %v2453_v9, %v2406_v0  ;;  %v2158_v40 = vadd.f32 %v2157_v3, %v6167_v43  ;;  %v7209_v47 = vld [vmem:[#allocation14_spill] sm:$0xff]  ;;  %v6330_v3 = vld [vmem:[#allocation9 + $0x138] sm:$0xff] }
 0x608   :  { %2233 = vst [vmem:[#allocation2 + $0x38] sm:$0xff] %v2202_v8  ;;  %v2442_v55 = vadd.f32 %v6274_v32, %v2441_v10  ;;  %v6389_v10 = vld [vmem:[#allocation9 + $0x98] sm:$0xff] }
 0x609   :  { %v2457_v34 = vadd.f32 %v2455_v5, %v6186_v4  ;;  %2235 = vst [vmem:[#allocation2 + $0x90] sm:$0xff] %v2158_v40  ;;  %v6344_v40 = vld [vmem:[#allocation9 + $0x120] sm:$0xff] }
 0x60a   :  { %v2446_v23 = vsel %vm2445_vm10, %v6274_v32, %v2442_v55 }
 0x60b   :  { %4211 = vtanh.f32 %v2457_v34  ;;  %v2451_v53 = vsel %vm2448_vm11, %v2450_v44, %v2446_v23  ;;  %v6375_v34 = vld [vmem:[#allocation9 + $0xc8] sm:$0xff]  ;;  %v2470_v44 = vld [vmem:[#allocation2 + $0x18] sm:$0xfc] }
 0x60c   :  { %v2370_v27 = vpop.f32.mrf.mxu3  ;;  %v2462_v57 = vsub.f32 1.0, %v2451_v53  ;;  %v2466_v9 = vmul.f32 %v6026_v60, %v2451_v53  ;;  %v2471_v53 = vld [vmem:[#allocation2 + $0x50] sm:$0xfc] }
 0x60d   :  { %v2454_v4 = vadd.f32 %v6272_v21, %v2370_v27  ;;  %v2204_v31 = vpop.f32.mrf.mxu2  ;;  %v6417_v27 = vld [vmem:[#allocation9 + $0x38] sm:$0xff] }
 0x60e   :  { %v2205_v18 = vadd.f32 %v2204_v31, %v6179_v42  ;;  %7217 = vst [vmem:[#allocation20_spill] sm:$0xff] %v6417_v27 }
 0x60f   :  { %v2456_v15 = vmul.f32 %v2454_v4, %v2436_v33  ;;  %v6427_v4 = vld [vmem:[#allocation9] sm:$0xff] }
 0x610   :  { %2236 = vst [vmem:[#allocation2 + $0xa0] sm:$0xff] %v2205_v18 }
 0x611   :  { %v4212_v20 = vpop.eup %4211  ;;  %v2458_v62 = vadd.f32 %v2456_v15, %v2303_v58  ;;  %7220 = vst [vmem:[#allocation26_spill] sm:$0xff] %v6427_v4 }
 0x612   :  { %v2463_v16 = vmul.f32 %v4212_v20, %v2461_v59 }
 0x613   :  { %4213 = vtanh.f32 %v2458_v62 }
 0x614   :  { %v6309_v11 = vadd.f32 %v2465_v39, %v2463_v16 }
 0x616   :  { %2492 = vmatmul.f32.vlgmr.msrb.gmra.mxu0 %v6309_v11  ;;  %2515 = vmatmul.f32.vlgmr.msrb.gmra.mxu1 %v6309_v11 }
 0x617   :  { %2538 = vmatmul.f32.vlgmr.msrb.gmra.mxu2 %v6309_v11  ;;  %2934 = vmatpush.msrb.mxu0 %v5962_v36  ;;  %v6326_v36 = vld [vmem:[#allocation9 + $0x158] sm:$0xff] }
 0x618   :  { %3093 = vmatpush.msrb.mxu1 %v6315_v2  ;;  %3116 = vmatpush.msrb.mxu2 %v6318_v25 }
 0x619   :  { %v4214_v32 = vpop.eup %4213  ;;  %2935 = vmatpush.msrb.mxu0 %v5969_v45  ;;  %v2660_v45 = vrot.slane %v6309_v11, 6 }
 0x61a   :  { %v2464_v0 = vmul.f32 %v4214_v32, %v2462_v57  ;;  %3094 = vmatpush.msrb.mxu1 %v6323_v7  ;;  %3117 = vmatpush.msrb.mxu2 %v6326_v36 }
 0x61b   :  { %2936 = vmatpush.msrb.mxu0 %v7209_v47 }
 0x61c   :  { %v2468_v8 = vadd.f32 %v2466_v9, %v2464_v0  ;;  %3095 = vmatpush.msrb.mxu1 %v6330_v3  ;;  %3118 = vmatpush.msrb.mxu2 %v6333_v22 }
 0x61d   :  { %2937 = vmatpush.msrb.mxu0 %v5989_v48  ;;  %v6351_v48 = vld [vmem:[#allocation9 + $0x108] sm:$0xff] }
 0x61e   :  { %2469 = vst [vmem:[#allocation4 - $0x1] sm:$0x2] %v2468_v8  ;;  %2495 = vmatmul.f32.gmra.mxu0 %v2468_v8  ;;  %2518 = vmatmul.f32.gmra.mxu1 %v2468_v8  ;;  %v2661_v60 = vrot.slane %v2468_v8, 6 }
 0x61f   :  { %2541 = vmatmul.f32.gmra.mxu2 %v2468_v8  ;;  %2938 = vmatpush.msrb.mxu0 %v5994_v28  ;;  %v6354_v28 = vld [vmem:[#allocation9 + $0x110] sm:$0xff] }
 0x620   :  { %v6342_v5 = vsel %vm674_vm0, %v2660_v45, %v2661_v60  ;;  %3096 = vmatpush.msrb.mxu1 %v6344_v40  ;;  %3119 = vmatpush.msrb.mxu2 %v6347_v1  ;;  %v2473_v60 = vld [vmem:[#allocation2 + $0x30] sm:$0xf] }
 0x621   :  { %2939 = vmatpush.msrb.mxu0 %v6004_v24  ;;  %v6365_v24 = vld [vmem:[#allocation9 + $0xd8] sm:$0xff] }
 0x622   :  { %3097 = vmatpush.msrb.mxu1 %v6351_v48  ;;  %3120 = vmatpush.msrb.mxu2 %v6354_v28 }
 0x623   :  { %2940 = vmatpush.msrb.mxu0 %v6013_v6  ;;  %v6372_v6 = vld [vmem:[#allocation9 + $0xc0] sm:$0xff] }
 0x624   :  { %3098 = vmatpush.msrb.mxu1 %v6358_v26  ;;  %3121 = vmatpush.msrb.mxu2 %v6361_v41 }
 0x625   :  { %2941 = vmatpush.msrb.mxu0 %v6018_v30  ;;  %v6379_v30 = vld [vmem:[#allocation9 + $0xa8] sm:$0xff] }
 0x626   :  { %3099 = vmatpush.msrb.mxu1 %v6365_v24  ;;  %3122 = vmatpush.msrb.mxu2 %v6368_v14 }
 0x627   :  { %2942 = vmatpush.msrb.mxu0 %v6028_v49  ;;  %v6386_v49 = vld [vmem:[#allocation9 + $0x90] sm:$0xff] }
 0x628   :  { %3100 = vmatpush.msrb.mxu1 %v6372_v6  ;;  %3123 = vmatpush.msrb.mxu2 %v6375_v34 }
 0x629   :  { %2943 = vmatpush.msrb.mxu0 %v6037_v19  ;;  %v6393_v19 = vld [vmem:[#allocation9 + $0x78] sm:$0xff] }
 0x62a   :  { %3101 = vmatpush.msrb.mxu1 %v6379_v30  ;;  %3124 = vmatpush.msrb.mxu2 %v6382_v51  ;;  %7210 = vst [vmem:[#allocation15_spill] sm:$0xff] %v6393_v19 }
 0x62b   :  { %2944 = vmatpush.msrb.mxu0 %v6042_v17  ;;  %v6400_v17 = vld [vmem:[#allocation9 + $0x60] sm:$0xff] }
 0x62c   :  { %3102 = vmatpush.msrb.mxu1 %v6386_v49  ;;  %3125 = vmatpush.msrb.mxu2 %v6389_v10  ;;  %7212 = vst [vmem:[#allocation16_spill] sm:$0xff] %v6400_v17 }
 0x62d   :  { %2945 = vmatpush.msrb.mxu0 %v6047_v52  ;;  %v6407_v52 = vld [vmem:[#allocation9 + $0x48] sm:$0xff] }
 0x62e   :  { %3103 = vmatpush.msrb.mxu1 %v6393_v19  ;;  %3126 = vmatpush.msrb.mxu2 %v6396_v13  ;;  %7214 = vst [vmem:[#allocation25_spill] sm:$0xff] %v6407_v52 }
 0x62f   :  { %2946 = vmatpush.msrb.mxu0 %v6055_v35  ;;  %v6414_v35 = vld [vmem:[#allocation9 + $0x30] sm:$0xff] }
 0x630   :  { %3104 = vmatpush.msrb.mxu1 %v6400_v17  ;;  %3127 = vmatpush.msrb.mxu2 %v6403_v38  ;;  %7216 = vst [vmem:[#allocation19_spill] sm:$0xff] %v6414_v35 }
 0x631   :  { %2947 = vmatpush.msrb.mxu0 %v6060_v50  ;;  %v6421_v50 = vld [vmem:[#allocation9 + $0x18] sm:$0xff] }
 0x632   :  { %3105 = vmatpush.msrb.mxu1 %v6407_v52  ;;  %3128 = vmatpush.msrb.mxu2 %v6410_v29  ;;  %7218 = vst [vmem:[#allocation21_spill] sm:$0xff] %v6421_v50 }
 0x633   :  { %2948 = vmatpush.msrb.mxu0 %v6065_v37  ;;  %v6430_v37 = vld [vmem:[#allocation9 + $0x8] sm:$0xff] }
 0x634   :  { %3106 = vmatpush.msrb.mxu1 %v6414_v35  ;;  %3129 = vmatpush.msrb.mxu2 %v6417_v27  ;;  %7221 = vst [vmem:[#allocation27_spill] sm:$0xff] %v6430_v37 }
 0x635   :  { %2949 = vmatpush.msrb.mxu0 %v6070_v61 }
 0x636   :  { %3107 = vmatpush.msrb.mxu1 %v6421_v50  ;;  %3130 = vmatpush.msrb.mxu2 %v6424_v56 }
 0x638   :  { %3108 = vmatpush.msrb.mxu1 %v6427_v4  ;;  %3131 = vmatpush.msrb.mxu2 %v6430_v37 }
 0x672   :  { %v2113_v31 = vpop.f32.mrf.mxu0  ;;  %v2160_v63 = vpop.f32.mrf.mxu1 }
 0x673   :  { %v2114_v61 = vadd.f32 %v2113_v31, %v5733_v54  ;;  %v2161_v55 = vadd.f32 %v2160_v63, %v6167_v43  ;;  %v2474_v31 = vld [vmem:[#allocation2 + $0x48] sm:$0xf] }
 0x675   :  { %2237 = vst [vmem:[#allocation2 + $0x58] sm:$0xff] %v2114_v61 }
 0x676   :  { %2238 = vst [vmem:[#allocation2 + $0xd0] sm:$0xff] %v2161_v55 }
 0x679   :  { %v2207_v33 = vpop.f32.mrf.mxu2 }
 0x67a   :  { %v2208_v18 = vadd.f32 %v2207_v33, %v6179_v42  ;;  %v2116_v46 = vpop.f32.mrf.mxu0  ;;  %v2163_v15 = vpop.f32.mrf.mxu1 }
 0x67b   :  { %v2117_v12 = vadd.f32 %v2116_v46, %v5733_v54  ;;  %v2164_v58 = vadd.f32 %v2163_v15, %v6167_v43 }
 0x67c   :  { %2239 = vst [vmem:[#allocation2 + $0x98] sm:$0xff] %v2208_v18 }
 0x67d   :  { %2240 = vst [vmem:[#allocation2 + $0xc8] sm:$0xff] %v2117_v12 }
 0x67e   :  { %2241 = vst [vmem:[#allocation2 + $0xe0] sm:$0xff] %v2164_v58 }
 0x681   :  { %v2210_v59 = vpop.f32.mrf.mxu2 }
 0x682   :  { %v2211_v20 = vadd.f32 %v2210_v59, %v6179_v42 }
 0x684   :  { %2242 = vst [vmem:[#allocation2 + $0x20] sm:$0xff] %v2211_v20 }
 0x693   :  { %v2493_v62 = vpop.f32.mrf.mxu0  ;;  %v2516_v23 = vpop.f32.mrf.mxu1 }
 0x694   :  { %v2549_v16 = vrot.slane %v2493_v62, 6  ;;  %v2550_v39 = vrot.slane %v2516_v23, 6 }
 0x696   :  { %v2559_v57 = vadd.f32 %v2549_v16, %v2470_v44  ;;  %v2560_v32 = vadd.f32 %v2550_v39, %v2471_v53 }
 0x698   :  { %v3963_v0 = vmul.f32 -1.442695, %v2559_v57  ;;  %v3964_v9 = vmul.f32 -1.442695, %v2560_v32 }
 0x69a   :  { %4215 = vpow2.f32 %v3963_v0  ;;  %v2539_v59 = vpop.f32.mrf.mxu2 }
 0x69b   :  { %4217 = vpow2.f32 %v3964_v9  ;;  %v2496_v54 = vpop.f32.mrf.mxu0  ;;  %v2519_v43 = vpop.f32.mrf.mxu1 }
 0x69c   :  { %v2551_v47 = vrot.slane %v2496_v54, 6  ;;  %v2553_v8 = vrot.slane %v2519_v43, 6  ;;  %v2639_v43 = vadd.f32 %v6272_v21, %v2539_v59 }
 0x69e   :  { %v2552_v42 = vsel %vm674_vm0, %v2549_v16, %v2551_v47  ;;  %v2554_v63 = vsel %vm674_vm0, %v2550_v39, %v2553_v8 }
 0x69f   :  { %v2561_v61 = vadd.f32 %v2552_v42, %v2473_v60  ;;  %v2562_v55 = vadd.f32 %v2554_v63, %v2474_v31 }
 0x6a0   :  { %v4216_v33 = vpop.eup %4215 }
 0x6a1   :  { %v4218_v18 = vpop.eup %4217  ;;  %v2575_v46 = vadd.f32 1.0, %v4216_v33  ;;  %v3965_v15 = vmul.f32 -1.442695, %v2561_v61  ;;  %v3966_v58 = vmul.f32 -1.442695, %v2562_v55  ;;  %v2643_v61 = vrot.slane %v2639_v43, 6 }
 0x6a2   :  { %v6441_v12 = vadd.f32 1.0, %v4218_v18  ;;  %v2542_v60 = vpop.f32.mrf.mxu2 }
 0x6a3   :  { %4219 = vrcp.f32 %v2575_v46  ;;  %v2588_v57 = vand.u32 2147483647, %v2575_v46  ;;  %v2590_v32 = vand.u32 2147483648, %v2575_v46  ;;  %vm2584_vm13 = vweird.f32 %v2575_v46 }
 0x6a4   :  { %4221 = vrcp.f32 %v6441_v12  ;;  %v2640_v33 = vadd.f32 %v6272_v21, %v2542_v60  ;;  %vm2599_vm6 = vweird.f32 %v6441_v12 }
 0x6a5   :  { %4223 = vpow2.f32 %v3965_v15  ;;  %v2591_v8 = vor.u32 1.1754944e-38, %v2590_v32  ;;  %vm2589_vm15 = vcmp.eq.f32.partialorder %v2588_v57, 8.507059e+37 }
 0x6a6   :  { %4225 = vpow2.f32 %v3966_v58  ;;  %v2644_v32 = vrot.slane %v2640_v33, 6 }
 0x6a9   :  { %v4220_v20 = vpop.eup %4219 }
 0x6aa   :  { %v6444_v62 = vpop.eup %4221  ;;  %v2580_v23 = vmul.f32 %v4220_v20, %v2575_v46  ;;  %vm2585_vm12 = vweird.f32 %v4220_v20  ;;  %v2472_v46 = vld [vmem:[#allocation2 + $0x68] sm:$0xfc] }
 0x6ab   :  { %v4224_v16 = vpop.eup %4223  ;;  %v2595_v9 = vmul.f32 %v6444_v62, %v6441_v12  ;;  %vm2586_vm14 = vmor %vm2584_vm13, %vm2585_vm12  ;;  %vm2600_vm4 = vweird.f32 %v6444_v62 }
 0x6ac   :  { %v4226_v39 = vpop.eup %4225  ;;  %v2581_v44 = vsub.f32 1.0, %v2580_v23  ;;  %v2577_v53 = vadd.f32 1.0, %v4224_v16  ;;  %vm2601_vm9 = vmor %vm2599_vm6, %vm2600_vm4 }
 0x6ad   :  { %v6446_v0 = vadd.f32 1.0, %v4226_v39  ;;  %v2596_v42 = vsub.f32 1.0, %v2595_v9 }
 0x6ae   :  { %v2582_v54 = vmul.f32 %v4220_v20, %v2581_v44  ;;  %4227 = vrcp.f32 %v2577_v53  ;;  %v2620_v44 = vand.u32 2147483648, %v2577_v53  ;;  %v2618_v57 = vand.u32 2147483647, %v2577_v53 }
 0x6af   :  { %4229 = vrcp.f32 %v6446_v0  ;;  %v2597_v59 = vmul.f32 %v6444_v62, %v2596_v42  ;;  %vm2614_vm5 = vweird.f32 %v2577_v53  ;;  %v2603_v42 = vand.u32 2147483647, %v6441_v12 }
 0x6b0   :  { %v2583_v47 = vadd.f32 %v4220_v20, %v2582_v54  ;;  %v2621_v60 = vor.u32 1.1754944e-38, %v2620_v44  ;;  %vm2619_vm8 = vcmp.eq.f32.partialorder %v2618_v57, 8.507059e+37  ;;  %vm2629_vm11 = vweird.f32 %v6446_v0 }
 0x6b1   :  { %v2598_v43 = vadd.f32 %v6444_v62, %v2597_v59  ;;  %v2635_v59 = vand.u32 2147483648, %v6446_v0  ;;  %vm2604_vm12 = vcmp.eq.f32.partialorder %v2603_v42, 8.507059e+37 }
 0x6b2   :  { %v2587_v31 = vsel %vm2586_vm14, %v4220_v20, %v2583_v47  ;;  %v2605_v47 = vand.u32 2147483648, %v6441_v12  ;;  %v2475_v12 = vld [vmem:[#allocation2 + $0x80] sm:$0xf] }
 0x6b3   :  { %v2592_v63 = vsel %vm2589_vm15, %v2591_v8, %v2587_v31  ;;  %v2636_v44 = vor.u32 1.1754944e-38, %v2635_v59  ;;  %v6501_v59 = vld [vmem:[#allocation9 + $0x100] sm:$0xff] }
 0x6b4   :  { %v4228_v55 = vpop.eup %4227  ;;  %v2648_v15 = vmul.f32 %v2643_v61, %v2592_v63  ;;  %v2645_v63 = vsel %vm674_vm0, %v2643_v61, %v2644_v32 }
 0x6b5   :  { %v4230_v18 = vpop.eup %4229  ;;  %v2610_v58 = vmul.f32 %v4228_v55, %v2577_v53  ;;  %vm2615_vm1 = vweird.f32 %v4228_v55 }
 0x6b6   :  { %v2625_v23 = vmul.f32 %v4230_v18, %v6446_v0  ;;  %v2650_v9 = vadd.f32 %v2648_v15, %v2472_v46  ;;  %vm2616_vm7 = vmor %vm2614_vm5, %vm2615_vm1  ;;  %vm2630_vm10 = vweird.f32 %v4230_v18 }
 0x6b7   :  { %v2611_v16 = vsub.f32 1.0, %v2610_v58  ;;  %v2602_v58 = vsel %vm2601_vm9, %v6444_v62, %v2598_v43  ;;  %vm2631_vm13 = vmor %vm2629_vm11, %vm2630_vm10 }
 0x6b8   :  { %v2626_v39 = vsub.f32 1.0, %v2625_v23  ;;  %4231 = vtanh.f32 %v2650_v9  ;;  %v2606_v23 = vor.u32 1.1754944e-38, %v2605_v47 }
 0x6b9   :  { %v2612_v20 = vmul.f32 %v4228_v55, %v2611_v16  ;;  %v2633_v16 = vand.u32 2147483647, %v6446_v0 }
 0x6ba   :  { %v2627_v54 = vmul.f32 %v4230_v18, %v2626_v39  ;;  %v2607_v46 = vsel %vm2604_vm12, %v2606_v23, %v2602_v58  ;;  %v6496_v58 = vld [vmem:[#allocation9 + $0x118] sm:$0xff]  ;;  %v6511_v23 = vld [vmem:[#allocation9 + $0xd0] sm:$0xff] }
 0x6bb   :  { %v2613_v8 = vadd.f32 %v4228_v55, %v2612_v20  ;;  %vm2634_vm14 = vcmp.eq.f32.partialorder %v2633_v16, 8.507059e+37  ;;  %v2654_v32 = vsub.f32 1.0, %v2607_v46  ;;  %v2665_v57 = vmul.f32 %v2660_v45, %v2607_v46  ;;  %v6478_v45 = vld [vmem:[#allocation9 + $0x178] sm:$0xff]  ;;  %v6531_v46 = vld [vmem:[#allocation9 + $0x70] sm:$0xff] }
 0x6bc   :  { %v2628_v15 = vadd.f32 %v4230_v18, %v2627_v54  ;;  %v6516_v16 = vld [vmem:[#allocation9 + $0xb8] sm:$0xff] }
 0x6bd   :  { %v2617_v31 = vsel %vm2616_vm7, %v4228_v55, %v2613_v8 }
 0x6be   :  { %v2622_v33 = vsel %vm2619_vm8, %v2621_v60, %v2617_v31  ;;  %v2632_v61 = vsel %vm2631_vm13, %v4230_v18, %v2628_v15  ;;  %v4232_v39 = vpop.eup %4231  ;;  %v6493_v15 = vld [vmem:[#allocation9 + $0x130] sm:$0xff] }
 0x6bf   :  { %v2649_v53 = vmul.f32 %v2645_v63, %v2622_v33  ;;  %v2637_v62 = vsel %vm2634_vm14, %v2636_v44, %v2632_v61  ;;  %v2656_v9 = vmul.f32 %v4232_v39, %v2654_v32  ;;  %v6488_v33 = vld [vmem:[#allocation9 + $0x148] sm:$0xff]  ;;  %v6536_v61 = vld [vmem:[#allocation9 + $0x58] sm:$0xff]  ;;  %v6541_v39 = vld [vmem:[#allocation9 + $0x40] sm:$0xff] }
 0x6c0   :  { %v2655_v20 = vsub.f32 1.0, %v2637_v62  ;;  %v2666_v0 = vmul.f32 %v6342_v5, %v2637_v62  ;;  %v6483_v5 = vld [vmem:[#allocation9 + $0x160] sm:$0xff]  ;;  %7222 = vst [vmem:[#allocation28_spill] sm:$0xff] %v6536_v61  ;;  %v6546_v44 = vld [vmem:[#allocation9 + $0x28] sm:$0xff]  ;;  %v6551_v32 = vld [vmem:[#allocation9 + $0x10] sm:$0xff] }
 0x6c1   :  { %v2651_v55 = vadd.f32 %v2649_v53, %v2475_v12  ;;  %v6468_v47 = vadd.f32 %v2665_v57, %v2656_v9  ;;  %v6506_v53 = vld [vmem:[#allocation9 + $0xe8] sm:$0xff]  ;;  %v6521_v12 = vld [vmem:[#allocation9 + $0xa0] sm:$0xff]  ;;  %7223 = vst [vmem:[#allocation29_spill] sm:$0xff] %v6541_v39 }
 0x6c2   :  { %7224 = vst [vmem:[#allocation30_spill] sm:$0xff] %v6546_v44 }
 0x6c3   :  { %4233 = vtanh.f32 %v2651_v55  ;;  %v2678_v18 = vrot.slane %v6468_v47, 2  ;;  %v7047_v42 = vrot.slane %v6468_v47, 6  ;;  %v6526_v55 = vld [vmem:[#allocation9 + $0x88] sm:$0xff]  ;;  %7225 = vst [vmem:[#allocation31_spill] sm:$0xff] %v6551_v32 }
 0x6c9   :  { %v4234_v54 = vpop.eup %4233 }
 0x6ca   :  { %v2657_v43 = vmul.f32 %v4234_v54, %v2655_v20  ;;  %v2671_v20 = vld [vmem:[#allocation2 + $0x48] sm:$0xf0] }
 0x6cc   :  { %v2668_v8 = vadd.f32 %v2666_v0, %v2657_v43 }
 0x6ce   :  { %2669 = vst [vmem:[#allocation4 - $0x2] sm:$0x8] %v2668_v8  ;;  %v2679_v60 = vrot.slane %v2668_v8, 2  ;;  %v2866_v31 = vrot.slane %v2668_v8, 6  ;;  %v2670_v8 = vld [vmem:[#allocation2 + $0x30] sm:$0xf0] }
 0x6d0   :  { %v2680_v63 = vsel %vm805_vm2, %v2678_v18, %v2679_v60  ;;  %v6476_v11 = vsel %vm674_vm0, %v7047_v42, %v2866_v31  ;;  %v2674_v42 = vld [vmem:[#allocation2 + $0xe8] sm:$0x3f] }
 0x6d1   :  { %2699 = vmatmul.f32.vlgmr.msrb.gmra.mxu3 %v2680_v63  ;;  %2722 = vmatmul.f32.vlgmr.msra.gmra.mxu0 %v2680_v63 }
 0x6d2   :  { %2745 = vmatmul.f32.vlgmr.msra.gmra.mxu1 %v2680_v63  ;;  %3139 = vmatpush.msrb.mxu3 %v6478_v45 }
 0x6d3   :  { %3265 = vmatpush.msra.mxu0 %v6315_v2  ;;  %3288 = vmatpush.msra.mxu1 %v6318_v25 }
 0x6d4   :  { %3140 = vmatpush.msrb.mxu3 %v6483_v5 }
 0x6d5   :  { %3266 = vmatpush.msra.mxu0 %v6323_v7  ;;  %3289 = vmatpush.msra.mxu1 %v6326_v36 }
 0x6d6   :  { %3141 = vmatpush.msrb.mxu3 %v6488_v33 }
 0x6d7   :  { %3267 = vmatpush.msra.mxu0 %v6330_v3  ;;  %3290 = vmatpush.msra.mxu1 %v6333_v22 }
 0x6d8   :  { %3142 = vmatpush.msrb.mxu3 %v6493_v15 }
 0x6d9   :  { %2702 = vmatmul.f32.gmra.mxu3 %v2679_v60  ;;  %2725 = vmatmul.f32.gmra.mxu0 %v2679_v60 }
 0x6da   :  { %2748 = vmatmul.f32.gmra.mxu1 %v2679_v60  ;;  %3143 = vmatpush.msrb.mxu3 %v6496_v58 }
 0x6db   :  { %3268 = vmatpush.msra.mxu0 %v6344_v40  ;;  %3291 = vmatpush.msra.mxu1 %v6347_v1 }
 0x6dc   :  { %3144 = vmatpush.msrb.mxu3 %v6501_v59 }
 0x6dd   :  { %3269 = vmatpush.msra.mxu0 %v6351_v48  ;;  %3292 = vmatpush.msra.mxu1 %v6354_v28 }
 0x6de   :  { %3145 = vmatpush.msrb.mxu3 %v6506_v53 }
 0x6df   :  { %3270 = vmatpush.msra.mxu0 %v6358_v26  ;;  %3293 = vmatpush.msra.mxu1 %v6361_v41 }
 0x6e0   :  { %3146 = vmatpush.msrb.mxu3 %v6511_v23 }
 0x6e1   :  { %3271 = vmatpush.msra.mxu0 %v6365_v24  ;;  %3294 = vmatpush.msra.mxu1 %v6368_v14 }
 0x6e2   :  { %3147 = vmatpush.msrb.mxu3 %v6516_v16 }
 0x6e3   :  { %3272 = vmatpush.msra.mxu0 %v6372_v6  ;;  %3295 = vmatpush.msra.mxu1 %v6375_v34 }
 0x6e4   :  { %3148 = vmatpush.msrb.mxu3 %v6521_v12 }
 0x6e5   :  { %3273 = vmatpush.msra.mxu0 %v6379_v30  ;;  %3296 = vmatpush.msra.mxu1 %v6382_v51 }
 0x6e6   :  { %3149 = vmatpush.msrb.mxu3 %v6526_v55 }
 0x6e7   :  { %3274 = vmatpush.msra.mxu0 %v6386_v49  ;;  %3297 = vmatpush.msra.mxu1 %v6389_v10 }
 0x6e8   :  { %3150 = vmatpush.msrb.mxu3 %v6531_v46 }
 0x6e9   :  { %3275 = vmatpush.msra.mxu0 %v6393_v19  ;;  %3298 = vmatpush.msra.mxu1 %v6396_v13 }
 0x6ea   :  { %3151 = vmatpush.msrb.mxu3 %v6536_v61  ;;  %v2672_v61 = vld [vmem:[#allocation2 + $0x80] sm:$0xf0] }
 0x6eb   :  { %3276 = vmatpush.msra.mxu0 %v6400_v17  ;;  %3299 = vmatpush.msra.mxu1 %v6403_v38 }
 0x6ec   :  { %3152 = vmatpush.msrb.mxu3 %v6541_v39 }
 0x6ed   :  { %3277 = vmatpush.msra.mxu0 %v6407_v52  ;;  %3300 = vmatpush.msra.mxu1 %v6410_v29 }
 0x6ee   :  { %3153 = vmatpush.msrb.mxu3 %v6546_v44 }
 0x6ef   :  { %3278 = vmatpush.msra.mxu0 %v6414_v35  ;;  %3301 = vmatpush.msra.mxu1 %v6417_v27 }
 0x6f0   :  { %3154 = vmatpush.msrb.mxu3 %v6551_v32 }
 0x6f1   :  { %3279 = vmatpush.msra.mxu0 %v6421_v50  ;;  %3302 = vmatpush.msra.mxu1 %v6424_v56 }
 0x6f3   :  { %3280 = vmatpush.msra.mxu0 %v6427_v4  ;;  %3303 = vmatpush.msra.mxu1 %v6430_v37 }
 0x74e   :  { %v2723_v62 = vpop.f32.mrf.mxu0 }
 0x74f   :  { %v2757_v9 = vrot.slane %v2723_v62, 4 }
 0x751   :  { %v2767_v57 = vadd.f32 %v2757_v9, %v2671_v20  ;;  %v2673_v20 = vld [vmem:[#allocation2 + $0x88] sm:$0x3f] }
 0x753   :  { %v3968_v54 = vmul.f32 -1.442695, %v2767_v57 }
 0x754   :  { %v2700_v43 = vpop.f32.mrf.mxu3 }
 0x755   :  { %v2756_v0 = vrot.slane %v2700_v43, 4  ;;  %4235 = vpow2.f32 %v3968_v54 }
 0x756   :  { %v2726_v18 = vpop.f32.mrf.mxu0 }
 0x757   :  { %v2766_v60 = vadd.f32 %v2756_v0, %v2670_v8  ;;  %v2760_v31 = vrot.slane %v2726_v18, 4 }
 0x759   :  { %v3967_v63 = vmul.f32 -1.442695, %v2766_v60  ;;  %v2761_v56 = vsel %vm884_vm3, %v2757_v9, %v2760_v31 }
 0x75a   :  { %v2769_v50 = vadd.f32 %v2761_v56, %v2674_v42 }
 0x75b   :  { %4237 = vpow2.f32 %v3967_v63  ;;  %v4236_v4 = vpop.eup %4235 }
 0x75c   :  { %v3970_v37 = vmul.f32 -1.442695, %v2769_v50  ;;  %v2703_v32 = vpop.f32.mrf.mxu3  ;;  %v6559_v27 = vadd.f32 1.0, %v4236_v4  ;;  %v2746_v50 = vpop.f32.mrf.mxu1 }
 0x75d   :  { %v2758_v62 = vrot.slane %v2703_v32, 4 }
 0x75e   :  { %4239 = vpow2.f32 %v3970_v37  ;;  %vm2806_vm9 = vweird.f32 %v6559_v27 }
 0x75f   :  { %v2759_v57 = vsel %vm884_vm3, %v2756_v0, %v2758_v62  ;;  %4241 = vrcp.f32 %v6559_v27 }
 0x760   :  { %v2768_v54 = vadd.f32 %v2759_v57, %v2673_v20  ;;  %v2846_v20 = vadd.f32 %v6272_v21, %v2746_v50 }
 0x761   :  { %v4238_v43 = vpop.eup %4237 }
 0x762   :  { %v2782_v8 = vadd.f32 1.0, %v4238_v43  ;;  %v3969_v18 = vmul.f32 -1.442695, %v2768_v54 }
 0x764   :  { %4243 = vrcp.f32 %v2782_v8  ;;  %v4240_v9 = vpop.eup %4239  ;;  %v2797_v63 = vand.u32 2147483648, %v2782_v8  ;;  %v2795_v54 = vand.u32 2147483647, %v2782_v8  ;;  %vm2791_vm1 = vweird.f32 %v2782_v8 }
 0x765   :  { %4245 = vpow2.f32 %v3969_v18  ;;  %v6563_v56 = vadd.f32 1.0, %v4240_v9  ;;  %v6565_v42 = vpop.eup %4241  ;;  %v2749_v18 = vpop.f32.mrf.mxu1 }
 0x766   :  { %v2802_v31 = vmul.f32 %v6565_v42, %v6559_v27  ;;  %v2798_v35 = vor.u32 1.1754944e-38, %v2797_v63  ;;  %vm2796_vm5 = vcmp.eq.f32.partialorder %v2795_v54, 8.507059e+37  ;;  %v2847_v39 = vadd.f32 %v6272_v21, %v2749_v18 }
 0x767   :  { %4247 = vrcp.f32 %v6563_v56  ;;  %vm2807_vm7 = vweird.f32 %v6565_v42  ;;  %v2812_v21 = vand.u32 2147483648, %v6559_v27  ;;  %v2842_v18 = vand.u32 2147483648, %v6563_v56 }
 0x768   :  { %v2803_v9 = vsub.f32 1.0, %v2802_v31  ;;  %v2851_v17 = vrot.slane %v2847_v39, 4  ;;  %v2810_v39 = vand.u32 2147483647, %v6559_v27  ;;  %vm6583_vm11 = vmor %vm2806_vm9, %vm2807_vm7  ;;  %vm2836_vm14 = vweird.f32 %v6563_v56 }
 0x76a   :  { %v4244_v4 = vpop.eup %4243  ;;  %v2804_v38 = vmul.f32 %v6565_v42, %v2803_v9 }
 0x76b   :  { %v4246_v37 = vpop.eup %4245  ;;  %v2787_v32 = vmul.f32 %v4244_v4, %v2782_v8  ;;  %vm2792_vm15 = vweird.f32 %v4244_v4 }
 0x76c   :  { %v2784_v0 = vadd.f32 1.0, %v4246_v37  ;;  %vm2793_vm4 = vmor %vm2791_vm1, %vm2792_vm15  ;;  %vm2811_vm15 = vcmp.eq.f32.partialorder %v2810_v39, 8.507059e+37 }
 0x76d   :  { %v2788_v60 = vsub.f32 1.0, %v2787_v32  ;;  %v6570_v62 = vpop.eup %4247  ;;  %v2850_v32 = vrot.slane %v2846_v20, 4 }
 0x76e   :  { %4249 = vrcp.f32 %v2784_v0  ;;  %v2832_v37 = vmul.f32 %v6570_v62, %v6563_v56  ;;  %v2827_v31 = vand.u32 2147483648, %v2784_v0  ;;  %v2825_v13 = vand.u32 2147483647, %v2784_v0 }
 0x76f   :  { %v2789_v57 = vmul.f32 %v4244_v4, %v2788_v60  ;;  %vm2821_vm8 = vweird.f32 %v2784_v0  ;;  %vm2837_vm13 = vweird.f32 %v6570_v62 }
 0x770   :  { %vm2826_vm12 = vcmp.eq.f32.partialorder %v2825_v13, 8.507059e+37  ;;  %vm2838_vm1 = vmor %vm2836_vm14, %vm2837_vm13 }
 0x771   :  { %v2790_v43 = vadd.f32 %v4244_v4, %v2789_v57  ;;  %v2833_v57 = vsub.f32 1.0, %v2832_v37 }
 0x773   :  { %v2794_v44 = vsel %vm2793_vm4, %v4244_v4, %v2790_v43  ;;  %v2834_v4 = vmul.f32 %v6570_v62, %v2833_v57  ;;  %v2813_v43 = vor.u32 1.1754944e-38, %v2812_v21 }
 0x774   :  { %v4250_v29 = vpop.eup %4249  ;;  %v2799_v52 = vsel %vm2796_vm5, %v2798_v35, %v2794_v44  ;;  %v2805_v35 = vadd.f32 %v6565_v42, %v2804_v38  ;;  %v2828_v44 = vor.u32 1.1754944e-38, %v2827_v31  ;;  %v7228_v31 = vrot.slane %v6468_v47, 6 }
 0x775   :  { %v2855_v50 = vmul.f32 %v2850_v32, %v2799_v52  ;;  %v2817_v60 = vmul.f32 %v4250_v29, %v2784_v0  ;;  %vm2822_vm6 = vweird.f32 %v4250_v29  ;;  %v2835_v38 = vadd.f32 %v6570_v62, %v2834_v4 }
 0x776   :  { %vm2823_vm10 = vmor %vm2821_vm8, %vm2822_vm6  ;;  %v2809_v27 = vsel %vm6583_vm11, %v6565_v42, %v2805_v35 }
 0x777   :  { %v2818_v8 = vsub.f32 1.0, %v2817_v60  ;;  %v2857_v19 = vadd.f32 %v2855_v50, %v2672_v61  ;;  %v2852_v61 = vsel %vm884_vm3, %v2850_v32, %v2851_v17  ;;  %v2840_v17 = vand.u32 2147483647, %v6563_v56 }
 0x778   :  { %v2814_v13 = vsel %vm2811_vm15, %v2813_v43, %v2809_v27  ;;  %v2839_v37 = vsel %vm2838_vm1, %v6570_v62, %v2835_v38  ;;  %v2843_v50 = vor.u32 1.1754944e-38, %v2842_v18 }
 0x779   :  { %v2819_v63 = vmul.f32 %v4250_v29, %v2818_v8  ;;  %4251 = vtanh.f32 %v2857_v19  ;;  %vm2841_vm4 = vcmp.eq.f32.partialorder %v2840_v17, 8.507059e+37  ;;  %v2861_v42 = vsub.f32 1.0, %v2814_v13 }
 0x77a   :  { %v2844_v60 = vsel %vm2841_vm4, %v2843_v50, %v2839_v37  ;;  %v2879_v37 = vld [vmem:[#allocation2 + $0xa8] sm:$0xff] }
 0x77b   :  { %v2820_v52 = vadd.f32 %v4250_v29, %v2819_v63  ;;  %v2862_v8 = vsub.f32 1.0, %v2844_v60  ;;  %v2870_v63 = vmul.f32 %v7228_v31, %v2814_v13  ;;  %v2871_v35 = vmul.f32 %v6476_v11, %v2844_v60  ;;  %v2875_v11 = vld [vmem:[#allocation2 + $0x88] sm:$0xc0] }
 0x77d   :  { %v2824_v54 = vsel %vm2823_vm10, %v4250_v29, %v2820_v52  ;;  %v2675_v29 = vld [vmem:[#allocation2 + $0xb8] sm:$0x3f] }
 0x77e   :  { %v2829_v0 = vsel %vm2826_vm12, %v2828_v44, %v2824_v54  ;;  %v2876_v54 = vld [vmem:[#allocation2 + $0xe8] sm:$0xc0] }
 0x77f   :  { %v2856_v9 = vmul.f32 %v2852_v61, %v2829_v0  ;;  %v4252_v32 = vpop.eup %4251 }
 0x780   :  { %v2863_v57 = vmul.f32 %v4252_v32, %v2861_v42 }
 0x781   :  { %v2858_v19 = vadd.f32 %v2856_v9, %v2675_v29 }
 0x782   :  { %v6600_v21 = vadd.f32 %v2870_v63, %v2863_v57 }
 0x783   :  { %4253 = vtanh.f32 %v2858_v19  ;;  %v2878_v19 = vld [vmem:[#allocation2 + $0x60] sm:$0xff] }
 0x784   :  { %v2883_v62 = vrot.slane %v6600_v21, 4  ;;  %v3070_v44 = vrot.slane %v6600_v21, 6  ;;  %v4472_v21 = vld [vmem:[#allocation9 + $0x168] sm:$0xff] }
 0x789   :  { %v4254_v4 = vpop.eup %4253 }
 0x78a   :  { %v2864_v56 = vmul.f32 %v4254_v4, %v2862_v8 }
 0x78c   :  { %v2873_v52 = vadd.f32 %v2871_v35, %v2864_v56 }
 0x78e   :  { %2874 = vst [vmem:[#allocation4 - $0x3] sm:$0x20] %v2873_v52  ;;  %v2884_v39 = vrot.slane %v2873_v52, 4  ;;  %v3071_v20 = vrot.slane %v2873_v52, 6 }
 0x790   :  { %v2885_v61 = vsel %vm884_vm3, %v2883_v62, %v2884_v39  ;;  %v6608_v47 = vsel %vm674_vm0, %v3070_v44, %v3071_v20 }
 0x791   :  { %2904 = vmatmul.f32.vlgmr.msra.gmra.mxu2 %v2885_v61  ;;  %2927 = vmatmul.f32.vlgmr.msra.gmra.mxu3 %v2885_v61 }
 0x792   :  { %2950 = vmatmul.f32.vlgmr.msrb.gmra.mxu0 %v2885_v61  ;;  %3311 = vmatpush.msra.mxu2 %v6478_v45 }
 0x793   :  { %3472 = vmatpush.msra.mxu3 %v6315_v2  ;;  %3495 = vmatpush.msrb.mxu0 %v6318_v25  ;;  %v7229_v2 = vld [vmem:[#allocation15_spill] sm:$0xff]  ;;  %v7230_v25 = vld [vmem:[#allocation24_spill] sm:$0xff] }
 0x794   :  { %3312 = vmatpush.msra.mxu2 %v6483_v5 }
 0x795   :  { %3473 = vmatpush.msra.mxu3 %v6323_v7  ;;  %3496 = vmatpush.msrb.mxu0 %v6326_v36  ;;  %v7231_v7 = vld [vmem:[#allocation28_spill] sm:$0xff] }
 0x796   :  { %3313 = vmatpush.msra.mxu2 %v6488_v33  ;;  %v7232_v36 = vld [vmem:[#allocation16_spill] sm:$0xff] }
 0x797   :  { %3474 = vmatpush.msra.mxu3 %v6330_v3  ;;  %3497 = vmatpush.msrb.mxu0 %v6333_v22  ;;  %v7233_v3 = vld [vmem:[#allocation17_spill] sm:$0xff] }
 0x798   :  { %3314 = vmatpush.msra.mxu2 %v6493_v15  ;;  %v7234_v22 = vld [vmem:[#allocation29_spill] sm:$0xff] }
 0x799   :  { %2907 = vmatmul.f32.gmra.mxu2 %v2884_v39  ;;  %2930 = vmatmul.f32.gmra.mxu3 %v2884_v39 }
 0x79a   :  { %2953 = vmatmul.f32.gmra.mxu0 %v2884_v39  ;;  %3315 = vmatpush.msra.mxu2 %v6496_v58 }
 0x79b   :  { %3475 = vmatpush.msra.mxu3 %v6344_v40  ;;  %3498 = vmatpush.msrb.mxu0 %v6347_v1  ;;  %v7235_v40 = vld [vmem:[#allocation25_spill] sm:$0xff]  ;;  %v7236_v1 = vld [vmem:[#allocation18_spill] sm:$0xff] }
 0x79c   :  { %3316 = vmatpush.msra.mxu2 %v6501_v59 }
 0x79d   :  { %3476 = vmatpush.msra.mxu3 %v6351_v48  ;;  %3499 = vmatpush.msrb.mxu0 %v6354_v28  ;;  %v7237_v48 = vld [vmem:[#allocation30_spill] sm:$0xff]  ;;  %v7238_v28 = vld [vmem:[#allocation19_spill] sm:$0xff] }
 0x79e   :  { %3317 = vmatpush.msra.mxu2 %v6506_v53 }
 0x79f   :  { %3477 = vmatpush.msra.mxu3 %v6358_v26  ;;  %3500 = vmatpush.msrb.mxu0 %v6361_v41  ;;  %v7239_v26 = vld [vmem:[#allocation20_spill] sm:$0xff]  ;;  %v7240_v41 = vld [vmem:[#allocation31_spill] sm:$0xff] }
 0x7a0   :  { %3318 = vmatpush.msra.mxu2 %v6511_v23 }
 0x7a1   :  { %3478 = vmatpush.msra.mxu3 %v6365_v24  ;;  %3501 = vmatpush.msrb.mxu0 %v6368_v14  ;;  %v7241_v24 = vld [vmem:[#allocation21_spill] sm:$0xff]  ;;  %v7242_v14 = vld [vmem:[#allocation35_spill] sm:$0xff] }
 0x7a2   :  { %3319 = vmatpush.msra.mxu2 %v6516_v16 }
 0x7a3   :  { %3479 = vmatpush.msra.mxu3 %v6372_v6  ;;  %3502 = vmatpush.msrb.mxu0 %v6375_v34  ;;  %v7243_v6 = vld [vmem:[#allocation26_spill] sm:$0xff]  ;;  %v7244_v34 = vld [vmem:[#allocation27_spill] sm:$0xff] }
 0x7a4   :  { %3320 = vmatpush.msra.mxu2 %v6521_v12 }
 0x7a5   :  { %3480 = vmatpush.msra.mxu3 %v6379_v30  ;;  %3503 = vmatpush.msrb.mxu0 %v6382_v51 }
 0x7a6   :  { %3321 = vmatpush.msra.mxu2 %v6526_v55 }
 0x7a7   :  { %3481 = vmatpush.msra.mxu3 %v6386_v49  ;;  %3504 = vmatpush.msrb.mxu0 %v6389_v10 }
 0x7a8   :  { %3322 = vmatpush.msra.mxu2 %v6531_v46 }
 0x7a9   :  { %3482 = vmatpush.msra.mxu3 %v7229_v2  ;;  %3505 = vmatpush.msrb.mxu0 %v7230_v25 }
 0x7aa   :  { %3323 = vmatpush.msra.mxu2 %v7231_v7 }
 0x7ab   :  { %3483 = vmatpush.msra.mxu3 %v7232_v36  ;;  %3506 = vmatpush.msrb.mxu0 %v7233_v3 }
 0x7ac   :  { %3324 = vmatpush.msra.mxu2 %v7234_v22 }
 0x7ad   :  { %3484 = vmatpush.msra.mxu3 %v7235_v40  ;;  %3507 = vmatpush.msrb.mxu0 %v7236_v1 }
 0x7ae   :  { %3325 = vmatpush.msra.mxu2 %v7237_v48 }
 0x7af   :  { %3485 = vmatpush.msra.mxu3 %v7238_v28  ;;  %3508 = vmatpush.msrb.mxu0 %v7239_v26  ;;  %v6672_v28 = vld [vmem:[%s6954_s9] ss:$0 sm:$0xff] }
 0x7b0   :  { %3326 = vmatpush.msra.mxu2 %v7240_v41 }
 0x7b1   :  { %3486 = vmatpush.msra.mxu3 %v7241_v24  ;;  %3509 = vmatpush.msrb.mxu0 %v7242_v14 }
 0x7b3   :  { %3487 = vmatpush.msra.mxu3 %v7243_v6  ;;  %3510 = vmatpush.msrb.mxu0 %v7244_v34 }
 0x80f   :  { %v2951_v56 = vpop.f32.mrf.mxu0 }
 0x810   :  { %v3051_v26 = vadd.f32 %v6672_v28, %v2951_v56 }
 0x814   :  { %v2905_v30 = vpop.f32.mrf.mxu2  ;;  %v2928_v51 = vpop.f32.mrf.mxu3 }
 0x815   :  { %v2961_v49 = vrot.slane %v2905_v30, 2  ;;  %v2962_v10 = vrot.slane %v2928_v51, 2  ;;  %v3055_v51 = vrot.slane %v3051_v26, 2 }
 0x817   :  { %v2971_v38 = vadd.f32 %v2961_v49, %v2875_v11  ;;  %v2972_v0 = vadd.f32 %v2962_v10, %v2876_v54  ;;  %v2954_v6 = vpop.f32.mrf.mxu0 }
 0x818   :  { %v3052_v11 = vadd.f32 %v6672_v28, %v2954_v6 }
 0x819   :  { %v3971_v27 = vmul.f32 -1.442695, %v2971_v38  ;;  %v3972_v43 = vmul.f32 -1.442695, %v2972_v0 }
 0x81b   :  { %4255 = vpow2.f32 %v3971_v27 }
 0x81c   :  { %4257 = vpow2.f32 %v3972_v43  ;;  %v2908_v18 = vpop.f32.mrf.mxu2  ;;  %v2931_v9 = vpop.f32.mrf.mxu3 }
 0x81d   :  { %v2963_v17 = vrot.slane %v2908_v18, 2  ;;  %v2965_v29 = vrot.slane %v2931_v9, 2  ;;  %v3056_v9 = vrot.slane %v3052_v11, 2 }
 0x81f   :  { %v2964_v13 = vsel %vm805_vm2, %v2961_v49, %v2963_v17  ;;  %v2966_v32 = vsel %vm805_vm2, %v2962_v10, %v2965_v29 }
 0x820   :  { %v2973_v50 = vadd.f32 %v2964_v13, %v2878_v19  ;;  %v2974_v42 = vadd.f32 %v2966_v32, %v2879_v37  ;;  %v2877_v19 = vld [vmem:[#allocation2 + $0xb8] sm:$0xc0] }
 0x821   :  { %v4256_v60 = vpop.eup %4255 }
 0x822   :  { %v4258_v57 = vpop.eup %4257  ;;  %v2987_v8 = vadd.f32 1.0, %v4256_v60  ;;  %v3973_v31 = vmul.f32 -1.442695, %v2973_v50  ;;  %v3974_v4 = vmul.f32 -1.442695, %v2974_v42 }
 0x823   :  { %v6660_v63 = vadd.f32 1.0, %v4258_v57 }
 0x824   :  { %4259 = vrcp.f32 %v2987_v8  ;;  %v3000_v25 = vand.u32 2147483647, %v2987_v8  ;;  %v3002_v36 = vand.u32 2147483648, %v2987_v8  ;;  %vm2996_vm6 = vweird.f32 %v2987_v8 }
 0x825   :  { %4261 = vrcp.f32 %v6660_v63  ;;  %v3017_v60 = vand.u32 2147483648, %v6660_v63  ;;  %vm3011_vm12 = vweird.f32 %v6660_v63 }
 0x826   :  { %4263 = vpow2.f32 %v3973_v31  ;;  %v3003_v14 = vor.u32 1.1754944e-38, %v3002_v36  ;;  %vm3001_vm8 = vcmp.eq.f32.partialorder %v3000_v25, 8.507059e+37  ;;  %v3015_v31 = vand.u32 2147483647, %v6660_v63  ;;  %v2880_v25 = vld [vmem:[#allocation2 + $0x70] sm:$0xff] }
 0x827   :  { %4265 = vpow2.f32 %v3974_v4  ;;  %v3057_v4 = vsel %vm805_vm2, %v3055_v51, %v3056_v9  ;;  %v4477_v9 = vld [vmem:[#allocation9 + $0x140] sm:$0xff] }
 0x82a   :  { %v4260_v35 = vpop.eup %4259 }
 0x82b   :  { %v6663_v52 = vpop.eup %4261  ;;  %v2992_v62 = vmul.f32 %v4260_v35, %v2987_v8  ;;  %vm2997_vm5 = vweird.f32 %v4260_v35 }
 0x82c   :  { %v4264_v39 = vpop.eup %4263  ;;  %v3007_v1 = vmul.f32 %v6663_v52, %v6660_v63  ;;  %vm2998_vm7 = vmor %vm2996_vm6, %vm2997_vm5  ;;  %vm3012_vm10 = vweird.f32 %v6663_v52  ;;  %v3018_v63 = vor.u32 1.1754944e-38, %v3017_v60  ;;  %vm3016_vm5 = vcmp.eq.f32.partialorder %v3015_v31, 8.507059e+37  ;;  %v4496_v60 = vld [vmem:[#allocation9 + $0x48] sm:$0xff]  ;;  %v4502_v31 = vld [vmem:[#allocation9] sm:$0xff] }
 0x82d   :  { %v4266_v20 = vpop.eup %4265  ;;  %v2993_v61 = vsub.f32 1.0, %v2992_v62  ;;  %v2989_v2 = vadd.f32 1.0, %v4264_v39  ;;  %vm6685_vm15 = vmor %vm3011_vm12, %vm3012_vm10 }
 0x82e   :  { %v6665_v3 = vadd.f32 1.0, %v4266_v20  ;;  %v3008_v30 = vsub.f32 1.0, %v3007_v1 }
 0x82f   :  { %v2994_v40 = vmul.f32 %v4260_v35, %v2993_v61  ;;  %4267 = vrcp.f32 %v2989_v2  ;;  %v3032_v17 = vand.u32 2147483648, %v2989_v2  ;;  %v3030_v37 = vand.u32 2147483647, %v2989_v2 }
 0x830   :  { %4269 = vrcp.f32 %v6665_v3  ;;  %v3009_v27 = vmul.f32 %v6663_v52, %v3008_v30  ;;  %vm3026_vm11 = vweird.f32 %v2989_v2  ;;  %vm3041_vm4 = vweird.f32 %v6665_v3 }
 0x831   :  { %v2995_v24 = vadd.f32 %v4260_v35, %v2994_v40  ;;  %v3033_v8 = vor.u32 1.1754944e-38, %v3032_v17  ;;  %vm3031_vm14 = vcmp.eq.f32.partialorder %v3030_v37, 8.507059e+37  ;;  %v3045_v36 = vand.u32 2147483647, %v6665_v3  ;;  %v4481_v17 = vld [vmem:[#allocation9 + $0x110] sm:$0xff]  ;;  %v4488_v37 = vld [vmem:[#allocation9 + $0xa8] sm:$0xff] }
 0x832   :  { %v3010_v42 = vadd.f32 %v6663_v52, %v3009_v27 }
 0x833   :  { %v2999_v34 = vsel %vm2998_vm7, %v4260_v35, %v2995_v24  ;;  %vm3046_vm7 = vcmp.eq.f32.partialorder %v3045_v36, 8.507059e+37 }
 0x834   :  { %v3004_v49 = vsel %vm3001_vm8, %v3003_v14, %v2999_v34  ;;  %v3014_v20 = vsel %vm6685_vm15, %v6663_v52, %v3010_v42  ;;  %v4494_v42 = vld [vmem:[#allocation9 + $0x60] sm:$0xff] }
 0x835   :  { %v4268_v10 = vpop.eup %4267  ;;  %v3060_v38 = vmul.f32 %v3055_v51, %v3004_v49  ;;  %v3019_v1 = vsel %vm3016_vm5, %v3018_v63, %v3014_v20 }
 0x836   :  { %v4270_v54 = vpop.eup %4269  ;;  %v3022_v0 = vmul.f32 %v4268_v10, %v2989_v2  ;;  %vm3027_vm9 = vweird.f32 %v4268_v10  ;;  %v3047_v2 = vand.u32 2147483648, %v6665_v3  ;;  %v3066_v6 = vsub.f32 1.0, %v3019_v1 }
 0x837   :  { %v3037_v43 = vmul.f32 %v4270_v54, %v6665_v3  ;;  %v3062_v32 = vadd.f32 %v3060_v38, %v2877_v19  ;;  %vm3028_vm13 = vmor %vm3026_vm11, %vm3027_vm9  ;;  %vm3042_vm1 = vweird.f32 %v4270_v54  ;;  %v3075_v51 = vmul.f32 %v3070_v44, %v3019_v1  ;;  %v4473_v44 = vld [vmem:[#allocation9 + $0x170] sm:$0xff]  ;;  %v4484_v19 = vld [vmem:[#allocation9 + $0xd8] sm:$0xff] }
 0x838   :  { %v3023_v18 = vsub.f32 1.0, %v3022_v0  ;;  %vm3043_vm6 = vmor %vm3041_vm4, %vm3042_vm1  ;;  %v3048_v14 = vor.u32 1.1754944e-38, %v3047_v2  ;;  %v3084_v1 = vld [vmem:[#allocation2 + $0x10] sm:$0x3] }
 0x839   :  { %v3038_v29 = vsub.f32 1.0, %v3037_v43  ;;  %4271 = vtanh.f32 %v3062_v32  ;;  %v4475_v43 = vld [vmem:[#allocation9 + $0x158] sm:$0xff]  ;;  %v4490_v32 = vld [vmem:[#allocation9 + $0x90] sm:$0xff] }
 0x83a   :  { %v3024_v13 = vmul.f32 %v4268_v10, %v3023_v18  ;;  %v4476_v18 = vld [vmem:[#allocation9 + $0x138] sm:$0xff] }
 0x83b   :  { %v3039_v50 = vmul.f32 %v4270_v54, %v3038_v29  ;;  %v4483_v29 = vld [vmem:[#allocation9 + $0xf8] sm:$0xff] }
 0x83c   :  { %v3025_v57 = vadd.f32 %v4268_v10, %v3024_v13  ;;  %v4486_v13 = vld [vmem:[#allocation9 + $0xc0] sm:$0xff] }
 0x83d   :  { %v3040_v39 = vadd.f32 %v4270_v54, %v3039_v50  ;;  %v4492_v50 = vld [vmem:[#allocation9 + $0x78] sm:$0xff] }
 0x83e   :  { %v3029_v56 = vsel %vm3028_vm13, %v4268_v10, %v3025_v57  ;;  %v4498_v57 = vld [vmem:[#allocation9 + $0x30] sm:$0xff] }
 0x83f   :  { %v3034_v62 = vsel %vm3031_vm14, %v3033_v8, %v3029_v56  ;;  %v3044_v26 = vsel %vm3043_vm6, %v4270_v54, %v3040_v39  ;;  %v4272_v24 = vpop.eup %4271  ;;  %v4500_v8 = vld [vmem:[#allocation9 + $0x18] sm:$0xff] }
 0x840   :  { %v3061_v61 = vmul.f32 %v3057_v4, %v3034_v62  ;;  %v3049_v52 = vsel %vm3046_vm7, %v3048_v14, %v3044_v26  ;;  %v3068_v34 = vmul.f32 %v4272_v24, %v3066_v6  ;;  %v4503_v4 = vld [vmem:[#allocation9 + $0x8] sm:$0xff] }
 0x841   :  { %v3067_v30 = vsub.f32 1.0, %v3049_v52  ;;  %v3076_v3 = vmul.f32 %v6608_v47, %v3049_v52  ;;  %v4474_v47 = vld [vmem:[#allocation9 + $0x150] sm:$0xff] }
 0x842   :  { %v3063_v40 = vadd.f32 %v3061_v61, %v2880_v25  ;;  %v3077_v11 = vadd.f32 %v3075_v51, %v3068_v34  ;;  %v3083_v61 = vld [vmem:[#allocation2 + $0xc0] sm:$0x3] }
 0x844   :  { %4273 = vtanh.f32 %v3063_v40  ;;  %v3088_v0 = vrot.slane %v3077_v11, 6 }
 0x84a   :  { %v4274_v49 = vpop.eup %4273 }
 0x84b   :  { %v3069_v10 = vmul.f32 %v4274_v49, %v3067_v30 }
 0x84d   :  { %v3078_v38 = vadd.f32 %v3076_v3, %v3069_v10 }
 0x84f   :  { %3079 = vst [vmem:[#allocation4 - $0x4] sm:$0x80] %v3078_v38  ;;  %v6698_v54 = vrot.slane %v3078_v38, 6 }
 0x851   :  { %v6702_v27 = vsel %vm674_vm0, %v3088_v0, %v6698_v54 }
 0x852   :  { %3109 = vmatmul.f32.vlgmr.msrb.gmra.mxu1 %v6702_v27  ;;  %3132 = vmatmul.f32.vlgmr.msrb.gmra.mxu2 %v6702_v27 }
 0x853   :  { %3155 = vmatmul.f32.vlgmr.msrb.gmra.mxu3 %v6702_v27  ;;  %3518 = vmatpush.msrb.mxu1 %v6478_v45  ;;  %v4478_v45 = vld [vmem:[#allocation9 + $0x120] sm:$0xff] }
 0x854   :  { %3677 = vmatpush.msrb.mxu2 %v4472_v21  ;;  %3700 = vmatpush.msrb.mxu3 %v4473_v44 }
 0x855   :  { %3519 = vmatpush.msrb.mxu1 %v6483_v5  ;;  %v4479_v5 = vld [vmem:[#allocation9 + $0x128] sm:$0xff] }
 0x856   :  { %3678 = vmatpush.msrb.mxu2 %v4474_v47  ;;  %3701 = vmatpush.msrb.mxu3 %v4475_v43 }
 0x857   :  { %3520 = vmatpush.msrb.mxu1 %v6488_v33  ;;  %v4480_v33 = vld [vmem:[#allocation9 + $0x108] sm:$0xff] }
 0x858   :  { %3679 = vmatpush.msrb.mxu2 %v4476_v18  ;;  %3702 = vmatpush.msrb.mxu3 %v4477_v9 }
 0x859   :  { %3521 = vmatpush.msrb.mxu1 %v6493_v15  ;;  %v4482_v15 = vld [vmem:[#allocation9 + $0xf0] sm:$0xff] }
 0x85a   :  { %3112 = vmatmul.f32.gmra.mxu1 %v6698_v54  ;;  %3135 = vmatmul.f32.gmra.mxu2 %v6698_v54 }
 0x85b   :  { %3158 = vmatmul.f32.gmra.mxu3 %v6698_v54  ;;  %3522 = vmatpush.msrb.mxu1 %v6496_v58  ;;  %v4485_v58 = vld [vmem:[#allocation9 + $0xe0] sm:$0xff] }
 0x85c   :  { %3680 = vmatpush.msrb.mxu2 %v4478_v45  ;;  %3703 = vmatpush.msrb.mxu3 %v4479_v5 }
 0x85d   :  { %3523 = vmatpush.msrb.mxu1 %v6501_v59  ;;  %v4487_v59 = vld [vmem:[#allocation9 + $0xc8] sm:$0xff] }
 0x85e   :  { %3681 = vmatpush.msrb.mxu2 %v4480_v33  ;;  %3704 = vmatpush.msrb.mxu3 %v4481_v17 }
 0x85f   :  { %3524 = vmatpush.msrb.mxu1 %v6506_v53  ;;  %v4489_v53 = vld [vmem:[#allocation9 + $0xb0] sm:$0xff] }
 0x860   :  { %3682 = vmatpush.msrb.mxu2 %v4482_v15  ;;  %3705 = vmatpush.msrb.mxu3 %v4483_v29 }
 0x861   :  { %3525 = vmatpush.msrb.mxu1 %v6511_v23  ;;  %v4491_v23 = vld [vmem:[#allocation9 + $0x98] sm:$0xff] }
 0x862   :  { %3683 = vmatpush.msrb.mxu2 %v4484_v19  ;;  %3706 = vmatpush.msrb.mxu3 %v4485_v58 }
 0x863   :  { %3526 = vmatpush.msrb.mxu1 %v6516_v16  ;;  %v4493_v16 = vld [vmem:[#allocation9 + $0x80] sm:$0xff] }
 0x864   :  { %3684 = vmatpush.msrb.mxu2 %v4486_v13  ;;  %3707 = vmatpush.msrb.mxu3 %v4487_v59 }
 0x865   :  { %3527 = vmatpush.msrb.mxu1 %v6521_v12  ;;  %v4495_v12 = vld [vmem:[#allocation9 + $0x68] sm:$0xff] }
 0x866   :  { %3685 = vmatpush.msrb.mxu2 %v4488_v37  ;;  %3708 = vmatpush.msrb.mxu3 %v4489_v53  ;;  %v3082_v37 = vld [vmem:[#allocation2 + $0x78] sm:$0xff] }
 0x867   :  { %3528 = vmatpush.msrb.mxu1 %v6526_v55  ;;  %v4497_v55 = vld [vmem:[#allocation9 + $0x50] sm:$0xff] }
 0x868   :  { %3686 = vmatpush.msrb.mxu2 %v4490_v32  ;;  %3709 = vmatpush.msrb.mxu3 %v4491_v23 }
 0x869   :  { %3529 = vmatpush.msrb.mxu1 %v6531_v46  ;;  %v4499_v46 = vld [vmem:[#allocation9 + $0x38] sm:$0xff] }
 0x86a   :  { %3687 = vmatpush.msrb.mxu2 %v4492_v50  ;;  %3710 = vmatpush.msrb.mxu3 %v4493_v16 }
 0x86b   :  { %3530 = vmatpush.msrb.mxu1 %v7231_v7  ;;  %v4501_v7 = vld [vmem:[#allocation9 + $0x20] sm:$0xff] }
 0x86c   :  { %3688 = vmatpush.msrb.mxu2 %v4494_v42  ;;  %3711 = vmatpush.msrb.mxu3 %v4495_v12 }
 0x86d   :  { %3531 = vmatpush.msrb.mxu1 %v7234_v22  ;;  %v3080_v22 = vld [vmem:[#allocation2 + $0x40] sm:$0xff] }
 0x86e   :  { %3689 = vmatpush.msrb.mxu2 %v4496_v60  ;;  %3712 = vmatpush.msrb.mxu3 %v4497_v55 }
 0x86f   :  { %3532 = vmatpush.msrb.mxu1 %v7237_v48  ;;  %v3081_v48 = vld [vmem:[#allocation2 + $0x8] sm:$0xff] }
 0x870   :  { %3690 = vmatpush.msrb.mxu2 %v4498_v57  ;;  %3713 = vmatpush.msrb.mxu3 %v4499_v46 }
 0x871   :  { %3533 = vmatpush.msrb.mxu1 %v7240_v41 }
 0x872   :  { %3691 = vmatpush.msrb.mxu2 %v4500_v8  ;;  %3714 = vmatpush.msrb.mxu3 %v4501_v7 }
 0x874   :  { %3692 = vmatpush.msrb.mxu2 %v4502_v31  ;;  %3715 = vmatpush.msrb.mxu3 %v4503_v4 }
 0x8cf   :  { %v3110_v56 = vpop.f32.mrf.mxu1 }
 0x8d0   :  { %v3162_v35 = vadd.f32 %v3110_v56, %v3080_v22 }
 0x8d2   :  { %v3975_v62 = vmul.f32 -1.442695, %v3162_v35 }
 0x8d4   :  { %4275 = vpow2.f32 %v3975_v62 }
 0x8d5   :  { %v3133_v39 = vpop.f32.mrf.mxu2 }
 0x8d6   :  { %v3163_v20 = vadd.f32 %v3133_v39, %v3081_v48  ;;  %v3156_v38 = vpop.f32.mrf.mxu3 }
 0x8d7   :  { %v3113_v2 = vpop.f32.mrf.mxu1  ;;  %v3242_v17 = vadd.f32 %v6672_v28, %v3156_v38 }
 0x8d8   :  { %v3976_v63 = vmul.f32 -1.442695, %v3163_v20  ;;  %v3164_v41 = vadd.f32 %v3113_v2, %v3083_v61 }
 0x8da   :  { %v4276_v25 = vpop.eup %4275  ;;  %4277 = vpow2.f32 %v3976_v63  ;;  %v3977_v36 = vmul.f32 -1.442695, %v3164_v41  ;;  %v3085_v41 = vld [vmem:[#allocation2 + $0x38] sm:$0x3] }
 0x8db   :  { %v3178_v40 = vadd.f32 1.0, %v4276_v25 }
 0x8dc   :  { %4279 = vpow2.f32 %v3977_v36 }
 0x8dd   :  { %4281 = vrcp.f32 %v3178_v40  ;;  %v3136_v26 = vpop.f32.mrf.mxu2  ;;  %v3193_v3 = vand.u32 2147483648, %v3178_v40  ;;  %v3191_v21 = vand.u32 2147483647, %v3178_v40  ;;  %vm3187_vm9 = vweird.f32 %v3178_v40 }
 0x8de   :  { %v3165_v24 = vadd.f32 %v3136_v26, %v3084_v1  ;;  %v3159_v46 = vpop.f32.mrf.mxu3 }
 0x8df   :  { %v3194_v9 = vor.u32 1.1754944e-38, %v3193_v3  ;;  %vm3192_vm11 = vcmp.eq.f32.partialorder %v3191_v21, 8.507059e+37  ;;  %v3243_v56 = vadd.f32 %v6672_v28, %v3159_v46  ;;  %v4507_v3 = vld [vmem:[#allocation9 + $0x130] sm:$0xff]  ;;  %v4509_v21 = vld [vmem:[#allocation9 + $0x100] sm:$0xff]  ;;  %v3263_v46 = vld [vmem:[#allocation2 + $0x90] sm:$0xf] }
 0x8e0   :  { %v4278_v14 = vpop.eup %4277  ;;  %v3978_v6 = vmul.f32 -1.442695, %v3165_v24 }
 0x8e1   :  { %v3179_v52 = vadd.f32 1.0, %v4278_v14 }
 0x8e2   :  { %v4280_v34 = vpop.eup %4279  ;;  %4283 = vpow2.f32 %v3978_v6  ;;  %v4504_v6 = vld [vmem:[#allocation9 + $0x178] sm:$0xff] }
 0x8e3   :  { %v4282_v30 = vpop.eup %4281  ;;  %4285 = vrcp.f32 %v3179_v52  ;;  %v3180_v49 = vadd.f32 1.0, %v4280_v34  ;;  %v3208_v58 = vand.u32 2147483648, %v3179_v52  ;;  %v3206_v59 = vand.u32 2147483647, %v3179_v52  ;;  %v4505_v34 = vld [vmem:[#allocation9 + $0x160] sm:$0xff] }
 0x8e4   :  { %v3183_v51 = vmul.f32 %v4282_v30, %v3178_v40  ;;  %vm3188_vm8 = vweird.f32 %v4282_v30  ;;  %vm3202_vm13 = vweird.f32 %v3179_v52 }
 0x8e5   :  { %4287 = vrcp.f32 %v3180_v49  ;;  %vm3189_vm10 = vmor %vm3187_vm9, %vm3188_vm8  ;;  %v3223_v50 = vand.u32 2147483648, %v3180_v49  ;;  %v3221_v12 = vand.u32 2147483647, %v3180_v49  ;;  %v3209_v60 = vor.u32 1.1754944e-38, %v3208_v58 }
 0x8e6   :  { %v3184_v10 = vsub.f32 1.0, %v3183_v51  ;;  %vm3207_vm1 = vcmp.eq.f32.partialorder %v3206_v59, 8.507059e+37  ;;  %vm3217_vm4 = vweird.f32 %v3180_v49  ;;  %v3259_v59 = vld [vmem:[#allocation2 + $0xc0] sm:$0xfc] }
 0x8e7   :  { %v3224_v4 = vor.u32 1.1754944e-38, %v3223_v50  ;;  %vm3222_vm6 = vcmp.eq.f32.partialorder %v3221_v12, 8.507059e+37 }
 0x8e8   :  { %v4284_v11 = vpop.eup %4283  ;;  %v3185_v0 = vmul.f32 %v4282_v30, %v3184_v10 }
 0x8e9   :  { %v4286_v44 = vpop.eup %4285  ;;  %v6726_v47 = vadd.f32 1.0, %v4284_v11 }
 0x8ea   :  { %v3198_v43 = vmul.f32 %v4286_v44, %v3179_v52  ;;  %v3186_v18 = vadd.f32 %v4282_v30, %v3185_v0  ;;  %vm3203_vm12 = vweird.f32 %v4286_v44  ;;  %v4508_v0 = vld [vmem:[#allocation9 + $0x118] sm:$0xff] }
 0x8eb   :  { %4289 = vrcp.f32 %v6726_v47  ;;  %v4288_v45 = vpop.eup %4287  ;;  %vm3204_vm14 = vmor %vm3202_vm13, %vm3203_vm12  ;;  %v3238_v39 = vand.u32 2147483648, %v6726_v47  ;;  %vm3232_vm8 = vweird.f32 %v6726_v47  ;;  %v3236_v63 = vand.u32 2147483647, %v6726_v47 }
 0x8ec   :  { %v3199_v5 = vsub.f32 1.0, %v3198_v43  ;;  %v3190_v33 = vsel %vm3189_vm10, %v4282_v30, %v3186_v18  ;;  %v3213_v29 = vmul.f32 %v4288_v45, %v3180_v49  ;;  %vm3218_vm15 = vweird.f32 %v4288_v45  ;;  %v4506_v49 = vld [vmem:[#allocation9 + $0x148] sm:$0xff]  ;;  %v4512_v43 = vld [vmem:[#allocation9 + $0xb8] sm:$0xff]  ;;  %v4513_v18 = vld [vmem:[#allocation9 + $0xa0] sm:$0xff] }
 0x8ed   :  { %v3195_v15 = vsel %vm3192_vm11, %v3194_v9, %v3190_v33  ;;  %vm3219_vm5 = vmor %vm3217_vm4, %vm3218_vm15  ;;  %v3239_v26 = vor.u32 1.1754944e-38, %v3238_v39  ;;  %vm3237_vm10 = vcmp.eq.f32.partialorder %v3236_v63, 8.507059e+37  ;;  %v4514_v9 = vld [vmem:[#allocation9 + $0x88] sm:$0xff]  ;;  %v4517_v33 = vld [vmem:[#allocation9 + $0x40] sm:$0xff] }
 0x8ee   :  { %v3200_v19 = vmul.f32 %v4286_v44, %v3199_v5  ;;  %v3244_v13 = vmul.f32 %v3242_v17, %v3195_v15  ;;  %v3214_v53 = vsub.f32 1.0, %v3213_v29  ;;  %v4516_v5 = vld [vmem:[#allocation9 + $0x58] sm:$0xff]  ;;  %v4518_v17 = vld [vmem:[#allocation9 + $0x28] sm:$0xff]  ;;  %v4519_v15 = vld [vmem:[#allocation9 + $0x10] sm:$0xff] }
 0x8f0   :  { %v3201_v32 = vadd.f32 %v4286_v44, %v3200_v19  ;;  %v3246_v23 = vadd.f32 %v3244_v13, %v3082_v37  ;;  %v3215_v42 = vmul.f32 %v4288_v45, %v3214_v53  ;;  %v3260_v37 = vld [vmem:[#allocation2 + $0x10] sm:$0xfc] }
 0x8f1   :  { %v4290_v16 = vpop.eup %4289 }
 0x8f2   :  { %v3205_v55 = vsel %vm3204_vm14, %v4286_v44, %v3201_v32  ;;  %4291 = vtanh.f32 %v3246_v23  ;;  %v3228_v57 = vmul.f32 %v4290_v16, %v6726_v47  ;;  %v3216_v8 = vadd.f32 %v4288_v45, %v3215_v42  ;;  %v4510_v44 = vld [vmem:[#allocation9 + $0xe8] sm:$0xff]  ;;  %v4511_v47 = vld [vmem:[#allocation9 + $0xd0] sm:$0xff] }
 0x8f3   :  { %v3210_v7 = vsel %vm3207_vm1, %v3209_v60, %v3205_v55  ;;  %vm3233_vm7 = vweird.f32 %v4290_v16  ;;  %v3262_v55 = vld [vmem:[#allocation2 + $0x28] sm:$0xf] }
 0x8f4   :  { %v3229_v31 = vsub.f32 1.0, %v3228_v57  ;;  %v3220_v22 = vsel %vm3219_vm5, %v4288_v45, %v3216_v8  ;;  %v3250_v48 = vsub.f32 1.0, %v3210_v7  ;;  %vm3234_vm9 = vmor %vm3232_vm8, %vm3233_vm7  ;;  %v3254_v40 = vmul.f32 %v3210_v7, %v6702_v27  ;;  %v4515_v45 = vld [vmem:[#allocation9 + $0x70] sm:$0xff] }
 0x8f5   :  { %v3225_v62 = vsel %vm3222_vm6, %v3224_v4, %v3220_v22 }
 0x8f6   :  { %v3230_v35 = vmul.f32 %v4290_v16, %v3229_v31  ;;  %v3245_v20 = vmul.f32 %v3243_v56, %v3225_v62 }
 0x8f8   :  { %v4292_v61 = vpop.eup %4291  ;;  %v3231_v2 = vadd.f32 %v4290_v16, %v3230_v35  ;;  %v3247_v36 = vadd.f32 %v3245_v20, %v3085_v41 }
 0x8f9   :  { %v3252_v25 = vmul.f32 %v4292_v61, %v3250_v48 }
 0x8fa   :  { %v3235_v1 = vsel %vm3234_vm9, %v4290_v16, %v3231_v2  ;;  %4293 = vtanh.f32 %v3247_v36 }
 0x8fb   :  { %v6736_v24 = vadd.f32 %v3254_v40, %v3252_v25  ;;  %v3240_v14 = vsel %vm3237_vm10, %v3239_v26, %v3235_v1 }
 0x8fc   :  { %v3251_v52 = vsub.f32 1.0, %v3240_v14  ;;  %v3255_v51 = vmul.f32 %v3240_v14, %v6698_v54 }
 0x8fd   :  { %3281 = vmatmul.f32.vlgmr.msra.gmra.mxu0 %v6736_v24  ;;  %3304 = vmatmul.f32.vlgmr.msra.gmra.mxu1 %v6736_v24  ;;  %v3449_v38 = vrot.slane %v6736_v24, 6 }
 0x8fe   :  { %3327 = vmatmul.f32.vlgmr.msra.gmra.mxu2 %v6736_v24  ;;  %3723 = vmatpush.msra.mxu0 %v4504_v6 }
 0x8ff   :  { %3993 = vmatpush.msra.mxu2 %v4504_v6 }
 0x900   :  { %3724 = vmatpush.msra.mxu0 %v4505_v34  ;;  %v4294_v27 = vpop.eup %4293 }
 0x901   :  { %3994 = vmatpush.msra.mxu2 %v4505_v34  ;;  %v3253_v30 = vmul.f32 %v4294_v27, %v3251_v52 }
 0x902   :  { %3725 = vmatpush.msra.mxu0 %v4506_v49 }
 0x903   :  { %3995 = vmatpush.msra.mxu2 %v4506_v49  ;;  %v3257_v10 = vadd.f32 %v3255_v51, %v3253_v30 }
 0x904   :  { %3726 = vmatpush.msra.mxu0 %v4507_v3 }
 0x905   :  { %3996 = vmatpush.msra.mxu2 %v4507_v3  ;;  %3258 = vst [vmem:[#allocation4 + $0x3] sm:$0x2] %v3257_v10  ;;  %3284 = vmatmul.f32.gmra.mxu0 %v3257_v10  ;;  %v3450_v11 = vrot.slane %v3257_v10, 6 }
 0x906   :  { %3307 = vmatmul.f32.gmra.mxu1 %v3257_v10  ;;  %3330 = vmatmul.f32.gmra.mxu2 %v3257_v10 }
 0x907   :  { %3727 = vmatpush.msra.mxu0 %v4508_v0  ;;  %v6746_v54 = vsel %vm674_vm0, %v3449_v38, %v3450_v11  ;;  %3997 = vmatpush.msra.mxu2 %v4508_v0 }
 0x909   :  { %3728 = vmatpush.msra.mxu0 %v4509_v21  ;;  %3998 = vmatpush.msra.mxu2 %v4509_v21 }
 0x90b   :  { %3729 = vmatpush.msra.mxu0 %v4510_v44  ;;  %3999 = vmatpush.msra.mxu2 %v4510_v44 }
 0x90d   :  { %3730 = vmatpush.msra.mxu0 %v4511_v47  ;;  %4000 = vmatpush.msra.mxu2 %v4511_v47 }
 0x90f   :  { %3731 = vmatpush.msra.mxu0 %v4512_v43  ;;  %4001 = vmatpush.msra.mxu2 %v4512_v43 }
 0x911   :  { %3732 = vmatpush.msra.mxu0 %v4513_v18  ;;  %4002 = vmatpush.msra.mxu2 %v4513_v18 }
 0x913   :  { %3733 = vmatpush.msra.mxu0 %v4514_v9  ;;  %4003 = vmatpush.msra.mxu2 %v4514_v9 }
 0x915   :  { %3734 = vmatpush.msra.mxu0 %v4515_v45  ;;  %4004 = vmatpush.msra.mxu2 %v4515_v45  ;;  %v3261_v45 = vld [vmem:[#allocation2 + $0x38] sm:$0xfc] }
 0x917   :  { %3735 = vmatpush.msra.mxu0 %v4516_v5  ;;  %4005 = vmatpush.msra.mxu2 %v4516_v5 }
 0x919   :  { %3736 = vmatpush.msra.mxu0 %v4517_v33  ;;  %4006 = vmatpush.msra.mxu2 %v4517_v33 }
 0x91b   :  { %3737 = vmatpush.msra.mxu0 %v4518_v17  ;;  %4007 = vmatpush.msra.mxu2 %v4518_v17 }
 0x91d   :  { %3738 = vmatpush.msra.mxu0 %v4519_v15  ;;  %4008 = vmatpush.msra.mxu2 %v4519_v15 }
 0x97a   :  { %v3282_v29 = vpop.f32.mrf.mxu0  ;;  %v3305_v19 = vpop.f32.mrf.mxu1 }
 0x97b   :  { %v3338_v58 = vrot.slane %v3282_v29, 6  ;;  %v3339_v13 = vrot.slane %v3305_v19, 6 }
 0x97d   :  { %v3348_v53 = vadd.f32 %v3338_v58, %v3259_v59  ;;  %v3349_v32 = vadd.f32 %v3339_v13, %v3260_v37 }
 0x97f   :  { %v3979_v23 = vmul.f32 -1.442695, %v3348_v53  ;;  %v3980_v50 = vmul.f32 -1.442695, %v3349_v32 }
 0x981   :  { %4295 = vpow2.f32 %v3979_v23  ;;  %v3328_v39 = vpop.f32.mrf.mxu2 }
 0x982   :  { %4297 = vpow2.f32 %v3980_v50  ;;  %v3285_v16 = vpop.f32.mrf.mxu0  ;;  %v3428_v52 = vadd.f32 %v6672_v28, %v3328_v39 }
 0x983   :  { %v3308_v42 = vpop.f32.mrf.mxu1  ;;  %v3340_v12 = vrot.slane %v3285_v16, 6 }
 0x984   :  { %v3342_v60 = vrot.slane %v3308_v42, 6  ;;  %v3432_v3 = vrot.slane %v3428_v52, 6  ;;  %v3460_v52 = vld [vmem:[#allocation2 + $0x90] sm:$0xf0] }
 0x985   :  { %v3341_v57 = vsel %vm674_vm0, %v3338_v58, %v3340_v12 }
 0x986   :  { %v3343_v8 = vsel %vm674_vm0, %v3339_v13, %v3342_v60  ;;  %v3350_v31 = vadd.f32 %v3341_v57, %v3262_v55 }
 0x987   :  { %v4296_v7 = vpop.eup %4295  ;;  %v3351_v4 = vadd.f32 %v3343_v8, %v3263_v46 }
 0x988   :  { %v4298_v22 = vpop.eup %4297  ;;  %v3364_v56 = vadd.f32 1.0, %v4296_v7  ;;  %v3981_v62 = vmul.f32 -1.442695, %v3350_v31  ;;  %v3264_v7 = vld [vmem:[#allocation2 + $0xa0] sm:$0xf] }
 0x989   :  { %v6750_v35 = vadd.f32 1.0, %v4298_v22  ;;  %v3982_v48 = vmul.f32 -1.442695, %v3351_v4  ;;  %v3331_v30 = vpop.f32.mrf.mxu2 }
 0x98a   :  { %4299 = vrcp.f32 %v3364_v56  ;;  %v3377_v40 = vand.u32 2147483647, %v3364_v56  ;;  %v3379_v1 = vand.u32 2147483648, %v3364_v56  ;;  %vm3373_vm12 = vweird.f32 %v3364_v56 }
 0x98b   :  { %4301 = vrcp.f32 %v6750_v35  ;;  %v3429_v0 = vadd.f32 %v6672_v28, %v3331_v30  ;;  %v3394_v59 = vand.u32 2147483648, %v6750_v35  ;;  %vm3388_vm5 = vweird.f32 %v6750_v35 }
 0x98c   :  { %4303 = vpow2.f32 %v3981_v62  ;;  %v3380_v27 = vor.u32 1.1754944e-38, %v3379_v1  ;;  %vm3378_vm14 = vcmp.eq.f32.partialorder %v3377_v40, 8.507059e+37  ;;  %v3392_v53 = vand.u32 2147483647, %v6750_v35 }
 0x98d   :  { %4305 = vpow2.f32 %v3982_v48  ;;  %v3433_v17 = vrot.slane %v3429_v0, 6  ;;  %v3395_v55 = vor.u32 1.1754944e-38, %v3394_v59 }
 0x98e   :  { %vm3393_vm10 = vcmp.eq.f32.partialorder %v3392_v53, 8.507059e+37 }
 0x98f   :  { %v3434_v16 = vsel %vm674_vm0, %v3432_v3, %v3433_v17 }
 0x990   :  { %v4300_v20 = vpop.eup %4299 }
 0x991   :  { %v6753_v61 = vpop.eup %4301  ;;  %v3369_v2 = vmul.f32 %v4300_v20, %v3364_v56  ;;  %vm3374_vm11 = vweird.f32 %v4300_v20 }
 0x992   :  { %v4304_v63 = vpop.eup %4303  ;;  %v3384_v14 = vmul.f32 %v6753_v61, %v6750_v35  ;;  %vm3375_vm13 = vmor %vm3373_vm12, %vm3374_vm11  ;;  %vm3389_vm1 = vweird.f32 %v6753_v61 }
 0x993   :  { %v4306_v41 = vpop.eup %4305  ;;  %v3370_v25 = vsub.f32 1.0, %v3369_v2  ;;  %v3366_v36 = vadd.f32 1.0, %v4304_v63  ;;  %vm6769_vm7 = vmor %vm3388_vm5, %vm3389_vm1 }
 0x994   :  { %v6755_v26 = vadd.f32 1.0, %v4306_v41  ;;  %v3385_v51 = vsub.f32 1.0, %v3384_v14 }
 0x995   :  { %v3371_v6 = vmul.f32 %v4300_v20, %v3370_v25  ;;  %4307 = vrcp.f32 %v3366_v36  ;;  %v3409_v33 = vand.u32 2147483648, %v3366_v36  ;;  %v3407_v19 = vand.u32 2147483647, %v3366_v36 }
 0x996   :  { %4309 = vrcp.f32 %v6755_v26  ;;  %v3386_v43 = vmul.f32 %v6753_v61, %v3385_v51  ;;  %vm3403_vm4 = vweird.f32 %v3366_v36  ;;  %v3424_v57 = vand.u32 2147483648, %v6755_v26 }
 0x997   :  { %v3372_v34 = vadd.f32 %v4300_v20, %v3371_v6  ;;  %v3410_v32 = vor.u32 1.1754944e-38, %v3409_v33  ;;  %vm3408_vm8 = vcmp.eq.f32.partialorder %v3407_v19, 8.507059e+37  ;;  %vm3418_vm11 = vweird.f32 %v6755_v26  ;;  %v3462_v33 = vld [vmem:[#allocation2 + $0x58] sm:$0x3f] }
 0x998   :  { %v3387_v58 = vadd.f32 %v6753_v61, %v3386_v43  ;;  %v3422_v8 = vand.u32 2147483647, %v6755_v26  ;;  %v3425_v35 = vor.u32 1.1754944e-38, %v3424_v57 }
 0x999   :  { %v3376_v49 = vsel %vm3375_vm13, %v4300_v20, %v3372_v34 }
 0x99a   :  { %v3381_v10 = vsel %vm3378_vm14, %v3380_v27, %v3376_v49  ;;  %v3391_v42 = vsel %vm6769_vm7, %v6753_v61, %v3387_v58  ;;  %vm3423_vm13 = vcmp.eq.f32.partialorder %v3422_v8, 8.507059e+37  ;;  %v3459_v49 = vld [vmem:[#allocation2 + $0x28] sm:$0xf0] }
 0x99b   :  { %v4308_v11 = vpop.eup %4307  ;;  %v3437_v44 = vmul.f32 %v3432_v3, %v3381_v10  ;;  %v3396_v31 = vsel %vm3393_vm10, %v3395_v55, %v3391_v42 }
 0x99c   :  { %v4310_v21 = vpop.eup %4309  ;;  %v3399_v47 = vmul.f32 %v4308_v11, %v3366_v36  ;;  %vm3404_vm15 = vweird.f32 %v4308_v11  ;;  %v3443_v62 = vsub.f32 1.0, %v3396_v31  ;;  %v3454_v61 = vmul.f32 %v3449_v38, %v3396_v31 }
 0x99d   :  { %v3414_v18 = vmul.f32 %v4310_v21, %v6755_v26  ;;  %v3439_v15 = vadd.f32 %v3437_v44, %v3261_v45  ;;  %vm3405_vm6 = vmor %vm3403_vm4, %vm3404_vm15  ;;  %vm3419_vm9 = vweird.f32 %v4310_v21 }
 0x99e   :  { %v3400_v9 = vsub.f32 1.0, %v3399_v47  ;;  %vm3420_vm12 = vmor %vm3418_vm11, %vm3419_vm9 }
 0x99f   :  { %v3415_v5 = vsub.f32 1.0, %v3414_v18  ;;  %4311 = vtanh.f32 %v3439_v15 }
 0x9a0   :  { %v3401_v29 = vmul.f32 %v4308_v11, %v3400_v9 }
 0x9a1   :  { %v3416_v13 = vmul.f32 %v4310_v21, %v3415_v5 }
 0x9a2   :  { %v3402_v37 = vadd.f32 %v4308_v11, %v3401_v29 }
 0x9a3   :  { %v3417_v60 = vadd.f32 %v4310_v21, %v3416_v13 }
 0x9a4   :  { %v3406_v50 = vsel %vm3405_vm6, %v4308_v11, %v3402_v37 }
 0x9a5   :  { %v3411_v12 = vsel %vm3408_vm8, %v3410_v32, %v3406_v50  ;;  %v3421_v22 = vsel %vm3420_vm12, %v4310_v21, %v3417_v60  ;;  %v4312_v56 = vpop.eup %4311  ;;  %v3463_v21 = vld [vmem:[#allocation2 + $0xd0] sm:$0x3f] }
 0x9a6   :  { %v3438_v46 = vmul.f32 %v3434_v16, %v3411_v12  ;;  %v3426_v48 = vsel %vm3423_vm13, %v3425_v35, %v3421_v22  ;;  %v3445_v39 = vmul.f32 %v4312_v56, %v3443_v62 }
 0x9a7   :  { %v3444_v20 = vsub.f32 1.0, %v3426_v48  ;;  %v3455_v41 = vmul.f32 %v6746_v54, %v3426_v48 }
 0x9a8   :  { %v3440_v4 = vadd.f32 %v3438_v46, %v3264_v7  ;;  %v6783_v25 = vadd.f32 %v3454_v61, %v3445_v39 }
 0x9aa   :  { %4313 = vtanh.f32 %v3440_v4  ;;  %v3467_v40 = vrot.slane %v6783_v25, 2  ;;  %v3654_v26 = vrot.slane %v6783_v25, 6 }
 0x9b0   :  { %v4314_v2 = vpop.eup %4313 }
 0x9b1   :  { %v3446_v63 = vmul.f32 %v4314_v2, %v3444_v20 }
 0x9b3   :  { %v3457_v36 = vadd.f32 %v3455_v41, %v3446_v63 }
 0x9b5   :  { %3458 = vst [vmem:[#allocation4 + $0x2] sm:$0x8] %v3457_v36  ;;  %v3468_v1 = vrot.slane %v3457_v36, 2  ;;  %v3655_v14 = vrot.slane %v3457_v36, 6 }
 0x9b7   :  { %v3469_v6 = vsel %vm805_vm2, %v3467_v40, %v3468_v1  ;;  %v6791_v24 = vsel %vm674_vm0, %v3654_v26, %v3655_v14  ;;  %v3461_v14 = vld [vmem:[#allocation2 + $0xa0] sm:$0xf0] }
 0x9b8   :  { %3488 = vmatmul.f32.vlgmr.msra.gmra.mxu3 %v3469_v6  ;;  %3511 = vmatmul.f32.vlgmr.msrb.gmra.mxu0 %v3469_v6 }
 0x9b9   :  { %3534 = vmatmul.f32.vlgmr.msrb.gmra.mxu1 %v3469_v6 }
 0x9c0   :  { %3491 = vmatmul.f32.gmra.mxu3 %v3468_v1  ;;  %3514 = vmatmul.f32.gmra.mxu0 %v3468_v1 }
 0x9c1   :  { %3537 = vmatmul.f32.gmra.mxu1 %v3468_v1 }
 0xa35   :  { %v3512_v38 = vpop.f32.mrf.mxu0 }
 0xa36   :  { %v3546_v54 = vrot.slane %v3512_v38, 4  ;;  %v3535_v37 = vpop.f32.mrf.mxu1 }
 0xa37   :  { %v3635_v57 = vadd.f32 %v6672_v28, %v3535_v37 }
 0xa38   :  { %v3556_v34 = vadd.f32 %v3546_v54, %v3460_v52 }
 0xa39   :  { %v3639_v35 = vrot.slane %v3635_v57, 4 }
 0xa3a   :  { %v3984_v27 = vmul.f32 -1.442695, %v3556_v34 }
 0xa3b   :  { %v3489_v30 = vpop.f32.mrf.mxu3 }
 0xa3c   :  { %v3545_v51 = vrot.slane %v3489_v30, 4  ;;  %4315 = vpow2.f32 %v3984_v27 }
 0xa3d   :  { %v3515_v10 = vpop.f32.mrf.mxu0 }
 0xa3e   :  { %v3555_v3 = vadd.f32 %v3545_v51, %v3459_v49  ;;  %v3549_v11 = vrot.slane %v3515_v10, 4  ;;  %v3538_v31 = vpop.f32.mrf.mxu1  ;;  %v3882_v49 = vld [vmem:[%s6955_s10 + $0x48] sm:$0xff] }
 0xa3f   :  { %v3636_v20 = vadd.f32 %v6672_v28, %v3538_v31 }
 0xa40   :  { %v3983_v0 = vmul.f32 -1.442695, %v3555_v3  ;;  %v3550_v44 = vsel %vm884_vm3, %v3546_v54, %v3549_v11 }
 0xa41   :  { %v3558_v47 = vadd.f32 %v3550_v44, %v3463_v21  ;;  %v3640_v40 = vrot.slane %v3636_v20, 4 }
 0xa42   :  { %4317 = vpow2.f32 %v3983_v0  ;;  %v4316_v43 = vpop.eup %4315 }
 0xa43   :  { %v3986_v18 = vmul.f32 -1.442695, %v3558_v47  ;;  %v3492_v9 = vpop.f32.mrf.mxu3  ;;  %v6794_v5 = vadd.f32 1.0, %v4316_v43  ;;  %v3641_v10 = vsel %vm884_vm3, %v3639_v35, %v3640_v40 }
 0xa44   :  { %v3547_v45 = vrot.slane %v3492_v9, 4  ;;  %v3464_v9 = vld [vmem:[#allocation2 + $0x98] sm:$0x3f] }
 0xa45   :  { %4319 = vpow2.f32 %v3986_v18  ;;  %v3601_v28 = vand.u32 2147483648, %v6794_v5  ;;  %vm3595_vm8 = vweird.f32 %v6794_v5  ;;  %v3599_v30 = vand.u32 2147483647, %v6794_v5 }
 0xa46   :  { %v3548_v17 = vsel %vm884_vm3, %v3545_v51, %v3547_v45  ;;  %4321 = vrcp.f32 %v6794_v5 }
 0xa47   :  { %v3557_v15 = vadd.f32 %v3548_v17, %v3462_v33  ;;  %v3602_v44 = vor.u32 1.1754944e-38, %v3601_v28 }
 0xa48   :  { %v4318_v29 = vpop.eup %4317 }
 0xa49   :  { %v3571_v19 = vadd.f32 1.0, %v4318_v29  ;;  %v3985_v58 = vmul.f32 -1.442695, %v3557_v15 }
 0xa4b   :  { %4323 = vrcp.f32 %v3571_v19  ;;  %v4320_v13 = vpop.eup %4319  ;;  %v3586_v60 = vand.u32 2147483648, %v3571_v19  ;;  %v3584_v8 = vand.u32 2147483647, %v3571_v19  ;;  %vm3580_vm15 = vweird.f32 %v3571_v19 }
 0xa4c   :  { %4325 = vpow2.f32 %v3985_v58  ;;  %v6798_v59 = vadd.f32 1.0, %v4320_v13  ;;  %v6800_v53 = vpop.eup %4321 }
 0xa4d   :  { %v3591_v12 = vmul.f32 %v6800_v53, %v6794_v5  ;;  %v3587_v22 = vor.u32 1.1754944e-38, %v3586_v60  ;;  %vm3585_vm4 = vcmp.eq.f32.partialorder %v3584_v8, 8.507059e+37  ;;  %vm3596_vm6 = vweird.f32 %v6800_v53  ;;  %v3664_v8 = vld [vmem:[#allocation2 + $0x58] sm:$0xc0] }
 0xa4e   :  { %4327 = vrcp.f32 %v6798_v59  ;;  %vm6818_vm10 = vmor %vm3595_vm8, %vm3596_vm6  ;;  %v3631_v47 = vand.u32 2147483648, %v6798_v59  ;;  %vm3625_vm13 = vweird.f32 %v6798_v59  ;;  %v3629_v18 = vand.u32 2147483647, %v6798_v59 }
 0xa4f   :  { %v3592_v4 = vsub.f32 1.0, %v3591_v12 }
 0xa50   :  { %v3632_v15 = vor.u32 1.1754944e-38, %v3631_v47  ;;  %v3879_v47 = vld [vmem:[%s6955_s10 + $0x30] sm:$0xff] }
 0xa51   :  { %v4324_v32 = vpop.eup %4323  ;;  %v3593_v63 = vmul.f32 %v6800_v53, %v3592_v4 }
 0xa52   :  { %v4326_v23 = vpop.eup %4325  ;;  %v3576_v50 = vmul.f32 %v4324_v32, %v3571_v19  ;;  %vm3581_vm14 = vweird.f32 %v4324_v32 }
 0xa53   :  { %v3573_v16 = vadd.f32 1.0, %v4326_v23  ;;  %vm3582_vm1 = vmor %vm3580_vm15, %vm3581_vm14  ;;  %v3594_v34 = vadd.f32 %v6800_v53, %v3593_v63  ;;  %vm3600_vm14 = vcmp.eq.f32.partialorder %v3599_v30, 8.507059e+37  ;;  %v3667_v63 = vld [vmem:[#allocation2 + $0xc8] sm:$0xff] }
 0xa54   :  { %v3577_v42 = vsub.f32 1.0, %v3576_v50  ;;  %v6805_v55 = vpop.eup %4327 }
 0xa55   :  { %4329 = vrcp.f32 %v3573_v16  ;;  %v3621_v56 = vmul.f32 %v6805_v55, %v6798_v59  ;;  %v3616_v1 = vand.u32 2147483648, %v3573_v16  ;;  %v3614_v38 = vand.u32 2147483647, %v3573_v16 }
 0xa56   :  { %v3578_v46 = vmul.f32 %v4324_v32, %v3577_v42  ;;  %vm3610_vm7 = vweird.f32 %v3573_v16  ;;  %vm3626_vm12 = vweird.f32 %v6805_v55  ;;  %v3598_v21 = vsel %vm6818_vm10, %v6800_v53, %v3594_v34 }
 0xa57   :  { %v3622_v41 = vsub.f32 1.0, %v3621_v56  ;;  %v3617_v51 = vor.u32 1.1754944e-38, %v3616_v1  ;;  %vm3615_vm11 = vcmp.eq.f32.partialorder %v3614_v38, 8.507059e+37  ;;  %vm3627_vm15 = vmor %vm3625_vm13, %vm3626_vm12  ;;  %v3603_v5 = vsel %vm3600_vm14, %v3602_v44, %v3598_v21  ;;  %v3885_v1 = vld [vmem:[%s6955_s10 + $0x60] sm:$0xff] }
 0xa58   :  { %v3579_v7 = vadd.f32 %v4324_v32, %v3578_v46  ;;  %v3650_v29 = vsub.f32 1.0, %v3603_v5  ;;  %v3659_v37 = vmul.f32 %v3654_v26, %v3603_v5 }
 0xa59   :  { %v3623_v52 = vmul.f32 %v6805_v55, %v3622_v41 }
 0xa5a   :  { %v3583_v62 = vsel %vm3582_vm1, %v4324_v32, %v3579_v7  ;;  %vm3630_vm1 = vcmp.eq.f32.partialorder %v3629_v18, 8.507059e+37  ;;  %v3665_v7 = vld [vmem:[#allocation2 + $0xd0] sm:$0xc0] }
 0xa5b   :  { %v4330_v48 = vpop.eup %4329  ;;  %v3588_v39 = vsel %vm3585_vm4, %v3587_v22, %v3583_v62  ;;  %v3624_v11 = vadd.f32 %v6805_v55, %v3623_v52  ;;  %v3887_v62 = vld [vmem:[%s6955_s10 + $0x70] sm:$0xff] }
 0xa5c   :  { %v3644_v61 = vmul.f32 %v3639_v35, %v3588_v39  ;;  %v3606_v2 = vmul.f32 %v4330_v48, %v3573_v16  ;;  %vm3611_vm5 = vweird.f32 %v4330_v48  ;;  %v3888_v35 = vld [vmem:[%s6955_s10 + $0x78] sm:$0xff] }
 0xa5d   :  { %vm3612_vm9 = vmor %vm3610_vm7, %vm3611_vm5  ;;  %v3628_v33 = vsel %vm3627_vm15, %v6805_v55, %v3624_v11  ;;  %3893 = vmatpush.msra.mxu1 %v3888_v35 }
 0xa5e   :  { %v3607_v36 = vsub.f32 1.0, %v3606_v2  ;;  %v3646_v54 = vadd.f32 %v3644_v61, %v3461_v14  ;;  %v3633_v19 = vsel %vm3630_vm1, %v3632_v15, %v3628_v33  ;;  %v3886_v2 = vld [vmem:[%s6955_s10 + $0x68] sm:$0xff] }
 0xa5f   :  { %v3651_v13 = vsub.f32 1.0, %v3633_v19  ;;  %v3660_v32 = vmul.f32 %v6791_v24, %v3633_v19  ;;  %3894 = vmatpush.msra.mxu1 %v3887_v62  ;;  %v3878_v33 = vld [vmem:[%s6955_s10 + $0x28] sm:$0xff] }
 0xa60   :  { %v3608_v6 = vmul.f32 %v4330_v48, %v3607_v36  ;;  %4331 = vtanh.f32 %v3646_v54  ;;  %v3668_v36 = vld [vmem:[#allocation2 + $0xe0] sm:$0xff]  ;;  %v3884_v54 = vld [vmem:[%s6955_s10 + $0x58] sm:$0xff] }
 0xa61   :  { %3895 = vmatpush.msra.mxu1 %v3886_v2 }
 0xa62   :  { %v3609_v27 = vadd.f32 %v4330_v48, %v3608_v6 }
 0xa63   :  { %3896 = vmatpush.msra.mxu1 %v3885_v1 }
 0xa64   :  { %v3613_v3 = vsel %vm3612_vm9, %v4330_v48, %v3609_v27 }
 0xa65   :  { %v3618_v0 = vsel %vm3615_vm11, %v3617_v51, %v3613_v3  ;;  %3897 = vmatpush.msra.mxu1 %v3884_v54  ;;  %v3883_v51 = vld [vmem:[%s6955_s10 + $0x50] sm:$0xff]  ;;  %v3880_v3 = vld [vmem:[%s6955_s10 + $0x38] sm:$0xff] }
 0xa66   :  { %v3645_v43 = vmul.f32 %v3641_v10, %v3618_v0  ;;  %v4332_v17 = vpop.eup %4331  ;;  %v3881_v10 = vld [vmem:[%s6955_s10 + $0x40] sm:$0xff] }
 0xa67   :  { %v3652_v58 = vmul.f32 %v4332_v17, %v3650_v29  ;;  %3898 = vmatpush.msra.mxu1 %v3883_v51  ;;  %v4520_v17 = vld [vmem:[%s6954_s9] ss:$0 sm:$0xff] }
 0xa68   :  { %v3647_v45 = vadd.f32 %v3645_v43, %v3464_v9 }
 0xa69   :  { %v6835_v23 = vadd.f32 %v3659_v37, %v3652_v58  ;;  %3899 = vmatpush.msra.mxu1 %v3882_v49 }
 0xa6a   :  { %4333 = vtanh.f32 %v3647_v45 }
 0xa6b   :  { %v3672_v16 = vrot.slane %v6835_v23, 4  ;;  %v3859_v12 = vrot.slane %v6835_v23, 6  ;;  %3900 = vmatpush.msra.mxu1 %v3881_v10 }
 0xa6d   :  { %3901 = vmatpush.msra.mxu1 %v3880_v3 }
 0xa6f   :  { %3902 = vmatpush.msra.mxu1 %v3879_v47 }
 0xa70   :  { %v4334_v53 = vpop.eup %4333 }
 0xa71   :  { %v3653_v59 = vmul.f32 %v4334_v53, %v3651_v13  ;;  %3903 = vmatpush.msra.mxu1 %v3878_v33  ;;  %v3877_v53 = vld [vmem:[%s6955_s10 + $0x20] sm:$0xff] }
 0xa73   :  { %v3662_v50 = vadd.f32 %v3660_v32, %v3653_v59  ;;  %3904 = vmatpush.msra.mxu1 %v3877_v53  ;;  %v3876_v32 = vld [vmem:[%s6955_s10 + $0x18] sm:$0xff] }
 0xa75   :  { %3663 = vst [vmem:[#allocation4 + $0x1] sm:$0x20] %v3662_v50  ;;  %v3673_v42 = vrot.slane %v3662_v50, 4  ;;  %v3860_v60 = vrot.slane %v3662_v50, 6  ;;  %3905 = vmatpush.msra.mxu1 %v3876_v32 }
 0xa77   :  { %v3674_v55 = vsel %vm884_vm3, %v3672_v16, %v3673_v42  ;;  %v6843_v25 = vsel %vm674_vm0, %v3859_v12, %v3860_v60  ;;  %v3875_v16 = vld [vmem:[%s6955_s10 + $0x10] sm:$0xff] }
 0xa78   :  { %3693 = vmatmul.f32.vlgmr.msrb.gmra.mxu2 %v3674_v55  ;;  %3716 = vmatmul.f32.vlgmr.msrb.gmra.mxu3 %v3674_v55 }
 0xa79   :  { %3739 = vmatmul.f32.vlgmr.msra.gmra.mxu0 %v3674_v55  ;;  %3906 = vmatpush.msra.mxu1 %v3875_v16 }
 0xa80   :  { %3696 = vmatmul.f32.gmra.mxu2 %v3673_v42  ;;  %3719 = vmatmul.f32.gmra.mxu3 %v3673_v42 }
 0xa88   :  { %3742 = vmatmul.f32.vlgmr.msra.gmra.mxu2 %v3673_v42 }
 0xaf6   :  { %v3740_v21 = vpop.f32.mrf.mxu0 }
 0xaf7   :  { %v6892_v15 = vadd.f32 %v4520_v17, %v3740_v21 }
 0xaf9   :  { %v3844_v60 = vrot.slane %v6892_v15, 2 }
 0xafb   :  { %v3694_v26 = vpop.f32.mrf.mxu2  ;;  %v3717_v24 = vpop.f32.mrf.mxu3 }
 0xafc   :  { %v3750_v57 = vrot.slane %v3694_v26, 2  ;;  %v3751_v46 = vrot.slane %v3717_v24, 2  ;;  %v3874_v26 = vld [vmem:[%s6955_s10 + $0x8] sm:$0xff] }
 0xafd   :  { %3907 = vmatpush.msra.mxu1 %v3874_v26 }
 0xafe   :  { %v3760_v31 = vadd.f32 %v3750_v57, %v3664_v8  ;;  %v3761_v4 = vadd.f32 %v3751_v46, %v3665_v7 }
 0xb00   :  { %v3987_v22 = vmul.f32 -1.442695, %v3760_v31  ;;  %v3988_v56 = vmul.f32 -1.442695, %v3761_v4  ;;  %v3873_v4 = vld [vmem:[%s6955_s10] sm:$0xff] }
 0xb01   :  { %3908 = vmatpush.msra.mxu1 %v3873_v4 }
 0xb02   :  { %4335 = vpow2.f32 %v3987_v22 }
 0xb03   :  { %4337 = vpow2.f32 %v3988_v56  ;;  %v3697_v48 = vpop.f32.mrf.mxu2  ;;  %v3720_v39 = vpop.f32.mrf.mxu3  ;;  %v3666_v56 = vld [vmem:[#allocation2 + $0x98] sm:$0xc0] }
 0xb04   :  { %v3752_v20 = vrot.slane %v3697_v48, 2  ;;  %v3754_v61 = vrot.slane %v3720_v39, 2 }
 0xb06   :  { %v3753_v41 = vsel %vm805_vm2, %v3750_v57, %v3752_v20  ;;  %v3755_v40 = vsel %vm805_vm2, %v3751_v46, %v3754_v61 }
 0xb07   :  { %v3762_v14 = vadd.f32 %v3753_v41, %v3667_v63  ;;  %v3763_v6 = vadd.f32 %v3755_v40, %v3668_v36 }
 0xb08   :  { %v4336_v38 = vpop.eup %4335 }
 0xb09   :  { %v4338_v52 = vpop.eup %4337  ;;  %v3776_v34 = vadd.f32 1.0, %v4336_v38  ;;  %v3989_v28 = vmul.f32 -1.442695, %v3762_v14  ;;  %v3990_v30 = vmul.f32 -1.442695, %v3763_v6 }
 0xb0a   :  { %v6862_v27 = vadd.f32 1.0, %v4338_v52 }
 0xb0b   :  { %4339 = vrcp.f32 %v3776_v34  ;;  %v3791_v29 = vand.u32 2147483648, %v3776_v34  ;;  %v3789_v37 = vand.u32 2147483647, %v3776_v34  ;;  %vm3785_vm3 = vweird.f32 %v3776_v34  ;;  %v3743_v46 = vpop.f32.mrf.mxu2 }
 0xb0c   :  { %4341 = vrcp.f32 %v6862_v27  ;;  %v3806_v31 = vand.u32 2147483648, %v6862_v27  ;;  %vm3800_vm7 = vweird.f32 %v6862_v27  ;;  %v3804_v35 = vand.u32 2147483647, %v6862_v27 }
 0xb0d   :  { %4343 = vpow2.f32 %v3989_v28  ;;  %v3792_v42 = vor.u32 1.1754944e-38, %v3791_v29  ;;  %vm3790_vm5 = vcmp.eq.f32.partialorder %v3789_v37, 8.507059e+37  ;;  %v3841_v20 = vadd.f32 %v4520_v17, %v3743_v46  ;;  %v4034_v29 = vld [vmem:[%s6956_s11] ss:$0 sm:$0xff] }
 0xb0e   :  { %4345 = vpow2.f32 %v3990_v30  ;;  %v3807_v63 = vor.u32 1.1754944e-38, %v3806_v31  ;;  %vm3805_vm9 = vcmp.eq.f32.partialorder %v3804_v35, 8.507059e+37 }
 0xb0f   :  { %v3845_v38 = vrot.slane %v3841_v20, 2 }
 0xb11   :  { %v4340_v11 = vpop.eup %4339  ;;  %v3846_v49 = vsel %vm805_vm2, %v3844_v60, %v3845_v38 }
 0xb12   :  { %v6877_v0 = vpop.eup %4341  ;;  %v3781_v44 = vmul.f32 %v4340_v11, %v3776_v34  ;;  %vm3786_vm0 = vweird.f32 %v4340_v11 }
 0xb13   :  { %v4344_v43 = vpop.eup %4343  ;;  %v3796_v18 = vmul.f32 %v6877_v0, %v6862_v27  ;;  %vm3787_vm4 = vmor %vm3785_vm3, %vm3786_vm0  ;;  %vm3801_vm6 = vweird.f32 %v6877_v0  ;;  %vm3913_vm0 = vcmask 15360  }
 0xb14   :  { %v4346_v9 = vpop.eup %4345  ;;  %v3782_v45 = vsub.f32 1.0, %v3781_v44  ;;  %v6884_v5 = vadd.f32 1.0, %v4344_v43  ;;  %vm3802_vm8 = vmor %vm3800_vm7, %vm3801_vm6  ;;  %v3669_v44 = vld [vmem:[#allocation2 + $0x20] sm:$0xff] }
 0xb15   :  { %v3797_v19 = vsub.f32 1.0, %v3796_v18  ;;  %v6894_v58 = vadd.f32 1.0, %v4346_v9 }
 0xb16   :  { %v3783_v13 = vmul.f32 %v4340_v11, %v3782_v45  ;;  %4347 = vrcp.f32 %v6884_v5  ;;  %v3821_v36 = vand.u32 2147483648, %v6884_v5  ;;  %v3819_v1 = vand.u32 2147483647, %v6884_v5 }
 0xb17   :  { %v3798_v59 = vmul.f32 %v6877_v0, %v3797_v19  ;;  %4349 = vrcp.f32 %v6894_v58  ;;  %vm3815_vm11 = vweird.f32 %v6884_v5  ;;  %vm3830_vm15 = vweird.f32 %v6894_v58 }
 0xb18   :  { %v3784_v50 = vadd.f32 %v4340_v11, %v3783_v13  ;;  %v3822_v52 = vor.u32 1.1754944e-38, %v3821_v36  ;;  %vm3820_vm13 = vcmp.eq.f32.partialorder %v3819_v1, 8.507059e+37  ;;  %v3834_v21 = vand.u32 2147483647, %v6894_v58 }
 0xb19   :  { %v3799_v57 = vadd.f32 %v6877_v0, %v3798_v59 }
 0xb1a   :  { %v3788_v55 = vsel %vm3787_vm4, %v4340_v11, %v3784_v50  ;;  %v3836_v11 = vand.u32 2147483648, %v6894_v58  ;;  %vm3835_vm2 = vcmp.eq.f32.partialorder %v3834_v21, 8.507059e+37 }
 0xb1b   :  { %v3793_v24 = vsel %vm3790_vm5, %v3792_v42, %v3788_v55  ;;  %v3803_v61 = vsel %vm3802_vm8, %v6877_v0, %v3799_v57 }
 0xb1c   :  { %v4348_v8 = vpop.eup %4347  ;;  %v3849_v7 = vmul.f32 %v3844_v60, %v3793_v24  ;;  %v3808_v14 = vsel %vm3805_vm9, %v3807_v63, %v3803_v61  ;;  %v3837_v9 = vor.u32 1.1754944e-38, %v3836_v11 }
 0xb1d   :  { %v4350_v22 = vpop.eup %4349  ;;  %v3811_v62 = vmul.f32 %v4348_v8, %v6884_v5  ;;  %vm3816_vm10 = vweird.f32 %v4348_v8  ;;  %v3855_v34 = vsub.f32 1.0, %v3808_v14  ;;  %v3864_v3 = vmul.f32 %v3859_v12, %v3808_v14 }
 0xb1e   :  { %v3851_v48 = vadd.f32 %v3849_v7, %v3666_v56  ;;  %v3826_v39 = vmul.f32 %v4350_v22, %v6894_v58  ;;  %vm3817_vm12 = vmor %vm3815_vm11, %vm3816_vm10  ;;  %vm3831_vm14 = vweird.f32 %v4350_v22 }
 0xb1f   :  { %v3812_v2 = vsub.f32 1.0, %v3811_v62  ;;  %vm3832_vm1 = vmor %vm3830_vm15, %vm3831_vm14 }
 0xb20   :  { %4351 = vtanh.f32 %v3851_v48  ;;  %v3827_v41 = vsub.f32 1.0, %v3826_v39 }
 0xb21   :  { %v3813_v40 = vmul.f32 %v4348_v8, %v3812_v2 }
 0xb22   :  { %v3828_v6 = vmul.f32 %v4350_v22, %v3827_v41 }
 0xb23   :  { %v3814_v54 = vadd.f32 %v4348_v8, %v3813_v40 }
 0xb24   :  { %v3829_v30 = vadd.f32 %v4350_v22, %v3828_v6 }
 0xb25   :  { %v3818_v28 = vsel %vm3817_vm12, %v4348_v8, %v3814_v54 }
 0xb26   :  { %v4352_v27 = vpop.eup %4351  ;;  %v3823_v51 = vsel %vm3820_vm13, %v3822_v52, %v3818_v28  ;;  %v3833_v18 = vsel %vm3832_vm1, %v4350_v22, %v3829_v30 }
 0xb27   :  { %v3857_v10 = vmul.f32 %v4352_v27, %v3855_v34  ;;  %v3850_v0 = vmul.f32 %v3846_v49, %v3823_v51  ;;  %v3838_v23 = vsel %vm3835_vm2, %v3837_v9, %v3833_v18 }
 0xb28   :  { %v3856_v12 = vsub.f32 1.0, %v3838_v23  ;;  %v3865_v33 = vmul.f32 %v6843_v25, %v3838_v23 }
 0xb29   :  { %v3866_v47 = vadd.f32 %v3864_v3, %v3857_v10  ;;  %v3852_v43 = vadd.f32 %v3850_v0, %v3669_v44 }
 0xb2b   :  { %3991 = vst [vmem:[%s6958_s13 + $0xa] sm:$0xc0] %v3866_v47  ;;  %4353 = vtanh.f32 %v3852_v43 }
 0xb31   :  { %v4354_v45 = vpop.eup %4353 }
 0xb32   :  { %v3858_v5 = vmul.f32 %v4354_v45, %v3856_v12 }
 0xb34   :  { %v3867_v17 = vadd.f32 %v3865_v33, %v3858_v5 }
 0xb36   :  { %3868 = vst [vmem:[#allocation4] sm:$0x80] %v3867_v17 }
 0xb37   :  { %3992 = vst [vmem:[%s6958_s13 + $0x12] sm:$0xff] %v3867_v17 }
 0xb3d   :  { %v3872_v15 = vld [vmem:[#allocation4] sm:$0xff] }
 0xb3e   :  { %3909 = vmatmul.f32.vlgmr.msra.gmra.mxu1 %v3872_v15 }
 0xbbb   :  { %v3910_v19 = vpop.f32.mrf.mxu1 }
 0xbbc   :  { %v3911_v58 = vadd.f32 %v4034_v29, %v3910_v19 }
 0xbbe   :  { %3914 = vst.msk [vmem:[%s6957_s12] sm:$0xff] %vm3913_vm0, %v3911_v58 }
 0xbbf   :  { %3923 = vsyncpa [#allocation6], 1 }
 0xbc0   :  { %3924 = vsyncpa [#allocation8], 1 }

</bundles_post_ra>
